<compile_context>
chip_gen: v7x
topology: tpu7x:2x2x1
jax: 0.10.0
libtpu: 0.0.40
codegen_flags: <defaults>
</compile_context>

<pallas_src>
import math

import numpy as np
import jax
import jax.numpy as jnp
from jax import lax
from jax.experimental import pallas as pl
from jax.experimental.pallas import tpu as pltpu

# ---------------- small synthetic config (mirrors ViT __init__ shape logic) ----
B = 8                 # batch
C_IN = 3              # in_channels
IMG = 16              # image_size
PATCH = 4             # patches (patch size)
DIM = 32              # dim
FF_DIM = 64           # ff_dim
NUM_HEADS = 4         # num_heads
NUM_LAYERS = 2        # num_layers
NUM_CLASSES = 10      # num_classes
GH = IMG // PATCH
NUM_PATCHES = GH * GH                 # 16
SEQ = NUM_PATCHES + 1                 # 17 (+ class token, classifier='token')
SEQ_PAD = 24                          # padded to a sublane multiple of 8
HEAD_DIM = DIM // NUM_HEADS           # 8
PATCH_DIM = C_IN * PATCH * PATCH      # 48
NC_PAD = 128                          # lane-dense logits slab width
BATCH_BLOCK = 8                       # batch elements fused into one token tile
ROWS = BATCH_BLOCK * SEQ_PAD          # 192 rows in every tokens-side matmul
WCAT = 3 * DIM + DIM + FF_DIM         # packed weight slab width: wqkv|wo|w1 = 192
LN_EPS = 1e-6
ATTN_SCALE = 1.0 / math.sqrt(HEAD_DIM)
NEG_INF = -1e30


# ---------------- helpers traced inside the kernel ----------------
def _layernorm(x, gamma, beta):
    mu = jnp.mean(x, axis=-1, keepdims=True)
    var = jnp.mean((x - mu) ** 2, axis=-1, keepdims=True)
    return (x - mu) * lax.rsqrt(var + LN_EPS) * gamma + beta


def _gelu_tanh(x):
    # matches pytorch_pretrained_vit's tanh-approx gelu
    return 0.5 * x * (1.0 + jnp.tanh(math.sqrt(2.0 / math.pi) * (x + 0.044715 * x * x * x)))


def _bf16(x):
    return x.astype(jnp.bfloat16)


# ---------------- the fused ViT kernel ----------------
def _vit_kernel(
    patches_ref,      # (ROWS, PATCH_DIM)  f32   patches laid out in token slots
    base_ref,         # (ROWS, DIM)        f32   cls+pos / conv-bias+pos / zeros
    pw_ref,           # (PATCH_DIM, DIM)   bf16  patch-embedding weight
    kmask_ref,        # (SEQ_PAD, SEQ_PAD) f32   additive key-padding mask
    wA_ref,           # (1, DIM, WCAT)     bf16  wqkv|wo|w1 for this layer
    w2_ref,           # (1, FF_DIM, DIM)   bf16
    vecs_ref,         # (1, 8, 128)        f32   packed per-layer vectors
    fcw_ref,          # (DIM, NC_PAD)      bf16
    headvec_ref,      # (8, NC_PAD)        f32   norm_g / norm_b / fc_b
    out_ref,          # (1, BATCH_BLOCK, NC_PAD) f32
    tok_ref,          # scratch (ROWS, DIM) f32  resident tokens (carried over layers)
):
    layer = pl.program_id(1)

    # ---- patch embedding + [cls] + positional embedding: one full-tile store ----
    @pl.when(layer == 0)
    def _embed():
        tok_ref[...] = (
            jnp.dot(_bf16(patches_ref[...]), pw_ref[...],
                    preferred_element_type=jnp.float32)
            + base_ref[...]
        )

    x = tok_ref[...]                                                   # (ROWS, DIM) f32

    # ---- unpack this layer's operands (3 DMAs per grid step) ----
    wA = wA_ref[0]                                                     # (DIM, WCAT) bf16
    wqkv = wA[:, 0:3 * DIM]
    wo = wA[:, 3 * DIM:4 * DIM]
    w1 = wA[:, 4 * DIM:4 * DIM + FF_DIM]
    w2 = w2_ref[0]                                                     # (FF, DIM) bf16
    vec = vecs_ref[0]                                                  # (8, 128) f32
    bqkv = vec[0:1, 0:3 * DIM]
    bo = vec[1:2, 0:DIM]
    ln1g = vec[2:3, 0:DIM]
    ln1b = vec[3:4, 0:DIM]
    ln2g = vec[4:5, 0:DIM]
    ln2b = vec[5:6, 0:DIM]
    b1 = vec[6:7, 0:FF_DIM]
    b2 = vec[7:8, 0:DIM]

    # ---- multi-head self-attention: batched einsum per head, per-head softmax ----
    h = _layernorm(x, ln1g, ln1b)
    qkv = jnp.dot(_bf16(h), wqkv, preferred_element_type=jnp.float32) + bqkv  # (ROWS, 3D)
    qkv_b = _bf16(qkv.reshape(BATCH_BLOCK, SEQ_PAD, 3 * DIM))                 # (BB, T, 3D)
    kmask = kmask_ref[...]                                                    # (T, T) 0/-inf

    ctx_heads = []
    for hh in range(NUM_HEADS):                         # static unroll over heads
        lo = hh * HEAD_DIM
        q_h = qkv_b[:, :, lo:lo + HEAD_DIM]                           # (BB, T, hd)
        k_h = qkv_b[:, :, DIM + lo:DIM + lo + HEAD_DIM]
        v_h = qkv_b[:, :, 2 * DIM + lo:2 * DIM + lo + HEAD_DIM]
        s = jnp.einsum("bqd,bkd->bqk", q_h, k_h,
                       preferred_element_type=jnp.float32)            # (BB, T, T)
        # padded key slots masked every layer; padded query rows are never read
        s = s * ATTN_SCALE + kmask[None, :, :]
        s = s - jnp.max(s, axis=-1, keepdims=True)
        p = jnp.exp(s)                                                 # padded keys -> 0
        denom = jnp.sum(p, axis=-1, keepdims=True)
        p = p * pl.reciprocal(denom, approx=True)
        ctx_heads.append(jnp.einsum("bqk,bkd->bqd", _bf16(p), v_h,
                                    preferred_element_type=jnp.float32))
    ctx = jnp.concatenate(ctx_heads, axis=-1).reshape(ROWS, DIM)       # heads merged
    x = x + jnp.dot(_bf16(ctx), wo, preferred_element_type=jnp.float32) + bo

    # ---- position-wise feed-forward ----
    h2 = _layernorm(x, ln2g, ln2b)
    h2 = jnp.dot(_bf16(h2), w1, preferred_element_type=jnp.float32) + b1
    h2 = _gelu_tanh(h2)
    h2 = jnp.dot(_bf16(h2), w2, preferred_element_type=jnp.float32) + b2
    x = x + h2

    tok_ref[...] = x

    # ---- classifier head on the CLS tokens (last layer step only) ----
    @pl.when(layer == NUM_LAYERS - 1)
    def _head():
        cls = jnp.concatenate(
            [x[bb * SEQ_PAD:bb * SEQ_PAD + 1, :] for bb in range(BATCH_BLOCK)],
            axis=0)                                                    # (BB, DIM)
        hv = headvec_ref[...]
        cls_n = _layernorm(cls, hv[0:1, 0:DIM], hv[1:2, 0:DIM])
        logits = (jnp.dot(_bf16(cls_n), fcw_ref[...],
                          preferred_element_type=jnp.float32) + hv[2:3, :])
        out_ref[0] = logits                                            # (BB, NC_PAD)


# ---------------- wrapper: one fused pallas_call ----------------
def vit_forward(x, params):
    """x: (B, C, H, W) float32 (NCHW, same as PyTorch)."""
    b = x.shape[0]
    nb = pl.cdiv(b, BATCH_BLOCK)
    b_pad = nb * BATCH_BLOCK
    if b_pad != b:
        x = jnp.pad(x, ((0, b_pad - b), (0, 0), (0, 0), (0, 0)))

    # im2col (plain-JAX glue), channel-major flattening matching Conv2d (D, C, ph, pw)
    patches = (
        x.reshape(b_pad, C_IN, GH, PATCH, GH, PATCH)
        .transpose(0, 2, 4, 1, 3, 5)
        .reshape(b_pad, NUM_PATCHES, PATCH_DIM)
    )
    # token-slot layout per batch element: [cls slot (zeros)] [patches] [pad zeros]
    patches_padded = jnp.pad(patches, ((0, 0), (1, SEQ_PAD - SEQ), (0, 0)))
    patches_padded = patches_padded.reshape(b_pad * SEQ_PAD, PATCH_DIM)

    # additive base: row0 -> cls + pos[0]; patch rows -> conv bias + pos; pad rows -> 0
    base_one = jnp.concatenate(
        [params["class_token"] + params["pos_emb"][0:1],
         params["pos_emb"][1:SEQ] + params["patch_b"],
         jnp.zeros((SEQ_PAD - SEQ, DIM), jnp.float32)], axis=0)         # (SEQ_PAD, DIM)
    base = jnp.tile(base_one, (BATCH_BLOCK, 1))                         # (ROWS, DIM)

    # additive key-padding mask (0 for real keys, -inf for padded key slots)
    kcol = np.arange(SEQ_PAD)
    kmask = jnp.asarray(
        np.tile(np.where(kcol < SEQ, 0.0, NEG_INF).astype(np.float32)[None, :],
                (SEQ_PAD, 1)))                                          # (SEQ_PAD, SEQ_PAD)

    # per-layer packed operands (3 DMAs per grid step instead of 12)
    wA = jnp.concatenate([params["wqkv"], params["wo"], params["w1"]], axis=-1)  # (L,D,192)

    def lanepad(v):
        return jnp.pad(v, ((0, 0), (0, 0), (0, 128 - v.shape[-1])))

    vecs = jnp.concatenate(
        [lanepad(params["bqkv"]), lanepad(params["bo"]),
         lanepad(params["ln1g"]), lanepad(params["ln1b"]),
         lanepad(params["ln2g"]), lanepad(params["ln2b"]),
         lanepad(params["b1"]), lanepad(params["b2"])], axis=1)          # (L, 8, 128)

    headvec = jnp.concatenate(
        [jnp.pad(params["norm_g"], ((0, 0), (0, NC_PAD - DIM))),
         jnp.pad(params["norm_b"], ((0, 0), (0, NC_PAD - DIM))),
         params["fc_b"],
         jnp.zeros((5, NC_PAD), jnp.float32)], axis=0)                   # (8, NC_PAD)

    grid_spec = pltpu.PrefetchScalarGridSpec(
        num_scalar_prefetch=0,
        grid=(nb, NUM_LAYERS),
        in_specs=[
            pl.BlockSpec((ROWS, PATCH_DIM), lambda bb, ll: (bb, 0)),      # patches
            pl.BlockSpec((ROWS, DIM), lambda bb, ll: (0, 0)),             # additive base
            pl.BlockSpec((PATCH_DIM, DIM), lambda bb, ll: (0, 0)),        # patch weight
            pl.BlockSpec((SEQ_PAD, SEQ_PAD), lambda bb, ll: (0, 0)),      # key mask
            pl.BlockSpec((1, DIM, WCAT), lambda bb, ll: (ll, 0, 0)),      # wqkv|wo|w1
            pl.BlockSpec((1, FF_DIM, DIM), lambda bb, ll: (ll, 0, 0)),    # w2
            pl.BlockSpec((1, 8, 128), lambda bb, ll: (ll, 0, 0)),         # packed vectors
            pl.BlockSpec((DIM, NC_PAD), lambda bb, ll: (0, 0)),           # fc weight
            pl.BlockSpec((8, NC_PAD), lambda bb, ll: (0, 0)),             # norm/fc bias
        ],
        out_specs=pl.BlockSpec((1, BATCH_BLOCK, NC_PAD), lambda bb, ll: (bb, 0, 0)),
        scratch_shapes=[pltpu.VMEM((ROWS, DIM), jnp.float32)],            # resident tokens
    )

    out = pl.pallas_call(
        _vit_kernel,
        out_shape=jax.ShapeDtypeStruct((nb, BATCH_BLOCK, NC_PAD), jnp.float32),
        grid_spec=grid_spec,
        compiler_params=pltpu.CompilerParams(
            dimension_semantics=("parallel", "arbitrary"),
            vmem_limit_bytes=32 * 1024 * 1024,
        ),
    )(patches_padded, base, params["patch_w"], kmask,
      wA, params["w2"], vecs, params["fc_w"], headvec)

    return out.reshape(b_pad, NC_PAD)[:b, :NUM_CLASSES]


# ---------------- pure-JAX reference (per-head formulation) for validation ----
def _vit_reference(x, params):
    b = x.shape[0]
    patches = (
        x.reshape(b, C_IN, GH, PATCH, GH, PATCH)
        .transpose(0, 2, 4, 1, 3, 5)
        .reshape(b * NUM_PATCHES, PATCH_DIM)
    )

    def mm(a, w):
        return jnp.dot(_bf16(a), w.astype(jnp.bfloat16), preferred_element_type=jnp.float32)

    emb = mm(patches, params["patch_w"]) + params["patch_b"]
    toks = emb.reshape(b, NUM_PATCHES, DIM)
    cls = jnp.broadcast_to(params["class_token"].reshape(1, 1, DIM), (b, 1, DIM))
    toks = jnp.concatenate([cls, toks], axis=1) + params["pos_emb"][None, :, :]

    for l in range(NUM_LAYERS):
        h = _layernorm(toks, params["ln1g"][l], params["ln1b"][l])
        qkv = mm(h.reshape(b * SEQ, DIM), params["wqkv"][l]) + params["bqkv"][l]
        qkv = qkv.reshape(b, SEQ, 3 * DIM)
        q, k, v = qkv[..., :DIM], qkv[..., DIM:2 * DIM], qkv[..., 2 * DIM:]
        ctx = []
        for hh in range(NUM_HEADS):
            lo, hi = hh * HEAD_DIM, (hh + 1) * HEAD_DIM
            s = jnp.einsum("btd,bsd->bts", _bf16(q[..., lo:hi]), _bf16(k[..., lo:hi]),
                           preferred_element_type=jnp.float32) * ATTN_SCALE
            p = jax.nn.softmax(s, axis=-1)
            ctx.append(jnp.einsum("bts,bsd->btd", _bf16(p), _bf16(v[..., lo:hi]),
                                  preferred_element_type=jnp.float32))
        ctx = jnp.concatenate(ctx, axis=-1)
        attn = mm(ctx.reshape(b * SEQ, DIM), params["wo"][l]).reshape(b, SEQ, DIM) + params["bo"][l]
        toks = toks + attn
        h2 = _layernorm(toks, params["ln2g"][l], params["ln2b"][l])
        h2 = mm(h2.reshape(b * SEQ, DIM), params["w1"][l]) + params["b1"][l]
        h2 = _gelu_tanh(h2)
        h2 = mm(h2, params["w2"][l]).reshape(b, SEQ, DIM) + params["b2"][l]
        toks = toks + h2

    cls_tok = _layernorm(toks[:, 0, :], params["norm_g"], params["norm_b"])
    logits = mm(cls_tok, params["fc_w"]) + params["fc_b"]
    return logits[:, :NUM_CLASSES]


# ---------------- deterministic parameter init ----------------
def init_params(key):
    keys = iter(jax.random.split(key, 32))
    bf, f32 = jnp.bfloat16, jnp.float32
    L = NUM_LAYERS

    def nrm(shape, std=0.02, dtype=f32):
        return (std * jax.random.normal(next(keys), shape)).astype(dtype)

    return {
        "patch_w": nrm((PATCH_DIM, DIM), dtype=bf),     # Conv2d weight, (C,ph,pw)->in
        "patch_b": nrm((1, DIM)),
        "class_token": nrm((1, DIM)),
        "pos_emb": nrm((SEQ, DIM)),
        "wqkv": nrm((L, DIM, 3 * DIM), dtype=bf),       # fused Q|K|V projection
        "bqkv": nrm((L, 1, 3 * DIM)),
        "wo": nrm((L, DIM, DIM), dtype=bf),
        "bo": nrm((L, 1, DIM)),
        "ln1g": 1.0 + nrm((L, 1, DIM), std=0.05),
        "ln1b": nrm((L, 1, DIM), std=0.02),
        "ln2g": 1.0 + nrm((L, 1, DIM), std=0.05),
        "ln2b": nrm((L, 1, DIM), std=0.02),
        "w1": nrm((L, DIM, FF_DIM), dtype=bf),
        "b1": nrm((L, 1, FF_DIM)),
        "w2": nrm((L, FF_DIM, DIM), dtype=bf),
        "b2": nrm((L, 1, DIM)),
        "norm_g": 1.0 + nrm((1, DIM), std=0.05),
        "norm_b": nrm((1, DIM), std=0.02),
        "fc_w": jnp.pad(nrm((DIM, NUM_CLASSES), std=0.1),
                        ((0, 0), (0, NC_PAD - NUM_CLASSES))).astype(bf),
        "fc_b": jnp.pad(nrm((1, NUM_CLASSES), std=0.1),
                        ((0, 0), (0, NC_PAD - NUM_CLASSES))),
    }


if __name__ == "__main__":
    root = jax.random.PRNGKey(0)
    pkey, xkey = jax.random.split(root)
    params = init_params(pkey)
    x = jax.random.normal(xkey, (B, C_IN, IMG, IMG), dtype=jnp.float32)

    out = jax.block_until_ready(jax.jit(vit_forward)(x, params))

    assert out.shape == (B, NUM_CLASSES), out.shape
    assert bool(jnp.all(jnp.isfinite(out)))

    ref = jax.block_until_ready(_vit_reference(x, params))
    np.testing.assert_allclose(np.asarray(out), np.asarray(ref), rtol=5e-2, atol=2e-2)

    print("KERNEL_OK")
</pallas_src>

<mosaic_0001>
module attributes {stable_mosaic.version = 11 : i64} {
  func.func @_vit_kernel(%arg0: i32, %arg1: i32, %arg2: memref<192x48xf32, #tpu.memory_space<vmem>>, %arg3: memref<192x32xf32, #tpu.memory_space<vmem>>, %arg4: memref<48x32xbf16, #tpu.memory_space<vmem>>, %arg5: memref<24x24xf32, #tpu.memory_space<vmem>>, %arg6: memref<1x32x192xbf16, #tpu.memory_space<vmem>>, %arg7: memref<1x64x32xbf16, #tpu.memory_space<vmem>>, %arg8: memref<1x8x128xf32, #tpu.memory_space<vmem>>, %arg9: memref<32x128xbf16, #tpu.memory_space<vmem>>, %arg10: memref<8x128xf32, #tpu.memory_space<vmem>>, %arg11: memref<1x8x128xf32, #tpu.memory_space<vmem>>, %arg12: memref<192x32xf32, #tpu.memory_space<vmem>>) attributes {dimension_semantics = [#tpu.dimension_semantics<parallel>, #tpu.dimension_semantics<arbitrary>], iteration_bounds = array<i64: 1, 2>, scalar_prefetch = 0 : i64, scratch_operands = 1 : i64, tpu.core_type = #tpu.core_type<tc>, window_params = [{transform_indices = @transform_0, window_bounds = array<i64: 192, 48>}, {pipeline_mode = #tpu.pipeline_mode<synchronous>, transform_indices = @transform_1, window_bounds = array<i64: 192, 32>}, {pipeline_mode = #tpu.pipeline_mode<synchronous>, transform_indices = @transform_2, window_bounds = array<i64: 48, 32>}, {pipeline_mode = #tpu.pipeline_mode<synchronous>, transform_indices = @transform_3, window_bounds = array<i64: 24, 24>}, {transform_indices = @transform_4, window_bounds = array<i64: 1, 32, 192>}, {transform_indices = @transform_5, window_bounds = array<i64: 1, 64, 32>}, {transform_indices = @transform_6, window_bounds = array<i64: 1, 8, 128>}, {pipeline_mode = #tpu.pipeline_mode<synchronous>, transform_indices = @transform_7, window_bounds = array<i64: 32, 128>}, {pipeline_mode = #tpu.pipeline_mode<synchronous>, transform_indices = @transform_8, window_bounds = array<i64: 8, 128>}, {transform_indices = @transform_9, window_bounds = array<i64: 1, 8, 128>}]} {
    %c0_i32 = arith.constant 0 : i32
    %0 = arith.cmpi eq, %arg1, %c0_i32 : i32
    %1 = arith.extui %0 : i1 to i32
    %c0_i32_0 = arith.constant 0 : i32
    %2 = arith.cmpi ne, %1, %c0_i32_0 : i32
    scf.if %2 {
      %c0_53 = arith.constant 0 : index
      %c0_54 = arith.constant 0 : index
      %189 = vector.load %arg2[%c0_53, %c0_54] : memref<192x48xf32, #tpu.memory_space<vmem>>, vector<192x48xf32>
      %190 = arith.truncf %189 : vector<192x48xf32> to vector<192x48xbf16>
      %c0_55 = arith.constant 0 : index
      %c0_56 = arith.constant 0 : index
      %191 = vector.load %arg4[%c0_55, %c0_56] : memref<48x32xbf16, #tpu.memory_space<vmem>>, vector<48x32xbf16>
      %cst_57 = arith.constant dense<0.000000e+00> : vector<192x32xf32>
      %192 = tpu.matmul %190, %191, %cst_57 {dimension_numbers = #tpu.dot_dimension_numbers<[1], [0], [0], [1], [0, 0, 1, 1], [], []>} : vector<192x48xbf16>, vector<48x32xbf16>, vector<192x32xf32> -> vector<192x32xf32>
      %c0_58 = arith.constant 0 : index
      %c0_59 = arith.constant 0 : index
      %193 = vector.load %arg3[%c0_58, %c0_59] : memref<192x32xf32, #tpu.memory_space<vmem>>, vector<192x32xf32>
      %194 = arith.addf %192, %193 : vector<192x32xf32>
      %c0_60 = arith.constant 0 : index
      %c0_61 = arith.constant 0 : index
      %195 = vector.load %arg12[%c0_60, %c0_61] : memref<192x32xf32, #tpu.memory_space<vmem>>, vector<192x32xf32>
      tpu.vector_store %arg12[%c0_60, %c0_61], %194 {strides = array<i32>} : memref<192x32xf32, #tpu.memory_space<vmem>>, vector<192x32xf32>,
    } else {
    }
    %c0 = arith.constant 0 : index
    %c0_1 = arith.constant 0 : index
    %3 = vector.load %arg12[%c0, %c0_1] : memref<192x32xf32, #tpu.memory_space<vmem>>, vector<192x32xf32>
    %c0_2 = arith.constant 0 : index
    %c0_3 = arith.constant 0 : index
    %c0_4 = arith.constant 0 : index
    %4 = vector.load %arg6[%c0_2, %c0_3, %c0_4] : memref<1x32x192xbf16, #tpu.memory_space<vmem>>, vector<1x32x192xbf16>
    %5 = vector.shape_cast %4 : vector<1x32x192xbf16> to vector<32x192xbf16>
    %6 = vector.extract_strided_slice %5 {offsets = [0, 0], sizes = [32, 96], strides = [1, 1]} : vector<32x192xbf16> to vector<32x96xbf16>
    %7 = vector.extract_strided_slice %5 {offsets = [0, 96], sizes = [32, 32], strides = [1, 1]} : vector<32x192xbf16> to vector<32x32xbf16>
    %8 = vector.extract_strided_slice %5 {offsets = [0, 128], sizes = [32, 64], strides = [1, 1]} : vector<32x192xbf16> to vector<32x64xbf16>
    %c0_5 = arith.constant 0 : index
    %c0_6 = arith.constant 0 : index
    %c0_7 = arith.constant 0 : index
    %9 = vector.load %arg7[%c0_5, %c0_6, %c0_7] : memref<1x64x32xbf16, #tpu.memory_space<vmem>>, vector<1x64x32xbf16>
    %10 = vector.shape_cast %9 : vector<1x64x32xbf16> to vector<64x32xbf16>
    %c0_8 = arith.constant 0 : index
    %c0_9 = arith.constant 0 : index
    %c0_10 = arith.constant 0 : index
    %11 = vector.load %arg8[%c0_8, %c0_9, %c0_10] : memref<1x8x128xf32, #tpu.memory_space<vmem>>, vector<1x8x128xf32>
    %12 = vector.shape_cast %11 : vector<1x8x128xf32> to vector<8x128xf32>
    %13 = vector.extract_strided_slice %12 {offsets = [0, 0], sizes = [1, 96], strides = [1, 1]} : vector<8x128xf32> to vector<1x96xf32>
    %14 = vector.extract_strided_slice %12 {offsets = [1, 0], sizes = [1, 32], strides = [1, 1]} : vector<8x128xf32> to vector<1x32xf32>
    %15 = vector.extract_strided_slice %12 {offsets = [2, 0], sizes = [1, 32], strides = [1, 1]} : vector<8x128xf32> to vector<1x32xf32>
    %16 = vector.extract_strided_slice %12 {offsets = [3, 0], sizes = [1, 32], strides = [1, 1]} : vector<8x128xf32> to vector<1x32xf32>
    %17 = vector.extract_strided_slice %12 {offsets = [4, 0], sizes = [1, 32], strides = [1, 1]} : vector<8x128xf32> to vector<1x32xf32>
    %18 = vector.extract_strided_slice %12 {offsets = [5, 0], sizes = [1, 32], strides = [1, 1]} : vector<8x128xf32> to vector<1x32xf32>
    %19 = vector.extract_strided_slice %12 {offsets = [6, 0], sizes = [1, 64], strides = [1, 1]} : vector<8x128xf32> to vector<1x64xf32>
    %20 = vector.extract_strided_slice %12 {offsets = [7, 0], sizes = [1, 32], strides = [1, 1]} : vector<8x128xf32> to vector<1x32xf32>
    %cst = arith.constant dense<0.000000e+00> : vector<192xf32>
    %21 = vector.multi_reduction <add>, %3, %cst [1] : vector<192x32xf32> to vector<192xf32>
    %22 = vector.shape_cast %21 : vector<192xf32> to vector<192x1xf32>
    %cst_11 = arith.constant 3.200000e+01 : f32
    %23 = vector.broadcast %cst_11 : f32 to vector<192x1xf32>
    %24 = arith.divf %22, %23 : vector<192x1xf32>
    %25 = vector.broadcast %24 : vector<192x1xf32> to vector<192x32xf32>
    %26 = arith.subf %3, %25 : vector<192x32xf32>
    %27 = arith.mulf %26, %26 : vector<192x32xf32>
    %cst_12 = arith.constant dense<0.000000e+00> : vector<192xf32>
    %28 = vector.multi_reduction <add>, %27, %cst_12 [1] : vector<192x32xf32> to vector<192xf32>
    %29 = vector.shape_cast %28 : vector<192xf32> to vector<192x1xf32>
    %cst_13 = arith.constant 3.200000e+01 : f32
    %30 = vector.broadcast %cst_13 : f32 to vector<192x1xf32>
    %31 = arith.divf %29, %30 : vector<192x1xf32>
    %32 = vector.broadcast %24 : vector<192x1xf32> to vector<192x32xf32>
    %33 = arith.subf %3, %32 : vector<192x32xf32>
    %cst_14 = arith.constant 9.99999997E-7 : f32
    %34 = vector.broadcast %cst_14 : f32 to vector<192x1xf32>
    %35 = arith.addf %31, %34 : vector<192x1xf32>
    %36 = math.rsqrt %35 : vector<192x1xf32>
    %37 = vector.broadcast %36 : vector<192x1xf32> to vector<192x32xf32>
    %38 = arith.mulf %33, %37 : vector<192x32xf32>
    %39 = vector.broadcast %15 : vector<1x32xf32> to vector<192x32xf32>
    %40 = arith.mulf %38, %39 : vector<192x32xf32>
    %41 = vector.broadcast %16 : vector<1x32xf32> to vector<192x32xf32>
    %42 = arith.addf %40, %41 : vector<192x32xf32>
    %43 = arith.truncf %42 : vector<192x32xf32> to vector<192x32xbf16>
    %cst_15 = arith.constant dense<0.000000e+00> : vector<192x96xf32>
    %44 = tpu.matmul %43, %6, %cst_15 {dimension_numbers = #tpu.dot_dimension_numbers<[1], [0], [0], [1], [0, 0, 1, 1], [], []>} : vector<192x32xbf16>, vector<32x96xbf16>, vector<192x96xf32> -> vector<192x96xf32>
    %45 = vector.broadcast %13 : vector<1x96xf32> to vector<192x96xf32>
    %46 = arith.addf %44, %45 : vector<192x96xf32>
    %47 = vector.shape_cast %46 : vector<192x96xf32> to vector<8x24x96xf32>
    %48 = arith.truncf %47 : vector<8x24x96xf32> to vector<8x24x96xbf16>
    %c0_16 = arith.constant 0 : index
    %c0_17 = arith.constant 0 : index
    %49 = vector.load %arg5[%c0_16, %c0_17] : memref<24x24xf32, #tpu.memory_space<vmem>>, vector<24x24xf32>
    %50 = vector.extract_strided_slice %48 {offsets = [0, 0, 0], sizes = [8, 24, 8], strides = [1, 1, 1]} : vector<8x24x96xbf16> to vector<8x24x8xbf16>
    %51 = vector.extract_strided_slice %48 {offsets = [0, 0, 32], sizes = [8, 24, 8], strides = [1, 1, 1]} : vector<8x24x96xbf16> to vector<8x24x8xbf16>
    %52 = vector.extract_strided_slice %48 {offsets = [0, 0, 64], sizes = [8, 24, 8], strides = [1, 1, 1]} : vector<8x24x96xbf16> to vector<8x24x8xbf16>
    "tpu.trace_start"() <{level = 10 : i32, message = "bqd,bkd->bqk"}> : () -> ()
    %cst_18 = arith.constant dense<0.000000e+00> : vector<8x24x24xf32>
    %53 = tpu.matmul %50, %51, %cst_18 {dimension_numbers = #tpu.dot_dimension_numbers<[2], [2], [1], [1], [0, 0, 0, 1, 1, 1], [0], [0]>} : vector<8x24x8xbf16>, vector<8x24x8xbf16>, vector<8x24x24xf32> -> vector<8x24x24xf32>
    "tpu.trace_stop"() : () -> ()
    %cst_19 = arith.constant 0.353553385 : f32
    %54 = vector.broadcast %cst_19 : f32 to vector<8x24x24xf32>
    %55 = arith.mulf %53, %54 : vector<8x24x24xf32>
    %56 = vector.shape_cast %49 : vector<24x24xf32> to vector<1x24x24xf32>
    %57 = vector.broadcast %56 : vector<1x24x24xf32> to vector<8x24x24xf32>
    %58 = arith.addf %55, %57 : vector<8x24x24xf32>
    %cst_20 = arith.constant dense<0xFF800000> : vector<8x24xf32>
    %59 = vector.multi_reduction <maximumf>, %58, %cst_20 [2] : vector<8x24x24xf32> to vector<8x24xf32>
    %60 = vector.shape_cast %59 : vector<8x24xf32> to vector<8x24x1xf32>
    %61 = vector.broadcast %60 : vector<8x24x1xf32> to vector<8x24x24xf32>
    %62 = arith.subf %58, %61 : vector<8x24x24xf32>
    %63 = math.exp %62 : vector<8x24x24xf32>
    %cst_21 = arith.constant dense<0.000000e+00> : vector<8x24xf32>
    %64 = vector.multi_reduction <add>, %63, %cst_21 [2] : vector<8x24x24xf32> to vector<8x24xf32>
    %65 = vector.shape_cast %64 : vector<8x24xf32> to vector<8x24x1xf32>
    %66 = tpu.reciprocal %65 {approx = true} : vector<8x24x1xf32> -> vector<8x24x1xf32>
    %67 = vector.broadcast %66 : vector<8x24x1xf32> to vector<8x24x24xf32>
    %68 = arith.mulf %63, %67 : vector<8x24x24xf32>
    %69 = arith.truncf %68 : vector<8x24x24xf32> to vector<8x24x24xbf16>
    "tpu.trace_start"() <{level = 10 : i32, message = "bqk,bkd->bqd"}> : () -> ()
    %cst_22 = arith.constant dense<0.000000e+00> : vector<8x24x8xf32>
    %70 = tpu.matmul %69, %52, %cst_22 {dimension_numbers = #tpu.dot_dimension_numbers<[2], [1], [1], [2], [0, 0, 0, 1, 1, 2], [0], [0]>} : vector<8x24x24xbf16>, vector<8x24x8xbf16>, vector<8x24x8xf32> -> vector<8x24x8xf32>
    "tpu.trace_stop"() : () -> ()
    %71 = vector.extract_strided_slice %48 {offsets = [0, 0, 8], sizes = [8, 24, 8], strides = [1, 1, 1]} : vector<8x24x96xbf16> to vector<8x24x8xbf16>
    %72 = vector.extract_strided_slice %48 {offsets = [0, 0, 40], sizes = [8, 24, 8], strides = [1, 1, 1]} : vector<8x24x96xbf16> to vector<8x24x8xbf16>
    %73 = vector.extract_strided_slice %48 {offsets = [0, 0, 72], sizes = [8, 24, 8], strides = [1, 1, 1]} : vector<8x24x96xbf16> to vector<8x24x8xbf16>
    "tpu.trace_start"() <{level = 10 : i32, message = "bqd,bkd->bqk"}> : () -> ()
    %cst_23 = arith.constant dense<0.000000e+00> : vector<8x24x24xf32>
    %74 = tpu.matmul %71, %72, %cst_23 {dimension_numbers = #tpu.dot_dimension_numbers<[2], [2], [1], [1], [0, 0, 0, 1, 1, 1], [0], [0]>} : vector<8x24x8xbf16>, vector<8x24x8xbf16>, vector<8x24x24xf32> -> vector<8x24x24xf32>
    "tpu.trace_stop"() : () -> ()
    %cst_24 = arith.constant 0.353553385 : f32
    %75 = vector.broadcast %cst_24 : f32 to vector<8x24x24xf32>
    %76 = arith.mulf %74, %75 : vector<8x24x24xf32>
    %77 = vector.shape_cast %49 : vector<24x24xf32> to vector<1x24x24xf32>
    %78 = vector.broadcast %77 : vector<1x24x24xf32> to vector<8x24x24xf32>
    %79 = arith.addf %76, %78 : vector<8x24x24xf32>
    %cst_25 = arith.constant dense<0xFF800000> : vector<8x24xf32>
    %80 = vector.multi_reduction <maximumf>, %79, %cst_25 [2] : vector<8x24x24xf32> to vector<8x24xf32>
    %81 = vector.shape_cast %80 : vector<8x24xf32> to vector<8x24x1xf32>
    %82 = vector.broadcast %81 : vector<8x24x1xf32> to vector<8x24x24xf32>
    %83 = arith.subf %79, %82 : vector<8x24x24xf32>
    %84 = math.exp %83 : vector<8x24x24xf32>
    %cst_26 = arith.constant dense<0.000000e+00> : vector<8x24xf32>
    %85 = vector.multi_reduction <add>, %84, %cst_26 [2] : vector<8x24x24xf32> to vector<8x24xf32>
    %86 = vector.shape_cast %85 : vector<8x24xf32> to vector<8x24x1xf32>
    %87 = tpu.reciprocal %86 {approx = true} : vector<8x24x1xf32> -> vector<8x24x1xf32>
    %88 = vector.broadcast %87 : vector<8x24x1xf32> to vector<8x24x24xf32>
    %89 = arith.mulf %84, %88 : vector<8x24x24xf32>
    %90 = arith.truncf %89 : vector<8x24x24xf32> to vector<8x24x24xbf16>
    "tpu.trace_start"() <{level = 10 : i32, message = "bqk,bkd->bqd"}> : () -> ()
    %cst_27 = arith.constant dense<0.000000e+00> : vector<8x24x8xf32>
    %91 = tpu.matmul %90, %73, %cst_27 {dimension_numbers = #tpu.dot_dimension_numbers<[2], [1], [1], [2], [0, 0, 0, 1, 1, 2], [0], [0]>} : vector<8x24x24xbf16>, vector<8x24x8xbf16>, vector<8x24x8xf32> -> vector<8x24x8xf32>
    "tpu.trace_stop"() : () -> ()
    %92 = vector.extract_strided_slice %48 {offsets = [0, 0, 16], sizes = [8, 24, 8], strides = [1, 1, 1]} : vector<8x24x96xbf16> to vector<8x24x8xbf16>
    %93 = vector.extract_strided_slice %48 {offsets = [0, 0, 48], sizes = [8, 24, 8], strides = [1, 1, 1]} : vector<8x24x96xbf16> to vector<8x24x8xbf16>
    %94 = vector.extract_strided_slice %48 {offsets = [0, 0, 80], sizes = [8, 24, 8], strides = [1, 1, 1]} : vector<8x24x96xbf16> to vector<8x24x8xbf16>
    "tpu.trace_start"() <{level = 10 : i32, message = "bqd,bkd->bqk"}> : () -> ()
    %cst_28 = arith.constant dense<0.000000e+00> : vector<8x24x24xf32>
    %95 = tpu.matmul %92, %93, %cst_28 {dimension_numbers = #tpu.dot_dimension_numbers<[2], [2], [1], [1], [0, 0, 0, 1, 1, 1], [0], [0]>} : vector<8x24x8xbf16>, vector<8x24x8xbf16>, vector<8x24x24xf32> -> vector<8x24x24xf32>
    "tpu.trace_stop"() : () -> ()
    %cst_29 = arith.constant 0.353553385 : f32
    %96 = vector.broadcast %cst_29 : f32 to vector<8x24x24xf32>
    %97 = arith.mulf %95, %96 : vector<8x24x24xf32>
    %98 = vector.shape_cast %49 : vector<24x24xf32> to vector<1x24x24xf32>
    %99 = vector.broadcast %98 : vector<1x24x24xf32> to vector<8x24x24xf32>
    %100 = arith.addf %97, %99 : vector<8x24x24xf32>
    %cst_30 = arith.constant dense<0xFF800000> : vector<8x24xf32>
    %101 = vector.multi_reduction <maximumf>, %100, %cst_30 [2] : vector<8x24x24xf32> to vector<8x24xf32>
    %102 = vector.shape_cast %101 : vector<8x24xf32> to vector<8x24x1xf32>
    %103 = vector.broadcast %102 : vector<8x24x1xf32> to vector<8x24x24xf32>
    %104 = arith.subf %100, %103 : vector<8x24x24xf32>
    %105 = math.exp %104 : vector<8x24x24xf32>
    %cst_31 = arith.constant dense<0.000000e+00> : vector<8x24xf32>
    %106 = vector.multi_reduction <add>, %105, %cst_31 [2] : vector<8x24x24xf32> to vector<8x24xf32>
    %107 = vector.shape_cast %106 : vector<8x24xf32> to vector<8x24x1xf32>
    %108 = tpu.reciprocal %107 {approx = true} : vector<8x24x1xf32> -> vector<8x24x1xf32>
    %109 = vector.broadcast %108 : vector<8x24x1xf32> to vector<8x24x24xf32>
    %110 = arith.mulf %105, %109 : vector<8x24x24xf32>
    %111 = arith.truncf %110 : vector<8x24x24xf32> to vector<8x24x24xbf16>
    "tpu.trace_start"() <{level = 10 : i32, message = "bqk,bkd->bqd"}> : () -> ()
    %cst_32 = arith.constant dense<0.000000e+00> : vector<8x24x8xf32>
    %112 = tpu.matmul %111, %94, %cst_32 {dimension_numbers = #tpu.dot_dimension_numbers<[2], [1], [1], [2], [0, 0, 0, 1, 1, 2], [0], [0]>} : vector<8x24x24xbf16>, vector<8x24x8xbf16>, vector<8x24x8xf32> -> vector<8x24x8xf32>
    "tpu.trace_stop"() : () -> ()
    %113 = vector.extract_strided_slice %48 {offsets = [0, 0, 24], sizes = [8, 24, 8], strides = [1, 1, 1]} : vector<8x24x96xbf16> to vector<8x24x8xbf16>
    %114 = vector.extract_strided_slice %48 {offsets = [0, 0, 56], sizes = [8, 24, 8], strides = [1, 1, 1]} : vector<8x24x96xbf16> to vector<8x24x8xbf16>
    %115 = vector.extract_strided_slice %48 {offsets = [0, 0, 88], sizes = [8, 24, 8], strides = [1, 1, 1]} : vector<8x24x96xbf16> to vector<8x24x8xbf16>
    "tpu.trace_start"() <{level = 10 : i32, message = "bqd,bkd->bqk"}> : () -> ()
    %cst_33 = arith.constant dense<0.000000e+00> : vector<8x24x24xf32>
    %116 = tpu.matmul %113, %114, %cst_33 {dimension_numbers = #tpu.dot_dimension_numbers<[2], [2], [1], [1], [0, 0, 0, 1, 1, 1], [0], [0]>} : vector<8x24x8xbf16>, vector<8x24x8xbf16>, vector<8x24x24xf32> -> vector<8x24x24xf32>
    "tpu.trace_stop"() : () -> ()
    %cst_34 = arith.constant 0.353553385 : f32
    %117 = vector.broadcast %cst_34 : f32 to vector<8x24x24xf32>
    %118 = arith.mulf %116, %117 : vector<8x24x24xf32>
    %119 = vector.shape_cast %49 : vector<24x24xf32> to vector<1x24x24xf32>
    %120 = vector.broadcast %119 : vector<1x24x24xf32> to vector<8x24x24xf32>
    %121 = arith.addf %118, %120 : vector<8x24x24xf32>
    %cst_35 = arith.constant dense<0xFF800000> : vector<8x24xf32>
    %122 = vector.multi_reduction <maximumf>, %121, %cst_35 [2] : vector<8x24x24xf32> to vector<8x24xf32>
    %123 = vector.shape_cast %122 : vector<8x24xf32> to vector<8x24x1xf32>
    %124 = vector.broadcast %123 : vector<8x24x1xf32> to vector<8x24x24xf32>
    %125 = arith.subf %121, %124 : vector<8x24x24xf32>
    %126 = math.exp %125 : vector<8x24x24xf32>
    %cst_36 = arith.constant dense<0.000000e+00> : vector<8x24xf32>
    %127 = vector.multi_reduction <add>, %126, %cst_36 [2] : vector<8x24x24xf32> to vector<8x24xf32>
    %128 = vector.shape_cast %127 : vector<8x24xf32> to vector<8x24x1xf32>
    %129 = tpu.reciprocal %128 {approx = true} : vector<8x24x1xf32> -> vector<8x24x1xf32>
    %130 = vector.broadcast %129 : vector<8x24x1xf32> to vector<8x24x24xf32>
    %131 = arith.mulf %126, %130 : vector<8x24x24xf32>
    %132 = arith.truncf %131 : vector<8x24x24xf32> to vector<8x24x24xbf16>
    "tpu.trace_start"() <{level = 10 : i32, message = "bqk,bkd->bqd"}> : () -> ()
    %cst_37 = arith.constant dense<0.000000e+00> : vector<8x24x8xf32>
    %133 = tpu.matmul %132, %115, %cst_37 {dimension_numbers = #tpu.dot_dimension_numbers<[2], [1], [1], [2], [0, 0, 0, 1, 1, 2], [0], [0]>} : vector<8x24x24xbf16>, vector<8x24x8xbf16>, vector<8x24x8xf32> -> vector<8x24x8xf32>
    "tpu.trace_stop"() : () -> ()
    %134 = tpu.concatenate %70, %91, %112, %133 in 2 : vector<8x24x8xf32>, vector<8x24x8xf32>, vector<8x24x8xf32>, vector<8x24x8xf32> -> vector<8x24x32xf32>
    %135 = vector.shape_cast %134 : vector<8x24x32xf32> to vector<192x32xf32>
    %136 = arith.truncf %135 : vector<192x32xf32> to vector<192x32xbf16>
    %cst_38 = arith.constant dense<0.000000e+00> : vector<192x32xf32>
    %137 = tpu.matmul %136, %7, %cst_38 {dimension_numbers = #tpu.dot_dimension_numbers<[1], [0], [0], [1], [0, 0, 1, 1], [], []>} : vector<192x32xbf16>, vector<32x32xbf16>, vector<192x32xf32> -> vector<192x32xf32>
    %138 = arith.addf %3, %137 : vector<192x32xf32>
    %139 = vector.broadcast %14 : vector<1x32xf32> to vector<192x32xf32>
    %140 = arith.addf %138, %139 : vector<192x32xf32>
    %cst_39 = arith.constant dense<0.000000e+00> : vector<192xf32>
    %141 = vector.multi_reduction <add>, %140, %cst_39 [1] : vector<192x32xf32> to vector<192xf32>
    %142 = vector.shape_cast %141 : vector<192xf32> to vector<192x1xf32>
    %cst_40 = arith.constant 3.200000e+01 : f32
    %143 = vector.broadcast %cst_40 : f32 to vector<192x1xf32>
    %144 = arith.divf %142, %143 : vector<192x1xf32>
    %145 = vector.broadcast %144 : vector<192x1xf32> to vector<192x32xf32>
    %146 = arith.subf %140, %145 : vector<192x32xf32>
    %147 = arith.mulf %146, %146 : vector<192x32xf32>
    %cst_41 = arith.constant dense<0.000000e+00> : vector<192xf32>
    %148 = vector.multi_reduction <add>, %147, %cst_41 [1] : vector<192x32xf32> to vector<192xf32>
    %149 = vector.shape_cast %148 : vector<192xf32> to vector<192x1xf32>
    %cst_42 = arith.constant 3.200000e+01 : f32
    %150 = vector.broadcast %cst_42 : f32 to vector<192x1xf32>
    %151 = arith.divf %149, %150 : vector<192x1xf32>
    %152 = vector.broadcast %144 : vector<192x1xf32> to vector<192x32xf32>
    %153 = arith.subf %140, %152 : vector<192x32xf32>
    %cst_43 = arith.constant 9.99999997E-7 : f32
    %154 = vector.broadcast %cst_43 : f32 to vector<192x1xf32>
    %155 = arith.addf %151, %154 : vector<192x1xf32>
    %156 = math.rsqrt %155 : vector<192x1xf32>
    %157 = vector.broadcast %156 : vector<192x1xf32> to vector<192x32xf32>
    %158 = arith.mulf %153, %157 : vector<192x32xf32>
    %159 = vector.broadcast %17 : vector<1x32xf32> to vector<192x32xf32>
    %160 = arith.mulf %158, %159 : vector<192x32xf32>
    %161 = vector.broadcast %18 : vector<1x32xf32> to vector<192x32xf32>
    %162 = arith.addf %160, %161 : vector<192x32xf32>
    %163 = arith.truncf %162 : vector<192x32xf32> to vector<192x32xbf16>
    %cst_44 = arith.constant dense<0.000000e+00> : vector<192x64xf32>
    %164 = tpu.matmul %163, %8, %cst_44 {dimension_numbers = #tpu.dot_dimension_numbers<[1], [0], [0], [1], [0, 0, 1, 1], [], []>} : vector<192x32xbf16>, vector<32x64xbf16>, vector<192x64xf32> -> vector<192x64xf32>
    %165 = vector.broadcast %19 : vector<1x64xf32> to vector<192x64xf32>
    %166 = arith.addf %164, %165 : vector<192x64xf32>
    %cst_45 = arith.constant 5.000000e-01 : f32
    %167 = vector.broadcast %cst_45 : f32 to vector<192x64xf32>
    %168 = arith.mulf %167, %166 : vector<192x64xf32>
    %cst_46 = arith.constant 4.471500e-02 : f32
    %169 = vector.broadcast %cst_46 : f32 to vector<192x64xf32>
    %170 = arith.mulf %169, %166 : vector<192x64xf32>
    %171 = arith.mulf %170, %166 : vector<192x64xf32>
    %172 = arith.mulf %171, %166 : vector<192x64xf32>
    %173 = arith.addf %166, %172 : vector<192x64xf32>
    %cst_47 = arith.constant 0.797884583 : f32
    %174 = vector.broadcast %cst_47 : f32 to vector<192x64xf32>
    %175 = arith.mulf %174, %173 : vector<192x64xf32>
    %176 = math.tanh %175 : vector<192x64xf32>
    %cst_48 = arith.constant 1.000000e+00 : f32
    %177 = vector.broadcast %cst_48 : f32 to vector<192x64xf32>
    %178 = arith.addf %177, %176 : vector<192x64xf32>
    %179 = arith.mulf %168, %178 : vector<192x64xf32>
    %180 = arith.truncf %179 : vector<192x64xf32> to vector<192x64xbf16>
    %cst_49 = arith.constant dense<0.000000e+00> : vector<192x32xf32>
    %181 = tpu.matmul %180, %10, %cst_49 {dimension_numbers = #tpu.dot_dimension_numbers<[1], [0], [0], [1], [0, 0, 1, 1], [], []>} : vector<192x64xbf16>, vector<64x32xbf16>, vector<192x32xf32> -> vector<192x32xf32>
    %182 = vector.broadcast %20 : vector<1x32xf32> to vector<192x32xf32>
    %183 = arith.addf %181, %182 : vector<192x32xf32>
    %184 = arith.addf %140, %183 : vector<192x32xf32>
    %c0_50 = arith.constant 0 : index
    %c0_51 = arith.constant 0 : index
    %185 = vector.load %arg12[%c0_50, %c0_51] : memref<192x32xf32, #tpu.memory_space<vmem>>, vector<192x32xf32>
    tpu.vector_store %arg12[%c0_50, %c0_51], %184 {strides = array<i32>} : memref<192x32xf32, #tpu.memory_space<vmem>>, vector<192x32xf32>,
    %c1_i32 = arith.constant 1 : i32
    %186 = arith.cmpi eq, %arg1, %c1_i32 : i32
    %187 = arith.extui %186 : i1 to i32
    %c0_i32_52 = arith.constant 0 : i32
    %188 = arith.cmpi ne, %187, %c0_i32_52 : i32
    scf.if %188 {
      %189 = vector.extract_strided_slice %184 {offsets = [0, 0], sizes = [1, 32], strides = [1, 1]} : vector<192x32xf32> to vector<1x32xf32>
      %190 = vector.extract_strided_slice %184 {offsets = [24, 0], sizes = [1, 32], strides = [1, 1]} : vector<192x32xf32> to vector<1x32xf32>
      %191 = vector.extract_strided_slice %184 {offsets = [48, 0], sizes = [1, 32], strides = [1, 1]} : vector<192x32xf32> to vector<1x32xf32>
      %192 = vector.extract_strided_slice %184 {offsets = [72, 0], sizes = [1, 32], strides = [1, 1]} : vector<192x32xf32> to vector<1x32xf32>
      %193 = vector.extract_strided_slice %184 {offsets = [96, 0], sizes = [1, 32], strides = [1, 1]} : vector<192x32xf32> to vector<1x32xf32>
      %194 = vector.extract_strided_slice %184 {offsets = [120, 0], sizes = [1, 32], strides = [1, 1]} : vector<192x32xf32> to vector<1x32xf32>
      %195 = vector.extract_strided_slice %184 {offsets = [144, 0], sizes = [1, 32], strides = [1, 1]} : vector<192x32xf32> to vector<1x32xf32>
      %196 = vector.extract_strided_slice %184 {offsets = [168, 0], sizes = [1, 32], strides = [1, 1]} : vector<192x32xf32> to vector<1x32xf32>
      %197 = tpu.concatenate %189, %190, %191, %192, %193, %194, %195, %196 in 0 : vector<1x32xf32>, vector<1x32xf32>, vector<1x32xf32>, vector<1x32xf32>, vector<1x32xf32>, vector<1x32xf32>, vector<1x32xf32>, vector<1x32xf32> -> vector<8x32xf32>
      %c0_53 = arith.constant 0 : index
      %c0_54 = arith.constant 0 : index
      %198 = vector.load %arg10[%c0_53, %c0_54] : memref<8x128xf32, #tpu.memory_space<vmem>>, vector<8x128xf32>
      %199 = vector.extract_strided_slice %198 {offsets = [0, 0], sizes = [1, 32], strides = [1, 1]} : vector<8x128xf32> to vector<1x32xf32>
      %200 = vector.extract_strided_slice %198 {offsets = [1, 0], sizes = [1, 32], strides = [1, 1]} : vector<8x128xf32> to vector<1x32xf32>
      %cst_55 = arith.constant dense<0.000000e+00> : vector<8xf32>
      %201 = vector.multi_reduction <add>, %197, %cst_55 [1] : vector<8x32xf32> to vector<8xf32>
      %202 = vector.shape_cast %201 : vector<8xf32> to vector<8x1xf32>
      %cst_56 = arith.constant 3.200000e+01 : f32
      %203 = vector.broadcast %cst_56 : f32 to vector<8x1xf32>
      %204 = arith.divf %202, %203 : vector<8x1xf32>
      %205 = vector.broadcast %204 : vector<8x1xf32> to vector<8x32xf32>
      %206 = arith.subf %197, %205 : vector<8x32xf32>
      %207 = arith.mulf %206, %206 : vector<8x32xf32>
      %cst_57 = arith.constant dense<0.000000e+00> : vector<8xf32>
      %208 = vector.multi_reduction <add>, %207, %cst_57 [1] : vector<8x32xf32> to vector<8xf32>
      %209 = vector.shape_cast %208 : vector<8xf32> to vector<8x1xf32>
      %cst_58 = arith.constant 3.200000e+01 : f32
      %210 = vector.broadcast %cst_58 : f32 to vector<8x1xf32>
      %211 = arith.divf %209, %210 : vector<8x1xf32>
      %212 = vector.broadcast %204 : vector<8x1xf32> to vector<8x32xf32>
      %213 = arith.subf %197, %212 : vector<8x32xf32>
      %cst_59 = arith.constant 9.99999997E-7 : f32
      %214 = vector.broadcast %cst_59 : f32 to vector<8x1xf32>
      %215 = arith.addf %211, %214 : vector<8x1xf32>
      %216 = math.rsqrt %215 : vector<8x1xf32>
      %217 = vector.broadcast %216 : vector<8x1xf32> to vector<8x32xf32>
      %218 = arith.mulf %213, %217 : vector<8x32xf32>
      %219 = vector.broadcast %199 : vector<1x32xf32> to vector<8x32xf32>
      %220 = arith.mulf %218, %219 : vector<8x32xf32>
      %221 = vector.broadcast %200 : vector<1x32xf32> to vector<8x32xf32>
      %222 = arith.addf %220, %221 : vector<8x32xf32>
      %223 = arith.truncf %222 : vector<8x32xf32> to vector<8x32xbf16>
      %c0_60 = arith.constant 0 : index
      %c0_61 = arith.constant 0 : index
      %224 = vector.load %arg9[%c0_60, %c0_61] : memref<32x128xbf16, #tpu.memory_space<vmem>>, vector<32x128xbf16>
      %cst_62 = arith.constant dense<0.000000e+00> : vector<8x128xf32>
      %225 = tpu.matmul %223, %224, %cst_62 {dimension_numbers = #tpu.dot_dimension_numbers<[1], [0], [0], [1], [0, 0, 1, 1], [], []>} : vector<8x32xbf16>, vector<32x128xbf16>, vector<8x128xf32> -> vector<8x128xf32>
      %226 = vector.extract_strided_slice %198 {offsets = [2, 0], sizes = [1, 128], strides = [1, 1]} : vector<8x128xf32> to vector<1x128xf32>
      %227 = vector.broadcast %226 : vector<1x128xf32> to vector<8x128xf32>
      %228 = arith.addf %225, %227 : vector<8x128xf32>
      %c0_63 = arith.constant 0 : index
      %c0_64 = arith.constant 0 : index
      %c0_65 = arith.constant 0 : index
      %229 = vector.load %arg11[%c0_63, %c0_64, %c0_65] : memref<1x8x128xf32, #tpu.memory_space<vmem>>, vector<1x8x128xf32>
      %230 = vector.shape_cast %229 : vector<1x8x128xf32> to vector<8x128xf32>
      %231 = vector.shape_cast %228 : vector<8x128xf32> to vector<1x8x128xf32>
      tpu.vector_store %arg11[%c0_63, %c0_64, %c0_65], %231 {strides = array<i32>} : memref<1x8x128xf32, #tpu.memory_space<vmem>>, vector<1x8x128xf32>,
    } else {
    }
    return
  }
  func.func @transform_0(%arg0: i32, %arg1: i32) -> (i32, i32) {
    %c0_i32 = arith.constant 0 : i32
    %c0_i32_0 = arith.constant 0 : i32
    return %arg0, %c0_i32 : i32, i32
  }
  func.func @transform_1(%arg0: i32, %arg1: i32) -> (i32, i32) {
    %c0_i32 = arith.constant 0 : i32
    %c0_i32_0 = arith.constant 0 : i32
    %c0_i32_1 = arith.constant 0 : i32
    return %c0_i32, %c0_i32_0 : i32, i32
  }
  func.func @transform_2(%arg0: i32, %arg1: i32) -> (i32, i32) {
    %c0_i32 = arith.constant 0 : i32
    %c0_i32_0 = arith.constant 0 : i32
    %c0_i32_1 = arith.constant 0 : i32
    return %c0_i32, %c0_i32_0 : i32, i32
  }
  func.func @transform_3(%arg0: i32, %arg1: i32) -> (i32, i32) {
    %c0_i32 = arith.constant 0 : i32
    %c0_i32_0 = arith.constant 0 : i32
    %c0_i32_1 = arith.constant 0 : i32
    return %c0_i32, %c0_i32_0 : i32, i32
  }
  func.func @transform_4(%arg0: i32, %arg1: i32) -> (i32, i32, i32) {
    %c0_i32 = arith.constant 0 : i32
    %c0_i32_0 = arith.constant 0 : i32
    %c0_i32_1 = arith.constant 0 : i32
    return %arg1, %c0_i32, %c0_i32_0 : i32, i32, i32
  }
  func.func @transform_5(%arg0: i32, %arg1: i32) -> (i32, i32, i32) {
    %c0_i32 = arith.constant 0 : i32
    %c0_i32_0 = arith.constant 0 : i32
    %c0_i32_1 = arith.constant 0 : i32
    return %arg1, %c0_i32, %c0_i32_0 : i32, i32, i32
  }
  func.func @transform_6(%arg0: i32, %arg1: i32) -> (i32, i32, i32) {
    %c0_i32 = arith.constant 0 : i32
    %c0_i32_0 = arith.constant 0 : i32
    %c0_i32_1 = arith.constant 0 : i32
    return %arg1, %c0_i32, %c0_i32_0 : i32, i32, i32
  }
  func.func @transform_7(%arg0: i32, %arg1: i32) -> (i32, i32) {
    %c0_i32 = arith.constant 0 : i32
    %c0_i32_0 = arith.constant 0 : i32
    %c0_i32_1 = arith.constant 0 : i32
    return %c0_i32, %c0_i32_0 : i32, i32
  }
  func.func @transform_8(%arg0: i32, %arg1: i32) -> (i32, i32) {
    %c0_i32 = arith.constant 0 : i32
    %c0_i32_0 = arith.constant 0 : i32
    %c0_i32_1 = arith.constant 0 : i32
    return %c0_i32, %c0_i32_0 : i32, i32
  }
  func.func @transform_9(%arg0: i32, %arg1: i32) -> (i32, i32, i32) {
    %c0_i32 = arith.constant 0 : i32
    %c0_i32_0 = arith.constant 0 : i32
    %c0_i32_1 = arith.constant 0 : i32
    return %arg0, %c0_i32, %c0_i32_0 : i32, i32, i32
  }
}

</mosaic_0001>

<bundles_post_ra>
// kernel: vit_forward.1
= control target key start
LH: loop header
LB: loop body
LE: loop exit
PB: predicated region body
PF: predicated region fallthrough
CT: control target
= control target key end

     0   :  { %14 = vsyncpa [#allocation4], 0  ;;  %s10853_s30 = smov 0   ;;  %s10855_s10 = smov 0   ;;  %s14619_s0 = inlined_call_operand.vmem [shape: f32[192,48], index: 0, kind: input, shape index: {}]   ;;  %s14620_s1 = inlined_call_operand.vmem [shape: f32[192,32], index: 1, kind: input, shape index: {}]   ;;  %s14621_s2 = inlined_call_operand.vmem [shape: bf16[48,32], index: 2, kind: input, shape index: {}]   ;;  %s14622_s3 = inlined_call_operand.vmem [shape: f32[24,24], index: 3, kind: input, shape index: {}]   ;;  %s14623_s4 = inlined_call_operand.vmem [shape: bf16[2,32,192], index: 4, kind: input, shape index: {}]   ;;  %s14624_s5 = inlined_call_operand.vmem [shape: bf16[2,64,32], index: 5, kind: input, shape index: {}]   ;;  %s14625_s6 = inlined_call_operand.vmem [shape: f32[2,8,128], index: 6, kind: input, shape index: {}]   ;;  %s14626_s7 = inlined_call_operand.vmem [shape: bf16[32,128], index: 7, kind: input, shape index: {}]   ;;  %s14627_s8 = inlined_call_operand.vmem [shape: f32[8,128], index: 8, kind: input, shape index: {}]   ;;  %s14628_s9 = inlined_call_operand.hbm [shape: f32[1,8,128], index: 9, kind: output, shape index: {}]  }
   0x1   :  { %s10857_s11 = smov 0  }
   0x2 LB: > { %s8601_s12 = sadd.s32 4294967295, %s10783_s11   ;;  %s29_s13 = sadd.s32 1, %s10779_s10  ;;  %s10783_s11 = sphi %s10857_s11, %s20_s11   ;;  %s10779_s10 = sphi %s10855_s10, %s14842_s10   ;;  %s10775_s30 = sphi %s10853_s30, %s14841_s30  }
   0x3   : > { %p30_p0 = scmp.ge.s32.totalorder %s29_s13, 2  ;;  %p8605_p1 = scmp.ge.s32.totalorder %s10783_s11, 1 }
   0x4   : > { %p330_p2 = scmp.lt.s32.totalorder %s10783_s11, 3 }
   0x5   : > { %s14844_s13 = smov (%p30_p0, %s29_s13), 0 }
   0x6   : > { %p331_p3 = pnand %p8605_p1, %p330_p2 }
   0x8   : > { %334 = sbr.rel (%p331_p3) target bundleno = 5417 (0x1529), region = 56 }
   0xf   : > { %p381_p4 = scmp.lt.s32.totalorder %s10775_s30, 1  ;;  %p8611_p5 = scmp.ne.s32.totalorder %s10775_s30, 0 }
  0x10   : > { %v9969_v0 = vld [vmem:[%s14621_s2] sm:$0xff] (!%p8611_p5)   ;;  %v9970_v1 = vld [vmem:[%s14621_s2 + $0x8] sm:$0xff] (!%p8611_p5)   ;;  %vm484_vm0 = vcmask (!%p8611_p5), 392192   ;;  %v9971_v5 = vld [vmem:[%s14621_s2 + $0x10] sm:$0xff] (!%p8611_p5)   ;;  %vm650_vm1 = vcmask (!%p8611_p5), 261120  }
  0x11   : > { %s382_s14 = scalar_select %p381_p4, %s10775_s30, 1 }
  0x12   : > { %399 = sbr.rel (%p8611_p5) target bundleno = 264 (0x108), region = 60  ;;  %9153 = vmatprep.subr.bf16.mxu0 (!%p8611_p5), %v9969_v0  ;;  %9819 = vmatprep.subr.bf16.mxu1 (!%p8611_p5), %v9969_v0  ;;  %v400_v2 = vld [vmem:[%s14619_s0] sm:$0xff] (!%p8611_p5)  ;;  %v401_v3 = vld [vmem:[%s14619_s0 + $0x8] sm:$0xff] (!%p8611_p5)  ;;  %v402_v9 = vld [vmem:[%s14619_s0 + $0x10] sm:$0xff] (!%p8611_p5) }
  0x13   : > { %s8819_s15 = sshll.u32 %s382_s14, 5  ;;  %s8610_s16 = sshll.u32 %s382_s14, 3  ;;  %9154 = vmatpush3.bf16.msra.mxu0 (!%p8611_p5), %v9969_v0  ;;  %9822 = vmatpush3.bf16.msra.mxu1 (!%p8611_p5), %v9969_v0  ;;  %v412_v4 = vld [vmem:[%s14619_s0 + $0x60] sm:$0xff] (!%p8611_p5)  ;;  %v424_v6 = vpack.c.bf16 (!%p8611_p5), %v401_v3, %v400_v2  ;;  %v413_v7 = vld [vmem:[%s14619_s0 + $0x68] sm:$0xff] (!%p8611_p5)  ;;  %v403_v10 = vld [vmem:[%s14619_s0 + $0x18] sm:$0xff] (!%p8611_p5) }
  0x14   : > { %s10879_s19 = scalar_lea.vmem %s14623_s4, %s8819_s15  ;;  %s10884_s22 = scalar_lea.vmem %s14624_s5, %s8819_s15  ;;  %9155 = vmatprep.subr.bf16.mxu0 (!%p8611_p5), %v9970_v1  ;;  %9820 = vmatprep.subr.bf16.mxu1 (!%p8611_p5), %v9970_v1  ;;  %v430_v8 = vpack.c.bf16 (!%p8611_p5), %v413_v7, %v412_v4  ;;  %v414_v11 = vld [vmem:[%s14619_s0 + $0x70] sm:$0xff] (!%p8611_p5)  ;;  %v415_v12 = vld [vmem:[%s14619_s0 + $0x78] sm:$0xff] (!%p8611_p5)  ;;  %v404_v13 = vld [vmem:[%s14619_s0 + $0x20] sm:$0xff] (!%p8611_p5)  ;;  %v425_v17 = vpack.c.bf16 (!%p8611_p5), %v403_v10, %v402_v9 }
  0x15   : > { %s10889_s25 = scalar_lea.vmem %s14625_s6, %s8610_s16  ;;  %9159 = vmatprep.mubr.msk.bf16.mxu0 (!%p8611_p5), %vm484_vm0, %v424_v6  ;;  %v405_v14 = vld [vmem:[%s14619_s0 + $0x28] sm:$0xff] (!%p8611_p5)  ;;  %v416_v15 = vld [vmem:[%s14619_s0 + $0x80] sm:$0xff] (!%p8611_p5)  ;;  %v431_v18 = vpack.c.bf16 (!%p8611_p5), %v415_v12, %v414_v11  ;;  %v406_v21 = vld [vmem:[%s14619_s0 + $0x30] sm:$0xff] (!%p8611_p5) }
  0x16   : > { %v417_v16 = vld [vmem:[%s14619_s0 + $0x88] sm:$0xff] (!%p8611_p5)  ;;  %9171 = vmatprep.mubr.msk.bf16.mxu1 (!%p8611_p5), %vm484_vm0, %v430_v8  ;;  %v426_v19 = vpack.c.bf16 (!%p8611_p5), %v405_v14, %v404_v13  ;;  %v407_v22 = vld [vmem:[%s14619_s0 + $0x38] sm:$0xff] (!%p8611_p5)  ;;  %v418_v23 = vld [vmem:[%s14619_s0 + $0x90] sm:$0xff] (!%p8611_p5) }
  0x17   : > { %9156 = vmatpush3.bf16.msra.mxu0 (!%p8611_p5), %v9970_v1  ;;  %9823 = vmatpush3.bf16.msra.mxu1 (!%p8611_p5), %v9970_v1  ;;  %v432_v20 = vpack.c.bf16 (!%p8611_p5), %v417_v16, %v416_v15  ;;  %v419_v24 = vld [vmem:[%s14619_s0 + $0x98] sm:$0xff] (!%p8611_p5)  ;;  %v408_v25 = vld [vmem:[%s14619_s0 + $0x40] sm:$0xff] (!%p8611_p5)  ;;  %v409_v26 = vld [vmem:[%s14619_s0 + $0x48] sm:$0xff] (!%p8611_p5)  ;;  %v427_v29 = vpack.c.bf16 (!%p8611_p5), %v407_v22, %v406_v21 }
  0x18   : > { %9157 = vmatprep.subr.bf16.mxu0 (!%p8611_p5), %v9971_v5  ;;  %9821 = vmatprep.subr.bf16.mxu1 (!%p8611_p5), %v9971_v5  ;;  %v420_v27 = vld [vmem:[%s14619_s0 + $0xa0] sm:$0xff] (!%p8611_p5)  ;;  %v421_v28 = vld [vmem:[%s14619_s0 + $0xa8] sm:$0xff] (!%p8611_p5)  ;;  %v433_v30 = vpack.c.bf16 (!%p8611_p5), %v419_v24, %v418_v23  ;;  %v428_v31 = vpack.c.bf16 (!%p8611_p5), %v409_v26, %v408_v25  ;;  %v410_v33 = vld [vmem:[%s14619_s0 + $0x50] sm:$0xff] (!%p8611_p5) }
  0x19   : > { %v434_v32 = vpack.c.bf16 %v421_v28, %v420_v27  ;;  %v411_v34 = vld [vmem:[%s14619_s0 + $0x58] sm:$0xff]  ;;  %v422_v35 = vld [vmem:[%s14619_s0 + $0xb0] sm:$0xff]  ;;  %v442_v41 = vld [vmem:[%s14620_s1] sm:$0xff] }
  0x1a   : > { %v423_v36 = vld [vmem:[%s14619_s0 + $0xb8] sm:$0xff]  ;;  %v429_v37 = vpack.c.bf16 %v411_v34, %v410_v33  ;;  %v444_v39 = vld [vmem:[%s14620_s1 + $0x10] sm:$0xff]  ;;  %v454_v42 = vld [vmem:[%s14620_s1 + $0x60] sm:$0xff] }
  0x1b   : > { %9158 = vmatpush3.bf16.msra.mxu0 %v9971_v5  ;;  %9824 = vmatpush3.bf16.msra.mxu1 %v9971_v5  ;;  %v435_v38 = vpack.c.bf16 %v423_v36, %v422_v35  ;;  %v456_v40 = vld [vmem:[%s14620_s1 + $0x70] sm:$0xff]  ;;  %v445_v45 = vld [vmem:[%s14620_s1 + $0x18] sm:$0xff]  ;;  %v443_v51 = vld [vmem:[%s14620_s1 + $0x8] sm:$0xff] }
  0x1c   : > { %v457_v46 = vld [vmem:[%s14620_s1 + $0x78] sm:$0xff]  ;;  %v455_v52 = vld [vmem:[%s14620_s1 + $0x68] sm:$0xff]  ;;  %v448_v63 = vld [vmem:[%s14620_s1 + $0x30] sm:$0xff] }
  0x1d   : > { %v460_v0 = vld [vmem:[%s14620_s1 + $0x90] sm:$0xff]  ;;  %v446_v1 = vld [vmem:[%s14620_s1 + $0x20] sm:$0xff]  ;;  %v449_v5 = vld [vmem:[%s14620_s1 + $0x38] sm:$0xff] }
  0x1e   : > { %9160 = vmatmul.mubr.msk.bf16.vlgmr.msra.gmra.mrb[0].mxu0 %vm484_vm0, %v425_v17  ;;  %9172 = vmatmul.mubr.msk.bf16.vlgmr.msra.gmra.mrb[0].mxu1 %vm484_vm0, %v431_v18  ;;  %v458_v2 = vld [vmem:[%s14620_s1 + $0x80] sm:$0xff]  ;;  %v461_v6 = vld [vmem:[%s14620_s1 + $0x98] sm:$0xff]  ;;  %v447_v11 = vld [vmem:[%s14620_s1 + $0x28] sm:$0xff] }
  0x1f   : > { %9163 = vmatprep.mubr.msk.bf16.mxu0 %vm484_vm0, %v426_v19  ;;  %9175 = vmatprep.mubr.msk.bf16.mxu1 %vm484_vm0, %v432_v20  ;;  %v459_v12 = vld [vmem:[%s14620_s1 + $0x88] sm:$0xff]  ;;  %v452_v23 = vld [vmem:[%s14620_s1 + $0x50] sm:$0xff]  ;;  %v450_v25 = vld [vmem:[%s14620_s1 + $0x40] sm:$0xff] }
  0x20   : > { %v464_v24 = vld [vmem:[%s14620_s1 + $0xb0] sm:$0xff]  ;;  %v462_v26 = vld [vmem:[%s14620_s1 + $0xa0] sm:$0xff]  ;;  %v451_v35 = vld [vmem:[%s14620_s1 + $0x48] sm:$0xff] }
  0x21   : > { %v463_v36 = vld [vmem:[%s14620_s1 + $0xa8] sm:$0xff] }
  0x26   : > { %9164 = vmatmul.mubr.msk.bf16.gmra.mrb[4].mxu0 %vm484_vm0, %v427_v29  ;;  %9176 = vmatmul.mubr.msk.bf16.gmra.mrb[4].mxu1 %vm484_vm0, %v433_v30  ;;  %v453_v29 = vld [vmem:[%s14620_s1 + $0x58] sm:$0xff] }
  0x27   : > { %9167 = vmatprep.mubr.msk.bf16.mxu0 %vm484_vm0, %v428_v31  ;;  %9179 = vmatprep.mubr.msk.bf16.mxu1 %vm484_vm0, %v434_v32  ;;  %v465_v30 = vld [vmem:[%s14620_s1 + $0xb8] sm:$0xff] }
  0x2e   : > { %9168 = vmatmul.mubr.msk.bf16.gmra.mrb[8].mxu0 %vm484_vm0, %v429_v37  ;;  %9180 = vmatmul.mubr.msk.bf16.gmra.mrb[8].mxu1 %vm484_vm0, %v435_v38 }
  0xf1   : > { %v9161_v43 = vpop.f32.mrb[0].mxu0  ;;  %v9173_v44 = vpop.f32.mrb[0].mxu1 }
  0xf2   : > { %v564_v47 = vadd.f32 %v9161_v43, %v444_v39  ;;  %v612_v48 = vadd.f32 %v9173_v44, %v456_v40  ;;  %v555_v49 = vpop.f32.mrb[1].mxu0  ;;  %v603_v50 = vpop.f32.mrb[1].mxu1 }
  0xf3   : > { %v556_v53 = vadd.f32 %v555_v49, %v442_v41  ;;  %v604_v54 = vadd.f32 %v603_v50, %v454_v42  ;;  %v9162_v55 = vpop.f32.mrb[2].mxu0  ;;  %v9174_v56 = vpop.f32.mrb[2].mxu1 }
  0xf4   : > { %653 = vst.msk [vmem:[#allocation2 + $0x10] sm:$0xff] %vm650_vm1, %v564_v47  ;;  %665 = vst.msk [vmem:[#allocation2 + $0x70] sm:$0xff] %vm650_vm1, %v612_v48  ;;  %v567_v57 = vadd.f32 %v9162_v55, %v445_v45  ;;  %v615_v58 = vadd.f32 %v9174_v56, %v457_v46  ;;  %v558_v59 = vpop.f32.mrb[3].mxu0  ;;  %v606_v60 = vpop.f32.mrb[3].mxu1 }
  0xf5   : > { %651 = vst.msk [vmem:[#allocation2] sm:$0xff] %vm650_vm1, %v556_v53  ;;  %663 = vst.msk [vmem:[#allocation2 + $0x60] sm:$0xff] %vm650_vm1, %v604_v54  ;;  %v559_v61 = vadd.f32 %v558_v59, %v443_v51  ;;  %v607_v62 = vadd.f32 %v606_v60, %v455_v52 }
  0xf6   : > { %654 = vst.msk [vmem:[#allocation2 + $0x18] sm:$0xff] %vm650_vm1, %v567_v57  ;;  %666 = vst.msk [vmem:[#allocation2 + $0x78] sm:$0xff] %vm650_vm1, %v615_v58 }
  0xf7   : > { %652 = vst.msk [vmem:[#allocation2 + $0x8] sm:$0xff] %vm650_vm1, %v559_v61  ;;  %664 = vst.msk [vmem:[#allocation2 + $0x68] sm:$0xff] %vm650_vm1, %v607_v62 }
  0xf9   : > { %v9165_v3 = vpop.f32.mrb[4].mxu0  ;;  %v9177_v4 = vpop.f32.mrb[4].mxu1 }
  0xfa   : > { %v580_v7 = vadd.f32 %v9165_v3, %v448_v63  ;;  %v628_v8 = vadd.f32 %v9177_v4, %v460_v0  ;;  %v571_v9 = vpop.f32.mrb[5].mxu0  ;;  %v619_v10 = vpop.f32.mrb[5].mxu1 }
  0xfb   : > { %v572_v13 = vadd.f32 %v571_v9, %v446_v1  ;;  %v620_v14 = vadd.f32 %v619_v10, %v458_v2  ;;  %v9166_v15 = vpop.f32.mrb[6].mxu0  ;;  %v9178_v16 = vpop.f32.mrb[6].mxu1 }
  0xfc   : > { %657 = vst.msk [vmem:[#allocation2 + $0x30] sm:$0xff] %vm650_vm1, %v580_v7  ;;  %669 = vst.msk [vmem:[#allocation2 + $0x90] sm:$0xff] %vm650_vm1, %v628_v8  ;;  %v583_v17 = vadd.f32 %v9166_v15, %v449_v5  ;;  %v631_v18 = vadd.f32 %v9178_v16, %v461_v6  ;;  %v574_v19 = vpop.f32.mrb[7].mxu0  ;;  %v622_v20 = vpop.f32.mrb[7].mxu1 }
  0xfd   : > { %655 = vst.msk [vmem:[#allocation2 + $0x20] sm:$0xff] %vm650_vm1, %v572_v13  ;;  %667 = vst.msk [vmem:[#allocation2 + $0x80] sm:$0xff] %vm650_vm1, %v620_v14  ;;  %v575_v21 = vadd.f32 %v574_v19, %v447_v11  ;;  %v623_v22 = vadd.f32 %v622_v20, %v459_v12 }
  0xfe   : > { %658 = vst.msk [vmem:[#allocation2 + $0x38] sm:$0xff] %vm650_vm1, %v583_v17  ;;  %670 = vst.msk [vmem:[#allocation2 + $0x98] sm:$0xff] %vm650_vm1, %v631_v18 }
  0xff   : > { %656 = vst.msk [vmem:[#allocation2 + $0x28] sm:$0xff] %vm650_vm1, %v575_v21  ;;  %668 = vst.msk [vmem:[#allocation2 + $0x88] sm:$0xff] %vm650_vm1, %v623_v22 }
 0x101   : > { %v9169_v27 = vpop.f32.mrb[8].mxu0  ;;  %v9181_v28 = vpop.f32.mrb[8].mxu1 }
 0x102   : > { %v596_v31 = vadd.f32 %v9169_v27, %v452_v23  ;;  %v644_v32 = vadd.f32 %v9181_v28, %v464_v24  ;;  %v587_v33 = vpop.f32.mrb[9].mxu0  ;;  %v635_v34 = vpop.f32.mrb[9].mxu1 }
 0x103   : > { %v588_v37 = vadd.f32 %v587_v33, %v450_v25  ;;  %v636_v38 = vadd.f32 %v635_v34, %v462_v26  ;;  %v9170_v39 = vpop.f32.mrb[10].mxu0  ;;  %v9182_v40 = vpop.f32.mrb[10].mxu1 }
 0x104   : > { %661 = vst.msk [vmem:[#allocation2 + $0x50] sm:$0xff] %vm650_vm1, %v596_v31  ;;  %673 = vst.msk [vmem:[#allocation2 + $0xb0] sm:$0xff] %vm650_vm1, %v644_v32  ;;  %v599_v41 = vadd.f32 %v9170_v39, %v453_v29  ;;  %v647_v42 = vadd.f32 %v9182_v40, %v465_v30  ;;  %v590_v43 = vpop.f32.mrb[11].mxu0  ;;  %v638_v44 = vpop.f32.mrb[11].mxu1 }
 0x105   : > { %659 = vst.msk [vmem:[#allocation2 + $0x40] sm:$0xff] %vm650_vm1, %v588_v37  ;;  %671 = vst.msk [vmem:[#allocation2 + $0xa0] sm:$0xff] %vm650_vm1, %v636_v38  ;;  %v591_v45 = vadd.f32 %v590_v43, %v451_v35  ;;  %v639_v46 = vadd.f32 %v638_v44, %v463_v36 }
 0x106   : > { %662 = vst.msk [vmem:[#allocation2 + $0x58] sm:$0xff] %vm650_vm1, %v599_v41  ;;  %674 = vst.msk [vmem:[#allocation2 + $0xb8] sm:$0xff] %vm650_vm1, %v647_v42 }
 0x107   : > { %660 = vst.msk [vmem:[#allocation2 + $0x48] sm:$0xff] %vm650_vm1, %v591_v45  ;;  %672 = vst.msk [vmem:[#allocation2 + $0xa8] sm:$0xff] %vm650_vm1, %v639_v46 }
 0x108 PF: > { %v11081_v47 = vld [vmem:[#allocation2] sm:$0xff]  ;;  %vm712_vm2 = vcmask 261120   ;;  %v11083_v48 = vld [vmem:[#allocation2 + $0x10] sm:$0xff]  ;;  %v11085_v49 = vld [vmem:[#allocation2 + $0x8] sm:$0xff]  ;;  %vm1300_vm3 = vcmask 64512   ;;  %s10785_s23 = smov 96  }
 0x109   : > { %v713_v50 = vsel %vm712_vm2, %v11081_v47, 0.0  ;;  %v719_v51 = vsel %vm712_vm2, %v11083_v48, 0.0  ;;  %v11091_v52 = vld [vmem:[#allocation2 + $0x18] sm:$0xff]  ;;  %v716_v53 = vsel %vm712_vm2, %v11085_v49, 0.0  ;;  %v11097_v55 = vld [vmem:[#allocation2 + $0x20] sm:$0xff]  ;;  %v11099_v56 = vld [vmem:[#allocation2 + $0x28] sm:$0xff] }
 0x10a   : > { %714 = vadd.xlane.f32.xlu0 %v713_v50  ;;  %720 = vadd.xlane.f32.xlu1 %v719_v51  ;;  %v722_v54 = vsel %vm712_vm2, %v11091_v52, 0.0  ;;  %v11101_v57 = vld [vmem:[#allocation2 + $0x30] sm:$0xff]  ;;  %v11103_v58 = vld [vmem:[#allocation2 + $0x38] sm:$0xff]  ;;  %v725_v59 = vsel %vm712_vm2, %v11097_v55, 0.0  ;;  %v728_v60 = vsel %vm712_vm2, %v11099_v56, 0.0  ;;  %v11129_v7 = vld [vmem:[#allocation2 + $0x60] sm:$0xff] }
 0x10b   : > { %v731_v61 = vsel %vm712_vm2, %v11101_v57, 0.0  ;;  %v734_v62 = vsel %vm712_vm2, %v11103_v58, 0.0  ;;  %v11121_v3 = vld [vmem:[#allocation2 + $0x50] sm:$0xff]  ;;  %v11131_v8 = vld [vmem:[#allocation2 + $0x68] sm:$0xff]  ;;  %v749_v9 = vsel %vm712_vm2, %v11129_v7, 0.0  ;;  %v11139_v12 = vld [vmem:[#allocation2 + $0x78] sm:$0xff] }
 0x10c   : > { %v11113_v63 = vld [vmem:[#allocation2 + $0x40] sm:$0xff]  ;;  %v743_v5 = vsel %vm712_vm2, %v11121_v3, 0.0  ;;  %v752_v10 = vsel %vm712_vm2, %v11131_v8, 0.0  ;;  %v11137_v11 = vld [vmem:[#allocation2 + $0x70] sm:$0xff]  ;;  %v758_v14 = vsel %vm712_vm2, %v11139_v12, 0.0  ;;  %v11147_v16 = vld [vmem:[#allocation2 + $0x88] sm:$0xff] }
 0x10d   : > { %v737_v1 = vsel %vm712_vm2, %v11113_v63, 0.0  ;;  %v11123_v4 = vld [vmem:[#allocation2 + $0x58] sm:$0xff]  ;;  %v755_v13 = vsel %vm712_vm2, %v11137_v11, 0.0  ;;  %v11145_v15 = vld [vmem:[#allocation2 + $0x80] sm:$0xff]  ;;  %v764_v18 = vsel %vm712_vm2, %v11147_v16, 0.0  ;;  %v11153_v19 = vld [vmem:[#allocation2 + $0x90] sm:$0xff] }
 0x10e   : > { %717 = vadd.xlane.f32.xlu0 %v716_v53  ;;  %723 = vadd.xlane.f32.xlu1 %v722_v54  ;;  %v11115_v0 = vld [vmem:[#allocation2 + $0x48] sm:$0xff]  ;;  %v746_v6 = vsel %vm712_vm2, %v11123_v4, 0.0  ;;  %v761_v17 = vsel %vm712_vm2, %v11145_v15, 0.0  ;;  %v11155_v20 = vld [vmem:[#allocation2 + $0x98] sm:$0xff]  ;;  %v767_v21 = vsel %vm712_vm2, %v11153_v19, 0.0  ;;  %v11161_v23 = vld [vmem:[#allocation2 + $0xa0] sm:$0xff] }
 0x10f   : > { %v740_v2 = vsel %vm712_vm2, %v11115_v0, 0.0  ;;  %v770_v22 = vsel %vm712_vm2, %v11155_v20, 0.0  ;;  %v11163_v24 = vld [vmem:[#allocation2 + $0xa8] sm:$0xff]  ;;  %v773_v25 = vsel %vm712_vm2, %v11161_v23, 0.0  ;;  %v11169_v27 = vld [vmem:[#allocation2 + $0xb0] sm:$0xff]  ;;  %v11171_v28 = vld [vmem:[#allocation2 + $0xb8] sm:$0xff] }
 0x110   : > { %v776_v26 = vsel %vm712_vm2, %v11163_v24, 0.0  ;;  %v779_v29 = vsel %vm712_vm2, %v11169_v27, 0.0  ;;  %v782_v30 = vsel %vm712_vm2, %v11171_v28, 0.0  ;;  %s10786_s24 = smov 64   ;;  %vm2163_vm4 = vcmask 1043456   ;;  %s10787_s16 = smov 88  }
 0x111   : > { %vm1871_vm5 = vcmask 195584   ;;  %s10788_s17 = smov 120   ;;  %s10789_s18 = smov 56   ;;  %vm7065_vm6 = vcmask 130048   ;;  %vm8162_vm7 = vcmask 523264  }
 0x112   : > { %726 = vadd.xlane.f32.xlu0 %v725_v59  ;;  %729 = vadd.xlane.f32.xlu1 %v728_v60  ;;  %s10790_s28 = smov 80   ;;  %s10791_s29 = smov 112  }
 0x113   : > { %s10792_s14 = smov 48   ;;  %s10795_s26 = smov 40  }
 0x114   : > { %s10798_s20 = smov 32   ;;  %s10799_s21 = smov 24  }
 0x115   : > { %p8811_p6 = scmp.ne.s32.totalorder %s10775_s30, 1 }
 0x116   : > { %732 = vadd.xlane.f32.xlu0 %v731_v61  ;;  %735 = vadd.xlane.f32.xlu1 %v734_v62  ;;  %vm8401_vm8 = vcmask (!%p8811_p6), 1040384   ;;  %vm8403_vm9 = vcmask (!%p8811_p6), 1041408   ;;  %vm8405_vm10 = vcmask (!%p8811_p6), 1042432   ;;  %vm8408_vm11 = vcmask (!%p8811_p6), 1044480  }
 0x117   : > { %vm8410_vm12 = vcmask (!%p8811_p6), 1045504   ;;  %vm8412_vm13 = vcmask (!%p8811_p6), 1046528   ;;  %vm10801_vm14 = vmmov (!%p8811_p6), 0  }
 0x11a   : > { %738 = vadd.xlane.f32.xlu0 %v737_v1  ;;  %741 = vadd.xlane.f32.xlu1 %v740_v2 }
 0x11e   : > { %744 = vadd.xlane.f32.xlu0 %v743_v5  ;;  %747 = vadd.xlane.f32.xlu1 %v746_v6 }
 0x122   : > { %750 = vadd.xlane.f32.xlu0 %v749_v9  ;;  %753 = vadd.xlane.f32.xlu1 %v752_v10 }
 0x126   : > { %756 = vadd.xlane.f32.xlu0 %v755_v13  ;;  %759 = vadd.xlane.f32.xlu1 %v758_v14 }
 0x12a   : > { %762 = vadd.xlane.f32.xlu0 %v761_v17  ;;  %765 = vadd.xlane.f32.xlu1 %v764_v18 }
 0x12e   : > { %768 = vadd.xlane.f32.xlu0 %v767_v21  ;;  %771 = vadd.xlane.f32.xlu1 %v770_v22 }
 0x132   : > { %774 = vadd.xlane.f32.xlu0 %v773_v25  ;;  %777 = vadd.xlane.f32.xlu1 %v776_v26 }
 0x136   : > { %780 = vadd.xlane.f32.xlu0 %v779_v29  ;;  %783 = vadd.xlane.f32.xlu1 %v782_v30 }
 0x197   : > { %v715_v31 = vpop.xlane.xlu0 %714  ;;  %v721_v32 = vpop.xlane.xlu1 %720 }
 0x198   : > { %v786_v33 = vmul.f32 0.03125, %v715_v31  ;;  %v788_v34 = vmul.f32 0.03125, %v721_v32 }
 0x19a   : > { %v11178_v35 = vsub.f32 %v11081_v47, %v786_v33  ;;  %v11181_v36 = vsub.f32 %v11083_v48, %v788_v34 }
 0x19b   : > { %v718_v37 = vpop.xlane.xlu0 %717  ;;  %v724_v38 = vpop.xlane.xlu1 %723 }
 0x19c   : > { %v787_v39 = vmul.f32 0.03125, %v718_v37  ;;  %v789_v40 = vmul.f32 0.03125, %v724_v38  ;;  %v834_v41 = vmul.f32 %v11178_v35, %v11178_v35  ;;  %v836_v42 = vmul.f32 %v11181_v36, %v11181_v36 }
 0x19e   : > { %v11188_v43 = vsub.f32 %v11085_v49, %v787_v39  ;;  %v11191_v44 = vsub.f32 %v11091_v52, %v789_v40  ;;  %v858_v45 = vsel %vm712_vm2, %v834_v41, 0.0  ;;  %v864_v48 = vsel %vm712_vm2, %v836_v42, 0.0 }
 0x19f   : > { %859 = vadd.xlane.f32.xlu0 %v858_v45  ;;  %v727_v46 = vpop.xlane.xlu0 %726  ;;  %v730_v47 = vpop.xlane.xlu1 %729 }
 0x1a0   : > { %v790_v50 = vmul.f32 0.03125, %v727_v46  ;;  %v791_v51 = vmul.f32 0.03125, %v730_v47  ;;  %v835_v53 = vmul.f32 %v11188_v43, %v11188_v43  ;;  %v837_v54 = vmul.f32 %v11191_v44, %v11191_v44 }
 0x1a2   : > { %v11200_v49 = vsub.f32 %v11097_v55, %v790_v50  ;;  %v11203_v52 = vsub.f32 %v11099_v56, %v791_v51  ;;  %v861_v59 = vsel %vm712_vm2, %v835_v53, 0.0  ;;  %v867_v62 = vsel %vm712_vm2, %v837_v54, 0.0 }
 0x1a3   : > { %865 = vadd.xlane.f32.xlu0 %v864_v48  ;;  %862 = vadd.xlane.f32.xlu1 %v861_v59  ;;  %v733_v60 = vpop.xlane.xlu0 %732  ;;  %v736_v61 = vpop.xlane.xlu1 %735 }
 0x1a4   : > { %v792_v1 = vmul.f32 0.03125, %v733_v60  ;;  %v793_v2 = vmul.f32 0.03125, %v736_v61  ;;  %v838_v5 = vmul.f32 %v11200_v49, %v11200_v49  ;;  %v839_v55 = vmul.f32 %v11203_v52, %v11203_v52 }
 0x1a6   : > { %v11212_v6 = vsub.f32 %v11101_v57, %v792_v1  ;;  %v11215_v56 = vsub.f32 %v11103_v58, %v793_v2  ;;  %v870_v9 = vsel %vm712_vm2, %v838_v5, 0.0  ;;  %v873_v14 = vsel %vm712_vm2, %v839_v55, 0.0 }
 0x1a7   : > { %868 = vadd.xlane.f32.xlu1 %v867_v62  ;;  %871 = vadd.xlane.f32.xlu0 %v870_v9  ;;  %v739_v10 = vpop.xlane.xlu0 %738  ;;  %v742_v13 = vpop.xlane.xlu1 %741 }
 0x1a8   : > { %v794_v17 = vmul.f32 0.03125, %v739_v10  ;;  %v795_v18 = vmul.f32 0.03125, %v742_v13  ;;  %v840_v21 = vmul.f32 %v11212_v6, %v11212_v6  ;;  %v841_v57 = vmul.f32 %v11215_v56, %v11215_v56 }
 0x1aa   : > { %v11224_v22 = vsub.f32 %v11113_v63, %v794_v17  ;;  %v11227_v58 = vsub.f32 %v11115_v0, %v795_v18  ;;  %v876_v25 = vsel %vm712_vm2, %v840_v21, 0.0  ;;  %v879_v30 = vsel %vm712_vm2, %v841_v57, 0.0 }
 0x1ab   : > { %874 = vadd.xlane.f32.xlu1 %v873_v14  ;;  %877 = vadd.xlane.f32.xlu0 %v876_v25  ;;  %v745_v26 = vpop.xlane.xlu0 %744  ;;  %v748_v29 = vpop.xlane.xlu1 %747 }
 0x1ac   : > { %v796_v31 = vmul.f32 0.03125, %v745_v26  ;;  %v797_v32 = vmul.f32 0.03125, %v748_v29  ;;  %v842_v33 = vmul.f32 %v11224_v22, %v11224_v22  ;;  %v843_v63 = vmul.f32 %v11227_v58, %v11227_v58 }
 0x1ae   : > { %v11236_v34 = vsub.f32 %v11121_v3, %v796_v31  ;;  %v11239_v0 = vsub.f32 %v11123_v4, %v797_v32  ;;  %v882_v37 = vsel %vm712_vm2, %v842_v33, 0.0  ;;  %v885_v40 = vsel %vm712_vm2, %v843_v63, 0.0 }
 0x1af   : > { %880 = vadd.xlane.f32.xlu1 %v879_v30  ;;  %883 = vadd.xlane.f32.xlu0 %v882_v37  ;;  %v751_v38 = vpop.xlane.xlu0 %750  ;;  %v754_v39 = vpop.xlane.xlu1 %753 }
 0x1b0   : > { %v798_v41 = vmul.f32 0.03125, %v751_v38  ;;  %v799_v42 = vmul.f32 0.03125, %v754_v39  ;;  %v844_v45 = vmul.f32 %v11236_v34, %v11236_v34  ;;  %v845_v3 = vmul.f32 %v11239_v0, %v11239_v0 }
 0x1b2   : > { %v11248_v46 = vsub.f32 %v11129_v7, %v798_v41  ;;  %v11251_v4 = vsub.f32 %v11131_v8, %v799_v42  ;;  %v888_v47 = vsel %vm712_vm2, %v844_v45, 0.0  ;;  %v891_v51 = vsel %vm712_vm2, %v845_v3, 0.0  ;;  %v10152_v45 = vld [vmem:[%s10879_s19] ss:$8 sps:$4 sm:$0xff]  }
 0x1b3   : > { %886 = vadd.xlane.f32.xlu1 %v885_v40  ;;  %889 = vadd.xlane.f32.xlu0 %v888_v47  ;;  %v757_v48 = vpop.xlane.xlu0 %756  ;;  %v760_v50 = vpop.xlane.xlu1 %759 }
 0x1b4   : > { %v800_v53 = vmul.f32 0.03125, %v757_v48  ;;  %v801_v54 = vmul.f32 0.03125, %v760_v50  ;;  %v846_v59 = vmul.f32 %v11248_v46, %v11248_v46  ;;  %v847_v7 = vmul.f32 %v11251_v4, %v11251_v4  ;;  %9183 = vmatprep.subr.bf16.mxu0 %v10152_v45 }
 0x1b5   : > { %9184 = vmatpush3.bf16.msra.mxu0 %v10152_v45 }
 0x1b6   : > { %v11260_v60 = vsub.f32 %v11137_v11, %v800_v53  ;;  %v11263_v8 = vsub.f32 %v11139_v12, %v801_v54  ;;  %v894_v61 = vsel %vm712_vm2, %v846_v59, 0.0  ;;  %v897_v2 = vsel %vm712_vm2, %v847_v7, 0.0  ;;  %v10154_v53 = vld [vmem:[%s10879_s19 + $0x10] ss:$8 sps:$4 sm:$0xff]  }
 0x1b7   : > { %892 = vadd.xlane.f32.xlu1 %v891_v51  ;;  %895 = vadd.xlane.f32.xlu0 %v894_v61  ;;  %v763_v62 = vpop.xlane.xlu0 %762  ;;  %v766_v1 = vpop.xlane.xlu1 %765 }
 0x1b8   : > { %v802_v5 = vmul.f32 0.03125, %v763_v62  ;;  %v803_v55 = vmul.f32 0.03125, %v766_v1  ;;  %v848_v9 = vmul.f32 %v11260_v60, %v11260_v60  ;;  %v849_v11 = vmul.f32 %v11263_v8, %v11263_v8  ;;  %9185 = vmatprep.subr.bf16.mxu0 %v10154_v53 }
 0x1b9   : > { %9186 = vmatpush3.bf16.msra.mxu0 %v10154_v53 }
 0x1ba   : > { %v11272_v10 = vsub.f32 %v11145_v15, %v802_v5  ;;  %v11275_v12 = vsub.f32 %v11147_v16, %v803_v55  ;;  %v900_v13 = vsel %vm712_vm2, %v848_v9, 0.0  ;;  %v903_v18 = vsel %vm712_vm2, %v849_v11, 0.0 }
 0x1bb   : > { %898 = vadd.xlane.f32.xlu1 %v897_v2  ;;  %901 = vadd.xlane.f32.xlu0 %v900_v13  ;;  %v769_v14 = vpop.xlane.xlu0 %768  ;;  %v772_v17 = vpop.xlane.xlu1 %771  ;;  %v1026_v55 = vlaneseq }
 0x1bc   : > { %v804_v21 = vmul.f32 0.03125, %v769_v14  ;;  %v805_v57 = vmul.f32 0.03125, %v772_v17  ;;  %v850_v25 = vmul.f32 %v11272_v10, %v11272_v10  ;;  %v851_v15 = vmul.f32 %v11275_v12, %v11275_v12 }
 0x1be   : > { %v11284_v26 = vsub.f32 %v11153_v19, %v804_v21  ;;  %v11287_v16 = vsub.f32 %v11155_v20, %v805_v57  ;;  %v906_v29 = vsel %vm712_vm2, %v850_v25, 0.0  ;;  %v909_v32 = vsel %vm712_vm2, %v851_v15, 0.0 }
 0x1bf   : > { %904 = vadd.xlane.f32.xlu1 %v903_v18  ;;  %907 = vadd.xlane.f32.xlu0 %v906_v29  ;;  %v775_v30 = vpop.xlane.xlu0 %774  ;;  %v778_v31 = vpop.xlane.xlu1 %777  ;;  %v11323_v21 = vshrl.u32 %v1026_v55, 7 }
 0x1c0   : > { %v806_v33 = vmul.f32 0.03125, %v775_v30  ;;  %v807_v63 = vmul.f32 0.03125, %v778_v31  ;;  %v852_v37 = vmul.f32 %v11284_v26, %v11284_v26  ;;  %v853_v19 = vmul.f32 %v11287_v16, %v11287_v16 }
 0x1c1   : > { %14680 = vst [vmem:[#allocation6_spill] sm:$0xff] %v11323_v21 }
 0x1c2   : > { %v11296_v20 = vsub.f32 %v11161_v23, %v806_v33  ;;  %v11299_v38 = vsub.f32 %v11163_v24, %v807_v63  ;;  %v912_v39 = vsel %vm712_vm2, %v852_v37, 0.0  ;;  %v915_v42 = vsel %vm712_vm2, %v853_v19, 0.0  ;;  %v11327_v37 = vld [vmem:[%s10889_s25] sm:$0xff] }
 0x1c3   : > { %910 = vadd.xlane.f32.xlu1 %v909_v32  ;;  %913 = vadd.xlane.f32.xlu0 %v912_v39  ;;  %v781_v40 = vpop.xlane.xlu0 %780  ;;  %v784_v41 = vpop.xlane.xlu1 %783  ;;  %v14629_v32 = vsub.s32 2, %v11323_v21 }
 0x1c4   : > { %v808_v3 = vmul.f32 0.03125, %v781_v40  ;;  %v809_v47 = vmul.f32 0.03125, %v784_v41  ;;  %v854_v48 = vmul.f32 %v11296_v20, %v11296_v20  ;;  %v855_v23 = vmul.f32 %v11299_v38, %v11299_v38 }
 0x1c6   : > { %v11309_v24 = vsub.f32 %v11169_v27, %v808_v3  ;;  %v11312_v50 = vsub.f32 %v11171_v28, %v809_v47  ;;  %v918_v51 = vsel %vm712_vm2, %v854_v48, 0.0  ;;  %v921_v54 = vsel %vm712_vm2, %v855_v23, 0.0 }
 0x1c7   : > { %916 = vadd.xlane.f32.xlu1 %v915_v42  ;;  %919 = vadd.xlane.f32.xlu0 %v918_v51  ;;  %v11333_v3 = vrot.slane %v11327_v37, %v14629_v32  ;;  %v1056_v47 = vsub.s32 3, %v11323_v21 }
 0x1c8   : > { %v856_v59 = vmul.f32 %v11309_v24, %v11309_v24  ;;  %v857_v7 = vmul.f32 %v11312_v50, %v11312_v50 }
 0x1ca   : > { %v924_v27 = vsel %vm712_vm2, %v856_v59, 0.0  ;;  %v927_v28 = vsel %vm712_vm2, %v857_v7, 0.0 }
 0x1cb   : > { %922 = vadd.xlane.f32.xlu1 %v921_v54  ;;  %925 = vadd.xlane.f32.xlu0 %v924_v27 }
 0x1cf   : > { %928 = vadd.xlane.f32.xlu1 %v927_v28 }
 0x22c   : > { %v860_v61 = vpop.xlane.xlu0 %859 }
 0x22d   : > { %v930_v62 = vmul.f32 0.03125, %v860_v61  ;;  %v11339_v61 = vrot.slane %v11327_v37, %v1056_v47 }
 0x22f   : > { %v954_v1 = vadd.f32 1e-06, %v930_v62 }
 0x230   : > { %v863_v2 = vpop.xlane.xlu1 %862  ;;  %v866_v5 = vpop.xlane.xlu0 %865 }
 0x231   : > { %10162 = vrsqrt.f32 %v954_v1  ;;  %v931_v9 = vmul.f32 0.03125, %v863_v2  ;;  %v932_v11 = vmul.f32 0.03125, %v866_v5 }
 0x233   : > { %v955_v13 = vadd.f32 1e-06, %v931_v9  ;;  %v956_v14 = vadd.f32 1e-06, %v932_v11 }
 0x234   : > { %v869_v17 = vpop.xlane.xlu1 %868  ;;  %v872_v18 = vpop.xlane.xlu0 %871 }
 0x235   : > { %10164 = vrsqrt.f32 %v955_v13  ;;  %v933_v57 = vmul.f32 0.03125, %v869_v17  ;;  %v934_v25 = vmul.f32 0.03125, %v872_v18 }
 0x236   : > { %10166 = vrsqrt.f32 %v956_v14 }
 0x237   : > { %v957_v15 = vadd.f32 1e-06, %v933_v57  ;;  %v958_v29 = vadd.f32 1e-06, %v934_v25 }
 0x238   : > { %v875_v30 = vpop.xlane.xlu1 %874  ;;  %v878_v31 = vpop.xlane.xlu0 %877 }
 0x239   : > { %10168 = vrsqrt.f32 %v957_v15  ;;  %v935_v33 = vmul.f32 0.03125, %v875_v30  ;;  %v936_v63 = vmul.f32 0.03125, %v878_v31 }
 0x23a   : > { %10170 = vrsqrt.f32 %v958_v29 }
 0x23b   : > { %v10163_v19 = vpop.eup %10162  ;;  %v959_v39 = vadd.f32 1e-06, %v935_v33  ;;  %v960_v40 = vadd.f32 1e-06, %v936_v63 }
 0x23c   : > { %v881_v41 = vpop.xlane.xlu1 %880  ;;  %v884_v42 = vpop.xlane.xlu0 %883  ;;  %v1002_v45 = vmul.f32 %v10163_v19, %v11178_v35 }
 0x23d   : > { %10172 = vrsqrt.f32 %v959_v39  ;;  %v937_v48 = vmul.f32 0.03125, %v881_v41  ;;  %v938_v23 = vmul.f32 0.03125, %v884_v42 }
 0x23e   : > { %10174 = vrsqrt.f32 %v960_v40  ;;  %v1030_v35 = vmul.f32 %v11333_v3, %v1002_v45 }
 0x23f   : > { %v10165_v51 = vpop.eup %10164  ;;  %v961_v53 = vadd.f32 1e-06, %v937_v48  ;;  %v962_v54 = vadd.f32 1e-06, %v938_v23 }
 0x240   : > { %v10167_v59 = vpop.eup %10166  ;;  %v887_v7 = vpop.xlane.xlu1 %886  ;;  %v1003_v28 = vmul.f32 %v10165_v51, %v11188_v43  ;;  %v1058_v43 = vadd.f32 %v11339_v61, %v1030_v35 }
 0x241   : > { %v890_v27 = vpop.xlane.xlu0 %889  ;;  %10176 = vrsqrt.f32 %v961_v53  ;;  %v939_v62 = vmul.f32 0.03125, %v887_v7  ;;  %v1004_v2 = vmul.f32 %v10167_v59, %v11181_v36 }
 0x242   : > { %v940_v1 = vmul.f32 0.03125, %v890_v27  ;;  %10178 = vrsqrt.f32 %v962_v54  ;;  %v1031_v5 = vmul.f32 %v11333_v3, %v1003_v28 }
 0x243   : > { %v10169_v55 = vpop.eup %10168  ;;  %v963_v9 = vadd.f32 1e-06, %v939_v62  ;;  %v1032_v25 = vmul.f32 %v11333_v3, %v1004_v2 }
 0x244   : > { %v964_v11 = vadd.f32 1e-06, %v940_v1  ;;  %v10171_v13 = vpop.eup %10170  ;;  %v893_v14 = vpop.xlane.xlu1 %892  ;;  %v1059_v18 = vadd.f32 %v11339_v61, %v1031_v5  ;;  %v1005_v57 = vmul.f32 %v10169_v55, %v11191_v44 }
 0x245   : > { %v896_v17 = vpop.xlane.xlu0 %895  ;;  %10180 = vrsqrt.f32 %v963_v9  ;;  %v941_v15 = vmul.f32 0.03125, %v893_v14  ;;  %v1006_v31 = vmul.f32 %v10171_v13, %v11200_v49  ;;  %v1060_v44 = vadd.f32 %v11339_v61, %v1032_v25 }
 0x246   : > { %v942_v36 = vmul.f32 0.03125, %v896_v17  ;;  %10182 = vrsqrt.f32 %v964_v11  ;;  %v1082_v29 = vpack.c.bf16 %v1059_v18, %v1058_v43  ;;  %v1033_v30 = vmul.f32 %v11333_v3, %v1005_v57 }
 0x247   : > { %v10173_v33 = vpop.eup %10172  ;;  %v965_v63 = vadd.f32 1e-06, %v941_v15  ;;  %v1034_v47 = vmul.f32 %v11333_v3, %v1006_v31 }
 0x248   : > { %v966_v19 = vadd.f32 1e-06, %v942_v36  ;;  %v10175_v39 = vpop.eup %10174  ;;  %v899_v40 = vpop.xlane.xlu1 %898  ;;  %9187 = vmatprep.mubr.msk.bf16.mxu0 %vm712_vm2, %v1082_v29  ;;  %v1061_v42 = vadd.f32 %v11339_v61, %v1033_v30  ;;  %v1007_v45 = vmul.f32 %v10173_v33, %v11203_v52 }
 0x249   : > { %v902_v41 = vpop.xlane.xlu0 %901  ;;  %10184 = vrsqrt.f32 %v965_v63  ;;  %v943_v48 = vmul.f32 0.03125, %v899_v40  ;;  %v1008_v49 = vmul.f32 %v10175_v39, %v11212_v6  ;;  %v1062_v52 = vadd.f32 %v11339_v61, %v1034_v47 }
 0x24a   : > { %v944_v23 = vmul.f32 0.03125, %v902_v41  ;;  %10186 = vrsqrt.f32 %v966_v19  ;;  %v1083_v51 = vpack.c.bf16 %v1061_v42, %v1060_v44  ;;  %v1035_v53 = vmul.f32 %v11333_v3, %v1007_v45 }
 0x24b   : > { %v10177_v54 = vpop.eup %10176  ;;  %v967_v59 = vadd.f32 1e-06, %v943_v48  ;;  %v1036_v6 = vmul.f32 %v11333_v3, %v1008_v49 }
 0x24c   : > { %v968_v7 = vadd.f32 1e-06, %v944_v23  ;;  %v10179_v27 = vpop.eup %10178  ;;  %v905_v28 = vpop.xlane.xlu1 %904  ;;  %9188 = vmatmul.mubr.msk.bf16.vlgmr.msra.gmra.mrb[0].mxu0 %vm712_vm2, %v1083_v51  ;;  %v1063_v62 = vadd.f32 %v11339_v61, %v1035_v53  ;;  %v1009_v1 = vmul.f32 %v10177_v54, %v11215_v56 }
 0x24d   : > { %v908_v35 = vpop.xlane.xlu0 %907  ;;  %10188 = vrsqrt.f32 %v967_v59  ;;  %v945_v2 = vmul.f32 0.03125, %v905_v28  ;;  %v1010_v11 = vmul.f32 %v10179_v27, %v11224_v22  ;;  %v1064_v56 = vadd.f32 %v11339_v61, %v1036_v6 }
 0x24e   : > { %v946_v5 = vmul.f32 0.03125, %v908_v35  ;;  %10190 = vrsqrt.f32 %v968_v7  ;;  %v1084_v55 = vpack.c.bf16 %v1063_v62, %v1062_v52  ;;  %v1037_v9 = vmul.f32 %v11333_v3, %v1009_v1 }
 0x24f   : > { %v10181_v13 = vpop.eup %10180  ;;  %v969_v14 = vadd.f32 1e-06, %v945_v2  ;;  %v1038_v36 = vmul.f32 %v11333_v3, %v1010_v11 }
 0x250   : > { %v970_v17 = vadd.f32 1e-06, %v946_v5  ;;  %v10183_v43 = vpop.eup %10182  ;;  %v911_v18 = vpop.xlane.xlu1 %910  ;;  %9191 = vmatprep.mubr.msk.bf16.mxu0 %vm712_vm2, %v1084_v55  ;;  %v1065_v25 = vadd.f32 %v11339_v61, %v1037_v9  ;;  %v1011_v15 = vmul.f32 %v10181_v13, %v11227_v58 }
 0x251   : > { %v914_v57 = vpop.xlane.xlu0 %913  ;;  %10192 = vrsqrt.f32 %v969_v14  ;;  %v947_v29 = vmul.f32 0.03125, %v911_v18  ;;  %v1012_v22 = vmul.f32 %v10183_v43, %v11236_v34  ;;  %v1066_v58 = vadd.f32 %v11339_v61, %v1038_v36 }
 0x252   : > { %v948_v30 = vmul.f32 0.03125, %v914_v57  ;;  %10194 = vrsqrt.f32 %v970_v17  ;;  %v1085_v31 = vpack.c.bf16 %v1065_v25, %v1064_v56  ;;  %v1039_v33 = vmul.f32 %v11333_v3, %v1011_v15 }
 0x253   : > { %v10185_v63 = vpop.eup %10184  ;;  %v971_v19 = vadd.f32 1e-06, %v947_v29  ;;  %v1040_v34 = vmul.f32 %v11333_v3, %v1012_v22 }
 0x254   : > { %v972_v39 = vadd.f32 1e-06, %v948_v30  ;;  %v10187_v40 = vpop.eup %10186  ;;  %v917_v41 = vpop.xlane.xlu1 %916  ;;  %9192 = vmatmul.mubr.msk.bf16.gmra.mrb[4].mxu0 %vm712_vm2, %v1085_v31  ;;  %v1067_v42 = vadd.f32 %v11339_v61, %v1039_v33  ;;  %v1013_v45 = vmul.f32 %v10185_v63, %v11239_v0 }
 0x255   : > { %v920_v44 = vpop.xlane.xlu0 %919  ;;  %10196 = vrsqrt.f32 %v971_v19  ;;  %v949_v47 = vmul.f32 0.03125, %v917_v41  ;;  %v1014_v51 = vmul.f32 %v10187_v40, %v11248_v46  ;;  %v1068_v0 = vadd.f32 %v11339_v61, %v1040_v34 }
 0x256   : > { %v950_v48 = vmul.f32 0.03125, %v920_v44  ;;  %10198 = vrsqrt.f32 %v972_v39  ;;  %v1086_v23 = vpack.c.bf16 %v1067_v42, %v1066_v58  ;;  %v1041_v49 = vmul.f32 %v11333_v3, %v1013_v45 }
 0x257   : > { %v10189_v53 = vpop.eup %10188  ;;  %v973_v54 = vadd.f32 1e-06, %v949_v47  ;;  %v1042_v62 = vmul.f32 %v11333_v3, %v1014_v51 }
 0x258   : > { %v974_v59 = vadd.f32 1e-06, %v950_v48  ;;  %v10191_v7 = vpop.eup %10190  ;;  %v923_v27 = vpop.xlane.xlu1 %922  ;;  %9195 = vmatprep.mubr.msk.bf16.mxu0 %vm712_vm2, %v1086_v23  ;;  %v1069_v35 = vadd.f32 %v11339_v61, %v1041_v49  ;;  %v1015_v52 = vmul.f32 %v10189_v53, %v11251_v4 }
 0x259   : > { %v926_v28 = vpop.xlane.xlu0 %925  ;;  %10200 = vrsqrt.f32 %v973_v54  ;;  %v951_v1 = vmul.f32 0.03125, %v923_v27  ;;  %v1016_v46 = vmul.f32 %v10191_v7, %v11260_v60  ;;  %v1070_v4 = vadd.f32 %v11339_v61, %v1042_v62 }
 0x25a   : > { %v952_v6 = vmul.f32 0.03125, %v926_v28  ;;  %10202 = vrsqrt.f32 %v974_v59  ;;  %v1087_v2 = vpack.c.bf16 %v1069_v35, %v1068_v0  ;;  %v1043_v5 = vmul.f32 %v11333_v3, %v1015_v52 }
 0x25b   : > { %v10193_v55 = vpop.eup %10192  ;;  %v975_v9 = vadd.f32 1e-06, %v951_v1  ;;  %v1044_v18 = vmul.f32 %v11333_v3, %v1016_v46  ;;  %v14630_v52 = vsub.s32 0, %v11323_v21 }
 0x25c   : > { %v976_v11 = vadd.f32 1e-06, %v952_v6  ;;  %v10195_v13 = vpop.eup %10194  ;;  %v929_v14 = vpop.xlane.xlu1 %928  ;;  %9196 = vmatmul.mubr.msk.bf16.gmra.mrb[8].mxu0 %vm712_vm2, %v1087_v2  ;;  %v1071_v17 = vadd.f32 %v11339_v61, %v1043_v5  ;;  %v1017_v43 = vmul.f32 %v10193_v55, %v11263_v8 }
 0x25d   : > { %10204 = vrsqrt.f32 %v975_v9  ;;  %v953_v60 = vmul.f32 0.03125, %v929_v14  ;;  %v1018_v57 = vmul.f32 %v10195_v13, %v11272_v10  ;;  %v1072_v30 = vadd.f32 %v11339_v61, %v1044_v18 }
 0x25e   : > { %10206 = vrsqrt.f32 %v976_v11  ;;  %v1088_v56 = vpack.c.bf16 %v1071_v17, %v1070_v4  ;;  %v1045_v25 = vmul.f32 %v11333_v3, %v1017_v43 }
 0x25f   : > { %v10197_v15 = vpop.eup %10196  ;;  %v977_v36 = vadd.f32 1e-06, %v953_v60  ;;  %v1046_v31 = vmul.f32 %v11333_v3, %v1018_v57 }
 0x260   : > { %v10199_v29 = vpop.eup %10198  ;;  %9199 = vmatprep.mubr.msk.bf16.mxu0 %vm712_vm2, %v1088_v56  ;;  %v1073_v22 = vadd.f32 %v11339_v61, %v1045_v25  ;;  %v1019_v8 = vmul.f32 %v10197_v15, %v11275_v12 }
 0x261   : > { %10208 = vrsqrt.f32 %v977_v36  ;;  %v1020_v10 = vmul.f32 %v10199_v29, %v11284_v26  ;;  %v1074_v40 = vadd.f32 %v11339_v61, %v1046_v31 }
 0x262   : > { %v1089_v33 = vpack.c.bf16 %v1073_v22, %v1072_v30  ;;  %v1047_v63 = vmul.f32 %v11333_v3, %v1019_v8 }
 0x263   : > { %v10201_v19 = vpop.eup %10200  ;;  %v1048_v12 = vmul.f32 %v11333_v3, %v1020_v10 }
 0x264   : > { %v10203_v39 = vpop.eup %10202  ;;  %9200 = vmatmul.mubr.msk.bf16.gmra.mrb[12].mxu0 %vm712_vm2, %v1089_v33  ;;  %v1075_v41 = vadd.f32 %v11339_v61, %v1047_v63  ;;  %v1021_v44 = vmul.f32 %v10201_v19, %v11287_v16 }
 0x265   : > { %v1022_v58 = vmul.f32 %v10203_v39, %v11296_v20  ;;  %v1076_v47 = vadd.f32 %v11339_v61, %v1048_v12 }
 0x266   : > { %v1090_v42 = vpack.c.bf16 %v1075_v41, %v1074_v40  ;;  %v1049_v26 = vmul.f32 %v11333_v3, %v1021_v44 }
 0x267   : > { %v10205_v45 = vpop.eup %10204  ;;  %v1050_v49 = vmul.f32 %v11333_v3, %v1022_v58 }
 0x268   : > { %v10207_v34 = vpop.eup %10206  ;;  %9203 = vmatprep.mubr.msk.bf16.mxu0 %vm712_vm2, %v1090_v42  ;;  %v1077_v48 = vadd.f32 %v11339_v61, %v1049_v26  ;;  %v1023_v23 = vmul.f32 %v10205_v45, %v11299_v38 }
 0x269   : > { %v1024_v16 = vmul.f32 %v10207_v34, %v11309_v24  ;;  %v1078_v54 = vadd.f32 %v11339_v61, %v1050_v49 }
 0x26a   : > { %v1091_v51 = vpack.c.bf16 %v1077_v48, %v1076_v47  ;;  %v1051_v20 = vmul.f32 %v11333_v3, %v1023_v23 }
 0x26b   : > { %v10209_v53 = vpop.eup %10208  ;;  %v1052_v27 = vmul.f32 %v11333_v3, %v1024_v16 }
 0x26c   : > { %9204 = vmatmul.mubr.msk.bf16.gmra.mrb[16].mxu0 %vm712_vm2, %v1091_v51  ;;  %v1079_v59 = vadd.f32 %v11339_v61, %v1051_v20  ;;  %v1025_v7 = vmul.f32 %v10209_v53, %v11312_v50  ;;  %v11426_v50 = vrot.slane %v11327_v37, %v14630_v52 }
 0x26d   : > { %v1080_v24 = vadd.f32 %v11339_v61, %v1052_v27 }
 0x26e   : > { %v1092_v28 = vpack.c.bf16 %v1079_v59, %v1078_v54  ;;  %v1053_v38 = vmul.f32 %v11333_v3, %v1025_v7 }
 0x270   : > { %9207 = vmatprep.mubr.msk.bf16.mxu0 %vm712_vm2, %v1092_v28  ;;  %v1081_v0 = vadd.f32 %v11339_v61, %v1053_v38 }
 0x272   : > { %v1093_v35 = vpack.c.bf16 %v1081_v0, %v1080_v24 }
 0x274   : > { %9208 = vmatmul.mubr.msk.bf16.gmra.mrb[20].mxu0 %vm712_vm2, %v1093_v35 }
 0x31f   : > { %v9189_v62 = vpop.f32.mrb[0].mxu0 }
 0x320   : > { %v1180_v1 = vpop.f32.mrb[1].mxu0  ;;  %v1189_v60 = vadd.f32 %v9189_v62, %v11426_v50 }
 0x321   : > { %v9190_v6 = vpop.f32.mrb[2].mxu0  ;;  %v1181_v46 = vadd.f32 %v1180_v1, %v11426_v50 }
 0x322   : > { %v1183_v3 = vpop.f32.mrb[3].mxu0  ;;  %v1192_v55 = vadd.f32 %v9190_v6, %v11426_v50  ;;  %v11454_v15 = vpack.c.bf16 %v1189_v60, %v1189_v60 }
 0x323   : > { %v1184_v2 = vadd.f32 %v1183_v3, %v11426_v50 }
 0x325   : > { %v11430_v61 = vpack.c.bf16 %v1184_v2, %v1181_v46 }
 0x327   : > { %1296 = vrot.lane.b32.xlu1 %v11430_v61, %s10785_s23  ;;  %v9193_v5 = vpop.f32.mrb[4].mxu0  ;;  %9215 = vmatprep.mubr.msk.bf16.mxu0 %vm1300_vm3, %v11430_v61 }
 0x328   : > { %v1196_v37 = vpop.f32.mrb[5].mxu0  ;;  %v1205_v13 = vadd.f32 %v9193_v5, %v11426_v50 }
 0x329   : > { %v1197_v9 = vadd.f32 %v1196_v37, %v11426_v50  ;;  %v9194_v11 = vpop.f32.mrb[6].mxu0 }
 0x32a   : > { %v1208_v14 = vadd.f32 %v9194_v11, %v11426_v50  ;;  %v1199_v4 = vpop.f32.mrb[7].mxu0 }
 0x32b   : > { %v11440_v17 = vpack.c.bf16 %v1197_v9, %v1192_v55  ;;  %v1200_v43 = vadd.f32 %v1199_v4, %v11426_v50 }
 0x32c   : > { %v11443_v18 = vpack.c.bf16 %v1208_v14, %v1205_v13 }
 0x32d   : > { %14681 = vst [vmem:[#allocation7_spill] sm:$0xff] %v11440_v17  ;;  %v11446_v57 = vpack.c.bf16 %v1200_v43, %v1200_v43  ;;  %1363 = vrot.lane.b32.xlu0 %v11440_v17, %s10785_s23  ;;  %9223 = vmatprep.mubr.msk.bf16.mxu1 %vm1300_vm3, %v11440_v17 }
 0x32f   : > { %1365 = vrot.lane.b32.xlu1 %v11446_v57, %s10785_s23  ;;  %v9197_v56 = vpop.f32.mrb[8].mxu0 }
 0x330   : > { %v1212_v25 = vpop.f32.mrb[9].mxu0  ;;  %v1221_v22 = vadd.f32 %v9197_v56, %v11426_v50 }
 0x331   : > { %v1213_v36 = vadd.f32 %v1212_v25, %v11426_v50  ;;  %1429 = vrot.lane.b32.xlu0 %v11443_v18, %s10785_s23  ;;  %v9198_v29 = vpop.f32.mrb[10].mxu0 }
 0x332   : > { %v1215_v30 = vpop.f32.mrb[11].mxu0  ;;  %v1224_v10 = vadd.f32 %v9198_v29, %v11426_v50 }
 0x333   : > { %v1216_v8 = vadd.f32 %v1215_v30, %v11426_v50  ;;  %1298 = vrot.lane.b32.xlu1 %v11454_v15, %s10785_s23  ;;  %v11463_v31 = vpack.c.bf16 %v1213_v36, %v1213_v36 }
 0x334   : > { %v11472_v39 = vpack.c.bf16 %v1224_v10, %v1224_v10 }
 0x335   : > { %v11466_v33 = vpack.c.bf16 %v1221_v22, %v1216_v8 }
 0x337   : > { %14682 = vst [vmem:[#allocation8_spill] sm:$0xff] %v11466_v33  ;;  %1495 = vrot.lane.b32.xlu0 %v11466_v33, %s10785_s23  ;;  %1431 = vrot.lane.b32.xlu1 %v11463_v31, %s10785_s23  ;;  %v9201_v63 = vpop.f32.mrb[12].mxu0 }
 0x338   : > { %v1228_v19 = vpop.f32.mrb[13].mxu0  ;;  %v1237_v40 = vadd.f32 %v9201_v63, %v11426_v50 }
 0x339   : > { %v9202_v41 = vpop.f32.mrb[14].mxu0  ;;  %v1229_v12 = vadd.f32 %v1228_v19, %v11426_v50 }
 0x33a   : > { %v1231_v44 = vpop.f32.mrb[15].mxu0  ;;  %v11479_v42 = vpack.c.bf16 %v1237_v40, %v1237_v40  ;;  %v1240_v47 = vadd.f32 %v9202_v41, %v11426_v50 }
 0x33b   : > { %v1232_v58 = vadd.f32 %v1231_v44, %v11426_v50  ;;  %1497 = vrot.lane.b32.xlu1 %v11472_v39, %s10785_s23 }
 0x33d   : > { %v11481_v26 = vpack.c.bf16 %v1232_v58, %v1229_v12 }
 0x33f   : > { %14683 = vst [vmem:[#allocation9_spill] sm:$0xff] %v11481_v26  ;;  %1563 = vrot.lane.b32.xlu1 %v11479_v42, %s10785_s23  ;;  %1561 = vrot.lane.b32.xlu0 %v11481_v26, %s10785_s23  ;;  %v9205_v45 = vpop.f32.mrb[16].mxu0 }
 0x340   : > { %v1244_v34 = vpop.f32.mrb[17].mxu0  ;;  %v1253_v49 = vadd.f32 %v9205_v45, %v11426_v50 }
 0x341   : > { %v1245_v48 = vadd.f32 %v1244_v34, %v11426_v50  ;;  %v9206_v23 = vpop.f32.mrb[18].mxu0 }
 0x342   : > { %v1256_v16 = vadd.f32 %v9206_v23, %v11426_v50  ;;  %v1247_v51 = vpop.f32.mrb[19].mxu0 }
 0x343   : > { %v11491_v20 = vpack.c.bf16 %v1245_v48, %v1240_v47  ;;  %v1248_v53 = vadd.f32 %v1247_v51, %v11426_v50 }
 0x344   : > { %v11494_v54 = vpack.c.bf16 %v1256_v16, %v1253_v49 }
 0x345   : > { %v11496_v59 = vpack.c.bf16 %v1248_v53, %v1248_v53  ;;  %1627 = vrot.lane.b32.xlu0 %v11491_v20, %s10785_s23 }
 0x347   : > { %1629 = vrot.lane.b32.xlu1 %v11496_v59, %s10785_s23  ;;  %v9209_v7 = vpop.f32.mrb[20].mxu0 }
 0x348   : > { %v1260_v27 = vpop.f32.mrb[21].mxu0  ;;  %v1269_v0 = vadd.f32 %v9209_v7, %v11426_v50 }
 0x349   : > { %v1261_v28 = vadd.f32 %v1260_v27, %v11426_v50  ;;  %1693 = vrot.lane.b32.xlu0 %v11494_v54, %s10785_s23  ;;  %v9210_v38 = vpop.f32.mrb[22].mxu0 }
 0x34a   : > { %v1263_v24 = vpop.f32.mrb[23].mxu0  ;;  %v1272_v62 = vadd.f32 %v9210_v38, %v11426_v50 }
 0x34b   : > { %v11506_v35 = vpack.c.bf16 %v1261_v28, %v1261_v28  ;;  %v1264_v1 = vadd.f32 %v1263_v24, %v11426_v50  ;;  %v11611_v24 = vld [vmem:[%s14622_s3 + $0x10] sm:$0xff] }
 0x34c   : > { %v11514_v3 = vpack.c.bf16 %v1272_v62, %v1272_v62 }
 0x34d   : > { %v11510_v6 = vpack.c.bf16 %v1269_v0, %v1264_v1  ;;  %1695 = vrot.lane.b32.xlu1 %v11506_v35, %s10785_s23 }
 0x34f   : > { %1759 = vrot.lane.b32.xlu0 %v11510_v6, %s10785_s23 }
 0x351   : > { %1761 = vrot.lane.b32.xlu1 %v11514_v3, %s10785_s23  ;;  %s10793_s23 = smov 72  }
 0x353   : > { %2154 = vrot.lane.b32.xlu0 %v11454_v15, %s10786_s24 }
 0x355   : > { %2152 = vrot.lane.b32.xlu1 %v11430_v61, %s10786_s24 }
 0x357   : > { %2277 = vrot.lane.b32.xlu0 %v11443_v18, %s10786_s24 }
 0x359   : > { %2215 = vrot.lane.b32.xlu1 %v11440_v17, %s10786_s24 }
 0x35b   : > { %2217 = vrot.lane.b32.xlu0 %v11446_v57, %s10786_s24 }
 0x35d   : > { %2339 = vrot.lane.b32.xlu1 %v11466_v33, %s10786_s24 }
 0x35f   : > { %2279 = vrot.lane.b32.xlu0 %v11463_v31, %s10786_s24 }
 0x361   : > { %2401 = vrot.lane.b32.xlu1 %v11481_v26, %s10786_s24 }
 0x365   : > { %2341 = vrot.lane.b32.xlu1 %v11472_v39, %s10786_s24 }
 0x399   : > { %v1297_v50 = vpop.permute.xlu1 %1296 }
 0x39a   : > { %9825 = vmatprep.subr.msk.bf16.mxu0 %vm1300_vm3, %v1297_v50  ;;  %v1308_v46 = vsel %vm1300_vm3, %v1297_v50, 0 }
 0x39b   : > { %9212 = vmatpush3.bf16.xpose.msra.mxu0 %v1308_v46 }
 0x39f   : > { %v1364_v2 = vpop.permute.xlu0 %1363 }
 0x3a0   : > { %9827 = vmatprep.subr.msk.bf16.mxu1 %vm1300_vm3, %v1364_v2  ;;  %v1374_v5 = vsel %vm1300_vm3, %v1364_v2, 0  ;;  %v11616_v2 = vld [vmem:[%s14622_s3] sm:$0xff] }
 0x3a1   : > { %v1366_v37 = vpop.permute.xlu1 %1365  ;;  %9220 = vmatpush3.bf16.xpose.msra.mxu1 %v1374_v5 }
 0x3a2   : > { %9828 = vmatprep.subr.msk.bf16.mxu1 %vm1300_vm3, %v1366_v37  ;;  %v1377_v13 = vsel %vm1300_vm3, %v1366_v37, 0 }
 0x3a3   : > { %v1430_v55 = vpop.permute.xlu0 %1429 }
 0x3a4   : > { %v1440_v56 = vsel %vm1300_vm3, %v1430_v55, 0 }
 0x3a5   : > { %v1299_v9 = vpop.permute.xlu1 %1298 }
 0x3a6   : > { %9826 = vmatprep.subr.msk.bf16.mxu0 %vm1300_vm3, %v1299_v9  ;;  %v1311_v11 = vsel %vm1300_vm3, %v1299_v9, 0  ;;  %v11624_v9 = vld [vmem:[%s14622_s3 + $0x8] sm:$0xff] }
 0x3a7   : > { %9214 = vmatpush3.bf16.xpose.msra.mxu0 %v1311_v11 }
 0x3a9   : > { %v1432_v14 = vpop.permute.xlu1 %1431  ;;  %9222 = vmatpush3.bf16.xpose.msra.mxu1 %v1377_v13  ;;  %v1496_v4 = vpop.permute.xlu0 %1495 }
 0x3aa   : > { %9829 = vmatprep.subr.msk.bf16.mxu1 %vm1300_vm3, %v1430_v55  ;;  %9831 = vmatprep.subr.msk.bf16.mxu0 %vm1300_vm3, %v1496_v4  ;;  %v1506_v43 = vsel %vm1300_vm3, %v1496_v4, 0  ;;  %v1443_v30 = vsel %vm1300_vm3, %v1432_v14, 0 }
 0x3ad   : > { %v1498_v60 = vpop.permute.xlu1 %1497 }
 0x3ae   : > { %9216 = vmatmul.mubr.msk.bf16.vlgmr.msra.gmra.mrb[24].mxu0 %vm1300_vm3, %v11454_v15  ;;  %v1509_v36 = vsel %vm1300_vm3, %v1498_v60, 0 }
 0x3af   : > { %9236 = vmatpush3.bf16.xpose.msra.mxu0 %v1506_v43  ;;  %9239 = vmatprep.mubr.msk.bf16.mxu0 %vm1300_vm3, %v11466_v33 }
 0x3b0   : > { %9224 = vmatmul.mubr.msk.bf16.vlgmr.msra.gmra.mrb[0].mxu1 %vm1300_vm3, %v11446_v57  ;;  %9832 = vmatprep.subr.msk.bf16.mxu0 %vm1300_vm3, %v1498_v60 }
 0x3b1   : > { %9228 = vmatpush3.bf16.xpose.msra.mxu1 %v1440_v56  ;;  %9231 = vmatprep.mubr.msk.bf16.mxu1 %vm1300_vm3, %v11443_v18  ;;  %v1562_v25 = vpop.permute.xlu0 %1561  ;;  %v1564_v22 = vpop.permute.xlu1 %1563 }
 0x3b2   : > { %9830 = vmatprep.subr.msk.bf16.mxu1 %vm1300_vm3, %v1432_v14  ;;  %v1572_v63 = vsel %vm1300_vm3, %v1562_v25, 0  ;;  %v1575_v12 = vsel %vm1300_vm3, %v1564_v22, 0 }
 0x3b7   : > { %9238 = vmatpush3.bf16.xpose.msra.mxu0 %v1509_v36  ;;  %v1628_v29 = vpop.permute.xlu0 %1627 }
 0x3b8   : > { %9835 = vmatprep.subr.msk.bf16.mxu0 %vm1300_vm3, %v1628_v29  ;;  %v1638_v8 = vsel %vm1300_vm3, %v1628_v29, 0 }
 0x3b9   : > { %9230 = vmatpush3.bf16.xpose.msra.mxu1 %v1443_v30  ;;  %v1630_v10 = vpop.permute.xlu1 %1629 }
 0x3ba   : > { %9833 = vmatprep.subr.msk.bf16.mxu1 %vm1300_vm3, %v1562_v25  ;;  %v1641_v41 = vsel %vm1300_vm3, %v1630_v10, 0 }
 0x3bb   : > { %v1694_v19 = vpop.permute.xlu0 %1693 }
 0x3bc   : > { %v1704_v34 = vsel %vm1300_vm3, %v1694_v19, 0 }
 0x3be   : > { %9240 = vmatmul.mubr.msk.bf16.vlgmr.msra.gmra.mrb[28].mxu0 %vm1300_vm3, %v11472_v39 }
 0x3bf   : > { %9252 = vmatpush3.bf16.xpose.msra.mxu0 %v1638_v8  ;;  %9255 = vmatprep.mubr.msk.bf16.mxu0 %vm1300_vm3, %v11491_v20  ;;  %v1696_v40 = vpop.permute.xlu1 %1695 }
 0x3c0   : > { %9232 = vmatmul.mubr.msk.bf16.vlgmr.msra.gmra.mrb[4].mxu1 %vm1300_vm3, %v11463_v31  ;;  %9836 = vmatprep.subr.msk.bf16.mxu0 %vm1300_vm3, %v1630_v10  ;;  %v1707_v16 = vsel %vm1300_vm3, %v1696_v40, 0 }
 0x3c1   : > { %9244 = vmatpush3.bf16.xpose.msra.mxu1 %v1572_v63  ;;  %9247 = vmatprep.mubr.msk.bf16.mxu1 %vm1300_vm3, %v11481_v26  ;;  %v1760_v44 = vpop.permute.xlu0 %1759 }
 0x3c2   : > { %9834 = vmatprep.subr.msk.bf16.mxu1 %vm1300_vm3, %v1564_v22  ;;  %v1770_v45 = vsel %vm1300_vm3, %v1760_v44, 0 }
 0x3c3   : > { %v1762_v58 = vpop.permute.xlu1 %1761 }
 0x3c4   : > { %v1773_v23 = vsel %vm1300_vm3, %v1762_v58, 0 }
 0x3c5   : > { %v2155_v48 = vpop.permute.xlu0 %2154 }
 0x3c6   : > { %v2165_v28 = vsel %vm2163_vm4, %v2155_v48, 0 }
 0x3c7   : > { %9254 = vmatpush3.bf16.xpose.msra.mxu0 %v1641_v41  ;;  %v2153_v47 = vpop.permute.xlu1 %2152 }
 0x3c8   : > { %9839 = vmatprep.subr.msk.bf16.mxu0 %vm1300_vm3, %v1760_v44 }
 0x3c9   : > { %9246 = vmatpush3.bf16.xpose.msra.mxu1 %v1575_v12  ;;  %v11594_v51 = vpop.permute.xlu0 %2277 }
 0x3ca   : > { %9837 = vmatprep.subr.msk.bf16.mxu1 %vm1300_vm3, %v1694_v19 }
 0x3cb   : > { %v2216_v49 = vpop.permute.xlu1 %2215 }
 0x3cd   : > { %v2218_v53 = vpop.permute.xlu0 %2217 }
 0x3ce   : > { %9256 = vmatmul.mubr.msk.bf16.vlgmr.msra.gmra.mrb[32].mxu0 %vm1300_vm3, %v11496_v59  ;;  %v2227_v7 = vsel %vm2163_vm4, %v2218_v53, 0 }
 0x3cf   : > { %9268 = vmatpush3.bf16.xpose.msra.mxu0 %v1770_v45  ;;  %9271 = vmatprep.mubr.msk.bf16.mxu0 %vm1300_vm3, %v11510_v6  ;;  %v11603_v27 = vpop.permute.xlu1 %2339 }
 0x3d0   : > { %9248 = vmatmul.mubr.msk.bf16.vlgmr.msra.gmra.mrb[8].mxu1 %vm1300_vm3, %v11479_v42  ;;  %9840 = vmatprep.subr.msk.bf16.mxu0 %vm1300_vm3, %v1762_v58 }
 0x3d1   : > { %9260 = vmatpush3.bf16.xpose.msra.mxu1 %v1704_v34  ;;  %9263 = vmatprep.mubr.msk.bf16.mxu1 %vm1300_vm3, %v11494_v54 }
 0x3d2   : > { %9838 = vmatprep.subr.msk.bf16.mxu1 %vm1300_vm3, %v1696_v40 }
 0x3d7   : > { %9270 = vmatpush3.bf16.xpose.msra.mxu0 %v1773_v23 }
 0x3d8   : > { %9283 = vmatprep.subr.bf16.mxu0 %v2216_v49 }
 0x3d9   : > { %9262 = vmatpush3.bf16.xpose.msra.mxu1 %v1707_v16 }
 0x3da   : > { %9275 = vmatprep.subr.bf16.mxu1 %v2153_v47 }
 0x3de   : > { %9272 = vmatmul.mubr.msk.bf16.vlgmr.msra.gmra.mrb[36].mxu0 %vm1300_vm3, %v11514_v3 }
 0x3df   : > { %9284 = vmatpush3.bf16.msra.mxu0 %v2216_v49 }
 0x3e0   : > { %9264 = vmatmul.mubr.msk.bf16.vlgmr.msra.gmra.mrb[12].mxu1 %vm1300_vm3, %v11506_v35  ;;  %9842 = vmatprep.subr.msk.bf16.mxu0 %vm2163_vm4, %v2218_v53 }
 0x3e1   : > { %9276 = vmatpush3.bf16.msra.mxu1 %v2153_v47 }
 0x3e2   : > { %9841 = vmatprep.subr.msk.bf16.mxu1 %vm2163_vm4, %v2155_v48 }
 0x3e3   : > { %9286 = vmatpush3.bf16.msra.mxu0 %v2227_v7 }
 0x3e4   : > { %9299 = vmatprep.subr.bf16.mxu0 %v11603_v27 }
 0x3e5   : > { %9278 = vmatpush3.bf16.msra.mxu1 %v2165_v28 }
 0x3e6   : > { %9291 = vmatprep.subr.bf16.mxu1 %v11594_v51 }
 0x481   : > { %v9217_v38 = vpop.f32.mrb[24].mxu0 }
 0x482   : > { %v1825_v0 = vmul.f32 0.35355338, %v9217_v38  ;;  %v1347_v62 = vpop.f32.mrb[25].mxu0 }
 0x483   : > { %v1823_v1 = vmul.f32 0.35355338, %v1347_v62  ;;  %v9218_v50 = vpop.f32.mrb[26].mxu0  ;;  %v9225_v46 = vpop.f32.mrb[0].mxu1 }
 0x484   : > { %v1350_v5 = vpop.f32.mrb[27].mxu0  ;;  %v1413_v37 = vpop.f32.mrb[1].mxu1  ;;  %v11619_v55 = vadd.f32 %v1825_v0, %v11611_v24  ;;  %v1828_v11 = vmul.f32 0.35355338, %v9225_v46 }
 0x485   : > { %v1824_v13 = vmul.f32 0.35355338, %v1350_v5  ;;  %v9226_v14 = vpop.f32.mrb[2].mxu1  ;;  %v1826_v4 = vmul.f32 0.35355338, %v1413_v37  ;;  %v11629_v56 = vadd.f32 %v1823_v1, %v11616_v2 }
 0x486   : > { %v1416_v43 = vpop.f32.mrb[3].mxu1  ;;  %v1878_v60 = vsel %vm1871_vm5, %v11619_v55, -inf  ;;  %v11637_v29 = vadd.f32 %v1828_v11, %v11611_v24 }
 0x487   : > { %1879 = vmax.xlane.f32.xlu0 %v1878_v60  ;;  %v11632_v25 = vadd.f32 %v1824_v13, %v11624_v9  ;;  %v1827_v30 = vmul.f32 0.35355338, %v1416_v43  ;;  %v1872_v22 = vsel %vm1871_vm5, %v11629_v56, -inf  ;;  %v11642_v8 = vadd.f32 %v1826_v4, %v11616_v2 }
 0x488   : > { %v1887_v10 = vsel %vm1871_vm5, %v11637_v29, -inf }
 0x489   : > { %v1875_v36 = vsel %vm1871_vm5, %v11632_v25, -inf  ;;  %v1881_v63 = vsel %vm1871_vm5, %v11642_v8, -inf  ;;  %v11649_v19 = vadd.f32 %v1827_v30, %v11624_v9 }
 0x48a   : > { %1876 = vmax.xlane.f32.xlu1 %v1875_v36 }
 0x48b   : > { %1873 = vmax.xlane.f32.xlu0 %v1872_v22  ;;  %v1884_v12 = vsel %vm1871_vm5, %v11649_v19, -inf }
 0x48e   : > { %1888 = vmax.xlane.f32.xlu1 %v1887_v10 }
 0x48f   : > { %1882 = vmax.xlane.f32.xlu0 %v1881_v63 }
 0x491   : > { %v9241_v40 = vpop.f32.mrb[28].mxu0 }
 0x492   : > { %v1834_v41 = vmul.f32 0.35355338, %v9241_v40  ;;  %v1545_v44 = vpop.f32.mrb[29].mxu0 }
 0x493   : > { %v1832_v58 = vmul.f32 0.35355338, %v1545_v44  ;;  %1885 = vmax.xlane.f32.xlu0 %v1884_v12  ;;  %v9233_v45 = vpop.f32.mrb[4].mxu1  ;;  %v9242_v34 = vpop.f32.mrb[30].mxu0 }
 0x494   : > { %v1479_v47 = vpop.f32.mrb[5].mxu1  ;;  %v1548_v48 = vpop.f32.mrb[31].mxu0  ;;  %v11654_v23 = vadd.f32 %v1834_v41, %v11611_v24  ;;  %v1831_v49 = vmul.f32 0.35355338, %v9233_v45 }
 0x495   : > { %v1833_v16 = vmul.f32 0.35355338, %v1548_v48  ;;  %v9234_v53 = vpop.f32.mrb[6].mxu1  ;;  %v1829_v7 = vmul.f32 0.35355338, %v1479_v47  ;;  %v11659_v0 = vadd.f32 %v1832_v58, %v11616_v2 }
 0x496   : > { %v1482_v28 = vpop.f32.mrb[7].mxu1  ;;  %v1905_v38 = vsel %vm1871_vm5, %v11654_v23, -inf  ;;  %v11667_v46 = vadd.f32 %v1831_v49, %v11611_v24 }
 0x497   : > { %1906 = vmax.xlane.f32.xlu1 %v1905_v38  ;;  %v11662_v62 = vadd.f32 %v1833_v16, %v11624_v9  ;;  %v1830_v1 = vmul.f32 0.35355338, %v1482_v28  ;;  %v1899_v5 = vsel %vm1871_vm5, %v11659_v0, -inf  ;;  %v11672_v37 = vadd.f32 %v1829_v7, %v11616_v2 }
 0x498   : > { %v1896_v11 = vsel %vm1871_vm5, %v11667_v46, -inf }
 0x499   : > { %v1902_v50 = vsel %vm1871_vm5, %v11662_v62, -inf  ;;  %v11677_v13 = vadd.f32 %v1830_v1, %v11624_v9  ;;  %v1890_v14 = vsel %vm1871_vm5, %v11672_v37, -inf }
 0x49a   : > { %1903 = vmax.xlane.f32.xlu0 %v1902_v50 }
 0x49b   : > { %1900 = vmax.xlane.f32.xlu1 %v1899_v5  ;;  %v1893_v43 = vsel %vm1871_vm5, %v11677_v13, -inf }
 0x49e   : > { %1897 = vmax.xlane.f32.xlu0 %v1896_v11 }
 0x49f   : > { %1891 = vmax.xlane.f32.xlu1 %v1890_v14 }
 0x4a1   : > { %v9257_v4 = vpop.f32.mrb[32].mxu0 }
 0x4a2   : > { %v1840_v60 = vmul.f32 0.35355338, %v9257_v4  ;;  %1894 = vmax.xlane.f32.xlu0 %v1893_v43  ;;  %v1677_v36 = vpop.f32.mrb[33].mxu0 }
 0x4a3   : > { %v1838_v30 = vmul.f32 0.35355338, %v1677_v36  ;;  %v9249_v22 = vpop.f32.mrb[8].mxu1  ;;  %v9258_v10 = vpop.f32.mrb[34].mxu0 }
 0x4a4   : > { %v1611_v63 = vpop.f32.mrb[9].mxu1  ;;  %v1680_v40 = vpop.f32.mrb[35].mxu0  ;;  %v11684_v41 = vadd.f32 %v1840_v60, %v11611_v24  ;;  %v1837_v44 = vmul.f32 0.35355338, %v9249_v22 }
 0x4a5   : > { %v1839_v12 = vmul.f32 0.35355338, %v1680_v40  ;;  %v9250_v58 = vpop.f32.mrb[10].mxu1  ;;  %v1835_v45 = vmul.f32 0.35355338, %v1611_v63  ;;  %v11689_v48 = vadd.f32 %v1838_v30, %v11616_v2 }
 0x4a6   : > { %v1614_v34 = vpop.f32.mrb[11].mxu1  ;;  %v1923_v47 = vsel %vm1871_vm5, %v11684_v41, -inf  ;;  %v11697_v7 = vadd.f32 %v1837_v44, %v11611_v24 }
 0x4a7   : > { %1924 = vmax.xlane.f32.xlu1 %v1923_v47  ;;  %v11692_v49 = vadd.f32 %v1839_v12, %v11624_v9  ;;  %v1836_v16 = vmul.f32 0.35355338, %v1614_v34  ;;  %v1917_v28 = vsel %vm1871_vm5, %v11689_v48, -inf  ;;  %v11702_v38 = vadd.f32 %v1835_v45, %v11616_v2 }
 0x4a8   : > { %v1914_v1 = vsel %vm1871_vm5, %v11697_v7, -inf }
 0x4a9   : > { %v1920_v53 = vsel %vm1871_vm5, %v11692_v49, -inf  ;;  %v11707_v50 = vadd.f32 %v1836_v16, %v11624_v9  ;;  %v1908_v5 = vsel %vm1871_vm5, %v11702_v38, -inf }
 0x4aa   : > { %1921 = vmax.xlane.f32.xlu0 %v1920_v53 }
 0x4ab   : > { %1918 = vmax.xlane.f32.xlu1 %v1917_v28  ;;  %v1911_v14 = vsel %vm1871_vm5, %v11707_v50, -inf }
 0x4ae   : > { %1915 = vmax.xlane.f32.xlu0 %v1914_v1 }
 0x4af   : > { %1909 = vmax.xlane.f32.xlu1 %v1908_v5 }
 0x4b1   : > { %v9273_v11 = vpop.f32.mrb[36].mxu0 }
 0x4b2   : > { %v1846_v4 = vmul.f32 0.35355338, %v9273_v11  ;;  %1912 = vmax.xlane.f32.xlu0 %v1911_v14  ;;  %v1809_v43 = vpop.f32.mrb[37].mxu0 }
 0x4b3   : > { %v1844_v60 = vmul.f32 0.35355338, %v1809_v43  ;;  %v9265_v36 = vpop.f32.mrb[12].mxu1  ;;  %v9274_v30 = vpop.f32.mrb[38].mxu0 }
 0x4b4   : > { %v1743_v22 = vpop.f32.mrb[13].mxu1  ;;  %v1812_v10 = vpop.f32.mrb[39].mxu0  ;;  %v11714_v63 = vadd.f32 %v1846_v4, %v11611_v24  ;;  %v1843_v40 = vmul.f32 0.35355338, %v9265_v36 }
 0x4b5   : > { %v1845_v44 = vmul.f32 0.35355338, %v1812_v10  ;;  %v9266_v12 = vpop.f32.mrb[14].mxu1  ;;  %v11719_v34 = vadd.f32 %v1844_v60, %v11616_v2  ;;  %v1841_v16 = vmul.f32 0.35355338, %v1743_v22  ;;  %v11753_v43 = vpop.permute.xlu1 %2401 }
 0x4b6   : > { %v1746_v58 = vpop.f32.mrb[15].mxu1  ;;  %v1941_v45 = vsel %vm1871_vm5, %v11714_v63, -inf  ;;  %v11727_v28 = vadd.f32 %v1843_v40, %v11611_v24  ;;  %v11757_v60 = vpop.permute.xlu0 %2279 }
 0x4b7   : > { %1942 = vmax.xlane.f32.xlu1 %v1941_v45  ;;  %v11722_v47 = vadd.f32 %v1845_v44, %v11624_v9  ;;  %v1935_v1 = vsel %vm1871_vm5, %v11719_v34, -inf  ;;  %v11734_v11 = vadd.f32 %v1841_v16, %v11616_v2  ;;  %v1842_v24 = vmul.f32 0.35355338, %v1746_v58 }
 0x4b8   : > { %v1932_v5 = vsel %vm1871_vm5, %v11727_v28, -inf }
 0x4b9   : > { %v1938_v53 = vsel %vm1871_vm5, %v11722_v47, -inf  ;;  %v1926_v14 = vsel %vm1871_vm5, %v11734_v11, -inf  ;;  %v11749_v2 = vadd.f32 %v1842_v24, %v11624_v9  ;;  %v11759_v36 = vpop.permute.xlu1 %2341 }
 0x4ba   : > { %1939 = vmax.xlane.f32.xlu0 %v1938_v53 }
 0x4bb   : > { %1936 = vmax.xlane.f32.xlu1 %v1935_v1  ;;  %v1929_v4 = vsel %vm1871_vm5, %v11749_v2, -inf }
 0x4be   : > { %1933 = vmax.xlane.f32.xlu0 %v1932_v5 }
 0x4c2   : > { %1927 = vmax.xlane.f32.xlu0 %v1926_v14 }
 0x4cc   : > { %2463 = vrot.lane.b32.xlu1 %v11491_v20, %s10786_s24 }
 0x4d0   : > { %2525 = vrot.lane.b32.xlu1 %v11494_v54, %s10786_s24 }
 0x4d4   : > { %2465 = vrot.lane.b32.xlu1 %v11496_v59, %s10786_s24 }
 0x4d8   : > { %2527 = vrot.lane.b32.xlu1 %v11506_v35, %s10786_s24  ;;  %2403 = vrot.lane.b32.xlu0 %v11479_v42, %s10786_s24 }
 0x4fc   : > { %1930 = vmax.xlane.f32.xlu1 %v1929_v4 }
 0x50d   : > { %2587 = vrot.lane.b32.xlu1 %v11510_v6, %s10786_s24 }
 0x514   : > { %v1880_v30 = vpop.xlane.xlu0 %1879 }
 0x515   : > { %v1946_v22 = vsub.f32 %v11619_v55, %v1880_v30 }
 0x517   : > { %v1972_v10 = vmul.f32 1.442695, %v1946_v22  ;;  %v1877_v40 = vpop.xlane.xlu1 %1876 }
 0x518   : > { %v1874_v9 = vpop.xlane.xlu0 %1873  ;;  %v1945_v12 = vsub.f32 %v11632_v25, %v1877_v40 }
 0x519   : > { %10210 = vpow2.f32 %v1972_v10  ;;  %v1944_v44 = vsub.f32 %v11629_v56, %v1874_v9 }
 0x51a   : > { %v1970_v53 = vmul.f32 1.442695, %v1945_v12 }
 0x51b   : > { %v1968_v58 = vmul.f32 1.442695, %v1944_v44  ;;  %v1889_v45 = vpop.xlane.xlu1 %1888 }
 0x51c   : > { %v1883_v16 = vpop.xlane.xlu0 %1882  ;;  %v1949_v1 = vsub.f32 %v11637_v29, %v1889_v45 }
 0x51d   : > { %10212 = vpow2.f32 %v1968_v58  ;;  %v1947_v4 = vsub.f32 %v11642_v8, %v1883_v16 }
 0x51e   : > { %10214 = vpow2.f32 %v1970_v53  ;;  %v1978_v55 = vmul.f32 1.442695, %v1949_v1 }
 0x51f   : > { %v1974_v29 = vmul.f32 1.442695, %v1947_v4 }
 0x520   : > { %v1886_v5 = vpop.xlane.xlu0 %1885 }
 0x521   : > { %v1948_v14 = vsub.f32 %v11649_v19, %v1886_v5 }
 0x523   : > { %v11766_v24 = vpop.eup %10210  ;;  %v1976_v30 = vmul.f32 1.442695, %v1948_v14 }
 0x524   : > { %v1907_v56 = vpop.xlane.xlu1 %1906  ;;  %v2022_v25 = vsel %vm1871_vm5, %v11766_v24, 0.0 }
 0x525   : > { %10216 = vpow2.f32 %v1976_v30  ;;  %2023 = vadd.xlane.f32.xlu0 %v2022_v25  ;;  %v1955_v10 = vsub.f32 %v11654_v23, %v1907_v56 }
 0x526   : > { %10218 = vpow2.f32 %v1978_v55 }
 0x527   : > { %v11771_v22 = vpop.eup %10212  ;;  %v1904_v19 = vpop.xlane.xlu0 %1903  ;;  %10220 = vpow2.f32 %v1974_v29  ;;  %v1990_v12 = vmul.f32 1.442695, %v1955_v10 }
 0x528   : > { %v1954_v40 = vsub.f32 %v11662_v62, %v1904_v19  ;;  %v1901_v9 = vpop.xlane.xlu1 %1900  ;;  %v2016_v8 = vsel %vm1871_vm5, %v11771_v22, 0.0  ;;  %v11779_v1 = vpop.eup %10214 }
 0x529   : > { %2017 = vadd.xlane.f32.xlu0 %v2016_v8  ;;  %v1953_v58 = vsub.f32 %v11659_v0, %v1901_v9  ;;  %v2019_v0 = vsel %vm1871_vm5, %v11779_v1, 0.0 }
 0x52a   : > { %v1988_v44 = vmul.f32 1.442695, %v1954_v40 }
 0x52b   : > { %v1898_v45 = vpop.xlane.xlu0 %1897  ;;  %v1986_v62 = vmul.f32 1.442695, %v1953_v58 }
 0x52c   : > { %10222 = vpow2.f32 %v1988_v44  ;;  %v1952_v16 = vsub.f32 %v11667_v46, %v1898_v45  ;;  %v1892_v53 = vpop.xlane.xlu1 %1891 }
 0x52d   : > { %10224 = vpow2.f32 %v1990_v12  ;;  %v1950_v14 = vsub.f32 %v11672_v37, %v1892_v53 }
 0x52e   : > { %v1984_v23 = vmul.f32 1.442695, %v1952_v16 }
 0x52f   : > { %v11781_v5 = vpop.eup %10216  ;;  %v1895_v55 = vpop.xlane.xlu0 %1894  ;;  %v1980_v25 = vmul.f32 1.442695, %v1950_v14 }
 0x530   : > { %10226 = vpow2.f32 %v1984_v23  ;;  %v1951_v4 = vsub.f32 %v11677_v13, %v1895_v55  ;;  %v2028_v46 = vsel %vm1871_vm5, %v11781_v5, 0.0  ;;  %v11789_v30 = vpop.eup %10218 }
 0x531   : > { %2020 = vadd.xlane.f32.xlu1 %v2019_v0  ;;  %2029 = vadd.xlane.f32.xlu0 %v2028_v46  ;;  %10228 = vpow2.f32 %v1986_v62  ;;  %v2031_v37 = vsel %vm1871_vm5, %v11789_v30, 0.0  ;;  %v11793_v10 = vpop.eup %10220 }
 0x532   : > { %v1982_v56 = vmul.f32 1.442695, %v1951_v4  ;;  %v2025_v58 = vsel %vm1871_vm5, %v11793_v10, 0.0 }
 0x534   : > { %10230 = vpow2.f32 %v1982_v56  ;;  %v1925_v29 = vpop.xlane.xlu1 %1924 }
 0x535   : > { %v1961_v13 = vsub.f32 %v11684_v41, %v1925_v29  ;;  %2032 = vadd.xlane.f32.xlu1 %v2031_v37  ;;  %10232 = vpow2.f32 %v1980_v25 }
 0x536   : > { %v11796_v19 = vpop.eup %10222 }
 0x537   : > { %v2002_v40 = vmul.f32 1.442695, %v1961_v13  ;;  %v1922_v9 = vpop.xlane.xlu0 %1921  ;;  %v2046_v8 = vsel %vm1871_vm5, %v11796_v19, 0.0  ;;  %v11803_v45 = vpop.eup %10224 }
 0x538   : > { %v1960_v44 = vsub.f32 %v11692_v49, %v1922_v9  ;;  %v1919_v12 = vpop.xlane.xlu1 %1918  ;;  %2047 = vadd.xlane.f32.xlu0 %v2046_v8  ;;  %v2049_v4 = vsel %vm1871_vm5, %v11803_v45, 0.0 }
 0x539   : > { %10234 = vpow2.f32 %v2002_v40  ;;  %v1959_v41 = vsub.f32 %v11689_v48, %v1919_v12  ;;  %2026 = vadd.xlane.f32.xlu1 %v2025_v58 }
 0x53a   : > { %v11806_v16 = vpop.eup %10226  ;;  %v2000_v53 = vmul.f32 1.442695, %v1960_v44 }
 0x53b   : > { %v1998_v23 = vmul.f32 1.442695, %v1959_v41  ;;  %v1916_v62 = vpop.xlane.xlu0 %1915  ;;  %v2040_v14 = vsel %vm1871_vm5, %v11806_v16, 0.0  ;;  %v11813_v0 = vpop.eup %10228 }
 0x53c   : > { %v1958_v49 = vsub.f32 %v11697_v7, %v1916_v62  ;;  %v1910_v55 = vpop.xlane.xlu1 %1909  ;;  %2041 = vadd.xlane.f32.xlu0 %v2040_v14  ;;  %v2043_v13 = vsel %vm1871_vm5, %v11813_v0, 0.0 }
 0x53d   : > { %10236 = vpow2.f32 %v1998_v23  ;;  %v1956_v48 = vsub.f32 %v11702_v38, %v1910_v55  ;;  %2050 = vadd.xlane.f32.xlu1 %v2049_v4 }
 0x53e   : > { %v11816_v46 = vpop.eup %10230  ;;  %10238 = vpow2.f32 %v2000_v53  ;;  %v1996_v56 = vmul.f32 1.442695, %v1958_v49 }
 0x53f   : > { %v1992_v25 = vmul.f32 1.442695, %v1956_v48  ;;  %v1913_v29 = vpop.xlane.xlu0 %1912  ;;  %v2037_v7 = vsel %vm1871_vm5, %v11816_v46, 0.0  ;;  %v11823_v40 = vpop.eup %10232 }
 0x540   : > { %v1957_v37 = vsub.f32 %v11707_v50, %v1913_v29  ;;  %2038 = vadd.xlane.f32.xlu0 %v2037_v7  ;;  %v2034_v44 = vsel %vm1871_vm5, %v11823_v40, 0.0 }
 0x541   : > { %10240 = vpow2.f32 %v1992_v25  ;;  %2044 = vadd.xlane.f32.xlu1 %v2043_v13 }
 0x542   : > { %10242 = vpow2.f32 %v1996_v56  ;;  %v1994_v9 = vmul.f32 1.442695, %v1957_v37 }
 0x543   : > { %v11825_v38 = vpop.eup %10234 }
 0x544   : > { %v1943_v8 = vpop.xlane.xlu1 %1942  ;;  %v2067_v12 = vsel %vm1871_vm5, %v11825_v38, 0.0  ;;  %10244 = vpow2.f32 %v1994_v9 }
 0x545   : > { %v1967_v50 = vsub.f32 %v11714_v63, %v1943_v8  ;;  %2035 = vadd.xlane.f32.xlu1 %v2034_v44  ;;  %2068 = vadd.xlane.f32.xlu0 %v2067_v12 }
 0x547   : > { %v11832_v58 = vpop.eup %10236  ;;  %v2014_v41 = vmul.f32 1.442695, %v1967_v50  ;;  %v1940_v53 = vpop.xlane.xlu0 %1939 }
 0x548   : > { %v1966_v23 = vsub.f32 %v11722_v47, %v1940_v53  ;;  %v1937_v62 = vpop.xlane.xlu1 %1936  ;;  %v2061_v14 = vsel %vm1871_vm5, %v11832_v58, 0.0  ;;  %v11837_v49 = vpop.eup %10238 }
 0x549   : > { %v1965_v55 = vsub.f32 %v11719_v34, %v1937_v62  ;;  %2062 = vadd.xlane.f32.xlu0 %v2061_v14  ;;  %10246 = vpow2.f32 %v2014_v41  ;;  %v2064_v29 = vsel %vm1871_vm5, %v11837_v49, 0.0 }
 0x54a   : > { %v2012_v4 = vmul.f32 1.442695, %v1966_v23 }
 0x54b   : > { %v11840_v63 = vpop.eup %10240  ;;  %v2010_v48 = vmul.f32 1.442695, %v1965_v55  ;;  %v1934_v56 = vpop.xlane.xlu0 %1933 }
 0x54c   : > { %10248 = vpow2.f32 %v2012_v4  ;;  %v1964_v25 = vsub.f32 %v11727_v28, %v1934_v56  ;;  %v2052_v47 = vsel %vm1871_vm5, %v11840_v63, 0.0  ;;  %v11847_v7 = vpop.eup %10242 }
 0x54d   : > { %2053 = vadd.xlane.f32.xlu1 %v2052_v47  ;;  %2065 = vadd.xlane.f32.xlu0 %v2064_v29  ;;  %10250 = vpow2.f32 %v2010_v48  ;;  %v2058_v9 = vsel %vm1871_vm5, %v11847_v7, 0.0  ;;  %v11878_v48 = vpop.permute.xlu1 %2463 }
 0x54e   : > { %v2008_v34 = vmul.f32 1.442695, %v1964_v25  ;;  %v11852_v28 = vpop.eup %10244 }
 0x54f   : > { %v1928_v37 = vpop.xlane.xlu0 %1927  ;;  %v2055_v44 = vsel %vm1871_vm5, %v11852_v28, 0.0 }
 0x550   : > { %10252 = vpow2.f32 %v2008_v34  ;;  %v1962_v13 = vsub.f32 %v11734_v11, %v1928_v37 }
 0x551   : > { %2059 = vadd.xlane.f32.xlu0 %v2058_v9  ;;  %v11882_v56 = vpop.permute.xlu1 %2525 }
 0x552   : > { %v2004_v8 = vmul.f32 1.442695, %v1962_v13 }
 0x553   : > { %v11856_v12 = vpop.eup %10246 }
 0x554   : > { %10254 = vpow2.f32 %v2004_v8  ;;  %v2085_v11 = vsel %vm1871_vm5, %v11856_v12, 0.0 }
 0x555   : > { %2056 = vadd.xlane.f32.xlu0 %v2055_v44  ;;  %v11888_v25 = vpop.permute.xlu1 %2465 }
 0x556   : > { %v11858_v50 = vpop.eup %10248 }
 0x557   : > { %v2082_v41 = vsel %vm1871_vm5, %v11858_v50, 0.0  ;;  %v11864_v53 = vpop.eup %10250 }
 0x558   : > { %2083 = vadd.xlane.f32.xlu1 %v2082_v41  ;;  %v2079_v14 = vsel %vm1871_vm5, %v11864_v53, 0.0 }
 0x559   : > { %2086 = vadd.xlane.f32.xlu0 %v2085_v11  ;;  %v11892_v47 = vpop.permute.xlu1 %2527 }
 0x55a   : > { %v11866_v23 = vpop.eup %10252 }
 0x55b   : > { %v2076_v62 = vsel %vm1871_vm5, %v11866_v23, 0.0 }
 0x55c   : > { %2077 = vadd.xlane.f32.xlu1 %v2076_v62 }
 0x55d   : > { %2080 = vadd.xlane.f32.xlu0 %v2079_v14 }
 0x55e   : > { %v11872_v55 = vpop.eup %10254 }
 0x55f   : > { %v2070_v4 = vsel %vm1871_vm5, %v11872_v55, 0.0 }
 0x560   : > { %2071 = vadd.xlane.f32.xlu1 %v2070_v4 }
 0x571   : > { %2589 = vrot.lane.b32.xlu1 %v11514_v3, %s10786_s24  ;;  %s10794_s24 = smov 104  }
 0x575   : > { %2655 = vrot.lane.b32.xlu1 %v11454_v15, %s10787_s16 }
 0x579   : > { %2649 = vrot.lane.b32.xlu1 %v11430_v61, %s10788_s17 }
 0x57d   : > { %2789 = vrot.lane.b32.xlu1 %v11443_v18, %s10787_s16 }
 0x581   : > { %2717 = vrot.lane.b32.xlu1 %v11440_v17, %s10788_s17 }
 0x585   : > { %2857 = vrot.lane.b32.xlu1 %v11466_v33, %s10787_s16 }
 0x589   : > { %v1931_v29 = vpop.xlane.xlu1 %1930  ;;  %2785 = vrot.lane.b32.xlu1 %v11443_v18, %s10788_s17 }
 0x58a   : > { %v1963_v34 = vsub.f32 %v11749_v2, %v1931_v29  ;;  %v11921_v2 = vpop.permute.xlu0 %2403 }
 0x58c   : > { %v2006_v37 = vmul.f32 1.442695, %v1963_v34 }
 0x58d   : > { %2925 = vrot.lane.b32.xlu1 %v11481_v26, %s10787_s16  ;;  %v11935_v44 = vpop.permute.xlu1 %2587 }
 0x58e   : > { %10256 = vpow2.f32 %v2006_v37 }
 0x591   : > { %2853 = vrot.lane.b32.xlu1 %v11466_v33, %s10788_s17 }
 0x595   : > { %2993 = vrot.lane.b32.xlu1 %v11491_v20, %s10787_s16 }
 0x598   : > { %v11905_v13 = vpop.eup %10256 }
 0x599   : > { %2921 = vrot.lane.b32.xlu1 %v11481_v26, %s10788_s17  ;;  %v2073_v9 = vsel %vm1871_vm5, %v11905_v13, 0.0 }
 0x59a   : > { %2074 = vadd.xlane.f32.xlu0 %v2073_v9 }
 0x59d   : > { %3061 = vrot.lane.b32.xlu1 %v11494_v54, %s10787_s16 }
 0x5a1   : > { %2989 = vrot.lane.b32.xlu1 %v11491_v20, %s10788_s17 }
 0x5a5   : > { %3129 = vrot.lane.b32.xlu1 %v11510_v6, %s10787_s16 }
 0x5a9   : > { %3057 = vrot.lane.b32.xlu1 %v11494_v54, %s10788_s17 }
 0x5ad   : > { %3131 = vrot.lane.b32.xlu1 %v11514_v3, %s10787_s16 }
 0x5b0   : > { %2653 = vrot.lane.b32.xlu0 %v11430_v61, %s10787_s16 }
 0x5b1   : > { %3127 = vrot.lane.b32.xlu1 %v11514_v3, %s10788_s17 }
 0x5b2   : > { %v2024_v8 = vpop.xlane.xlu0 %2023 }
 0x5b3   : > { %10258 = vrcp.f32 %v2024_v8 }
 0x5b4   : > { %2721 = vrot.lane.b32.xlu0 %v11440_v17, %s10787_s16 }
 0x5b5   : > { %3521 = vrot.lane.b32.xlu1 %v11430_v61, %s10789_s18 }
 0x5b6   : > { %v2018_v41 = vpop.xlane.xlu0 %2017 }
 0x5b7   : > { %10260 = vrcp.f32 %v2018_v41 }
 0x5b8   : > { %2723 = vrot.lane.b32.xlu0 %v11446_v57, %s10787_s16 }
 0x5b9   : > { %3583 = vrot.lane.b32.xlu1 %v11440_v17, %s10789_s18 }
 0x5bc   : > { %2651 = vrot.lane.b32.xlu0 %v11454_v15, %s10788_s17 }
 0x5bd   : > { %3707 = vrot.lane.b32.xlu1 %v11466_v33, %s10789_s18  ;;  %v10259_v29 = vpop.eup %10258 }
 0x5be   : > { %v2021_v11 = vpop.xlane.xlu1 %2020  ;;  %v2030_v62 = vpop.xlane.xlu0 %2029  ;;  %v2114_v41 = vmul.f32 %v10259_v29, %v11766_v24 }
 0x5bf   : > { %10262 = vrcp.f32 %v2021_v11 }
 0x5c0   : > { %2791 = vrot.lane.b32.xlu0 %v11463_v31, %s10787_s16 }
 0x5c1   : > { %3769 = vrot.lane.b32.xlu1 %v11481_v26, %s10789_s18  ;;  %v10261_v37 = vpop.eup %10260 }
 0x5c2   : > { %v2033_v14 = vpop.xlane.xlu1 %2032 }
 0x5c3   : > { %10264 = vrcp.f32 %v2033_v14  ;;  %v2112_v14 = vmul.f32 %v10261_v37, %v11771_v22 }
 0x5c4   : > { %2719 = vrot.lane.b32.xlu0 %v11446_v57, %s10788_s17  ;;  %10266 = vrcp.f32 %v2030_v62 }
 0x5c5   : > { %3709 = vrot.lane.b32.xlu1 %v11472_v39, %s10789_s18  ;;  %v2048_v4 = vpop.xlane.xlu0 %2047 }
 0x5c6   : > { %v2027_v34 = vpop.xlane.xlu1 %2026 }
 0x5c7   : > { %10268 = vrcp.f32 %v2027_v34  ;;  %v2137_v34 = vpack.c.bf16 %v2114_v41, %v2114_v41 }
 0x5c8   : > { %2859 = vrot.lane.b32.xlu0 %v11472_v39, %s10787_s16 }
 0x5c9   : > { %v10263_v9 = vpop.eup %10262  ;;  %v2042_v8 = vpop.xlane.xlu0 %2041 }
 0x5ca   : > { %v2051_v11 = vpop.xlane.xlu1 %2050  ;;  %v2113_v62 = vmul.f32 %v10263_v9, %v11779_v1 }
 0x5cb   : > { %10270 = vrcp.f32 %v2051_v11 }
 0x5cc   : > { %2787 = vrot.lane.b32.xlu0 %v11463_v31, %s10788_s17  ;;  %v2136_v32 = vpack.c.bf16 %v2113_v62, %v2112_v14  ;;  %10272 = vrcp.f32 %v2048_v4 }
 0x5cd   : > { %v2039_v52 = vpop.xlane.xlu0 %2038  ;;  %v10265_v21 = vpop.eup %10264 }
 0x5ce   : > { %v2045_v26 = vpop.xlane.xlu1 %2044  ;;  %9279 = vmatprep.mubr.msk.bf16.mxu1 %vm1871_vm5, %v2136_v32  ;;  %v10267_v33 = vpop.eup %10266  ;;  %v2117_v22 = vmul.f32 %v10265_v21, %v11789_v30 }
 0x5cf   : > { %10274 = vrcp.f32 %v2045_v26  ;;  %9280 = vmatmul.mubr.msk.bf16.vlgmr.msra.gmra.mrb[16].mxu1 %vm1871_vm5, %v2137_v34  ;;  %v2116_v26 = vmul.f32 %v10267_v33, %v11781_v5 }
 0x5d0   : > { %10276 = vrcp.f32 %v2042_v8  ;;  %9292 = vmatpush3.bf16.msra.mxu1 %v11594_v51  ;;  %2927 = vrot.lane.b32.xlu0 %v11479_v42, %s10787_s16  ;;  %v2289_v51 = vsel %vm2163_vm4, %v11757_v60, 0  ;;  %v2139_v29 = vpack.c.bf16 %v2117_v22, %v2117_v22 }
 0x5d1   : > { %v10269_v24 = vpop.eup %10268  ;;  %10278 = vrcp.f32 %v2039_v52  ;;  %9843 = vmatprep.subr.msk.bf16.mxu1 %vm2163_vm4, %v11757_v60 }
 0x5d2   : > { %v2036_v1 = vpop.xlane.xlu1 %2035  ;;  %v2069_v4 = vpop.xlane.xlu0 %2068  ;;  %v2115_v32 = vmul.f32 %v10269_v24, %v11793_v10 }
 0x5d3   : > { %10280 = vrcp.f32 %v2036_v1 }
 0x5d4   : > { %9294 = vmatpush3.bf16.msra.mxu1 %v2289_v51  ;;  %2855 = vrot.lane.b32.xlu0 %v11472_v39, %s10788_s17  ;;  %v2138_v52 = vpack.c.bf16 %v2116_v26, %v2115_v32  ;;  %10282 = vrcp.f32 %v2069_v4 }
 0x5d5   : > { %9307 = vmatprep.subr.bf16.mxu1 %v11753_v43  ;;  %v10271_v37 = vpop.eup %10270 }
 0x5d6   : > { %9287 = vmatprep.mubr.msk.bf16.mxu0 %vm1871_vm5, %v2138_v52  ;;  %v2063_v21 = vpop.xlane.xlu0 %2062  ;;  %v10273_v30 = vpop.eup %10272  ;;  %v2123_v60 = vmul.f32 %v10271_v37, %v11803_v45 }
 0x5d7   : > { %9288 = vmatmul.mubr.msk.bf16.vlgmr.msra.gmra.mrb[40].mxu0 %vm1871_vm5, %v2139_v29  ;;  %10284 = vrcp.f32 %v2063_v21  ;;  %v2122_v8 = vmul.f32 %v10273_v30, %v11796_v19 }
 0x5d8   : > { %9300 = vmatpush3.bf16.msra.mxu0 %v11603_v27  ;;  %2995 = vrot.lane.b32.xlu0 %v11496_v59, %s10787_s16  ;;  %v2351_v27 = vsel %vm2163_vm4, %v11759_v36, 0  ;;  %v2143_v45 = vpack.c.bf16 %v2123_v60, %v2123_v60 }
 0x5d9   : > { %v10275_v33 = vpop.eup %10274  ;;  %9844 = vmatprep.subr.msk.bf16.mxu0 %vm2163_vm4, %v11759_v36 }
 0x5da   : > { %v10277_v5 = vpop.eup %10276  ;;  %v2066_v10 = vpop.xlane.xlu0 %2065  ;;  %v2121_v9 = vmul.f32 %v10275_v33, %v11813_v0 }
 0x5db   : > { %v10279_v41 = vpop.eup %10278  ;;  %10286 = vrcp.f32 %v2066_v10  ;;  %v2120_v62 = vmul.f32 %v10277_v5, %v11806_v16  ;;  %v2054_v34 = vpop.xlane.xlu1 %2053 }
 0x5dc   : > { %9302 = vmatpush3.bf16.msra.mxu0 %v2351_v27  ;;  %2923 = vrot.lane.b32.xlu0 %v11479_v42, %s10788_s17  ;;  %v2142_v11 = vpack.c.bf16 %v2122_v8, %v2121_v9  ;;  %v2119_v36 = vmul.f32 %v10279_v41, %v11816_v46  ;;  %v2475_v46 = vsel %vm2163_vm4, %v11888_v25, 0 }
 0x5dd   : > { %v10281_v14 = vpop.eup %10280  ;;  %9315 = vmatprep.subr.bf16.mxu0 %v11878_v48  ;;  %v2141_v16 = vpack.c.bf16 %v2120_v62, %v2120_v62 }
 0x5de   : > { %9303 = vmatprep.mubr.msk.bf16.mxu0 %vm1871_vm5, %v2142_v11  ;;  %v2060_v19 = vpop.xlane.xlu0 %2059  ;;  %v2118_v0 = vmul.f32 %v10281_v14, %v11823_v40  ;;  %v10283_v40 = vpop.eup %10282  ;;  %v2537_v14 = vsel %vm2163_vm4, %v11892_v47, 0 }
 0x5df   : > { %9304 = vmatmul.mubr.msk.bf16.vlgmr.msra.gmra.mrb[44].mxu0 %vm1871_vm5, %v2143_v45  ;;  %10288 = vrcp.f32 %v2060_v19  ;;  %v2129_v26 = vmul.f32 %v10283_v40, %v11825_v38 }
 0x5e0   : > { %9316 = vmatpush3.bf16.msra.mxu0 %v11878_v48  ;;  %3063 = vrot.lane.b32.xlu0 %v11506_v35, %s10787_s16  ;;  %v2140_v24 = vpack.c.bf16 %v2119_v36, %v2118_v0  ;;  %10290 = vrcp.f32 %v2054_v34 }
 0x5e1   : > { %9846 = vmatprep.subr.msk.bf16.mxu0 %vm2163_vm4, %v11888_v25  ;;  %v10285_v48 = vpop.eup %10284  ;;  %v2413_v25 = vsel %vm2163_vm4, %v11921_v2, 0  ;;  %v2147_v38 = vpack.c.bf16 %v2129_v26, %v2129_v26 }
 0x5e2   : > { %9295 = vmatprep.mubr.msk.bf16.mxu1 %vm1871_vm5, %v2140_v24  ;;  %v2057_v22 = vpop.xlane.xlu0 %2056  ;;  %v2127_v51 = vmul.f32 %v10285_v48, %v11832_v58 }
 0x5e3   : > { %10292 = vrcp.f32 %v2057_v22  ;;  %9296 = vmatmul.mubr.msk.bf16.vlgmr.msra.gmra.mrb[20].mxu1 %vm1871_vm5, %v2141_v16 }
 0x5e4   : > { %9308 = vmatpush3.bf16.msra.mxu1 %v11753_v43  ;;  %9318 = vmatpush3.bf16.msra.mxu0 %v2475_v46 }
 0x5e5   : > { %2991 = vrot.lane.b32.xlu0 %v11496_v59, %s10788_s17  ;;  %9845 = vmatprep.subr.msk.bf16.mxu1 %vm2163_vm4, %v11921_v2  ;;  %v2084_v1 = vpop.xlane.xlu1 %2083  ;;  %v10287_v4 = vpop.eup %10286 }
 0x5e6   : > { %9331 = vmatprep.subr.bf16.mxu0 %v11935_v44  ;;  %v2087_v32 = vpop.xlane.xlu0 %2086  ;;  %v2128_v43 = vmul.f32 %v10287_v4, %v11837_v49 }
 0x5e7   : > { %10294 = vrcp.f32 %v2087_v32 }
 0x5e8   : > { %9310 = vmatpush3.bf16.msra.mxu1 %v2413_v25  ;;  %10296 = vrcp.f32 %v2084_v1  ;;  %v2146_v29 = vpack.c.bf16 %v2128_v43, %v2127_v51 }
 0x5e9   : > { %3059 = vrot.lane.b32.xlu0 %v11506_v35, %s10788_s17  ;;  %9323 = vmatprep.subr.bf16.mxu1 %v11882_v56  ;;  %v2078_v52 = vpop.xlane.xlu1 %2077  ;;  %v10289_v37 = vpop.eup %10288 }
 0x5ea   : > { %v2081_v21 = vpop.xlane.xlu0 %2080  ;;  %v10291_v30 = vpop.eup %10290  ;;  %9319 = vmatprep.mubr.msk.bf16.mxu0 %vm1871_vm5, %v2146_v29  ;;  %v2126_v2 = vmul.f32 %v10289_v37, %v11847_v7 }
 0x5eb   : > { %10298 = vrcp.f32 %v2081_v21  ;;  %9320 = vmatmul.mubr.msk.bf16.vlgmr.msra.gmra.mrb[48].mxu0 %vm1871_vm5, %v2147_v38  ;;  %v2124_v33 = vmul.f32 %v10291_v30, %v11840_v63 }
 0x5ec   : > { %9332 = vmatpush3.bf16.msra.mxu0 %v11935_v44  ;;  %v2145_v9 = vpack.c.bf16 %v2126_v2, %v2126_v2  ;;  %10300 = vrcp.f32 %v2078_v52 }
 0x5ed   : > { %v10293_v58 = vpop.eup %10292  ;;  %3125 = vrot.lane.b32.xlu0 %v11510_v6, %s10788_s17  ;;  %v2072_v49 = vpop.xlane.xlu1 %2071  ;;  %s10796_s17 = smov 8  }
 0x5ee   : > { %v2125_v60 = vmul.f32 %v10293_v58, %v11852_v28  ;;  %10302 = vrcp.f32 %v2072_v49 }
 0x5f0   : > { %v2144_v5 = vpack.c.bf16 %v2125_v60, %v2124_v33 }
 0x5f1   : > { %3523 = vrot.lane.b32.xlu0 %v11454_v15, %s10789_s18  ;;  %v2590_v10 = vpop.permute.xlu1 %2589  ;;  %v10295_v8 = vpop.eup %10294 }
 0x5f2   : > { %9311 = vmatprep.mubr.msk.bf16.mxu1 %vm1871_vm5, %v2144_v5  ;;  %9848 = vmatprep.subr.msk.bf16.mxu0 %vm2163_vm4, %v2590_v10  ;;  %v2599_v44 = vsel %vm2163_vm4, %v2590_v10, 0  ;;  %v10297_v41 = vpop.eup %10296  ;;  %v2135_v28 = vmul.f32 %v10295_v8, %v11856_v12 }
 0x5f3   : > { %9312 = vmatmul.mubr.msk.bf16.vlgmr.msra.gmra.mrb[24].mxu1 %vm1871_vm5, %v2145_v9  ;;  %9334 = vmatpush3.bf16.msra.mxu0 %v2599_v44  ;;  %v2134_v11 = vmul.f32 %v10297_v41, %v11858_v50 }
 0x5f4   : > { %9324 = vmatpush3.bf16.msra.mxu1 %v11882_v56  ;;  %v2151_v62 = vpack.c.bf16 %v2135_v28, %v2135_v28 }
 0x5f5   : > { %v10299_v63 = vpop.eup %10298  ;;  %3645 = vrot.lane.b32.xlu0 %v11443_v18, %s10789_s18  ;;  %9847 = vmatprep.subr.msk.bf16.mxu1 %vm2163_vm4, %v11892_v47  ;;  %v2656_v7 = vpop.permute.xlu1 %2655 }
 0x5f6   : > { %v2133_v27 = vmul.f32 %v10299_v63, %v11864_v53  ;;  %v10301_v24 = vpop.eup %10300  ;;  %v2667_v21 = vsel %vm1300_vm3, %v2656_v7, 0 }
 0x5f7   : > { %v2132_v48 = vmul.f32 %v10301_v24, %v11866_v23 }
 0x5f8   : > { %9326 = vmatpush3.bf16.msra.mxu1 %v2537_v14  ;;  %v2150_v45 = vpack.c.bf16 %v2134_v11, %v2133_v27  ;;  %v10303_v22 = vpop.eup %10302 }
 0x5f9   : > { %3585 = vrot.lane.b32.xlu0 %v11446_v57, %s10789_s18  ;;  %v2650_v56 = vpop.permute.xlu1 %2649  ;;  %v2130_v4 = vmul.f32 %v10303_v22, %v11872_v55  ;;  %v2149_v51 = vpack.c.bf16 %v2132_v48, %v2132_v48 }
 0x5fa   : > { %9335 = vmatprep.mubr.msk.bf16.mxu0 %vm1871_vm5, %v2150_v45 }
 0x5fb   : > { %9336 = vmatmul.mubr.msk.bf16.vlgmr.msra.gmra.mrb[52].mxu0 %vm1871_vm5, %v2151_v62 }
 0x5fd   : > { %3647 = vrot.lane.b32.xlu0 %v11463_v31, %s10789_s18  ;;  %v2790_v12 = vpop.permute.xlu1 %2789 }
 0x5fe   : > { %v2800_v2 = vsel %vm1300_vm3, %v2790_v12, 0 }
 0x601   : > { %v2718_v53 = vpop.permute.xlu1 %2717 }
 0x602   : > { %9351 = vmatprep.mubr.msk.bf16.mxu0 %vm1300_vm3, %v2718_v53 }
 0x605   : > { %v2858_v50 = vpop.permute.xlu1 %2857 }
 0x606   : > { %v2868_v38 = vsel %vm1300_vm3, %v2858_v50, 0 }
 0x609   : > { %v2786_v47 = vpop.permute.xlu1 %2785 }
 0x60d   : > { %v12045_v19 = vpop.permute.xlu1 %2925 }
 0x60e   : > { %v2936_v28 = vsel %vm1300_vm3, %v12045_v19, 0 }
 0x611   : > { %v2854_v36 = vpop.permute.xlu1 %2853 }
 0x615   : > { %v2994_v26 = vpop.permute.xlu1 %2993 }
 0x616   : > { %v3004_v8 = vsel %vm1300_vm3, %v2994_v26, 0 }
 0x619   : > { %v2922_v55 = vpop.permute.xlu1 %2921 }
 0x61d   : > { %v3062_v37 = vpop.permute.xlu1 %3061 }
 0x621   : > { %v2990_v58 = vpop.permute.xlu1 %2989 }
 0x625   : > { %v3130_v5 = vpop.permute.xlu1 %3129 }
 0x626   : > { %v3140_v62 = vsel %vm1300_vm3, %v3130_v5, 0 }
 0x627   : > { %v2075_v34 = vpop.xlane.xlu0 %2074 }
 0x628   : > { %10304 = vrcp.f32 %v2075_v34 }
 0x629   : > { %v3058_v44 = vpop.permute.xlu1 %3057 }
 0x62b   : > { %v2654_v0 = vpop.permute.xlu0 %2653 }
 0x62c   : > { %9849 = vmatprep.subr.msk.bf16.mxu1 %vm1300_vm3, %v2654_v0  ;;  %v2664_v52 = vsel %vm1300_vm3, %v2654_v0, 0 }
 0x62f   : > { %v2722_v16 = vpop.permute.xlu0 %2721 }
 0x630   : > { %9851 = vmatprep.subr.msk.bf16.mxu0 %vm1300_vm3, %v2722_v16  ;;  %v2732_v40 = vsel %vm1300_vm3, %v2722_v16, 0 }
 0x631   : > { %9348 = vmatpush3.bf16.xpose.msra.mxu0 %v2732_v40 }
 0x632   : > { %v10305_v46 = vpop.eup %10304 }
 0x633   : > { %v2724_v1 = vpop.permute.xlu0 %2723  ;;  %v2131_v32 = vmul.f32 %v10305_v46, %v11905_v13 }
 0x634   : > { %9852 = vmatprep.subr.msk.bf16.mxu0 %vm1300_vm3, %v2724_v1  ;;  %v2735_v23 = vsel %vm1300_vm3, %v2724_v1, 0 }
 0x635   : > { %v2148_v25 = vpack.c.bf16 %v2131_v32, %v2130_v4 }
 0x637   : > { %9327 = vmatprep.mubr.msk.bf16.mxu1 %vm1871_vm5, %v2148_v25  ;;  %v2652_v43 = vpop.permute.xlu0 %2651 }
 0x638   : > { %9328 = vmatmul.mubr.msk.bf16.vlgmr.msra.gmra.mrb[28].mxu1 %vm1871_vm5, %v2149_v51 }
 0x639   : > { %9340 = vmatpush3.bf16.xpose.msra.mxu1 %v2664_v52  ;;  %9343 = vmatprep.mubr.msk.bf16.mxu1 %vm1300_vm3, %v2650_v56 }
 0x63a   : > { %9850 = vmatprep.subr.msk.bf16.mxu1 %vm1300_vm3, %v2656_v7  ;;  %9350 = vmatpush3.bf16.xpose.msra.mxu0 %v2735_v23  ;;  %v3132_v7 = vpop.permute.xlu1 %3131 }
 0x63b   : > { %9855 = vmatprep.subr.msk.bf16.mxu0 %vm1300_vm3, %v2858_v50  ;;  %v2792_v13 = vpop.permute.xlu0 %2791  ;;  %v3143_v34 = vsel %vm1300_vm3, %v3132_v7, 0 }
 0x63c   : > { %v2803_v9 = vsel %vm1300_vm3, %v2792_v13, 0 }
 0x63e   : > { %v3128_v14 = vpop.permute.xlu1 %3127 }
 0x63f   : > { %v2720_v29 = vpop.permute.xlu0 %2719 }
 0x641   : > { %9342 = vmatpush3.bf16.xpose.msra.mxu1 %v2667_v21  ;;  %9352 = vmatmul.mubr.msk.bf16.vlgmr.msra.gmra.mrb[56].mxu0 %vm1300_vm3, %v2720_v29 }
 0x642   : > { %9853 = vmatprep.subr.msk.bf16.mxu1 %vm1300_vm3, %v2790_v12  ;;  %9364 = vmatpush3.bf16.xpose.msra.mxu0 %v2868_v38  ;;  %v3522_v53 = vpop.permute.xlu1 %3521 }
 0x643   : > { %9367 = vmatprep.mubr.msk.bf16.mxu0 %vm1300_vm3, %v2854_v36  ;;  %v2860_v30 = vpop.permute.xlu0 %2859 }
 0x644   : > { %9856 = vmatprep.subr.msk.bf16.mxu0 %vm1300_vm3, %v2860_v30  ;;  %v2871_v33 = vsel %vm1300_vm3, %v2860_v30, 0 }
 0x647   : > { %v2788_v49 = vpop.permute.xlu0 %2787 }
 0x648   : > { %9344 = vmatmul.mubr.msk.bf16.vlgmr.msra.gmra.mrb[32].mxu1 %vm1300_vm3, %v2652_v43 }
 0x649   : > { %9356 = vmatpush3.bf16.xpose.msra.mxu1 %v2800_v2  ;;  %9359 = vmatprep.mubr.msk.bf16.mxu1 %vm1300_vm3, %v2786_v47  ;;  %v3072_v47 = vsel %vm1300_vm3, %v3062_v37, 0 }
 0x64a   : > { %9854 = vmatprep.subr.msk.bf16.mxu1 %vm1300_vm3, %v2792_v13  ;;  %9366 = vmatpush3.bf16.xpose.msra.mxu0 %v2871_v33 }
 0x64b   : > { %9859 = vmatprep.subr.msk.bf16.mxu0 %vm1300_vm3, %v2994_v26  ;;  %v2928_v60 = vpop.permute.xlu0 %2927 }
 0x64c   : > { %v2939_v56 = vsel %vm1300_vm3, %v2928_v60, 0 }
 0x64f   : > { %v2856_v10 = vpop.permute.xlu0 %2855 }
 0x651   : > { %9358 = vmatpush3.bf16.xpose.msra.mxu1 %v2803_v9  ;;  %9368 = vmatmul.mubr.msk.bf16.vlgmr.msra.gmra.mrb[60].mxu0 %vm1300_vm3, %v2856_v10 }
 0x652   : > { %9857 = vmatprep.subr.msk.bf16.mxu1 %vm1300_vm3, %v12045_v19  ;;  %9380 = vmatpush3.bf16.xpose.msra.mxu0 %v3004_v8  ;;  %v3584_v19 = vpop.permute.xlu1 %3583 }
 0x653   : > { %9383 = vmatprep.mubr.msk.bf16.mxu0 %vm1300_vm3, %v2990_v58  ;;  %v2996_v41 = vpop.permute.xlu0 %2995 }
 0x654   : > { %9860 = vmatprep.subr.msk.bf16.mxu0 %vm1300_vm3, %v2996_v41  ;;  %v3007_v27 = vsel %vm1300_vm3, %v2996_v41, 0 }
 0x656   : > { %v12104_v40 = vpop.permute.xlu1 %3707 }
 0x657   : > { %v2924_v63 = vpop.permute.xlu0 %2923 }
 0x658   : > { %9360 = vmatmul.mubr.msk.bf16.vlgmr.msra.gmra.mrb[36].mxu1 %vm1300_vm3, %v2788_v49 }
 0x659   : > { %9372 = vmatpush3.bf16.xpose.msra.mxu1 %v2936_v28  ;;  %9375 = vmatprep.mubr.msk.bf16.mxu1 %vm1300_vm3, %v2922_v55 }
 0x65a   : > { %9858 = vmatprep.subr.msk.bf16.mxu1 %vm1300_vm3, %v2928_v60  ;;  %9382 = vmatpush3.bf16.xpose.msra.mxu0 %v3007_v27 }
 0x65b   : > { %9863 = vmatprep.subr.msk.bf16.mxu0 %vm1300_vm3, %v3130_v5  ;;  %v3064_v11 = vpop.permute.xlu0 %3063 }
 0x65c   : > { %v3075_v24 = vsel %vm1300_vm3, %v3064_v11, 0 }
 0x65f   : > { %v2992_v45 = vpop.permute.xlu0 %2991 }
 0x661   : > { %9374 = vmatpush3.bf16.xpose.msra.mxu1 %v2939_v56  ;;  %9384 = vmatmul.mubr.msk.bf16.vlgmr.msra.gmra.mrb[64].mxu0 %vm1300_vm3, %v2992_v45 }
 0x662   : > { %9861 = vmatprep.subr.msk.bf16.mxu1 %vm1300_vm3, %v3062_v37  ;;  %9396 = vmatpush3.bf16.xpose.msra.mxu0 %v3140_v62 }
 0x663   : > { %9864 = vmatprep.subr.msk.bf16.mxu0 %vm1300_vm3, %v3132_v7  ;;  %v3060_v12 = vpop.permute.xlu0 %3059 }
 0x667   : > { %v3126_v50 = vpop.permute.xlu0 %3125 }
 0x668   : > { %9376 = vmatmul.mubr.msk.bf16.vlgmr.msra.gmra.mrb[40].mxu1 %vm1300_vm3, %v2924_v63  ;;  %9399 = vmatprep.mubr.msk.bf16.mxu0 %vm1300_vm3, %v3126_v50 }
 0x669   : > { %9388 = vmatpush3.bf16.xpose.msra.mxu1 %v3072_v47  ;;  %9391 = vmatprep.mubr.msk.bf16.mxu1 %vm1300_vm3, %v3058_v44  ;;  %v12170_v47 = vld [vmem:[%s14622_s3] sm:$0xff] }
 0x66a   : > { %9862 = vmatprep.subr.msk.bf16.mxu1 %vm1300_vm3, %v3064_v11  ;;  %9398 = vmatpush3.bf16.xpose.msra.mxu0 %v3143_v34 }
 0x66b   : > { %9411 = vmatprep.subr.bf16.mxu0 %v3584_v19  ;;  %v3524_v0 = vpop.permute.xlu0 %3523 }
 0x66c   : > { %v3533_v46 = vsel %vm2163_vm4, %v3524_v0, 0 }
 0x66f   : > { %v12098_v36 = vpop.permute.xlu0 %3645 }
 0x671   : > { %9390 = vmatpush3.bf16.xpose.msra.mxu1 %v3075_v24  ;;  %9400 = vmatmul.mubr.msk.bf16.vlgmr.msra.gmra.mrb[68].mxu0 %vm1300_vm3, %v3128_v14  ;;  %v12180_v24 = vld [vmem:[%s14622_s3 + $0x8] sm:$0xff] }
 0x672   : > { %9403 = vmatprep.subr.bf16.mxu1 %v3522_v53  ;;  %9412 = vmatpush3.bf16.msra.mxu0 %v3584_v19 }
 0x673   : > { %v3586_v16 = vpop.permute.xlu0 %3585 }
 0x674   : > { %9866 = vmatprep.subr.msk.bf16.mxu0 %vm2163_vm4, %v3586_v16  ;;  %v3595_v22 = vsel %vm2163_vm4, %v3586_v16, 0 }
 0x676   : > { %9414 = vmatpush3.bf16.msra.mxu0 %v3595_v22 }
 0x677   : > { %9427 = vmatprep.subr.bf16.mxu0 %v12104_v40 }
 0x678   : > { %9392 = vmatmul.mubr.msk.bf16.vlgmr.msra.gmra.mrb[44].mxu1 %vm1300_vm3, %v3060_v12  ;;  %v12162_v12 = vld [vmem:[%s14622_s3 + $0x10] sm:$0xff] }
 0x679   : > { %9404 = vmatpush3.bf16.msra.mxu1 %v3522_v53 }
 0x67a   : > { %9865 = vmatprep.subr.msk.bf16.mxu1 %vm2163_vm4, %v3524_v0 }
 0x67d   : > { %9406 = vmatpush3.bf16.msra.mxu1 %v3533_v46 }
 0x67e   : > { %9419 = vmatprep.subr.bf16.mxu1 %v12098_v36 }
 0x6a2   : > { %v12111_v48 = vpop.f32.mrb[16].mxu1 }
 0x6a3   : > { %14684 = vst [vmem:[#allocation10_spill] sm:$0xff] %v12111_v48  ;;  %v12113_v1 = vpop.f32.mrb[17].mxu1 }
 0x6a4   : > { %14685 = vst [vmem:[#allocation11_spill] sm:$0xff] %v12113_v1  ;;  %v9282_v4 = vpop.f32.mrb[18].mxu1 }
 0x6a5   : > { %v12115_v32 = vpop.f32.mrb[19].mxu1 }
 0x6a6   : > { %14686 = vst [vmem:[#allocation12_spill] sm:$0xff] %v12115_v32 }
 0x6aa   : > { %v12117_v26 = vpop.f32.mrb[40].mxu0 }
 0x6ab   : > { %14687 = vst [vmem:[#allocation13_spill] sm:$0xff] %v12117_v26  ;;  %v12119_v25 = vpop.f32.mrb[41].mxu0 }
 0x6ac   : > { %14688 = vst [vmem:[#allocation14_spill] sm:$0xff] %v12119_v25  ;;  %v9290_v51 = vpop.f32.mrb[42].mxu0 }
 0x6ad   : > { %v12121_v43 = vpop.f32.mrb[43].mxu0 }
 0x6ae   : > { %14689 = vst [vmem:[#allocation15_spill] sm:$0xff] %v12121_v43 }
 0x6b2   : > { %v12123_v52 = vpop.f32.mrb[44].mxu0 }
 0x6b3   : > { %14690 = vst [vmem:[#allocation16_spill] sm:$0xff] %v12123_v52  ;;  %v12125_v23 = vpop.f32.mrb[45].mxu0 }
 0x6b4   : > { %14691 = vst [vmem:[#allocation17_spill] sm:$0xff] %v12125_v23  ;;  %v9306_v55 = vpop.f32.mrb[46].mxu0 }
 0x6b5   : > { %v12127_v13 = vpop.f32.mrb[47].mxu0 }
 0x6b6   : > { %14692 = vst [vmem:[#allocation18_spill] sm:$0xff] %v12127_v13  ;;  %v12129_v29 = vpop.f32.mrb[20].mxu1 }
 0x6b7   : > { %14693 = vst [vmem:[#allocation19_spill] sm:$0xff] %v12129_v29  ;;  %v12131_v37 = vpop.f32.mrb[21].mxu1 }
 0x6b8   : > { %14694 = vst [vmem:[#allocation20_spill] sm:$0xff] %v12131_v37  ;;  %v9298_v21 = vpop.f32.mrb[22].mxu1 }
 0x6b9   : > { %v12133_v38 = vpop.f32.mrb[23].mxu1 }
 0x6ba   : > { %14695 = vst [vmem:[#allocation21_spill] sm:$0xff] %v12133_v38 }
 0x6be   : > { %v12135_v30 = vpop.f32.mrb[48].mxu0 }
 0x6bf   : > { %14696 = vst [vmem:[#allocation22_spill] sm:$0xff] %v12135_v30  ;;  %v12137_v58 = vpop.f32.mrb[49].mxu0 }
 0x6c0   : > { %14697 = vst [vmem:[#allocation23_spill] sm:$0xff] %v12137_v58  ;;  %v9322_v49 = vpop.f32.mrb[50].mxu0 }
 0x6c1   : > { %v12139_v2 = vpop.f32.mrb[51].mxu0 }
 0x6c2   : > { %14698 = vst [vmem:[#allocation24_spill] sm:$0xff] %v12139_v2 }
 0x6c6   : > { %v12141_v33 = vpop.f32.mrb[24].mxu1 }
 0x6c7   : > { %14699 = vst [vmem:[#allocation25_spill] sm:$0xff] %v12141_v33  ;;  %v12143_v60 = vpop.f32.mrb[25].mxu1 }
 0x6c8   : > { %14700 = vst [vmem:[#allocation26_spill] sm:$0xff] %v12143_v60  ;;  %v9314_v5 = vpop.f32.mrb[26].mxu1 }
 0x6c9   : > { %v12145_v10 = vpop.f32.mrb[27].mxu1 }
 0x6ca   : > { %14701 = vst [vmem:[#allocation27_spill] sm:$0xff] %v12145_v10 }
 0x6ce   : > { %v12147_v9 = vpop.f32.mrb[52].mxu0 }
 0x6cf   : > { %14702 = vst [vmem:[#allocation28_spill] sm:$0xff] %v12147_v9  ;;  %v12149_v8 = vpop.f32.mrb[53].mxu0 }
 0x6d0   : > { %14703 = vst [vmem:[#allocation29_spill] sm:$0xff] %v12149_v8  ;;  %v9338_v44 = vpop.f32.mrb[54].mxu0 }
 0x6d1   : > { %v12151_v41 = vpop.f32.mrb[55].mxu0 }
 0x6d2   : > { %14704 = vst [vmem:[#allocation30_spill] sm:$0xff] %v12151_v41 }
 0x70b   : > { %v12153_v63 = vpop.f32.mrb[28].mxu1 }
 0x70c   : > { %14705 = vst [vmem:[#allocation31_spill] sm:$0xff] %v12153_v63  ;;  %v12155_v7 = vpop.f32.mrb[29].mxu1 }
 0x70d   : > { %14706 = vst [vmem:[#allocation32_spill] sm:$0xff] %v12155_v7  ;;  %v9330_v28 = vpop.f32.mrb[30].mxu1 }
 0x70e   : > { %v12157_v27 = vpop.f32.mrb[31].mxu1 }
 0x70f   : > { %14707 = vst [vmem:[#allocation33_spill] sm:$0xff] %v12157_v27 }
 0x714   : > { %v9353_v11 = vpop.f32.mrb[56].mxu0 }
 0x715   : > { %v3198_v14 = vmul.f32 0.35355338, %v9353_v11  ;;  %v2771_v45 = vpop.f32.mrb[57].mxu0 }
 0x716   : > { %v3196_v56 = vmul.f32 0.35355338, %v2771_v45  ;;  %v9354_v62 = vpop.f32.mrb[58].mxu0 }
 0x717   : > { %v12165_v53 = vadd.f32 %v12162_v12, %v3198_v14  ;;  %v2774_v50 = vpop.f32.mrb[59].mxu0 }
 0x718   : > { %v12173_v34 = vadd.f32 %v12170_v47, %v3196_v56  ;;  %v3197_v19 = vmul.f32 0.35355338, %v2774_v50 }
 0x719   : > { %v3256_v0 = vsel %vm1871_vm5, %v12165_v53, -inf }
 0x71a   : > { %v12183_v16 = vadd.f32 %v12180_v24, %v3197_v19  ;;  %3257 = vmax.xlane.f32.xlu1 %v3256_v0  ;;  %v3250_v22 = vsel %vm1871_vm5, %v12173_v34, -inf }
 0x71b   : > { %v9345_v46 = vpop.f32.mrb[32].mxu1  ;;  %3251 = vmax.xlane.f32.xlu0 %v3250_v22 }
 0x71c   : > { %v3195_v4 = vmul.f32 0.35355338, %v9345_v46  ;;  %v2703_v51 = vpop.f32.mrb[33].mxu1  ;;  %v3253_v44 = vsel %vm1871_vm5, %v12183_v16, -inf }
 0x71d   : > { %v9346_v55 = vpop.f32.mrb[34].mxu1  ;;  %v3193_v49 = vmul.f32 0.35355338, %v2703_v51 }
 0x71e   : > { %v12188_v21 = vadd.f32 %v12162_v12, %v3195_v4  ;;  %v2706_v5 = vpop.f32.mrb[35].mxu1 }
 0x71f   : > { %v3194_v28 = vmul.f32 0.35355338, %v2706_v5  ;;  %3254 = vmax.xlane.f32.xlu0 %v3253_v44  ;;  %v12196_v14 = vadd.f32 %v12170_v47, %v3193_v49 }
 0x720   : > { %v3247_v45 = vsel %vm1871_vm5, %v12188_v21, -inf }
 0x721   : > { %v12193_v11 = vadd.f32 %v12180_v24, %v3194_v28  ;;  %v3241_v46 = vsel %vm1871_vm5, %v12196_v14, -inf }
 0x723   : > { %3248 = vmax.xlane.f32.xlu0 %v3247_v45  ;;  %v3244_v56 = vsel %vm1871_vm5, %v12193_v11, -inf }
 0x724   : > { %3245 = vmax.xlane.f32.xlu1 %v3244_v56  ;;  %v9369_v62 = vpop.f32.mrb[60].mxu0 }
 0x725   : > { %v3204_v50 = vmul.f32 0.35355338, %v9369_v62  ;;  %v2907_v19 = vpop.f32.mrb[61].mxu0 }
 0x726   : > { %v3202_v0 = vmul.f32 0.35355338, %v2907_v19  ;;  %v9370_v22 = vpop.f32.mrb[62].mxu0 }
 0x727   : > { %v12205_v4 = vadd.f32 %v12162_v12, %v3204_v50  ;;  %3242 = vmax.xlane.f32.xlu0 %v3241_v46  ;;  %v2910_v51 = vpop.f32.mrb[63].mxu0 }
 0x728   : > { %v3203_v55 = vmul.f32 0.35355338, %v2910_v51  ;;  %v12208_v49 = vadd.f32 %v12170_v47, %v3202_v0 }
 0x729   : > { %v3274_v5 = vsel %vm1871_vm5, %v12205_v4, -inf }
 0x72a   : > { %v12213_v44 = vadd.f32 %v12180_v24, %v3203_v55  ;;  %3275 = vmax.xlane.f32.xlu1 %v3274_v5  ;;  %v3268_v0 = vsel %vm1871_vm5, %v12208_v49, -inf }
 0x72b   : > { %v9361_v28 = vpop.f32.mrb[36].mxu1 }
 0x72c   : > { %v3201_v45 = vmul.f32 0.35355338, %v9361_v28  ;;  %v2839_v56 = vpop.f32.mrb[37].mxu1  ;;  %v3271_v62 = vsel %vm1871_vm5, %v12213_v44, -inf }
 0x72d   : > { %v3199_v50 = vmul.f32 0.35355338, %v2839_v56  ;;  %v9362_v19 = vpop.f32.mrb[38].mxu1  ;;  %3272 = vmax.xlane.f32.xlu0 %v3271_v62 }
 0x72e   : > { %v12220_v22 = vadd.f32 %v12162_v12, %v3201_v45  ;;  %v2842_v46 = vpop.f32.mrb[39].mxu1  ;;  %3269 = vmax.xlane.f32.xlu1 %v3268_v0 }
 0x72f   : > { %v12223_v51 = vadd.f32 %v12170_v47, %v3199_v50  ;;  %v3200_v55 = vmul.f32 0.35355338, %v2842_v46 }
 0x730   : > { %v3265_v5 = vsel %vm1871_vm5, %v12220_v22, -inf }
 0x731   : > { %v12228_v28 = vadd.f32 %v12180_v24, %v3200_v55  ;;  %3266 = vmax.xlane.f32.xlu0 %v3265_v5  ;;  %v3259_v56 = vsel %vm1871_vm5, %v12223_v51, -inf }
 0x732   : > { %3260 = vmax.xlane.f32.xlu1 %v3259_v56 }
 0x733   : > { %v3262_v45 = vsel %vm1871_vm5, %v12228_v28, -inf }
 0x734   : > { %v9385_v62 = vpop.f32.mrb[64].mxu0 }
 0x735   : > { %v3210_v19 = vmul.f32 0.35355338, %v9385_v62  ;;  %3263 = vmax.xlane.f32.xlu0 %v3262_v45  ;;  %v3043_v50 = vpop.f32.mrb[65].mxu0 }
 0x736   : > { %v3208_v0 = vmul.f32 0.35355338, %v3043_v50  ;;  %v9386_v46 = vpop.f32.mrb[66].mxu0 }
 0x737   : > { %v12235_v41 = vadd.f32 %v12162_v12, %v3210_v19  ;;  %v3046_v9 = vpop.f32.mrb[67].mxu0 }
 0x738   : > { %v3209_v55 = vmul.f32 0.35355338, %v3046_v9  ;;  %v12238_v5 = vadd.f32 %v12170_v47, %v3208_v0 }
 0x739   : > { %v3292_v56 = vsel %vm1871_vm5, %v12235_v41, -inf }
 0x73a   : > { %v12243_v63 = vadd.f32 %v12180_v24, %v3209_v55  ;;  %3293 = vmax.xlane.f32.xlu1 %v3292_v56  ;;  %v3286_v9 = vsel %vm1871_vm5, %v12238_v5, -inf }
 0x73b   : > { %v9377_v62 = vpop.f32.mrb[40].mxu1 }
 0x73c   : > { %v3207_v45 = vmul.f32 0.35355338, %v9377_v62  ;;  %v2975_v8 = vpop.f32.mrb[41].mxu1  ;;  %v3289_v50 = vsel %vm1871_vm5, %v12243_v63, -inf }
 0x73d   : > { %v3205_v19 = vmul.f32 0.35355338, %v2975_v8  ;;  %v9378_v46 = vpop.f32.mrb[42].mxu1  ;;  %3290 = vmax.xlane.f32.xlu0 %v3289_v50 }
 0x73e   : > { %v12250_v0 = vadd.f32 %v12162_v12, %v3207_v45  ;;  %v2978_v7 = vpop.f32.mrb[43].mxu1  ;;  %3287 = vmax.xlane.f32.xlu1 %v3286_v9 }
 0x73f   : > { %v12253_v55 = vadd.f32 %v12170_v47, %v3205_v19  ;;  %v3206_v56 = vmul.f32 0.35355338, %v2978_v7 }
 0x740   : > { %v3283_v62 = vsel %vm1871_vm5, %v12250_v0, -inf }
 0x741   : > { %v12258_v27 = vadd.f32 %v12180_v24, %v3206_v56  ;;  %3284 = vmax.xlane.f32.xlu0 %v3283_v62  ;;  %v3277_v8 = vsel %vm1871_vm5, %v12253_v55, -inf }
 0x742   : > { %3278 = vmax.xlane.f32.xlu1 %v3277_v8 }
 0x743   : > { %v3280_v45 = vsel %vm1871_vm5, %v12258_v27, -inf }
 0x744   : > { %v9401_v50 = vpop.f32.mrb[68].mxu0 }
 0x745   : > { %v3216_v46 = vmul.f32 0.35355338, %v9401_v50  ;;  %3281 = vmax.xlane.f32.xlu0 %v3280_v45  ;;  %v3179_v19 = vpop.f32.mrb[69].mxu0 }
 0x746   : > { %v3214_v9 = vmul.f32 0.35355338, %v3179_v19  ;;  %v9402_v7 = vpop.f32.mrb[70].mxu0 }
 0x747   : > { %v12265_v2 = vadd.f32 %v12162_v12, %v3216_v46  ;;  %v3182_v30 = vpop.f32.mrb[71].mxu0 }
 0x748   : > { %v3215_v56 = vmul.f32 0.35355338, %v3182_v30  ;;  %v12268_v62 = vadd.f32 %v12170_v47, %v3214_v9 }
 0x749   : > { %v3310_v8 = vsel %vm1871_vm5, %v12265_v2, -inf }
 0x74a   : > { %v12273_v60 = vadd.f32 %v12180_v24, %v3215_v56  ;;  %3311 = vmax.xlane.f32.xlu1 %v3310_v8  ;;  %v3304_v30 = vsel %vm1871_vm5, %v12268_v62, -inf }
 0x74b   : > { %v9393_v50 = vpop.f32.mrb[44].mxu1 }
 0x74c   : > { %v3213_v45 = vmul.f32 0.35355338, %v9393_v50  ;;  %v3111_v10 = vpop.f32.mrb[45].mxu1  ;;  %v3307_v19 = vsel %vm1871_vm5, %v12273_v60, -inf }
 0x74d   : > { %v3211_v46 = vmul.f32 0.35355338, %v3111_v10  ;;  %v9394_v7 = vpop.f32.mrb[46].mxu1  ;;  %3308 = vmax.xlane.f32.xlu0 %v3307_v19  ;;  %v12308_v19 = vpop.permute.xlu0 %3647 }
 0x74e   : > { %v12280_v9 = vadd.f32 %v12162_v12, %v3213_v45  ;;  %v3114_v33 = vpop.f32.mrb[47].mxu1  ;;  %3305 = vmax.xlane.f32.xlu1 %v3304_v30  ;;  %v12306_v45 = vpop.permute.xlu1 %3769 }
 0x74f   : > { %v12283_v56 = vadd.f32 %v12170_v47, %v3211_v46  ;;  %v3212_v12 = vmul.f32 0.35355338, %v3114_v33 }
 0x750   : > { %v3301_v8 = vsel %vm1871_vm5, %v12280_v9, -inf }
 0x751   : > { %3302 = vmax.xlane.f32.xlu0 %v3301_v8  ;;  %v3295_v10 = vsel %vm1871_vm5, %v12283_v56, -inf  ;;  %v12300_v47 = vadd.f32 %v12180_v24, %v3212_v12 }
 0x752   : > { %v12310_v46 = vpop.permute.xlu1 %3709 }
 0x753   : > { %v3298_v50 = vsel %vm1871_vm5, %v12300_v47, -inf }
 0x755   : > { %3296 = vmax.xlane.f32.xlu0 %v3295_v10 }
 0x75f   : > { %3831 = vrot.lane.b32.xlu1 %v11491_v20, %s10789_s18 }
 0x763   : > { %3893 = vrot.lane.b32.xlu1 %v11494_v54, %s10789_s18 }
 0x767   : > { %3833 = vrot.lane.b32.xlu1 %v11496_v59, %s10789_s18 }
 0x76b   : > { %3895 = vrot.lane.b32.xlu1 %v11506_v35, %s10789_s18  ;;  %3771 = vrot.lane.b32.xlu0 %v11479_v42, %s10789_s18 }
 0x78f   : > { %3299 = vmax.xlane.f32.xlu1 %v3298_v50 }
 0x7a0   : > { %3955 = vrot.lane.b32.xlu1 %v11510_v6, %s10789_s18 }
 0x7a7   : > { %v3258_v30 = vpop.xlane.xlu1 %3257 }
 0x7a8   : > { %v3252_v7 = vpop.xlane.xlu0 %3251  ;;  %v3318_v24 = vsub.f32 %v12165_v53, %v3258_v30 }
 0x7a9   : > { %v3316_v37 = vsub.f32 %v12173_v34, %v3252_v7 }
 0x7aa   : > { %v3347_v58 = vmul.f32 1.442695, %v3318_v24 }
 0x7ab   : > { %v3343_v52 = vmul.f32 1.442695, %v3316_v37 }
 0x7ac   : > { %v3255_v8 = vpop.xlane.xlu0 %3254 }
 0x7ad   : > { %v3317_v33 = vsub.f32 %v12183_v16, %v3255_v8 }
 0x7af   : > { %v3345_v10 = vmul.f32 1.442695, %v3317_v33 }
 0x7b0   : > { %v3249_v12 = vpop.xlane.xlu0 %3248 }
 0x7b1   : > { %10306 = vpow2.f32 %v3345_v10  ;;  %v3315_v50 = vsub.f32 %v12188_v21, %v3249_v12  ;;  %v3246_v29 = vpop.xlane.xlu1 %3245 }
 0x7b2   : > { %v3314_v16 = vsub.f32 %v12193_v11, %v3246_v29 }
 0x7b3   : > { %v3341_v38 = vmul.f32 1.442695, %v3315_v50 }
 0x7b4   : > { %v3243_v23 = vpop.xlane.xlu0 %3242  ;;  %v3339_v30 = vmul.f32 1.442695, %v3314_v16 }
 0x7b5   : > { %10308 = vpow2.f32 %v3341_v38  ;;  %v3313_v13 = vsub.f32 %v12196_v14, %v3243_v23 }
 0x7b6   : > { %10310 = vpow2.f32 %v3347_v58 }
 0x7b7   : > { %v3337_v8 = vmul.f32 1.442695, %v3313_v13  ;;  %v3276_v53 = vpop.xlane.xlu1 %3275 }
 0x7b8   : > { %v3324_v21 = vsub.f32 %v12205_v4, %v3276_v53 }
 0x7b9   : > { %10312 = vpow2.f32 %v3337_v8 }
 0x7ba   : > { %10314 = vpow2.f32 %v3343_v52  ;;  %v3273_v33 = vpop.xlane.xlu0 %3272  ;;  %v3359_v29 = vmul.f32 1.442695, %v3324_v21 }
 0x7bb   : > { %v12319_v24 = vpop.eup %10306  ;;  %v3323_v34 = vsub.f32 %v12213_v44, %v3273_v33  ;;  %v3270_v7 = vpop.xlane.xlu1 %3269  ;;  %10316 = vpow2.f32 %v3339_v30 }
 0x7bc   : > { %v3397_v23 = vsel %vm1871_vm5, %v12319_v24, 0.0  ;;  %v3322_v13 = vsub.f32 %v12208_v49, %v3270_v7 }
 0x7bd   : > { %v3357_v38 = vmul.f32 1.442695, %v3323_v34  ;;  %3398 = vadd.xlane.f32.xlu0 %v3397_v23 }
 0x7be   : > { %v3267_v37 = vpop.xlane.xlu0 %3266  ;;  %v3355_v10 = vmul.f32 1.442695, %v3322_v13 }
 0x7bf   : > { %v12325_v52 = vpop.eup %10308  ;;  %10318 = vpow2.f32 %v3357_v38  ;;  %v3321_v58 = vsub.f32 %v12220_v22, %v3267_v37  ;;  %v3261_v11 = vpop.xlane.xlu1 %3260 }
 0x7c0   : > { %v12328_v14 = vpop.eup %10310  ;;  %v3391_v4 = vsel %vm1871_vm5, %v12325_v52, 0.0  ;;  %10320 = vpow2.f32 %v3359_v29  ;;  %v3319_v12 = vsub.f32 %v12223_v51, %v3261_v11 }
 0x7c1   : > { %v3353_v44 = vmul.f32 1.442695, %v3321_v58  ;;  %3392 = vadd.xlane.f32.xlu0 %v3391_v4  ;;  %v3400_v22 = vsel %vm1871_vm5, %v12328_v14, 0.0 }
 0x7c2   : > { %v3264_v50 = vpop.xlane.xlu0 %3263  ;;  %v3349_v21 = vmul.f32 1.442695, %v3319_v12 }
 0x7c3   : > { %v12333_v49 = vpop.eup %10312  ;;  %10322 = vpow2.f32 %v3353_v44  ;;  %v3320_v16 = vsub.f32 %v12228_v28, %v3264_v50 }
 0x7c4   : > { %v12338_v8 = vpop.eup %10314  ;;  %3401 = vadd.xlane.f32.xlu1 %v3400_v22  ;;  %v3385_v53 = vsel %vm1871_vm5, %v12333_v49, 0.0  ;;  %10324 = vpow2.f32 %v3355_v10 }
 0x7c5   : > { %v3351_v30 = vmul.f32 1.442695, %v3320_v16  ;;  %3386 = vadd.xlane.f32.xlu0 %v3385_v53  ;;  %v3394_v33 = vsel %vm1871_vm5, %v12338_v8, 0.0  ;;  %v12344_v34 = vpop.eup %10316 }
 0x7c6   : > { %v3388_v58 = vsel %vm1871_vm5, %v12344_v34, 0.0 }
 0x7c7   : > { %10326 = vpow2.f32 %v3351_v30  ;;  %v3294_v51 = vpop.xlane.xlu1 %3293 }
 0x7c8   : > { %v3330_v28 = vsub.f32 %v12235_v41, %v3294_v51  ;;  %3395 = vadd.xlane.f32.xlu1 %v3394_v33  ;;  %10328 = vpow2.f32 %v3349_v21 }
 0x7c9   : > { %v12347_v7 = vpop.eup %10318 }
 0x7ca   : > { %v3371_v23 = vmul.f32 1.442695, %v3330_v28  ;;  %v3291_v38 = vpop.xlane.xlu0 %3290  ;;  %v3415_v29 = vsel %vm1871_vm5, %v12347_v7, 0.0  ;;  %v12354_v11 = vpop.eup %10320 }
 0x7cb   : > { %v3329_v13 = vsub.f32 %v12243_v63, %v3291_v38  ;;  %v3288_v37 = vpop.xlane.xlu1 %3287  ;;  %3416 = vadd.xlane.f32.xlu0 %v3415_v29  ;;  %v3418_v22 = vsel %vm1871_vm5, %v12354_v11, 0.0 }
 0x7cc   : > { %10330 = vpow2.f32 %v3371_v23  ;;  %v3328_v41 = vsub.f32 %v12238_v5, %v3288_v37  ;;  %3389 = vadd.xlane.f32.xlu1 %v3388_v58 }
 0x7cd   : > { %v12357_v4 = vpop.eup %10322  ;;  %v3369_v44 = vmul.f32 1.442695, %v3329_v13 }
 0x7ce   : > { %v3367_v10 = vmul.f32 1.442695, %v3328_v41  ;;  %v3285_v12 = vpop.xlane.xlu0 %3284  ;;  %v3409_v50 = vsel %vm1871_vm5, %v12357_v4, 0.0  ;;  %v12364_v53 = vpop.eup %10324 }
 0x7cf   : > { %v3327_v63 = vsub.f32 %v12250_v0, %v3285_v12  ;;  %v3279_v16 = vpop.xlane.xlu1 %3278  ;;  %3410 = vadd.xlane.f32.xlu0 %v3409_v50  ;;  %v3412_v23 = vsel %vm1871_vm5, %v12364_v53, 0.0 }
 0x7d0   : > { %10332 = vpow2.f32 %v3367_v10  ;;  %v3325_v5 = vsub.f32 %v12253_v55, %v3279_v16  ;;  %3419 = vadd.xlane.f32.xlu1 %v3418_v22 }
 0x7d1   : > { %v12367_v30 = vpop.eup %10326  ;;  %10334 = vpow2.f32 %v3369_v44  ;;  %v3365_v21 = vmul.f32 1.442695, %v3327_v63 }
 0x7d2   : > { %v3361_v51 = vmul.f32 1.442695, %v3325_v5  ;;  %v3282_v33 = vpop.xlane.xlu0 %3281  ;;  %v3406_v0 = vsel %vm1871_vm5, %v12367_v30, 0.0  ;;  %v12374_v38 = vpop.eup %10328 }
 0x7d3   : > { %v3326_v28 = vsub.f32 %v12258_v27, %v3282_v33  ;;  %3407 = vadd.xlane.f32.xlu0 %v3406_v0  ;;  %v3403_v37 = vsel %vm1871_vm5, %v12374_v38, 0.0 }
 0x7d4   : > { %10336 = vpow2.f32 %v3361_v51  ;;  %3413 = vadd.xlane.f32.xlu1 %v3412_v23 }
 0x7d5   : > { %10338 = vpow2.f32 %v3365_v21  ;;  %v3363_v29 = vmul.f32 1.442695, %v3326_v28 }
 0x7d6   : > { %v12376_v55 = vpop.eup %10330 }
 0x7d7   : > { %v3312_v13 = vpop.xlane.xlu1 %3311  ;;  %v3436_v58 = vsel %vm1871_vm5, %v12376_v55, 0.0  ;;  %10340 = vpow2.f32 %v3363_v29 }
 0x7d8   : > { %v3336_v27 = vsub.f32 %v12265_v2, %v3312_v13  ;;  %3404 = vadd.xlane.f32.xlu1 %v3403_v37  ;;  %3437 = vadd.xlane.f32.xlu0 %v3436_v58 }
 0x7da   : > { %v12383_v41 = vpop.eup %10332  ;;  %v3383_v44 = vmul.f32 1.442695, %v3336_v27  ;;  %v3309_v10 = vpop.xlane.xlu0 %3308 }
 0x7db   : > { %v3335_v12 = vsub.f32 %v12273_v60, %v3309_v10  ;;  %v3306_v50 = vpop.xlane.xlu1 %3305  ;;  %v3430_v63 = vsel %vm1871_vm5, %v12383_v41, 0.0  ;;  %v12388_v16 = vpop.eup %10334 }
 0x7dc   : > { %v3334_v22 = vsub.f32 %v12268_v62, %v3306_v50  ;;  %3431 = vadd.xlane.f32.xlu0 %v3430_v63  ;;  %10342 = vpow2.f32 %v3383_v44  ;;  %v3433_v0 = vsel %vm1871_vm5, %v12388_v16, 0.0 }
 0x7dd   : > { %v3381_v5 = vmul.f32 1.442695, %v3335_v12 }
 0x7de   : > { %v12391_v2 = vpop.eup %10336  ;;  %v3379_v21 = vmul.f32 1.442695, %v3334_v22  ;;  %v3303_v51 = vpop.xlane.xlu0 %3302 }
 0x7df   : > { %10344 = vpow2.f32 %v3381_v5  ;;  %v3333_v33 = vsub.f32 %v12280_v9, %v3303_v51  ;;  %v3421_v60 = vsel %vm1871_vm5, %v12391_v2, 0.0  ;;  %v12398_v28 = vpop.eup %10338  ;;  %v12429_v51 = vpop.permute.xlu1 %3831 }
 0x7e0   : > { %3422 = vadd.xlane.f32.xlu1 %v3421_v60  ;;  %3434 = vadd.xlane.f32.xlu0 %v3433_v0  ;;  %10346 = vpow2.f32 %v3379_v21  ;;  %v3427_v13 = vsel %vm1871_vm5, %v12398_v28, 0.0 }
 0x7e1   : > { %v3377_v62 = vmul.f32 1.442695, %v3333_v33  ;;  %v12403_v9 = vpop.eup %10340 }
 0x7e2   : > { %v3297_v23 = vpop.xlane.xlu0 %3296  ;;  %v3424_v58 = vsel %vm1871_vm5, %v12403_v9, 0.0 }
 0x7e3   : > { %10348 = vpow2.f32 %v3377_v62  ;;  %v3331_v29 = vsub.f32 %v12283_v56, %v3297_v23  ;;  %v12433_v33 = vpop.permute.xlu1 %3893  ;;  %v14708_v62 = vld [vmem:[#allocation8_spill] sm:$0xff] }
 0x7e4   : > { %3428 = vadd.xlane.f32.xlu0 %v3427_v13 }
 0x7e5   : > { %v3373_v37 = vmul.f32 1.442695, %v3331_v29 }
 0x7e6   : > { %v12407_v27 = vpop.eup %10342 }
 0x7e7   : > { %10350 = vpow2.f32 %v3373_v37  ;;  %v3454_v56 = vsel %vm1871_vm5, %v12407_v27, 0.0  ;;  %v12439_v60 = vpop.permute.xlu1 %3833  ;;  %v14709_v37 = vld [vmem:[#allocation9_spill] sm:$0xff] }
 0x7e8   : > { %3425 = vadd.xlane.f32.xlu0 %v3424_v58 }
 0x7e9   : > { %v12409_v44 = vpop.eup %10344 }
 0x7ea   : > { %v3451_v10 = vsel %vm1871_vm5, %v12409_v44, 0.0  ;;  %v12415_v12 = vpop.eup %10346 }
 0x7eb   : > { %3452 = vadd.xlane.f32.xlu1 %v3451_v10  ;;  %v3448_v22 = vsel %vm1871_vm5, %v12415_v12, 0.0  ;;  %v12443_v0 = vpop.permute.xlu1 %3895 }
 0x7ec   : > { %3455 = vadd.xlane.f32.xlu0 %v3454_v56 }
 0x7ed   : > { %v12417_v50 = vpop.eup %10348 }
 0x7ee   : > { %v3445_v63 = vsel %vm1871_vm5, %v12417_v50, 0.0 }
 0x7ef   : > { %3446 = vadd.xlane.f32.xlu1 %v3445_v63 }
 0x7f0   : > { %3449 = vadd.xlane.f32.xlu0 %v3448_v22 }
 0x7f1   : > { %v12423_v5 = vpop.eup %10350 }
 0x7f2   : > { %v3439_v21 = vsel %vm1871_vm5, %v12423_v5, 0.0 }
 0x7f3   : > { %3440 = vadd.xlane.f32.xlu1 %v3439_v21 }
 0x804   : > { %3957 = vrot.lane.b32.xlu1 %v11514_v3, %s10789_s18  ;;  %s10797_s18 = smov 16  }
 0x808   : > { %4023 = vrot.lane.b32.xlu1 %v11454_v15, %s10790_s28 }
 0x80c   : > { %4017 = vrot.lane.b32.xlu1 %v11430_v61, %s10791_s29 }
 0x810   : > { %4157 = vrot.lane.b32.xlu1 %v11443_v18, %s10790_s28 }
 0x814   : > { %4085 = vrot.lane.b32.xlu1 %v11440_v17, %s10791_s29 }
 0x818   : > { %4225 = vrot.lane.b32.xlu1 %v14708_v62, %s10790_s28 }
 0x81c   : > { %v3300_v23 = vpop.xlane.xlu1 %3299  ;;  %4153 = vrot.lane.b32.xlu1 %v11443_v18, %s10791_s29 }
 0x81d   : > { %v3332_v29 = vsub.f32 %v12300_v47, %v3300_v23  ;;  %v12476_v47 = vpop.permute.xlu0 %3771 }
 0x81f   : > { %v3375_v13 = vmul.f32 1.442695, %v3332_v29 }
 0x820   : > { %4293 = vrot.lane.b32.xlu1 %v14709_v37, %s10790_s28  ;;  %v12486_v63 = vpop.permute.xlu1 %3955 }
 0x821   : > { %10352 = vpow2.f32 %v3375_v13 }
 0x824   : > { %4221 = vrot.lane.b32.xlu1 %v14708_v62, %s10791_s29 }
 0x828   : > { %4361 = vrot.lane.b32.xlu1 %v11491_v20, %s10790_s28 }
 0x82b   : > { %v12456_v58 = vpop.eup %10352 }
 0x82c   : > { %4289 = vrot.lane.b32.xlu1 %v14709_v37, %s10791_s29  ;;  %v3442_v10 = vsel %vm1871_vm5, %v12456_v58, 0.0 }
 0x82d   : > { %3443 = vadd.xlane.f32.xlu0 %v3442_v10 }
 0x830   : > { %4429 = vrot.lane.b32.xlu1 %v11494_v54, %s10790_s28 }
 0x834   : > { %4357 = vrot.lane.b32.xlu1 %v11491_v20, %s10791_s29 }
 0x838   : > { %4497 = vrot.lane.b32.xlu1 %v11510_v6, %s10790_s28 }
 0x83c   : > { %4425 = vrot.lane.b32.xlu1 %v11494_v54, %s10791_s29 }
 0x840   : > { %4499 = vrot.lane.b32.xlu1 %v11514_v3, %s10790_s28 }
 0x843   : > { %4021 = vrot.lane.b32.xlu0 %v11430_v61, %s10790_s28 }
 0x844   : > { %4495 = vrot.lane.b32.xlu1 %v11514_v3, %s10791_s29 }
 0x847   : > { %4089 = vrot.lane.b32.xlu0 %v11440_v17, %s10790_s28 }
 0x848   : > { %4889 = vrot.lane.b32.xlu1 %v11430_v61, %s10792_s14 }
 0x84a   : > { %v3399_v56 = vpop.xlane.xlu0 %3398 }
 0x84b   : > { %4091 = vrot.lane.b32.xlu0 %v11446_v57, %s10790_s28 }
 0x84c   : > { %4951 = vrot.lane.b32.xlu1 %v11440_v17, %s10792_s14 }
 0x84e   : > { %v3393_v22 = vpop.xlane.xlu0 %3392 }
 0x84f   : > { %4019 = vrot.lane.b32.xlu0 %v11454_v15, %s10791_s29 }
 0x850   : > { %5075 = vrot.lane.b32.xlu1 %v14708_v62, %s10792_s14 }
 0x851   : > { %v3402_v21 = vpop.xlane.xlu1 %3401 }
 0x852   : > { %10354 = vrcp.f32 %v3402_v21  ;;  %v3387_v23 = vpop.xlane.xlu0 %3386 }
 0x853   : > { %4159 = vrot.lane.b32.xlu0 %v11463_v31, %s10790_s28  ;;  %10356 = vrcp.f32 %v3399_v56 }
 0x854   : > { %5137 = vrot.lane.b32.xlu1 %v14709_v37, %s10792_s14 }
 0x855   : > { %v3396_v29 = vpop.xlane.xlu1 %3395 }
 0x856   : > { %10358 = vrcp.f32 %v3396_v29 }
 0x857   : > { %10360 = vrcp.f32 %v3393_v22  ;;  %4087 = vrot.lane.b32.xlu0 %v11446_v57, %s10791_s29 }
 0x858   : > { %10362 = vrcp.f32 %v3387_v23  ;;  %5077 = vrot.lane.b32.xlu1 %v11472_v39, %s10792_s14  ;;  %v3417_v13 = vpop.xlane.xlu0 %3416 }
 0x859   : > { %v3390_v10 = vpop.xlane.xlu1 %3389 }
 0x85a   : > { %10364 = vrcp.f32 %v3390_v10 }
 0x85b   : > { %4227 = vrot.lane.b32.xlu0 %v11472_v39, %s10790_s28 }
 0x85c   : > { %v3411_v56 = vpop.xlane.xlu0 %3410  ;;  %v10355_v21 = vpop.eup %10354 }
 0x85d   : > { %v3420_v1 = vpop.xlane.xlu1 %3419  ;;  %v10357_v32 = vpop.eup %10356  ;;  %v3486_v29 = vmul.f32 %v10355_v21, %v12328_v14 }
 0x85e   : > { %10366 = vrcp.f32 %v3420_v1  ;;  %v3485_v48 = vmul.f32 %v10357_v32, %v12319_v24 }
 0x85f   : > { %4155 = vrot.lane.b32.xlu0 %v11463_v31, %s10791_s29  ;;  %10368 = vrcp.f32 %v3417_v13  ;;  %v3508_v62 = vpack.c.bf16 %v3486_v29, %v3486_v29 }
 0x860   : > { %v10359_v22 = vpop.eup %10358  ;;  %v3408_v23 = vpop.xlane.xlu0 %3407 }
 0x861   : > { %v10361_v43 = vpop.eup %10360  ;;  %v3414_v26 = vpop.xlane.xlu1 %3413  ;;  %v3484_v10 = vmul.f32 %v10359_v22, %v12338_v8 }
 0x862   : > { %v10363_v25 = vpop.eup %10362  ;;  %10370 = vrcp.f32 %v3414_v26  ;;  %v3483_v13 = vmul.f32 %v10361_v43, %v12325_v52 }
 0x863   : > { %10372 = vrcp.f32 %v3411_v56  ;;  %4295 = vrot.lane.b32.xlu0 %v11479_v42, %s10790_s28  ;;  %v3507_v1 = vpack.c.bf16 %v3485_v48, %v3484_v10  ;;  %v3481_v8 = vmul.f32 %v10363_v25, %v12333_v49 }
 0x864   : > { %v10365_v37 = vpop.eup %10364  ;;  %10374 = vrcp.f32 %v3408_v23  ;;  %v3506_v26 = vpack.c.bf16 %v3483_v13, %v3483_v13 }
 0x865   : > { %v3405_v17 = vpop.xlane.xlu1 %3404  ;;  %9415 = vmatprep.mubr.msk.bf16.mxu0 %vm1871_vm5, %v3507_v1  ;;  %v3438_v14 = vpop.xlane.xlu0 %3437  ;;  %v3482_v32 = vmul.f32 %v10365_v37, %v12344_v34  ;;  %v3657_v37 = vsel %vm2163_vm4, %v12308_v19, 0 }
 0x866   : > { %10376 = vrcp.f32 %v3405_v17  ;;  %9416 = vmatmul.mubr.msk.bf16.vlgmr.msra.gmra.mrb[72].mxu0 %vm1871_vm5, %v3508_v62  ;;  %v3719_v17 = vsel %vm2163_vm4, %v12310_v46, 0 }
 0x867   : > { %9428 = vmatpush3.bf16.msra.mxu0 %v12104_v40  ;;  %4223 = vrot.lane.b32.xlu0 %v11472_v39, %s10791_s29  ;;  %v3505_v48 = vpack.c.bf16 %v3482_v32, %v3481_v8  ;;  %10378 = vrcp.f32 %v3438_v14 }
 0x868   : > { %9868 = vmatprep.subr.msk.bf16.mxu0 %vm2163_vm4, %v12310_v46  ;;  %v10367_v43 = vpop.eup %10366 }
 0x869   : > { %9407 = vmatprep.mubr.msk.bf16.mxu1 %vm1871_vm5, %v3505_v48  ;;  %v3432_v24 = vpop.xlane.xlu0 %3431  ;;  %v10369_v25 = vpop.eup %10368  ;;  %v3492_v52 = vmul.f32 %v10367_v43, %v12354_v11 }
 0x86a   : > { %9408 = vmatmul.mubr.msk.bf16.vlgmr.msra.gmra.mrb[48].mxu1 %vm1871_vm5, %v3506_v26  ;;  %10380 = vrcp.f32 %v3432_v24 }
 0x86b   : > { %9420 = vmatpush3.bf16.msra.mxu1 %v12098_v36  ;;  %9430 = vmatpush3.bf16.msra.mxu0 %v3719_v17  ;;  %v3491_v36 = vmul.f32 %v10369_v25, %v12347_v7  ;;  %v3512_v11 = vpack.c.bf16 %v3492_v52, %v3492_v52 }
 0x86c   : > { %v10371_v40 = vpop.eup %10370  ;;  %4363 = vrot.lane.b32.xlu0 %v11496_v59, %s10790_s28  ;;  %9867 = vmatprep.subr.msk.bf16.mxu1 %vm2163_vm4, %v12308_v19 }
 0x86d   : > { %v10373_v49 = vpop.eup %10372  ;;  %9443 = vmatprep.subr.bf16.mxu0 %v12429_v51  ;;  %v3435_v34 = vpop.xlane.xlu0 %3434  ;;  %v3490_v46 = vmul.f32 %v10371_v40, %v12364_v53 }
 0x86e   : > { %v10375_v62 = vpop.eup %10374  ;;  %10382 = vrcp.f32 %v3435_v34  ;;  %v3489_v22 = vmul.f32 %v10373_v49, %v12357_v4  ;;  %v3423_v23 = vpop.xlane.xlu1 %3422 }
 0x86f   : > { %9422 = vmatpush3.bf16.msra.mxu1 %v3657_v37  ;;  %v3511_v56 = vpack.c.bf16 %v3491_v36, %v3490_v46  ;;  %v3488_v19 = vmul.f32 %v10375_v62, %v12367_v30  ;;  %v3843_v30 = vsel %vm2163_vm4, %v12439_v60, 0 }
 0x870   : > { %v10377_v21 = vpop.eup %10376  ;;  %4291 = vrot.lane.b32.xlu0 %v11479_v42, %s10791_s29  ;;  %9435 = vmatprep.subr.bf16.mxu1 %v12306_v45  ;;  %v3510_v4 = vpack.c.bf16 %v3489_v22, %v3489_v22 }
 0x871   : > { %9431 = vmatprep.mubr.msk.bf16.mxu0 %vm1871_vm5, %v3511_v56  ;;  %v3429_v7 = vpop.xlane.xlu0 %3428  ;;  %v3487_v53 = vmul.f32 %v10377_v21, %v12374_v38  ;;  %v10379_v38 = vpop.eup %10378  ;;  %v3905_v56 = vsel %vm2163_vm4, %v12443_v0, 0 }
 0x872   : > { %9432 = vmatmul.mubr.msk.bf16.vlgmr.msra.gmra.mrb[76].mxu0 %vm1871_vm5, %v3512_v11  ;;  %10384 = vrcp.f32 %v3429_v7  ;;  %v3498_v8 = vmul.f32 %v10379_v38, %v12376_v55 }
 0x873   : > { %9444 = vmatpush3.bf16.msra.mxu0 %v12429_v51  ;;  %v3509_v29 = vpack.c.bf16 %v3488_v19, %v3487_v53  ;;  %10386 = vrcp.f32 %v3423_v23 }
 0x874   : > { %4431 = vrot.lane.b32.xlu0 %v11506_v35, %s10790_s28  ;;  %9870 = vmatprep.subr.msk.bf16.mxu0 %vm2163_vm4, %v12439_v60  ;;  %v10381_v51 = vpop.eup %10380  ;;  %v3781_v60 = vsel %vm2163_vm4, %v12476_v47, 0  ;;  %v3516_v55 = vpack.c.bf16 %v3498_v8, %v3498_v8 }
 0x875   : > { %9423 = vmatprep.mubr.msk.bf16.mxu1 %vm1871_vm5, %v3509_v29  ;;  %v3426_v10 = vpop.xlane.xlu0 %3425  ;;  %v3496_v32 = vmul.f32 %v10381_v51, %v12383_v41 }
 0x876   : > { %10388 = vrcp.f32 %v3426_v10  ;;  %9424 = vmatmul.mubr.msk.bf16.vlgmr.msra.gmra.mrb[52].mxu1 %vm1871_vm5, %v3510_v4 }
 0x877   : > { %9436 = vmatpush3.bf16.msra.mxu1 %v12306_v45  ;;  %9446 = vmatpush3.bf16.msra.mxu0 %v3843_v30 }
 0x878   : > { %4359 = vrot.lane.b32.xlu0 %v11496_v59, %s10791_s29  ;;  %9869 = vmatprep.subr.msk.bf16.mxu1 %vm2163_vm4, %v12476_v47  ;;  %v3453_v1 = vpop.xlane.xlu1 %3452  ;;  %v10383_v13 = vpop.eup %10382 }
 0x879   : > { %9459 = vmatprep.subr.bf16.mxu0 %v12486_v63  ;;  %v3456_v14 = vpop.xlane.xlu0 %3455  ;;  %v3497_v45 = vmul.f32 %v10383_v13, %v12388_v16 }
 0x87a   : > { %10390 = vrcp.f32 %v3456_v14 }
 0x87b   : > { %9438 = vmatpush3.bf16.msra.mxu1 %v3781_v60  ;;  %10392 = vrcp.f32 %v3453_v1  ;;  %v3515_v26 = vpack.c.bf16 %v3497_v45, %v3496_v32 }
 0x87c   : > { %4427 = vrot.lane.b32.xlu0 %v11506_v35, %s10791_s29  ;;  %9451 = vmatprep.subr.bf16.mxu1 %v12433_v33  ;;  %v3447_v48 = vpop.xlane.xlu1 %3446  ;;  %v10385_v43 = vpop.eup %10384 }
 0x87d   : > { %v3450_v24 = vpop.xlane.xlu0 %3449  ;;  %v10387_v25 = vpop.eup %10386  ;;  %9447 = vmatprep.mubr.msk.bf16.mxu0 %vm1871_vm5, %v3515_v26  ;;  %v3495_v47 = vmul.f32 %v10385_v43, %v12398_v28 }
 0x87e   : > { %10394 = vrcp.f32 %v3450_v24  ;;  %9448 = vmatmul.mubr.msk.bf16.vlgmr.msra.gmra.mrb[80].mxu0 %vm1871_vm5, %v3516_v55  ;;  %v3493_v17 = vmul.f32 %v10387_v25, %v12391_v2 }
 0x87f   : > { %9460 = vmatpush3.bf16.msra.mxu0 %v12486_v63  ;;  %v3514_v34 = vpack.c.bf16 %v3495_v47, %v3495_v47  ;;  %10396 = vrcp.f32 %v3447_v48 }
 0x880   : > { %v10389_v41 = vpop.eup %10388  ;;  %4493 = vrot.lane.b32.xlu0 %v11510_v6, %s10791_s29  ;;  %v3441_v16 = vpop.xlane.xlu1 %3440 }
 0x881   : > { %v3494_v40 = vmul.f32 %v10389_v41, %v12403_v9  ;;  %10398 = vrcp.f32 %v3441_v16 }
 0x883   : > { %v3513_v52 = vpack.c.bf16 %v3494_v40, %v3493_v17 }
 0x884   : > { %4891 = vrot.lane.b32.xlu0 %v11454_v15, %s10792_s14  ;;  %v3958_v49 = vpop.permute.xlu1 %3957  ;;  %v10391_v46 = vpop.eup %10390 }
 0x885   : > { %9439 = vmatprep.mubr.msk.bf16.mxu1 %vm1871_vm5, %v3513_v52  ;;  %9872 = vmatprep.subr.msk.bf16.mxu0 %vm2163_vm4, %v3958_v49  ;;  %v3967_v63 = vsel %vm2163_vm4, %v3958_v49, 0  ;;  %v10393_v36 = vpop.eup %10392  ;;  %v3504_v9 = vmul.f32 %v10391_v46, %v12407_v27 }
 0x886   : > { %9440 = vmatmul.mubr.msk.bf16.vlgmr.msra.gmra.mrb[56].mxu1 %vm1871_vm5, %v3514_v34  ;;  %9462 = vmatpush3.bf16.msra.mxu0 %v3967_v63  ;;  %v3503_v37 = vmul.f32 %v10393_v36, %v12409_v44 }
 0x887   : > { %9452 = vmatpush3.bf16.msra.mxu1 %v12433_v33  ;;  %v3520_v11 = vpack.c.bf16 %v3504_v9, %v3504_v9 }
 0x888   : > { %v10395_v2 = vpop.eup %10394  ;;  %5013 = vrot.lane.b32.xlu0 %v11443_v18, %s10792_s14  ;;  %9871 = vmatprep.subr.msk.bf16.mxu1 %vm2163_vm4, %v12443_v0  ;;  %v4024_v28 = vpop.permute.xlu1 %4023 }
 0x889   : > { %v3502_v62 = vmul.f32 %v10395_v2, %v12415_v12  ;;  %v10397_v19 = vpop.eup %10396  ;;  %v4035_v43 = vsel %vm1300_vm3, %v4024_v28, 0 }
 0x88a   : > { %v3501_v30 = vmul.f32 %v10397_v19, %v12417_v50 }
 0x88b   : > { %9454 = vmatpush3.bf16.msra.mxu1 %v3905_v56  ;;  %v3519_v21 = vpack.c.bf16 %v3503_v37, %v3502_v62  ;;  %v10399_v4 = vpop.eup %10398 }
 0x88c   : > { %4953 = vrot.lane.b32.xlu0 %v11446_v57, %s10792_s14  ;;  %v4018_v33 = vpop.permute.xlu1 %4017  ;;  %v3499_v1 = vmul.f32 %v10399_v4, %v12423_v5  ;;  %v3518_v60 = vpack.c.bf16 %v3501_v30, %v3501_v30 }
 0x88d   : > { %9463 = vmatprep.mubr.msk.bf16.mxu0 %vm1871_vm5, %v3519_v21 }
 0x88e   : > { %9464 = vmatmul.mubr.msk.bf16.vlgmr.msra.gmra.mrb[84].mxu0 %vm1871_vm5, %v3520_v11 }
 0x890   : > { %5015 = vrot.lane.b32.xlu0 %v11463_v31, %s10792_s14  ;;  %v4158_v27 = vpop.permute.xlu1 %4157 }
 0x891   : > { %v4168_v16 = vsel %vm1300_vm3, %v4158_v27, 0 }
 0x894   : > { %v4086_v12 = vpop.permute.xlu1 %4085 }
 0x895   : > { %9479 = vmatprep.mubr.msk.bf16.mxu0 %vm1300_vm3, %v4086_v12 }
 0x898   : > { %v4226_v44 = vpop.permute.xlu1 %4225 }
 0x899   : > { %v4236_v24 = vsel %vm1300_vm3, %v4226_v44, 0 }
 0x89c   : > { %v4154_v0 = vpop.permute.xlu1 %4153 }
 0x8a0   : > { %v12596_v23 = vpop.permute.xlu1 %4293 }
 0x8a4   : > { %v4222_v53 = vpop.permute.xlu1 %4221 }
 0x8a8   : > { %v4362_v14 = vpop.permute.xlu1 %4361 }
 0x8a9   : > { %v4372_v34 = vsel %vm1300_vm3, %v4362_v14, 0 }
 0x8ac   : > { %v4290_v5 = vpop.permute.xlu1 %4289 }
 0x8b0   : > { %v4430_v26 = vpop.permute.xlu1 %4429 }
 0x8b4   : > { %v4358_v25 = vpop.permute.xlu1 %4357 }
 0x8b8   : > { %v4498_v40 = vpop.permute.xlu1 %4497 }
 0x8ba   : > { %v3444_v22 = vpop.xlane.xlu0 %3443 }
 0x8bb   : > { %10400 = vrcp.f32 %v3444_v22 }
 0x8bc   : > { %v4426_v46 = vpop.permute.xlu1 %4425 }
 0x8be   : > { %v4022_v7 = vpop.permute.xlu0 %4021 }
 0x8bf   : > { %9873 = vmatprep.subr.msk.bf16.mxu1 %vm1300_vm3, %v4022_v7  ;;  %v4032_v45 = vsel %vm1300_vm3, %v4022_v7, 0 }
 0x8c0   : > { %v4500_v2 = vpop.permute.xlu1 %4499 }
 0x8c2   : > { %v4090_v29 = vpop.permute.xlu0 %4089 }
 0x8c3   : > { %9875 = vmatprep.subr.msk.bf16.mxu0 %vm1300_vm3, %v4090_v29  ;;  %v4100_v10 = vsel %vm1300_vm3, %v4090_v29, 0 }
 0x8c4   : > { %9476 = vmatpush3.bf16.xpose.msra.mxu0 %v4100_v10  ;;  %v4496_v37 = vpop.permute.xlu1 %4495 }
 0x8c5   : > { %v10401_v38 = vpop.eup %10400 }
 0x8c6   : > { %v4092_v51 = vpop.permute.xlu0 %4091  ;;  %v3500_v13 = vmul.f32 %v10401_v38, %v12456_v58 }
 0x8c7   : > { %9876 = vmatprep.subr.msk.bf16.mxu0 %vm1300_vm3, %v4092_v51  ;;  %v4103_v50 = vsel %vm1300_vm3, %v4092_v51, 0 }
 0x8c8   : > { %v3517_v8 = vpack.c.bf16 %v3500_v13, %v3499_v1 }
 0x8ca   : > { %9455 = vmatprep.mubr.msk.bf16.mxu1 %vm1871_vm5, %v3517_v8  ;;  %v4020_v32 = vpop.permute.xlu0 %4019 }
 0x8cb   : > { %9456 = vmatmul.mubr.msk.bf16.vlgmr.msra.gmra.mrb[60].mxu1 %vm1871_vm5, %v3518_v60 }
 0x8cc   : > { %9468 = vmatpush3.bf16.xpose.msra.mxu1 %v4032_v45  ;;  %9471 = vmatprep.mubr.msk.bf16.mxu1 %vm1300_vm3, %v4018_v33  ;;  %v4508_v33 = vsel %vm1300_vm3, %v4498_v40, 0 }
 0x8cd   : > { %9874 = vmatprep.subr.msk.bf16.mxu1 %vm1300_vm3, %v4024_v28  ;;  %9478 = vmatpush3.bf16.xpose.msra.mxu0 %v4103_v50  ;;  %v4304_v28 = vsel %vm1300_vm3, %v12596_v23, 0 }
 0x8ce   : > { %9879 = vmatprep.subr.msk.bf16.mxu0 %vm1300_vm3, %v4226_v44  ;;  %v4160_v58 = vpop.permute.xlu0 %4159  ;;  %v4440_v44 = vsel %vm1300_vm3, %v4430_v26, 0 }
 0x8cf   : > { %v4171_v49 = vsel %vm1300_vm3, %v4160_v58, 0 }
 0x8d2   : > { %v4088_v48 = vpop.permute.xlu0 %4087 }
 0x8d4   : > { %9470 = vmatpush3.bf16.xpose.msra.mxu1 %v4035_v43  ;;  %9480 = vmatmul.mubr.msk.bf16.vlgmr.msra.gmra.mrb[88].mxu0 %vm1300_vm3, %v4088_v48 }
 0x8d5   : > { %9877 = vmatprep.subr.msk.bf16.mxu1 %vm1300_vm3, %v4158_v27  ;;  %9492 = vmatpush3.bf16.xpose.msra.mxu0 %v4236_v24  ;;  %v4890_v27 = vpop.permute.xlu1 %4889 }
 0x8d6   : > { %9495 = vmatprep.mubr.msk.bf16.mxu0 %vm1300_vm3, %v4222_v53  ;;  %v4228_v55 = vpop.permute.xlu0 %4227 }
 0x8d7   : > { %9880 = vmatprep.subr.msk.bf16.mxu0 %vm1300_vm3, %v4228_v55  ;;  %v4239_v47 = vsel %vm1300_vm3, %v4228_v55, 0 }
 0x8d9   : > { %v4952_v22 = vpop.permute.xlu1 %4951 }
 0x8da   : > { %v4156_v41 = vpop.permute.xlu0 %4155 }
 0x8db   : > { %9472 = vmatmul.mubr.msk.bf16.vlgmr.msra.gmra.mrb[64].mxu1 %vm1300_vm3, %v4020_v32 }
 0x8dc   : > { %9484 = vmatpush3.bf16.xpose.msra.mxu1 %v4168_v16  ;;  %9487 = vmatprep.mubr.msk.bf16.mxu1 %vm1300_vm3, %v4154_v0  ;;  %v4511_v0 = vsel %vm1300_vm3, %v4500_v2, 0 }
 0x8dd   : > { %9878 = vmatprep.subr.msk.bf16.mxu1 %vm1300_vm3, %v4160_v58  ;;  %9494 = vmatpush3.bf16.xpose.msra.mxu0 %v4239_v47  ;;  %v12655_v4 = vpop.permute.xlu1 %5075 }
 0x8de   : > { %9883 = vmatprep.subr.msk.bf16.mxu0 %vm1300_vm3, %v4362_v14  ;;  %v4296_v17 = vpop.permute.xlu0 %4295 }
 0x8df   : > { %v4307_v21 = vsel %vm1300_vm3, %v4296_v17, 0 }
 0x8e2   : > { %v4224_v52 = vpop.permute.xlu0 %4223 }
 0x8e4   : > { %9486 = vmatpush3.bf16.xpose.msra.mxu1 %v4171_v49  ;;  %9496 = vmatmul.mubr.msk.bf16.vlgmr.msra.gmra.mrb[92].mxu0 %vm1300_vm3, %v4224_v52 }
 0x8e5   : > { %9881 = vmatprep.subr.msk.bf16.mxu1 %vm1300_vm3, %v12596_v23  ;;  %9508 = vmatpush3.bf16.xpose.msra.mxu0 %v4372_v34 }
 0x8e6   : > { %9511 = vmatprep.mubr.msk.bf16.mxu0 %vm1300_vm3, %v4358_v25  ;;  %v4364_v63 = vpop.permute.xlu0 %4363 }
 0x8e7   : > { %9884 = vmatprep.subr.msk.bf16.mxu0 %vm1300_vm3, %v4364_v63  ;;  %v4375_v9 = vsel %vm1300_vm3, %v4364_v63, 0 }
 0x8ea   : > { %v4292_v36 = vpop.permute.xlu0 %4291 }
 0x8eb   : > { %9488 = vmatmul.mubr.msk.bf16.vlgmr.msra.gmra.mrb[68].mxu1 %vm1300_vm3, %v4156_v41 }
 0x8ec   : > { %9500 = vmatpush3.bf16.xpose.msra.mxu1 %v4304_v28  ;;  %9503 = vmatprep.mubr.msk.bf16.mxu1 %vm1300_vm3, %v4290_v5 }
 0x8ed   : > { %9882 = vmatprep.subr.msk.bf16.mxu1 %vm1300_vm3, %v4296_v17  ;;  %9510 = vmatpush3.bf16.xpose.msra.mxu0 %v4375_v9 }
 0x8ee   : > { %9887 = vmatprep.subr.msk.bf16.mxu0 %vm1300_vm3, %v4498_v40  ;;  %v4432_v62 = vpop.permute.xlu0 %4431 }
 0x8ef   : > { %v4443_v53 = vsel %vm1300_vm3, %v4432_v62, 0 }
 0x8f2   : > { %v4360_v56 = vpop.permute.xlu0 %4359 }
 0x8f4   : > { %9502 = vmatpush3.bf16.xpose.msra.mxu1 %v4307_v21  ;;  %9512 = vmatmul.mubr.msk.bf16.vlgmr.msra.gmra.mrb[96].mxu0 %vm1300_vm3, %v4360_v56 }
 0x8f5   : > { %9885 = vmatprep.subr.msk.bf16.mxu1 %vm1300_vm3, %v4430_v26  ;;  %9524 = vmatpush3.bf16.xpose.msra.mxu0 %v4508_v33 }
 0x8f6   : > { %9888 = vmatprep.subr.msk.bf16.mxu0 %vm1300_vm3, %v4500_v2  ;;  %v4428_v11 = vpop.permute.xlu0 %4427 }
 0x8fa   : > { %v4494_v12 = vpop.permute.xlu0 %4493 }
 0x8fb   : > { %9504 = vmatmul.mubr.msk.bf16.vlgmr.msra.gmra.mrb[72].mxu1 %vm1300_vm3, %v4292_v36  ;;  %9527 = vmatprep.mubr.msk.bf16.mxu0 %vm1300_vm3, %v4494_v12 }
 0x8fc   : > { %9516 = vmatpush3.bf16.xpose.msra.mxu1 %v4440_v44  ;;  %9519 = vmatprep.mubr.msk.bf16.mxu1 %vm1300_vm3, %v4426_v46 }
 0x8fd   : > { %9886 = vmatprep.subr.msk.bf16.mxu1 %vm1300_vm3, %v4432_v62  ;;  %9526 = vmatpush3.bf16.xpose.msra.mxu0 %v4511_v0 }
 0x8fe   : > { %9539 = vmatprep.subr.bf16.mxu0 %v4952_v22  ;;  %v4892_v23 = vpop.permute.xlu0 %4891 }
 0x8ff   : > { %v4901_v10 = vsel %vm2163_vm4, %v4892_v23, 0 }
 0x902   : > { %v12649_v7 = vpop.permute.xlu0 %5013 }
 0x904   : > { %9518 = vmatpush3.bf16.xpose.msra.mxu1 %v4443_v53  ;;  %9528 = vmatmul.mubr.msk.bf16.vlgmr.msra.gmra.mrb[100].mxu0 %vm1300_vm3, %v4496_v37 }
 0x905   : > { %9531 = vmatprep.subr.bf16.mxu1 %v4890_v27  ;;  %9540 = vmatpush3.bf16.msra.mxu0 %v4952_v22 }
 0x906   : > { %v4954_v19 = vpop.permute.xlu0 %4953 }
 0x907   : > { %9890 = vmatprep.subr.msk.bf16.mxu0 %vm2163_vm4, %v4954_v19  ;;  %v4963_v29 = vsel %vm2163_vm4, %v4954_v19, 0 }
 0x909   : > { %9542 = vmatpush3.bf16.msra.mxu0 %v4963_v29 }
 0x90a   : > { %9555 = vmatprep.subr.bf16.mxu0 %v12655_v4 }
 0x90b   : > { %9520 = vmatmul.mubr.msk.bf16.vlgmr.msra.gmra.mrb[76].mxu1 %vm1300_vm3, %v4428_v11 }
 0x90c   : > { %9532 = vmatpush3.bf16.msra.mxu1 %v4890_v27 }
 0x90d   : > { %9889 = vmatprep.subr.msk.bf16.mxu1 %vm2163_vm4, %v4892_v23 }
 0x910   : > { %9534 = vmatpush3.bf16.msra.mxu1 %v4901_v10 }
 0x911   : > { %9547 = vmatprep.subr.bf16.mxu1 %v12649_v7 }
 0x939   : > { %v12662_v38 = vpop.f32.mrb[72].mxu0 }
 0x93a   : > { %14710 = vst [vmem:[#allocation34_spill] sm:$0xff] %v12662_v38  ;;  %v12664_v30 = vpop.f32.mrb[73].mxu0 }
 0x93b   : > { %14711 = vst [vmem:[#allocation35_spill] sm:$0xff] %v12664_v30  ;;  %v9418_v51 = vpop.f32.mrb[74].mxu0 }
 0x93c   : > { %v12666_v1 = vpop.f32.mrb[75].mxu0  ;;  %v12737_v51 = vld [vmem:[%s14622_s3 + $0x10] sm:$0xff] }
 0x93d   : > { %14712 = vst [vmem:[#allocation36_spill] sm:$0xff] %v12666_v1  ;;  %v12670_v14 = vpop.f32.mrb[48].mxu1 }
 0x93e   : > { %14713 = vst [vmem:[#allocation37_spill] sm:$0xff] %v12670_v14  ;;  %v12674_v60 = vpop.f32.mrb[49].mxu1 }
 0x93f   : > { %14714 = vst [vmem:[#allocation38_spill] sm:$0xff] %v12674_v60  ;;  %v9410_v32 = vpop.f32.mrb[50].mxu1 }
 0x940   : > { %v12676_v45 = vpop.f32.mrb[51].mxu1 }
 0x945   : > { %v12680_v5 = vpop.f32.mrb[76].mxu0 }
 0x946   : > { %14715 = vst [vmem:[#allocation39_spill] sm:$0xff] %v12680_v5  ;;  %v12682_v58 = vpop.f32.mrb[77].mxu0 }
 0x947   : > { %14716 = vst [vmem:[#allocation40_spill] sm:$0xff] %v12682_v58  ;;  %v9434_v48 = vpop.f32.mrb[78].mxu0 }
 0x948   : > { %v12684_v26 = vpop.f32.mrb[79].mxu0 }
 0x949   : > { %14717 = vst [vmem:[#allocation41_spill] sm:$0xff] %v12684_v26  ;;  %v12688_v24 = vpop.f32.mrb[52].mxu1 }
 0x94a   : > { %14718 = vst [vmem:[#allocation42_spill] sm:$0xff] %v12688_v24  ;;  %v12692_v25 = vpop.f32.mrb[53].mxu1 }
 0x94b   : > { %14719 = vst [vmem:[#allocation43_spill] sm:$0xff] %v12692_v25  ;;  %v9426_v41 = vpop.f32.mrb[54].mxu1 }
 0x94c   : > { %v12694_v16 = vpop.f32.mrb[55].mxu1  ;;  %v12745_v41 = vld [vmem:[%s14622_s3] sm:$0xff] }
 0x94d   : > { %14720 = vst [vmem:[#allocation44_spill] sm:$0xff] %v12694_v16 }
 0x951   : > { %v12698_v17 = vpop.f32.mrb[80].mxu0 }
 0x952   : > { %14721 = vst [vmem:[#allocation45_spill] sm:$0xff] %v12698_v17  ;;  %v12700_v40 = vpop.f32.mrb[81].mxu0 }
 0x953   : > { %14722 = vst [vmem:[#allocation46_spill] sm:$0xff] %v12700_v40  ;;  %v9450_v52 = vpop.f32.mrb[82].mxu0 }
 0x954   : > { %v12702_v49 = vpop.f32.mrb[83].mxu0 }
 0x955   : > { %14723 = vst [vmem:[#allocation47_spill] sm:$0xff] %v12702_v49 }
 0x959   : > { %v12706_v46 = vpop.f32.mrb[56].mxu1 }
 0x95a   : > { %14724 = vst [vmem:[#allocation48_spill] sm:$0xff] %v12706_v46  ;;  %v12710_v36 = vpop.f32.mrb[57].mxu1 }
 0x95b   : > { %14725 = vst [vmem:[#allocation49_spill] sm:$0xff] %v12710_v36  ;;  %v9442_v2 = vpop.f32.mrb[58].mxu1 }
 0x95c   : > { %v12712_v28 = vpop.f32.mrb[59].mxu1 }
 0x95d   : > { %14726 = vst [vmem:[#allocation50_spill] sm:$0xff] %v12712_v28 }
 0x961   : > { %v12716_v62 = vpop.f32.mrb[84].mxu0 }
 0x962   : > { %14727 = vst [vmem:[#allocation51_spill] sm:$0xff] %v12716_v62  ;;  %v12718_v37 = vpop.f32.mrb[85].mxu0 }
 0x963   : > { %14728 = vst [vmem:[#allocation52_spill] sm:$0xff] %v12718_v37  ;;  %v9466_v56 = vpop.f32.mrb[86].mxu0 }
 0x964   : > { %v12720_v21 = vpop.f32.mrb[87].mxu0 }
 0x965   : > { %14729 = vst [vmem:[#allocation53_spill] sm:$0xff] %v12720_v21 }
 0x99e   : > { %v12724_v11 = vpop.f32.mrb[60].mxu1 }
 0x99f   : > { %14730 = vst [vmem:[#allocation54_spill] sm:$0xff] %v12724_v11  ;;  %v12728_v12 = vpop.f32.mrb[61].mxu1 }
 0x9a0   : > { %14731 = vst [vmem:[#allocation55_spill] sm:$0xff] %v12728_v12  ;;  %v9458_v44 = vpop.f32.mrb[62].mxu1 }
 0x9a1   : > { %v12730_v0 = vpop.f32.mrb[63].mxu1  ;;  %v12755_v44 = vld [vmem:[%s14622_s3 + $0x8] sm:$0xff] }
 0x9a2   : > { %14732 = vst [vmem:[#allocation56_spill] sm:$0xff] %v12730_v0 }
 0x9a7   : > { %v9481_v23 = vpop.f32.mrb[88].mxu0 }
 0x9a8   : > { %v4566_v53 = vmul.f32 0.35355338, %v9481_v23  ;;  %v4139_v19 = vpop.f32.mrb[89].mxu0 }
 0x9a9   : > { %v4564_v29 = vmul.f32 0.35355338, %v4139_v19  ;;  %v9482_v10 = vpop.f32.mrb[90].mxu0 }
 0x9aa   : > { %v12740_v32 = vadd.f32 %v12737_v51, %v4566_v53  ;;  %v4142_v48 = vpop.f32.mrb[91].mxu0 }
 0x9ab   : > { %v12748_v52 = vadd.f32 %v12745_v41, %v4564_v29  ;;  %v4565_v2 = vmul.f32 0.35355338, %v4142_v48 }
 0x9ac   : > { %v4624_v56 = vsel %vm1871_vm5, %v12740_v32, -inf }
 0x9ad   : > { %v12758_v23 = vadd.f32 %v12755_v44, %v4565_v2  ;;  %4625 = vmax.xlane.f32.xlu1 %v4624_v56  ;;  %v4618_v53 = vsel %vm1871_vm5, %v12748_v52, -inf }
 0x9ae   : > { %v9473_v19 = vpop.f32.mrb[64].mxu1  ;;  %4619 = vmax.xlane.f32.xlu0 %v4618_v53 }
 0x9af   : > { %v4563_v29 = vmul.f32 0.35355338, %v9473_v19  ;;  %v4071_v10 = vpop.f32.mrb[65].mxu1  ;;  %v4621_v34 = vsel %vm1871_vm5, %v12758_v23, -inf }
 0x9b0   : > { %v9474_v48 = vpop.f32.mrb[66].mxu1  ;;  %v4561_v33 = vmul.f32 0.35355338, %v4071_v10 }
 0x9b1   : > { %v12763_v27 = vadd.f32 %v12737_v51, %v4563_v29  ;;  %v4074_v22 = vpop.f32.mrb[67].mxu1 }
 0x9b2   : > { %v4562_v63 = vmul.f32 0.35355338, %v4074_v22  ;;  %4622 = vmax.xlane.f32.xlu0 %v4621_v34  ;;  %v12771_v56 = vadd.f32 %v12745_v41, %v4561_v33 }
 0x9b3   : > { %v4615_v53 = vsel %vm1871_vm5, %v12763_v27, -inf }
 0x9b4   : > { %v12768_v2 = vadd.f32 %v12755_v44, %v4562_v63  ;;  %v4609_v34 = vsel %vm1871_vm5, %v12771_v56, -inf }
 0x9b6   : > { %4616 = vmax.xlane.f32.xlu0 %v4615_v53  ;;  %v4612_v19 = vsel %vm1871_vm5, %v12768_v2, -inf }
 0x9b7   : > { %4613 = vmax.xlane.f32.xlu1 %v4612_v19  ;;  %v9497_v29 = vpop.f32.mrb[92].mxu0 }
 0x9b8   : > { %v4572_v10 = vmul.f32 0.35355338, %v9497_v29  ;;  %v4275_v48 = vpop.f32.mrb[93].mxu0 }
 0x9b9   : > { %v4570_v9 = vmul.f32 0.35355338, %v4275_v48  ;;  %v9498_v22 = vpop.f32.mrb[94].mxu0 }
 0x9ba   : > { %v12780_v63 = vadd.f32 %v12737_v51, %v4572_v10  ;;  %4610 = vmax.xlane.f32.xlu0 %v4609_v34  ;;  %v4278_v33 = vpop.f32.mrb[95].mxu0 }
 0x9bb   : > { %v4571_v55 = vmul.f32 0.35355338, %v4278_v33  ;;  %v12783_v53 = vadd.f32 %v12745_v41, %v4570_v9 }
 0x9bc   : > { %v4642_v19 = vsel %vm1871_vm5, %v12780_v63, -inf }
 0x9bd   : > { %v12788_v29 = vadd.f32 %v12755_v44, %v4571_v55  ;;  %4643 = vmax.xlane.f32.xlu1 %v4642_v19  ;;  %v4636_v9 = vsel %vm1871_vm5, %v12783_v53, -inf }
 0x9be   : > { %v9489_v48 = vpop.f32.mrb[68].mxu1 }
 0x9bf   : > { %v4569_v22 = vmul.f32 0.35355338, %v9489_v48  ;;  %v4207_v13 = vpop.f32.mrb[69].mxu1  ;;  %v4639_v10 = vsel %vm1871_vm5, %v12788_v29, -inf }
 0x9c0   : > { %v4567_v43 = vmul.f32 0.35355338, %v4207_v13  ;;  %v9490_v34 = vpop.f32.mrb[70].mxu1  ;;  %4640 = vmax.xlane.f32.xlu0 %v4639_v10 }
 0x9c1   : > { %v12795_v33 = vadd.f32 %v12737_v51, %v4569_v22  ;;  %v4210_v8 = vpop.f32.mrb[71].mxu1  ;;  %4637 = vmax.xlane.f32.xlu1 %v4636_v9 }
 0x9c2   : > { %v12798_v55 = vadd.f32 %v12745_v41, %v4567_v43  ;;  %v4568_v19 = vmul.f32 0.35355338, %v4210_v8 }
 0x9c3   : > { %v4633_v48 = vsel %vm1871_vm5, %v12795_v33, -inf }
 0x9c4   : > { %v12803_v47 = vadd.f32 %v12755_v44, %v4568_v19  ;;  %4634 = vmax.xlane.f32.xlu0 %v4633_v48  ;;  %v4627_v13 = vsel %vm1871_vm5, %v12798_v55, -inf }
 0x9c5   : > { %4628 = vmax.xlane.f32.xlu1 %v4627_v13 }
 0x9c6   : > { %v4630_v22 = vsel %vm1871_vm5, %v12803_v47, -inf }
 0x9c7   : > { %v9513_v10 = vpop.f32.mrb[96].mxu0 }
 0x9c8   : > { %v4578_v34 = vmul.f32 0.35355338, %v9513_v10  ;;  %4631 = vmax.xlane.f32.xlu0 %v4630_v22  ;;  %v4411_v43 = vpop.f32.mrb[97].mxu0 }
 0x9c9   : > { %v4576_v9 = vmul.f32 0.35355338, %v4411_v43  ;;  %v9514_v8 = vpop.f32.mrb[98].mxu0 }
 0x9ca   : > { %v12810_v50 = vadd.f32 %v12737_v51, %v4578_v34  ;;  %v4414_v11 = vpop.f32.mrb[99].mxu0 }
 0x9cb   : > { %v4577_v19 = vmul.f32 0.35355338, %v4414_v11  ;;  %v12813_v48 = vadd.f32 %v12745_v41, %v4576_v9 }
 0x9cc   : > { %v4660_v13 = vsel %vm1871_vm5, %v12810_v50, -inf }
 0x9cd   : > { %v12818_v37 = vadd.f32 %v12755_v44, %v4577_v19  ;;  %4661 = vmax.xlane.f32.xlu1 %v4660_v13  ;;  %v4654_v11 = vsel %vm1871_vm5, %v12813_v48, -inf }
 0x9ce   : > { %v9505_v10 = vpop.f32.mrb[72].mxu1 }
 0x9cf   : > { %v4575_v22 = vmul.f32 0.35355338, %v9505_v10  ;;  %v4343_v21 = vpop.f32.mrb[73].mxu1  ;;  %v4657_v43 = vsel %vm1871_vm5, %v12818_v37, -inf }
 0x9d0   : > { %v4573_v34 = vmul.f32 0.35355338, %v4343_v21  ;;  %v9506_v8 = vpop.f32.mrb[74].mxu1  ;;  %4658 = vmax.xlane.f32.xlu0 %v4657_v43 }
 0x9d1   : > { %v12825_v9 = vadd.f32 %v12737_v51, %v4575_v22  ;;  %v4346_v62 = vpop.f32.mrb[75].mxu1  ;;  %4655 = vmax.xlane.f32.xlu1 %v4654_v11 }
 0x9d2   : > { %v12828_v19 = vadd.f32 %v12745_v41, %v4573_v34  ;;  %v4574_v13 = vmul.f32 0.35355338, %v4346_v62 }
 0x9d3   : > { %v4651_v10 = vsel %vm1871_vm5, %v12825_v9, -inf }
 0x9d4   : > { %v12833_v12 = vadd.f32 %v12755_v44, %v4574_v13  ;;  %4652 = vmax.xlane.f32.xlu0 %v4651_v10  ;;  %v4645_v21 = vsel %vm1871_vm5, %v12828_v19, -inf }
 0x9d5   : > { %4646 = vmax.xlane.f32.xlu1 %v4645_v21 }
 0x9d6   : > { %v4648_v22 = vsel %vm1871_vm5, %v12833_v12, -inf }
 0x9d7   : > { %v9529_v43 = vpop.f32.mrb[100].mxu0 }
 0x9d8   : > { %v4584_v8 = vmul.f32 0.35355338, %v9529_v43  ;;  %4649 = vmax.xlane.f32.xlu0 %v4648_v22  ;;  %v4547_v34 = vpop.f32.mrb[101].mxu0 }
 0x9d9   : > { %v4582_v11 = vmul.f32 0.35355338, %v4547_v34  ;;  %v9530_v62 = vpop.f32.mrb[102].mxu0 }
 0x9da   : > { %v12840_v0 = vadd.f32 %v12737_v51, %v4584_v8  ;;  %v4550_v49 = vpop.f32.mrb[103].mxu0 }
 0x9db   : > { %v4583_v13 = vmul.f32 0.35355338, %v4550_v49  ;;  %v12843_v10 = vadd.f32 %v12745_v41, %v4582_v11 }
 0x9dc   : > { %v4678_v21 = vsel %vm1871_vm5, %v12840_v0, -inf }
 0x9dd   : > { %v12848_v17 = vadd.f32 %v12755_v44, %v4583_v13  ;;  %4679 = vmax.xlane.f32.xlu1 %v4678_v21  ;;  %v4672_v49 = vsel %vm1871_vm5, %v12843_v10, -inf }
 0x9de   : > { %v9521_v43 = vpop.f32.mrb[76].mxu1 }
 0x9df   : > { %v4581_v22 = vmul.f32 0.35355338, %v9521_v43  ;;  %v4479_v46 = vpop.f32.mrb[77].mxu1  ;;  %v4675_v34 = vsel %vm1871_vm5, %v12848_v17, -inf }
 0x9e0   : > { %v4579_v8 = vmul.f32 0.35355338, %v4479_v46  ;;  %v9522_v62 = vpop.f32.mrb[78].mxu1  ;;  %4676 = vmax.xlane.f32.xlu0 %v4675_v34  ;;  %v12883_v34 = vpop.permute.xlu0 %5015 }
 0x9e1   : > { %v12855_v11 = vadd.f32 %v12737_v51, %v4581_v22  ;;  %v4482_v40 = vpop.f32.mrb[79].mxu1  ;;  %4673 = vmax.xlane.f32.xlu1 %v4672_v49  ;;  %v12881_v22 = vpop.permute.xlu1 %5137 }
 0x9e2   : > { %v12858_v13 = vadd.f32 %v12745_v41, %v4579_v8  ;;  %v4580_v51 = vmul.f32 0.35355338, %v4482_v40 }
 0x9e3   : > { %v4669_v21 = vsel %vm1871_vm5, %v12855_v11, -inf }
 0x9e4   : > { %4670 = vmax.xlane.f32.xlu0 %v4669_v21  ;;  %v4663_v46 = vsel %vm1871_vm5, %v12858_v13, -inf  ;;  %v12875_v41 = vadd.f32 %v12755_v44, %v4580_v51 }
 0x9e5   : > { %v12885_v8 = vpop.permute.xlu1 %5077 }
 0x9e6   : > { %v4666_v43 = vsel %vm1871_vm5, %v12875_v41, -inf }
 0x9e8   : > { %4664 = vmax.xlane.f32.xlu0 %v4663_v46 }
 0x9f2   : > { %5199 = vrot.lane.b32.xlu1 %v11491_v20, %s10792_s14 }
 0x9f6   : > { %5261 = vrot.lane.b32.xlu1 %v11494_v54, %s10792_s14 }
 0x9fa   : > { %5201 = vrot.lane.b32.xlu1 %v11496_v59, %s10792_s14 }
 0x9fe   : > { %5263 = vrot.lane.b32.xlu1 %v11506_v35, %s10792_s14  ;;  %5139 = vrot.lane.b32.xlu0 %v11479_v42, %s10792_s14 }
 0xa22   : > { %4667 = vmax.xlane.f32.xlu1 %v4666_v43 }
 0xa33   : > { %5323 = vrot.lane.b32.xlu1 %v11510_v6, %s10792_s14 }
 0xa3a   : > { %v4626_v49 = vpop.xlane.xlu1 %4625 }
 0xa3b   : > { %v4620_v62 = vpop.xlane.xlu0 %4619  ;;  %v4686_v44 = vsub.f32 %v12740_v32, %v4626_v49 }
 0xa3c   : > { %v4684_v28 = vsub.f32 %v12748_v52, %v4620_v62 }
 0xa3d   : > { %v4715_v36 = vmul.f32 1.442695, %v4686_v44 }
 0xa3e   : > { %v4711_v26 = vmul.f32 1.442695, %v4684_v28 }
 0xa3f   : > { %v4623_v21 = vpop.xlane.xlu0 %4622 }
 0xa40   : > { %v4685_v40 = vsub.f32 %v12758_v23, %v4623_v21 }
 0xa42   : > { %v4713_v46 = vmul.f32 1.442695, %v4685_v40 }
 0xa43   : > { %v4617_v51 = vpop.xlane.xlu0 %4616 }
 0xa44   : > { %10402 = vpow2.f32 %v4713_v46  ;;  %v4683_v43 = vsub.f32 %v12763_v27, %v4617_v51  ;;  %v4614_v58 = vpop.xlane.xlu1 %4613 }
 0xa45   : > { %v4682_v23 = vsub.f32 %v12768_v2, %v4614_v58 }
 0xa46   : > { %v4709_v24 = vmul.f32 1.442695, %v4683_v43 }
 0xa47   : > { %v4611_v1 = vpop.xlane.xlu0 %4610  ;;  %v4707_v49 = vmul.f32 1.442695, %v4682_v23 }
 0xa48   : > { %10404 = vpow2.f32 %v4709_v24  ;;  %v4681_v38 = vsub.f32 %v12771_v56, %v4611_v1 }
 0xa49   : > { %10406 = vpow2.f32 %v4715_v36 }
 0xa4a   : > { %v4705_v21 = vmul.f32 1.442695, %v4681_v38  ;;  %v4644_v32 = vpop.xlane.xlu1 %4643 }
 0xa4b   : > { %v4692_v27 = vsub.f32 %v12780_v63, %v4644_v32 }
 0xa4c   : > { %10408 = vpow2.f32 %v4705_v21 }
 0xa4d   : > { %10410 = vpow2.f32 %v4711_v26  ;;  %v4641_v40 = vpop.xlane.xlu0 %4640  ;;  %v4727_v58 = vmul.f32 1.442695, %v4692_v27 }
 0xa4e   : > { %v12894_v44 = vpop.eup %10402  ;;  %v4691_v52 = vsub.f32 %v12788_v29, %v4641_v40  ;;  %v4638_v62 = vpop.xlane.xlu1 %4637  ;;  %10412 = vpow2.f32 %v4707_v49 }
 0xa4f   : > { %v4765_v1 = vsel %vm1871_vm5, %v12894_v44, 0.0  ;;  %v4690_v38 = vsub.f32 %v12783_v53, %v4638_v62 }
 0xa50   : > { %v4725_v24 = vmul.f32 1.442695, %v4691_v52  ;;  %4766 = vadd.xlane.f32.xlu0 %v4765_v1 }
 0xa51   : > { %v4635_v36 = vpop.xlane.xlu0 %4634  ;;  %v4723_v46 = vmul.f32 1.442695, %v4690_v38 }
 0xa52   : > { %v12900_v26 = vpop.eup %10404  ;;  %10414 = vpow2.f32 %v4725_v24  ;;  %v4689_v28 = vsub.f32 %v12795_v33, %v4635_v36  ;;  %v4629_v2 = vpop.xlane.xlu1 %4628 }
 0xa53   : > { %v12903_v56 = vpop.eup %10406  ;;  %v4759_v63 = vsel %vm1871_vm5, %v12900_v26, 0.0  ;;  %10416 = vpow2.f32 %v4727_v58  ;;  %v4687_v51 = vsub.f32 %v12798_v55, %v4629_v2 }
 0xa54   : > { %v4721_v29 = vmul.f32 1.442695, %v4689_v28  ;;  %4760 = vadd.xlane.f32.xlu0 %v4759_v63  ;;  %v4768_v33 = vsel %vm1871_vm5, %v12903_v56, 0.0 }
 0xa55   : > { %v4632_v43 = vpop.xlane.xlu0 %4631  ;;  %v4717_v27 = vmul.f32 1.442695, %v4687_v51 }
 0xa56   : > { %v12908_v53 = vpop.eup %10408  ;;  %10418 = vpow2.f32 %v4721_v29  ;;  %v4688_v23 = vsub.f32 %v12803_v47, %v4632_v43 }
 0xa57   : > { %v12913_v21 = vpop.eup %10410  ;;  %4769 = vadd.xlane.f32.xlu1 %v4768_v33  ;;  %v4753_v32 = vsel %vm1871_vm5, %v12908_v53, 0.0  ;;  %10420 = vpow2.f32 %v4723_v46 }
 0xa58   : > { %v4719_v49 = vmul.f32 1.442695, %v4688_v23  ;;  %4754 = vadd.xlane.f32.xlu0 %v4753_v32  ;;  %v4762_v40 = vsel %vm1871_vm5, %v12913_v21, 0.0  ;;  %v12919_v52 = vpop.eup %10412 }
 0xa59   : > { %v4756_v28 = vsel %vm1871_vm5, %v12919_v52, 0.0 }
 0xa5a   : > { %10422 = vpow2.f32 %v4719_v49  ;;  %v4662_v55 = vpop.xlane.xlu1 %4661 }
 0xa5b   : > { %v4698_v47 = vsub.f32 %v12810_v50, %v4662_v55  ;;  %4763 = vadd.xlane.f32.xlu1 %v4762_v40  ;;  %10424 = vpow2.f32 %v4717_v27 }
 0xa5c   : > { %v12922_v62 = vpop.eup %10414 }
 0xa5d   : > { %v4739_v1 = vmul.f32 1.442695, %v4698_v47  ;;  %v4659_v24 = vpop.xlane.xlu0 %4658  ;;  %v4783_v58 = vsel %vm1871_vm5, %v12922_v62, 0.0  ;;  %v12929_v2 = vpop.eup %10416 }
 0xa5e   : > { %v4697_v38 = vsub.f32 %v12818_v37, %v4659_v24  ;;  %v4656_v36 = vpop.xlane.xlu1 %4655  ;;  %4784 = vadd.xlane.f32.xlu0 %v4783_v58  ;;  %v4786_v33 = vsel %vm1871_vm5, %v12929_v2, 0.0 }
 0xa5f   : > { %10426 = vpow2.f32 %v4739_v1  ;;  %v4696_v50 = vsub.f32 %v12813_v48, %v4656_v36  ;;  %4757 = vadd.xlane.f32.xlu1 %v4756_v28 }
 0xa60   : > { %v12932_v63 = vpop.eup %10418  ;;  %v4737_v29 = vmul.f32 1.442695, %v4697_v38 }
 0xa61   : > { %v4735_v46 = vmul.f32 1.442695, %v4696_v50  ;;  %v4653_v51 = vpop.xlane.xlu0 %4652  ;;  %v4777_v43 = vsel %vm1871_vm5, %v12932_v63, 0.0  ;;  %v12939_v32 = vpop.eup %10420 }
 0xa62   : > { %v4695_v37 = vsub.f32 %v12825_v9, %v4653_v51  ;;  %v4647_v23 = vpop.xlane.xlu1 %4646  ;;  %4778 = vadd.xlane.f32.xlu0 %v4777_v43  ;;  %v4780_v1 = vsel %vm1871_vm5, %v12939_v32, 0.0 }
 0xa63   : > { %10428 = vpow2.f32 %v4735_v46  ;;  %v4693_v48 = vsub.f32 %v12828_v19, %v4647_v23  ;;  %4787 = vadd.xlane.f32.xlu1 %v4786_v33 }
 0xa64   : > { %v12942_v49 = vpop.eup %10422  ;;  %10430 = vpow2.f32 %v4737_v29  ;;  %v4733_v27 = vmul.f32 1.442695, %v4695_v37 }
 0xa65   : > { %v4729_v55 = vmul.f32 1.442695, %v4693_v48  ;;  %v4650_v40 = vpop.xlane.xlu0 %4649  ;;  %v4774_v9 = vsel %vm1871_vm5, %v12942_v49, 0.0  ;;  %v12949_v24 = vpop.eup %10424 }
 0xa66   : > { %v4694_v47 = vsub.f32 %v12833_v12, %v4650_v40  ;;  %4775 = vadd.xlane.f32.xlu0 %v4774_v9  ;;  %v4771_v36 = vsel %vm1871_vm5, %v12949_v24, 0.0 }
 0xa67   : > { %10432 = vpow2.f32 %v4729_v55  ;;  %4781 = vadd.xlane.f32.xlu1 %v4780_v1 }
 0xa68   : > { %10434 = vpow2.f32 %v4733_v27  ;;  %v4731_v58 = vmul.f32 1.442695, %v4694_v47 }
 0xa69   : > { %v12951_v19 = vpop.eup %10426 }
 0xa6a   : > { %v4680_v38 = vpop.xlane.xlu1 %4679  ;;  %v4804_v28 = vsel %vm1871_vm5, %v12951_v19, 0.0  ;;  %10436 = vpow2.f32 %v4731_v58 }
 0xa6b   : > { %v4704_v12 = vsub.f32 %v12840_v0, %v4680_v38  ;;  %4772 = vadd.xlane.f32.xlu1 %v4771_v36  ;;  %4805 = vadd.xlane.f32.xlu0 %v4804_v28 }
 0xa6d   : > { %v12958_v50 = vpop.eup %10428  ;;  %v4751_v29 = vmul.f32 1.442695, %v4704_v12  ;;  %v4677_v46 = vpop.xlane.xlu0 %4676 }
 0xa6e   : > { %v4703_v51 = vsub.f32 %v12848_v17, %v4677_v46  ;;  %v4674_v43 = vpop.xlane.xlu1 %4673  ;;  %v4798_v37 = vsel %vm1871_vm5, %v12958_v50, 0.0  ;;  %v12963_v23 = vpop.eup %10430 }
 0xa6f   : > { %v4702_v33 = vsub.f32 %v12843_v10, %v4674_v43  ;;  %4799 = vadd.xlane.f32.xlu0 %v4798_v37  ;;  %10438 = vpow2.f32 %v4751_v29  ;;  %v4801_v9 = vsel %vm1871_vm5, %v12963_v23, 0.0 }
 0xa70   : > { %v4749_v48 = vmul.f32 1.442695, %v4703_v51 }
 0xa71   : > { %v12966_v0 = vpop.eup %10432  ;;  %v4747_v27 = vmul.f32 1.442695, %v4702_v33  ;;  %v4671_v55 = vpop.xlane.xlu0 %4670 }
 0xa72   : > { %10440 = vpow2.f32 %v4749_v48  ;;  %v4701_v40 = vsub.f32 %v12855_v11, %v4671_v55  ;;  %v4789_v17 = vsel %vm1871_vm5, %v12966_v0, 0.0  ;;  %v12973_v47 = vpop.eup %10434  ;;  %v13004_v55 = vpop.permute.xlu1 %5199 }
 0xa73   : > { %4790 = vadd.xlane.f32.xlu1 %v4789_v17  ;;  %4802 = vadd.xlane.f32.xlu0 %v4801_v9  ;;  %10442 = vpow2.f32 %v4747_v27  ;;  %v4795_v38 = vsel %vm1871_vm5, %v12973_v47, 0.0  ;;  %v14733_v9 = vld [vmem:[#allocation7_spill] sm:$0xff] }
 0xa74   : > { %v4745_v10 = vmul.f32 1.442695, %v4701_v40  ;;  %v12978_v11 = vpop.eup %10436 }
 0xa75   : > { %v4665_v1 = vpop.xlane.xlu0 %4664  ;;  %v4792_v28 = vsel %vm1871_vm5, %v12978_v11, 0.0 }
 0xa76   : > { %10444 = vpow2.f32 %v4745_v10  ;;  %v4699_v58 = vsub.f32 %v12858_v13, %v4665_v1  ;;  %v13008_v40 = vpop.permute.xlu1 %5261  ;;  %v14734_v1 = vld [vmem:[#allocation8_spill] sm:$0xff] }
 0xa77   : > { %4796 = vadd.xlane.f32.xlu0 %v4795_v38 }
 0xa78   : > { %v4741_v36 = vmul.f32 1.442695, %v4699_v58 }
 0xa79   : > { %v12982_v12 = vpop.eup %10438 }
 0xa7a   : > { %10446 = vpow2.f32 %v4741_v36  ;;  %v4822_v13 = vsel %vm1871_vm5, %v12982_v12, 0.0  ;;  %v13014_v17 = vpop.permute.xlu1 %5201 }
 0xa7b   : > { %4793 = vadd.xlane.f32.xlu0 %v4792_v28  ;;  %v14735_v28 = vld [vmem:[#allocation9_spill] sm:$0xff] }
 0xa7c   : > { %v12984_v29 = vpop.eup %10440 }
 0xa7d   : > { %v4819_v46 = vsel %vm1871_vm5, %v12984_v29, 0.0  ;;  %v12990_v51 = vpop.eup %10442 }
 0xa7e   : > { %4820 = vadd.xlane.f32.xlu1 %v4819_v46  ;;  %v4816_v33 = vsel %vm1871_vm5, %v12990_v51, 0.0  ;;  %v13018_v10 = vpop.permute.xlu1 %5263 }
 0xa7f   : > { %4823 = vadd.xlane.f32.xlu0 %v4822_v13 }
 0xa80   : > { %v12992_v43 = vpop.eup %10444 }
 0xa81   : > { %v4813_v37 = vsel %vm1871_vm5, %v12992_v43, 0.0 }
 0xa82   : > { %4814 = vadd.xlane.f32.xlu1 %v4813_v37 }
 0xa83   : > { %4817 = vadd.xlane.f32.xlu0 %v4816_v33 }
 0xa84   : > { %v12998_v48 = vpop.eup %10446 }
 0xa85   : > { %v4807_v27 = vsel %vm1871_vm5, %v12998_v48, 0.0 }
 0xa86   : > { %4808 = vadd.xlane.f32.xlu1 %v4807_v27 }
 0xa97   : > { %5325 = vrot.lane.b32.xlu1 %v11514_v3, %s10792_s14 }
 0xa9b   : > { %5391 = vrot.lane.b32.xlu1 %v11454_v15, %s10793_s23 }
 0xa9f   : > { %5385 = vrot.lane.b32.xlu1 %v11430_v61, %s10794_s24 }
 0xaa3   : > { %5525 = vrot.lane.b32.xlu1 %v11443_v18, %s10793_s23 }
 0xaa7   : > { %5453 = vrot.lane.b32.xlu1 %v14733_v9, %s10794_s24 }
 0xaab   : > { %5593 = vrot.lane.b32.xlu1 %v14734_v1, %s10793_s23 }
 0xaaf   : > { %v4668_v58 = vpop.xlane.xlu1 %4667  ;;  %5521 = vrot.lane.b32.xlu1 %v11443_v18, %s10794_s24 }
 0xab0   : > { %v4700_v38 = vsub.f32 %v12875_v41, %v4668_v58  ;;  %v13051_v41 = vpop.permute.xlu0 %5139 }
 0xab2   : > { %v4743_v36 = vmul.f32 1.442695, %v4700_v38 }
 0xab3   : > { %5661 = vrot.lane.b32.xlu1 %v14735_v28, %s10793_s23  ;;  %v13061_v33 = vpop.permute.xlu1 %5323 }
 0xab4   : > { %10448 = vpow2.f32 %v4743_v36 }
 0xab7   : > { %5589 = vrot.lane.b32.xlu1 %v14734_v1, %s10794_s24 }
 0xabb   : > { %5729 = vrot.lane.b32.xlu1 %v11491_v20, %s10793_s23 }
 0xabe   : > { %v13031_v46 = vpop.eup %10448 }
 0xabf   : > { %5657 = vrot.lane.b32.xlu1 %v14735_v28, %s10794_s24  ;;  %v4810_v13 = vsel %vm1871_vm5, %v13031_v46, 0.0 }
 0xac0   : > { %4811 = vadd.xlane.f32.xlu0 %v4810_v13 }
 0xac3   : > { %5797 = vrot.lane.b32.xlu1 %v11494_v54, %s10793_s23 }
 0xac7   : > { %5725 = vrot.lane.b32.xlu1 %v11491_v20, %s10794_s24 }
 0xacb   : > { %5865 = vrot.lane.b32.xlu1 %v11510_v6, %s10793_s23 }
 0xacf   : > { %5793 = vrot.lane.b32.xlu1 %v11494_v54, %s10794_s24 }
 0xad3   : > { %5867 = vrot.lane.b32.xlu1 %v11514_v3, %s10793_s23 }
 0xad6   : > { %5389 = vrot.lane.b32.xlu0 %v11430_v61, %s10793_s23 }
 0xad7   : > { %5863 = vrot.lane.b32.xlu1 %v11514_v3, %s10794_s24 }
 0xada   : > { %5457 = vrot.lane.b32.xlu0 %v14733_v9, %s10793_s23 }
 0xadb   : > { %6319 = vrot.lane.b32.xlu1 %v14733_v9, %s10795_s26 }
 0xadd   : > { %v4767_v37 = vpop.xlane.xlu0 %4766 }
 0xade   : > { %5459 = vrot.lane.b32.xlu0 %v11446_v57, %s10793_s23 }
 0xadf   : > { %6381 = vrot.lane.b32.xlu1 %v11443_v18, %s10795_s26 }
 0xae1   : > { %v4761_v27 = vpop.xlane.xlu0 %4760 }
 0xae2   : > { %5387 = vrot.lane.b32.xlu0 %v11454_v15, %s10794_s24 }
 0xae3   : > { %6443 = vrot.lane.b32.xlu1 %v14734_v1, %s10795_s26 }
 0xae4   : > { %v4770_v58 = vpop.xlane.xlu1 %4769 }
 0xae5   : > { %10450 = vrcp.f32 %v4770_v58  ;;  %v4755_v9 = vpop.xlane.xlu0 %4754 }
 0xae6   : > { %5527 = vrot.lane.b32.xlu0 %v11463_v31, %s10793_s23  ;;  %10452 = vrcp.f32 %v4767_v37 }
 0xae7   : > { %6445 = vrot.lane.b32.xlu1 %v11472_v39, %s10795_s26 }
 0xae8   : > { %v4764_v18 = vpop.xlane.xlu1 %4763 }
 0xae9   : > { %10454 = vrcp.f32 %v4764_v18 }
 0xaea   : > { %10456 = vrcp.f32 %v4761_v27  ;;  %5455 = vrot.lane.b32.xlu0 %v11446_v57, %s10794_s24 }
 0xaeb   : > { %10458 = vrcp.f32 %v4755_v9  ;;  %6567 = vrot.lane.b32.xlu1 %v11491_v20, %s10795_s26  ;;  %v4785_v1 = vpop.xlane.xlu0 %4784 }
 0xaec   : > { %v4758_v38 = vpop.xlane.xlu1 %4757 }
 0xaed   : > { %10460 = vrcp.f32 %v4758_v38 }
 0xaee   : > { %5595 = vrot.lane.b32.xlu0 %v11472_v39, %s10793_s23 }
 0xaef   : > { %6507 = vrot.lane.b32.xlu1 %v11479_v42, %s10795_s26  ;;  %v4779_v36 = vpop.xlane.xlu0 %4778  ;;  %v10451_v13 = vpop.eup %10450 }
 0xaf0   : > { %v4788_v37 = vpop.xlane.xlu1 %4787  ;;  %v10453_v27 = vpop.eup %10452  ;;  %v4854_v9 = vmul.f32 %v10451_v13, %v12903_v56 }
 0xaf1   : > { %10462 = vrcp.f32 %v4788_v37  ;;  %v4853_v14 = vmul.f32 %v10453_v27, %v12894_v44 }
 0xaf2   : > { %5523 = vrot.lane.b32.xlu0 %v11463_v31, %s10794_s24  ;;  %10464 = vrcp.f32 %v4785_v1  ;;  %v4876_v25 = vpack.c.bf16 %v4854_v9, %v4854_v9 }
 0xaf3   : > { %v10455_v58 = vpop.eup %10454  ;;  %6569 = vrot.lane.b32.xlu1 %v11496_v59, %s10795_s26  ;;  %v4776_v20 = vpop.xlane.xlu0 %4775 }
 0xaf4   : > { %v10457_v18 = vpop.eup %10456  ;;  %v4782_v38 = vpop.xlane.xlu1 %4781  ;;  %v4852_v5 = vmul.f32 %v10455_v58, %v12913_v21 }
 0xaf5   : > { %v10459_v30 = vpop.eup %10458  ;;  %10466 = vrcp.f32 %v4782_v38  ;;  %v4851_v16 = vmul.f32 %v10457_v18, %v12900_v26 }
 0xaf6   : > { %10468 = vrcp.f32 %v4779_v36  ;;  %5663 = vrot.lane.b32.xlu0 %v11479_v42, %s10793_s23  ;;  %v4875_v37 = vpack.c.bf16 %v4853_v14, %v4852_v5  ;;  %v4849_v21 = vmul.f32 %v10459_v30, %v12908_v53 }
 0xaf7   : > { %v10461_v1 = vpop.eup %10460  ;;  %10470 = vrcp.f32 %v4776_v20  ;;  %v4874_v5 = vpack.c.bf16 %v4851_v16, %v4851_v16 }
 0xaf8   : > { %v4773_v60 = vpop.xlane.xlu1 %4772  ;;  %9543 = vmatprep.mubr.msk.bf16.mxu0 %vm1871_vm5, %v4875_v37  ;;  %v4806_v56 = vpop.xlane.xlu0 %4805  ;;  %v4850_v44 = vmul.f32 %v10461_v1, %v12919_v52  ;;  %v5025_v52 = vsel %vm2163_vm4, %v12883_v34, 0 }
 0xaf9   : > { %10472 = vrcp.f32 %v4773_v60  ;;  %9544 = vmatmul.mubr.msk.bf16.vlgmr.msra.gmra.mrb[104].mxu0 %vm1871_vm5, %v4876_v25  ;;  %v5087_v60 = vsel %vm2163_vm4, %v12885_v8, 0 }
 0xafa   : > { %9556 = vmatpush3.bf16.msra.mxu0 %v12655_v4  ;;  %5591 = vrot.lane.b32.xlu0 %v11472_v39, %s10794_s24  ;;  %v4873_v14 = vpack.c.bf16 %v4850_v44, %v4849_v21  ;;  %10474 = vrcp.f32 %v4806_v56 }
 0xafb   : > { %9892 = vmatprep.subr.msk.bf16.mxu0 %vm2163_vm4, %v12885_v8  ;;  %v10463_v26 = vpop.eup %10462 }
 0xafc   : > { %9535 = vmatprep.mubr.msk.bf16.mxu1 %vm1871_vm5, %v4873_v14  ;;  %v4800_v36 = vpop.xlane.xlu0 %4799  ;;  %v10465_v30 = vpop.eup %10464  ;;  %v4860_v39 = vmul.f32 %v10463_v26, %v12929_v2 }
 0xafd   : > { %9536 = vmatmul.mubr.msk.bf16.vlgmr.msra.gmra.mrb[80].mxu1 %vm1871_vm5, %v4874_v5  ;;  %10476 = vrcp.f32 %v4800_v36 }
 0xafe   : > { %9548 = vmatpush3.bf16.msra.mxu1 %v12649_v7  ;;  %9558 = vmatpush3.bf16.msra.mxu0 %v5087_v60  ;;  %v4859_v7 = vmul.f32 %v10465_v30, %v12922_v62  ;;  %v4880_v2 = vpack.c.bf16 %v4860_v39, %v4860_v39 }
 0xaff   : > { %v10467_v4 = vpop.eup %10466  ;;  %5731 = vrot.lane.b32.xlu0 %v11496_v59, %s10793_s23  ;;  %9891 = vmatprep.subr.msk.bf16.mxu1 %vm2163_vm4, %v12883_v34 }
 0xb00   : > { %v10469_v25 = vpop.eup %10468  ;;  %9571 = vmatprep.subr.bf16.mxu0 %v13004_v55  ;;  %v4803_v16 = vpop.xlane.xlu0 %4802  ;;  %v4858_v8 = vmul.f32 %v10467_v4, %v12939_v32 }
 0xb01   : > { %v10471_v53 = vpop.eup %10470  ;;  %10478 = vrcp.f32 %v4803_v16  ;;  %v4857_v58 = vmul.f32 %v10469_v25, %v12932_v63  ;;  %v4791_v20 = vpop.xlane.xlu1 %4790 }
 0xb02   : > { %9550 = vmatpush3.bf16.msra.mxu1 %v5025_v52  ;;  %v4879_v13 = vpack.c.bf16 %v4859_v7, %v4858_v8  ;;  %v4856_v34 = vmul.f32 %v10471_v53, %v12942_v49  ;;  %v5211_v49 = vsel %vm2163_vm4, %v13014_v17, 0  ;;  %v5273_v8 = vsel %vm2163_vm4, %v13018_v10, 0 }
 0xb03   : > { %v10473_v27 = vpop.eup %10472  ;;  %5659 = vrot.lane.b32.xlu0 %v11479_v42, %s10794_s24  ;;  %9563 = vmatprep.subr.bf16.mxu1 %v12881_v22  ;;  %v4878_v42 = vpack.c.bf16 %v4857_v58, %v4857_v58 }
 0xb04   : > { %9559 = vmatprep.mubr.msk.bf16.mxu0 %vm1871_vm5, %v4879_v13  ;;  %v4797_v62 = vpop.xlane.xlu0 %4796  ;;  %v4855_v32 = vmul.f32 %v10473_v27, %v12949_v24  ;;  %v10475_v24 = vpop.eup %10474 }
 0xb05   : > { %9560 = vmatmul.mubr.msk.bf16.vlgmr.msra.gmra.mrb[108].mxu0 %vm1871_vm5, %v4880_v2  ;;  %10480 = vrcp.f32 %v4797_v62  ;;  %v4866_v1 = vmul.f32 %v10475_v24, %v12951_v19 }
 0xb06   : > { %9572 = vmatpush3.bf16.msra.mxu0 %v13004_v55  ;;  %v4877_v9 = vpack.c.bf16 %v4856_v34, %v4855_v32  ;;  %10482 = vrcp.f32 %v4791_v20 }
 0xb07   : > { %5799 = vrot.lane.b32.xlu0 %v11506_v35, %s10793_s23  ;;  %9894 = vmatprep.subr.msk.bf16.mxu0 %vm2163_vm4, %v13014_v17  ;;  %v10477_v55 = vpop.eup %10476  ;;  %v5149_v17 = vsel %vm2163_vm4, %v13051_v41, 0  ;;  %v4884_v19 = vpack.c.bf16 %v4866_v1, %v4866_v1 }
 0xb08   : > { %9551 = vmatprep.mubr.msk.bf16.mxu1 %vm1871_vm5, %v4877_v9  ;;  %v4794_v63 = vpop.xlane.xlu0 %4793  ;;  %v4864_v56 = vmul.f32 %v10477_v55, %v12958_v50 }
 0xb09   : > { %10484 = vrcp.f32 %v4794_v63  ;;  %9552 = vmatmul.mubr.msk.bf16.vlgmr.msra.gmra.mrb[84].mxu1 %vm1871_vm5, %v4878_v42 }
 0xb0a   : > { %9564 = vmatpush3.bf16.msra.mxu1 %v12881_v22  ;;  %9574 = vmatpush3.bf16.msra.mxu0 %v5211_v49 }
 0xb0b   : > { %5727 = vrot.lane.b32.xlu0 %v11496_v59, %s10794_s24  ;;  %9893 = vmatprep.subr.msk.bf16.mxu1 %vm2163_vm4, %v13051_v41  ;;  %v4821_v18 = vpop.xlane.xlu1 %4820  ;;  %v10479_v38 = vpop.eup %10478 }
 0xb0c   : > { %9587 = vmatprep.subr.bf16.mxu0 %v13061_v33  ;;  %v4824_v37 = vpop.xlane.xlu0 %4823  ;;  %v4865_v22 = vmul.f32 %v10479_v38, %v12963_v23 }
 0xb0d   : > { %10486 = vrcp.f32 %v4824_v37 }
 0xb0e   : > { %9566 = vmatpush3.bf16.msra.mxu1 %v5149_v17  ;;  %10488 = vrcp.f32 %v4821_v18  ;;  %v4883_v21 = vpack.c.bf16 %v4865_v22, %v4864_v56 }
 0xb0f   : > { %5795 = vrot.lane.b32.xlu0 %v11506_v35, %s10794_s24  ;;  %9579 = vmatprep.subr.bf16.mxu1 %v13008_v40  ;;  %v4815_v59 = vpop.xlane.xlu1 %4814  ;;  %v10481_v44 = vpop.eup %10480 }
 0xb10   : > { %v4818_v14 = vpop.xlane.xlu0 %4817  ;;  %v10483_v5 = vpop.eup %10482  ;;  %9575 = vmatprep.mubr.msk.bf16.mxu0 %vm1871_vm5, %v4883_v21  ;;  %v4863_v41 = vmul.f32 %v10481_v44, %v12973_v47 }
 0xb11   : > { %10490 = vrcp.f32 %v4818_v14  ;;  %9576 = vmatmul.mubr.msk.bf16.vlgmr.msra.gmra.mrb[112].mxu0 %vm1871_vm5, %v4884_v19  ;;  %v4861_v26 = vmul.f32 %v10483_v5, %v12966_v0 }
 0xb12   : > { %9588 = vmatpush3.bf16.msra.mxu0 %v13061_v33  ;;  %v4882_v4 = vpack.c.bf16 %v4863_v41, %v4863_v41  ;;  %10492 = vrcp.f32 %v4815_v59 }
 0xb13   : > { %v10485_v50 = vpop.eup %10484  ;;  %5861 = vrot.lane.b32.xlu0 %v11510_v6, %s10794_s24  ;;  %v4809_v23 = vpop.xlane.xlu1 %4808 }
 0xb14   : > { %v4862_v36 = vmul.f32 %v10485_v50, %v12978_v11  ;;  %10494 = vrcp.f32 %v4809_v23 }
 0xb16   : > { %v4881_v30 = vpack.c.bf16 %v4862_v36, %v4861_v26 }
 0xb17   : > { %6257 = vrot.lane.b32.xlu0 %v11430_v61, %s10795_s26  ;;  %v5326_v60 = vpop.permute.xlu1 %5325  ;;  %v10487_v39 = vpop.eup %10486 }
 0xb18   : > { %9567 = vmatprep.mubr.msk.bf16.mxu1 %vm1871_vm5, %v4881_v30  ;;  %9896 = vmatprep.subr.msk.bf16.mxu0 %vm2163_vm4, %v5326_v60  ;;  %v5335_v33 = vsel %vm2163_vm4, %v5326_v60, 0  ;;  %v10489_v25 = vpop.eup %10488  ;;  %v4872_v47 = vmul.f32 %v10487_v39, %v12982_v12 }
 0xb19   : > { %9568 = vmatmul.mubr.msk.bf16.vlgmr.msra.gmra.mrb[88].mxu1 %vm1871_vm5, %v4882_v4  ;;  %9590 = vmatpush3.bf16.msra.mxu0 %v5335_v33  ;;  %v4871_v16 = vmul.f32 %v10489_v25, %v12984_v29 }
 0xb1a   : > { %9580 = vmatpush3.bf16.msra.mxu1 %v13008_v40 }
 0xb1b   : > { %v10491_v0 = vpop.eup %10490  ;;  %6259 = vrot.lane.b32.xlu0 %v11454_v15, %s10795_s26  ;;  %9895 = vmatprep.subr.msk.bf16.mxu1 %vm2163_vm4, %v13018_v10  ;;  %v5392_v61 = vpop.permute.xlu1 %5391  ;;  %v4888_v15 = vpack.c.bf16 %v4872_v47, %v4872_v47 }
 0xb1c   : > { %v4870_v11 = vmul.f32 %v10491_v0, %v12990_v51  ;;  %v10493_v13 = vpop.eup %10492  ;;  %v5403_v18 = vsel %vm1300_vm3, %v5392_v61, 0 }
 0xb1d   : > { %v4869_v58 = vmul.f32 %v10493_v13, %v12992_v43 }
 0xb1e   : > { %9582 = vmatpush3.bf16.msra.mxu1 %v5273_v8  ;;  %v4887_v7 = vpack.c.bf16 %v4871_v16, %v4870_v11  ;;  %v10495_v27 = vpop.eup %10494 }
 0xb1f   : > { %6321 = vrot.lane.b32.xlu0 %v11446_v57, %s10795_s26  ;;  %v5386_v40 = vpop.permute.xlu1 %5385  ;;  %v4867_v62 = vmul.f32 %v10495_v27, %v12998_v48  ;;  %v4886_v42 = vpack.c.bf16 %v4869_v58, %v4869_v58 }
 0xb20   : > { %9591 = vmatprep.mubr.msk.bf16.mxu0 %vm1871_vm5, %v4887_v7 }
 0xb21   : > { %9592 = vmatmul.mubr.msk.bf16.vlgmr.msra.gmra.mrb[116].mxu0 %vm1871_vm5, %v4888_v15 }
 0xb23   : > { %6383 = vrot.lane.b32.xlu0 %v11463_v31, %s10795_s26  ;;  %v5526_v12 = vpop.permute.xlu1 %5525 }
 0xb24   : > { %v5536_v56 = vsel %vm1300_vm3, %v5526_v12, 0 }
 0xb27   : > { %6505 = vrot.lane.b32.xlu0 %v14735_v28, %s10795_s26  ;;  %v5454_v29 = vpop.permute.xlu1 %5453 }
 0xb28   : > { %9607 = vmatprep.mubr.msk.bf16.mxu0 %vm1300_vm3, %v5454_v29 }
 0xb2b   : > { %v5594_v51 = vpop.permute.xlu1 %5593 }
 0xb2c   : > { %v5604_v38 = vsel %vm1300_vm3, %v5594_v51, 0 }
 0xb2f   : > { %v5522_v10 = vpop.permute.xlu1 %5521 }
 0xb33   : > { %v13178_v52 = vpop.permute.xlu1 %5661 }
 0xb34   : > { %v5672_v26 = vsel %vm1300_vm3, %v13178_v52, 0 }
 0xb37   : > { %v5590_v34 = vpop.permute.xlu1 %5589 }
 0xb3b   : > { %v5730_v48 = vpop.permute.xlu1 %5729 }
 0xb3c   : > { %v5740_v19 = vsel %vm1300_vm3, %v5730_v48, 0 }
 0xb3f   : > { %v5658_v55 = vpop.permute.xlu1 %5657 }
 0xb43   : > { %v5798_v1 = vpop.permute.xlu1 %5797 }
 0xb44   : > { %v5808_v47 = vsel %vm1300_vm3, %v5798_v1, 0 }
 0xb47   : > { %v5726_v21 = vpop.permute.xlu1 %5725 }
 0xb4b   : > { %v5866_v5 = vpop.permute.xlu1 %5865 }
 0xb4c   : > { %v5876_v33 = vsel %vm1300_vm3, %v5866_v5, 0 }
 0xb4d   : > { %v4812_v57 = vpop.xlane.xlu0 %4811 }
 0xb4e   : > { %10496 = vrcp.f32 %v4812_v57 }
 0xb4f   : > { %v5794_v41 = vpop.permute.xlu1 %5793 }
 0xb51   : > { %v5390_v53 = vpop.permute.xlu0 %5389 }
 0xb52   : > { %9897 = vmatprep.subr.msk.bf16.mxu1 %vm1300_vm3, %v5390_v53  ;;  %v5400_v24 = vsel %vm1300_vm3, %v5390_v53, 0 }
 0xb53   : > { %v5868_v60 = vpop.permute.xlu1 %5867 }
 0xb54   : > { %v5879_v11 = vsel %vm1300_vm3, %v5868_v60, 0 }
 0xb55   : > { %v5458_v31 = vpop.permute.xlu0 %5457 }
 0xb56   : > { %9899 = vmatprep.subr.msk.bf16.mxu0 %vm1300_vm3, %v5458_v31  ;;  %v5468_v28 = vsel %vm1300_vm3, %v5458_v31, 0 }
 0xb57   : > { %9604 = vmatpush3.bf16.xpose.msra.mxu0 %v5468_v28  ;;  %v5864_v0 = vpop.permute.xlu1 %5863 }
 0xb58   : > { %v10497_v2 = vpop.eup %10496 }
 0xb59   : > { %v5460_v20 = vpop.permute.xlu0 %5459  ;;  %v4868_v32 = vmul.f32 %v10497_v2, %v13031_v46 }
 0xb5a   : > { %9900 = vmatprep.subr.msk.bf16.mxu0 %vm1300_vm3, %v5460_v20  ;;  %v5471_v43 = vsel %vm1300_vm3, %v5460_v20, 0 }
 0xb5b   : > { %v4885_v9 = vpack.c.bf16 %v4868_v32, %v4867_v62  ;;  %v6320_v16 = vpop.permute.xlu1 %6319 }
 0xb5d   : > { %9583 = vmatprep.mubr.msk.bf16.mxu1 %vm1871_vm5, %v4885_v9  ;;  %v5388_v63 = vpop.permute.xlu0 %5387 }
 0xb5e   : > { %9584 = vmatmul.mubr.msk.bf16.vlgmr.msra.gmra.mrb[92].mxu1 %vm1871_vm5, %v4886_v42 }
 0xb5f   : > { %9596 = vmatpush3.bf16.xpose.msra.mxu1 %v5400_v24  ;;  %9599 = vmatprep.mubr.msk.bf16.mxu1 %vm1300_vm3, %v5386_v40  ;;  %v13230_v40 = vpop.permute.xlu1 %6381 }
 0xb60   : > { %9898 = vmatprep.subr.msk.bf16.mxu1 %vm1300_vm3, %v5392_v61  ;;  %9606 = vmatpush3.bf16.xpose.msra.mxu0 %v5471_v43 }
 0xb61   : > { %9903 = vmatprep.subr.msk.bf16.mxu0 %vm1300_vm3, %v5594_v51  ;;  %v5528_v46 = vpop.permute.xlu0 %5527 }
 0xb62   : > { %v5539_v14 = vsel %vm1300_vm3, %v5528_v46, 0 }
 0xb63   : > { %v13236_v51 = vpop.permute.xlu1 %6443 }
 0xb65   : > { %v5456_v49 = vpop.permute.xlu0 %5455 }
 0xb67   : > { %9598 = vmatpush3.bf16.xpose.msra.mxu1 %v5403_v18  ;;  %9608 = vmatmul.mubr.msk.bf16.vlgmr.msra.gmra.mrb[120].mxu0 %vm1300_vm3, %v5456_v49 }
 0xb68   : > { %9901 = vmatprep.subr.msk.bf16.mxu1 %vm1300_vm3, %v5526_v12  ;;  %9620 = vmatpush3.bf16.xpose.msra.mxu0 %v5604_v38 }
 0xb69   : > { %9623 = vmatprep.mubr.msk.bf16.mxu0 %vm1300_vm3, %v5590_v34  ;;  %v5596_v37 = vpop.permute.xlu0 %5595 }
 0xb6a   : > { %9904 = vmatprep.subr.msk.bf16.mxu0 %vm1300_vm3, %v5596_v37  ;;  %v5607_v22 = vsel %vm1300_vm3, %v5596_v37, 0 }
 0xb6d   : > { %v5524_v17 = vpop.permute.xlu0 %5523 }
 0xb6e   : > { %9600 = vmatmul.mubr.msk.bf16.vlgmr.msra.gmra.mrb[96].mxu1 %vm1300_vm3, %v5388_v63 }
 0xb6f   : > { %9612 = vmatpush3.bf16.xpose.msra.mxu1 %v5536_v56  ;;  %9615 = vmatprep.mubr.msk.bf16.mxu1 %vm1300_vm3, %v5522_v10 }
 0xb70   : > { %9902 = vmatprep.subr.msk.bf16.mxu1 %vm1300_vm3, %v5528_v46  ;;  %9622 = vmatpush3.bf16.xpose.msra.mxu0 %v5607_v22 }
 0xb71   : > { %9907 = vmatprep.subr.msk.bf16.mxu0 %vm1300_vm3, %v5730_v48  ;;  %v5664_v59 = vpop.permute.xlu0 %5663 }
 0xb72   : > { %v5675_v39 = vsel %vm1300_vm3, %v5664_v59, 0 }
 0xb75   : > { %v5592_v44 = vpop.permute.xlu0 %5591 }
 0xb77   : > { %9614 = vmatpush3.bf16.xpose.msra.mxu1 %v5539_v14  ;;  %9624 = vmatmul.mubr.msk.bf16.vlgmr.msra.gmra.mrb[124].mxu0 %vm1300_vm3, %v5592_v44 }
 0xb78   : > { %9905 = vmatprep.subr.msk.bf16.mxu1 %vm1300_vm3, %v13178_v52  ;;  %9636 = vmatpush3.bf16.xpose.msra.mxu0 %v5740_v19 }
 0xb79   : > { %9639 = vmatprep.mubr.msk.bf16.mxu0 %vm1300_vm3, %v5726_v21  ;;  %v5732_v50 = vpop.permute.xlu0 %5731 }
 0xb7a   : > { %9908 = vmatprep.subr.msk.bf16.mxu0 %vm1300_vm3, %v5732_v50  ;;  %v5743_v36 = vsel %vm1300_vm3, %v5732_v50, 0 }
 0xb7d   : > { %v5660_v23 = vpop.permute.xlu0 %5659 }
 0xb7e   : > { %9616 = vmatmul.mubr.msk.bf16.vlgmr.msra.gmra.mrb[100].mxu1 %vm1300_vm3, %v5524_v17 }
 0xb7f   : > { %9628 = vmatpush3.bf16.xpose.msra.mxu1 %v5672_v26  ;;  %9631 = vmatprep.mubr.msk.bf16.mxu1 %vm1300_vm3, %v5658_v55 }
 0xb80   : > { %9906 = vmatprep.subr.msk.bf16.mxu1 %vm1300_vm3, %v5664_v59  ;;  %9638 = vmatpush3.bf16.xpose.msra.mxu0 %v5743_v36 }
 0xb81   : > { %9911 = vmatprep.subr.msk.bf16.mxu0 %vm1300_vm3, %v5866_v5  ;;  %v5800_v30 = vpop.permute.xlu0 %5799 }
 0xb82   : > { %v5811_v15 = vsel %vm1300_vm3, %v5800_v30, 0 }
 0xb85   : > { %v5728_v4 = vpop.permute.xlu0 %5727 }
 0xb87   : > { %9630 = vmatpush3.bf16.xpose.msra.mxu1 %v5675_v39  ;;  %9640 = vmatmul.mubr.msk.bf16.vlgmr.msra.gmra.mrb[128].mxu0 %vm1300_vm3, %v5728_v4 }
 0xb88   : > { %9909 = vmatprep.subr.msk.bf16.mxu1 %vm1300_vm3, %v5798_v1  ;;  %9652 = vmatpush3.bf16.xpose.msra.mxu0 %v5876_v33 }
 0xb89   : > { %9912 = vmatprep.subr.msk.bf16.mxu0 %vm1300_vm3, %v5868_v60  ;;  %v5796_v25 = vpop.permute.xlu0 %5795 }
 0xb8d   : > { %v5862_v61 = vpop.permute.xlu0 %5861 }
 0xb8e   : > { %9632 = vmatmul.mubr.msk.bf16.vlgmr.msra.gmra.mrb[104].mxu1 %vm1300_vm3, %v5660_v23  ;;  %9655 = vmatprep.mubr.msk.bf16.mxu0 %vm1300_vm3, %v5862_v61 }
 0xb8f   : > { %9644 = vmatpush3.bf16.xpose.msra.mxu1 %v5808_v47  ;;  %9647 = vmatprep.mubr.msk.bf16.mxu1 %vm1300_vm3, %v5794_v41 }
 0xb90   : > { %9910 = vmatprep.subr.msk.bf16.mxu1 %vm1300_vm3, %v5800_v30  ;;  %9654 = vmatpush3.bf16.xpose.msra.mxu0 %v5879_v11  ;;  %v13318_v11 = vld [vmem:[%s14622_s3 + $0x10] sm:$0xff] }
 0xb91   : > { %9667 = vmatprep.subr.bf16.mxu0 %v6320_v16  ;;  %v6258_v8 = vpop.permute.xlu0 %6257 }
 0xb95   : > { %v6260_v7 = vpop.permute.xlu0 %6259 }
 0xb96   : > { %v6269_v57 = vsel %vm2163_vm4, %v6260_v7, 0 }
 0xb97   : > { %9646 = vmatpush3.bf16.xpose.msra.mxu1 %v5811_v15  ;;  %9656 = vmatmul.mubr.msk.bf16.vlgmr.msra.gmra.mrb[132].mxu0 %vm1300_vm3, %v5864_v0 }
 0xb98   : > { %9659 = vmatprep.subr.bf16.mxu1 %v6258_v8  ;;  %9668 = vmatpush3.bf16.msra.mxu0 %v6320_v16 }
 0xb99   : > { %v6322_v12 = vpop.permute.xlu0 %6321 }
 0xb9a   : > { %9914 = vmatprep.subr.msk.bf16.mxu0 %vm2163_vm4, %v6322_v12  ;;  %v6331_v29 = vsel %vm2163_vm4, %v6322_v12, 0 }
 0xb9c   : > { %9670 = vmatpush3.bf16.msra.mxu0 %v6331_v29 }
 0xb9d   : > { %9683 = vmatprep.subr.bf16.mxu0 %v13236_v51 }
 0xb9e   : > { %9648 = vmatmul.mubr.msk.bf16.vlgmr.msra.gmra.mrb[108].mxu1 %vm1300_vm3, %v5796_v25 }
 0xb9f   : > { %9660 = vmatpush3.bf16.msra.mxu1 %v6258_v8 }
 0xba0   : > { %9913 = vmatprep.subr.msk.bf16.mxu1 %vm2163_vm4, %v6260_v7  ;;  %v13326_v7 = vld [vmem:[%s14622_s3] sm:$0xff] }
 0xba3   : > { %9662 = vmatpush3.bf16.msra.mxu1 %v6269_v57  ;;  %v13336_v57 = vld [vmem:[%s14622_s3 + $0x8] sm:$0xff] }
 0xba4   : > { %9675 = vmatprep.subr.bf16.mxu1 %v13230_v40 }
 0xbcc   : > { %v13243_v10 = vpop.f32.mrb[104].mxu0 }
 0xbcd   : > { %v13245_v53 = vpop.f32.mrb[105].mxu0 }
 0xbce   : > { %v9546_v52 = vpop.f32.mrb[106].mxu0 }
 0xbcf   : > { %v13247_v13 = vpop.f32.mrb[107].mxu0 }
 0xbd0   : > { %v13251_v27 = vpop.f32.mrb[80].mxu1 }
 0xbd1   : > { %v13255_v2 = vpop.f32.mrb[81].mxu1 }
 0xbd2   : > { %v9538_v58 = vpop.f32.mrb[82].mxu1 }
 0xbd3   : > { %v13257_v20 = vpop.f32.mrb[83].mxu1 }
 0xbd8   : > { %v13261_v32 = vpop.f32.mrb[108].mxu0 }
 0xbd9   : > { %v13263_v34 = vpop.f32.mrb[109].mxu0 }
 0xbda   : > { %v9562_v9 = vpop.f32.mrb[110].mxu0 }
 0xbdb   : > { %v13265_v42 = vpop.f32.mrb[111].mxu0 }
 0xbdc   : > { %v13269_v24 = vpop.f32.mrb[84].mxu1 }
 0xbdd   : > { %v13273_v48 = vpop.f32.mrb[85].mxu1 }
 0xbde   : > { %v9554_v46 = vpop.f32.mrb[86].mxu1 }
 0xbdf   : > { %v13275_v49 = vpop.f32.mrb[87].mxu1 }
 0xbe4   : > { %v13279_v18 = vpop.f32.mrb[112].mxu0 }
 0xbe5   : > { %14736 = vst [vmem:[#allocation7_spill] sm:$0xff] %v13279_v18  ;;  %v13281_v38 = vpop.f32.mrb[113].mxu0 }
 0xbe6   : > { %v9578_v37 = vpop.f32.mrb[114].mxu0 }
 0xbe7   : > { %v13283_v1 = vpop.f32.mrb[115].mxu0 }
 0xbe8   : > { %14737 = vst [vmem:[#allocation8_spill] sm:$0xff] %v13283_v1 }
 0xbec   : > { %v13287_v56 = vpop.f32.mrb[88].mxu1 }
 0xbed   : > { %14738 = vst [vmem:[#allocation9_spill] sm:$0xff] %v13287_v56  ;;  %v13291_v59 = vpop.f32.mrb[89].mxu1 }
 0xbee   : > { %v9570_v21 = vpop.f32.mrb[90].mxu1 }
 0xbef   : > { %v13293_v44 = vpop.f32.mrb[91].mxu1 }
 0xbf4   : > { %v13297_v19 = vpop.f32.mrb[116].mxu0 }
 0xbf5   : > { %14739 = vst [vmem:[#allocation57_spill] sm:$0xff] %v13297_v19  ;;  %v13299_v5 = vpop.f32.mrb[117].mxu0 }
 0xbf6   : > { %14740 = vst [vmem:[#allocation58_spill] sm:$0xff] %v13299_v5  ;;  %v9594_v50 = vpop.f32.mrb[118].mxu0 }
 0xbf7   : > { %v13301_v23 = vpop.f32.mrb[119].mxu0 }
 0xbf8   : > { %14741 = vst [vmem:[#allocation59_spill] sm:$0xff] %v13301_v23 }
 0xc31   : > { %v13305_v26 = vpop.f32.mrb[92].mxu1 }
 0xc32   : > { %14742 = vst [vmem:[#allocation60_spill] sm:$0xff] %v13305_v26  ;;  %v13309_v30 = vpop.f32.mrb[93].mxu1 }
 0xc33   : > { %14743 = vst [vmem:[#allocation61_spill] sm:$0xff] %v13309_v30  ;;  %v9586_v60 = vpop.f32.mrb[94].mxu1 }
 0xc34   : > { %v13311_v4 = vpop.f32.mrb[95].mxu1 }
 0xc35   : > { %14744 = vst [vmem:[#allocation62_spill] sm:$0xff] %v13311_v4 }
 0xc3a   : > { %v9609_v33 = vpop.f32.mrb[120].mxu0 }
 0xc3b   : > { %v5934_v25 = vmul.f32 0.35355338, %v9609_v33  ;;  %v5507_v0 = vpop.f32.mrb[121].mxu0 }
 0xc3c   : > { %v5932_v61 = vmul.f32 0.35355338, %v5507_v0  ;;  %v9610_v47 = vpop.f32.mrb[122].mxu0 }
 0xc3d   : > { %v13321_v16 = vadd.f32 %v13318_v11, %v5934_v25  ;;  %v5510_v8 = vpop.f32.mrb[123].mxu0 }
 0xc3e   : > { %v13329_v15 = vadd.f32 %v13326_v7, %v5932_v61  ;;  %v5933_v12 = vmul.f32 0.35355338, %v5510_v8 }
 0xc3f   : > { %v5992_v29 = vsel %vm1871_vm5, %v13321_v16, -inf }
 0xc40   : > { %v13339_v52 = vadd.f32 %v13336_v57, %v5933_v12  ;;  %5993 = vmax.xlane.f32.xlu1 %v5992_v29  ;;  %v5986_v58 = vsel %vm1871_vm5, %v13329_v15, -inf }
 0xc41   : > { %v9601_v9 = vpop.f32.mrb[96].mxu1  ;;  %5987 = vmax.xlane.f32.xlu0 %v5986_v58 }
 0xc42   : > { %v5931_v46 = vmul.f32 0.35355338, %v9601_v9  ;;  %v5439_v37 = vpop.f32.mrb[97].mxu1  ;;  %v5989_v25 = vsel %vm1871_vm5, %v13339_v52, -inf }
 0xc43   : > { %v9602_v21 = vpop.f32.mrb[98].mxu1  ;;  %v5929_v60 = vmul.f32 0.35355338, %v5439_v37 }
 0xc44   : > { %v13344_v50 = vadd.f32 %v13318_v11, %v5931_v46  ;;  %v5442_v33 = vpop.f32.mrb[99].mxu1 }
 0xc45   : > { %v5930_v0 = vmul.f32 0.35355338, %v5442_v33  ;;  %5990 = vmax.xlane.f32.xlu0 %v5989_v25  ;;  %v13352_v47 = vadd.f32 %v13326_v7, %v5929_v60 }
 0xc46   : > { %v5983_v8 = vsel %vm1871_vm5, %v13344_v50, -inf }
 0xc47   : > { %v13349_v61 = vadd.f32 %v13336_v57, %v5930_v0  ;;  %v5977_v21 = vsel %vm1871_vm5, %v13352_v47, -inf }
 0xc49   : > { %5984 = vmax.xlane.f32.xlu0 %v5983_v8  ;;  %v5980_v12 = vsel %vm1871_vm5, %v13349_v61, -inf }
 0xc4a   : > { %5981 = vmax.xlane.f32.xlu1 %v5980_v12  ;;  %v9625_v29 = vpop.f32.mrb[124].mxu0 }
 0xc4b   : > { %v5940_v58 = vmul.f32 0.35355338, %v9625_v29  ;;  %v5643_v9 = vpop.f32.mrb[125].mxu0 }
 0xc4c   : > { %v5938_v46 = vmul.f32 0.35355338, %v5643_v9  ;;  %v9626_v37 = vpop.f32.mrb[126].mxu0 }
 0xc4d   : > { %v13361_v33 = vadd.f32 %v13318_v11, %v5940_v58  ;;  %5978 = vmax.xlane.f32.xlu0 %v5977_v21  ;;  %v5646_v60 = vpop.f32.mrb[127].mxu0 }
 0xc4e   : > { %v5939_v25 = vmul.f32 0.35355338, %v5646_v60  ;;  %v13364_v0 = vadd.f32 %v13326_v7, %v5938_v46 }
 0xc4f   : > { %v6010_v8 = vsel %vm1871_vm5, %v13361_v33, -inf }
 0xc50   : > { %v13369_v12 = vadd.f32 %v13336_v57, %v5939_v25  ;;  %6011 = vmax.xlane.f32.xlu1 %v6010_v8  ;;  %v6004_v46 = vsel %vm1871_vm5, %v13364_v0, -inf }
 0xc51   : > { %v9617_v29 = vpop.f32.mrb[100].mxu1 }
 0xc52   : > { %v5937_v9 = vmul.f32 0.35355338, %v9617_v29  ;;  %v5575_v37 = vpop.f32.mrb[101].mxu1  ;;  %v6007_v58 = vsel %vm1871_vm5, %v13369_v12, -inf }
 0xc53   : > { %v5935_v41 = vmul.f32 0.35355338, %v5575_v37  ;;  %v9618_v21 = vpop.f32.mrb[102].mxu1  ;;  %6008 = vmax.xlane.f32.xlu0 %v6007_v58 }
 0xc54   : > { %v13376_v60 = vadd.f32 %v13318_v11, %v5937_v9  ;;  %v5578_v36 = vpop.f32.mrb[103].mxu1  ;;  %6005 = vmax.xlane.f32.xlu1 %v6004_v46 }
 0xc55   : > { %v5936_v25 = vmul.f32 0.35355338, %v5578_v36  ;;  %v13379_v8 = vadd.f32 %v13326_v7, %v5935_v41 }
 0xc56   : > { %v6001_v29 = vsel %vm1871_vm5, %v13376_v60, -inf }
 0xc57   : > { %v13384_v39 = vadd.f32 %v13336_v57, %v5936_v25  ;;  %6002 = vmax.xlane.f32.xlu0 %v6001_v29  ;;  %v5995_v9 = vsel %vm1871_vm5, %v13379_v8, -inf }
 0xc59   : > { %v5998_v37 = vsel %vm1871_vm5, %v13384_v39, -inf }
 0xc5a   : > { %5999 = vmax.xlane.f32.xlu1 %v5998_v37  ;;  %v9641_v58 = vpop.f32.mrb[128].mxu0 }
 0xc5b   : > { %v5946_v21 = vmul.f32 0.35355338, %v9641_v58  ;;  %5996 = vmax.xlane.f32.xlu0 %v5995_v9  ;;  %v5779_v36 = vpop.f32.mrb[129].mxu0 }
 0xc5c   : > { %v5944_v41 = vmul.f32 0.35355338, %v5779_v36  ;;  %v9642_v46 = vpop.f32.mrb[130].mxu0 }
 0xc5d   : > { %v13391_v17 = vadd.f32 %v13318_v11, %v5946_v21  ;;  %v5782_v22 = vpop.f32.mrb[131].mxu0 }
 0xc5e   : > { %v5945_v25 = vmul.f32 0.35355338, %v5782_v22  ;;  %v13394_v29 = vadd.f32 %v13326_v7, %v5944_v41 }
 0xc5f   : > { %v6028_v37 = vsel %vm1871_vm5, %v13391_v17, -inf }
 0xc60   : > { %v13399_v14 = vadd.f32 %v13336_v57, %v5945_v25  ;;  %6029 = vmax.xlane.f32.xlu1 %v6028_v37  ;;  %v6022_v22 = vsel %vm1871_vm5, %v13394_v29, -inf }
 0xc61   : > { %v9633_v58 = vpop.f32.mrb[104].mxu1 }
 0xc62   : > { %v5943_v9 = vmul.f32 0.35355338, %v9633_v58  ;;  %v5711_v43 = vpop.f32.mrb[105].mxu1  ;;  %v6025_v36 = vsel %vm1871_vm5, %v13399_v14, -inf }
 0xc63   : > { %v5941_v21 = vmul.f32 0.35355338, %v5711_v43  ;;  %v9634_v46 = vpop.f32.mrb[106].mxu1  ;;  %6026 = vmax.xlane.f32.xlu0 %v6025_v36 }
 0xc64   : > { %v13406_v41 = vadd.f32 %v13318_v11, %v5943_v9  ;;  %v5714_v31 = vpop.f32.mrb[107].mxu1  ;;  %6023 = vmax.xlane.f32.xlu1 %v6022_v22 }
 0xc65   : > { %v5942_v25 = vmul.f32 0.35355338, %v5714_v31  ;;  %v13409_v37 = vadd.f32 %v13326_v7, %v5941_v21 }
 0xc66   : > { %v6019_v58 = vsel %vm1871_vm5, %v13406_v41, -inf }
 0xc67   : > { %v13414_v63 = vadd.f32 %v13336_v57, %v5942_v25  ;;  %6020 = vmax.xlane.f32.xlu0 %v6019_v58  ;;  %v6013_v9 = vsel %vm1871_vm5, %v13409_v37, -inf }
 0xc69   : > { %v6016_v43 = vsel %vm1871_vm5, %v13414_v63, -inf }
 0xc6a   : > { %6017 = vmax.xlane.f32.xlu1 %v6016_v43  ;;  %v9657_v36 = vpop.f32.mrb[132].mxu0 }
 0xc6b   : > { %v5952_v46 = vmul.f32 0.35355338, %v9657_v36  ;;  %6014 = vmax.xlane.f32.xlu0 %v6013_v9  ;;  %v5915_v31 = vpop.f32.mrb[133].mxu0 }
 0xc6c   : > { %v5950_v21 = vmul.f32 0.35355338, %v5915_v31  ;;  %v9658_v22 = vpop.f32.mrb[134].mxu0 }
 0xc6d   : > { %v13421_v28 = vadd.f32 %v13318_v11, %v5952_v46  ;;  %v5918_v55 = vpop.f32.mrb[135].mxu0 }
 0xc6e   : > { %v5951_v25 = vmul.f32 0.35355338, %v5918_v55  ;;  %v13424_v58 = vadd.f32 %v13326_v7, %v5950_v21 }
 0xc6f   : > { %v6046_v43 = vsel %vm1871_vm5, %v13421_v28, -inf }
 0xc70   : > { %v13429_v62 = vadd.f32 %v13336_v57, %v5951_v25  ;;  %6047 = vmax.xlane.f32.xlu1 %v6046_v43  ;;  %v6040_v55 = vsel %vm1871_vm5, %v13424_v58, -inf }
 0xc71   : > { %v9649_v36 = vpop.f32.mrb[108].mxu1 }
 0xc72   : > { %v5949_v9 = vmul.f32 0.35355338, %v9649_v36  ;;  %v5847_v23 = vpop.f32.mrb[109].mxu1  ;;  %v6043_v31 = vsel %vm1871_vm5, %v13429_v62, -inf }
 0xc73   : > { %v5947_v46 = vmul.f32 0.35355338, %v5847_v23  ;;  %v9650_v22 = vpop.f32.mrb[110].mxu1  ;;  %6044 = vmax.xlane.f32.xlu0 %v6043_v31 }
 0xc74   : > { %v13436_v21 = vadd.f32 %v13318_v11, %v5949_v9  ;;  %v5850_v19 = vpop.f32.mrb[111].mxu1  ;;  %6041 = vmax.xlane.f32.xlu1 %v6040_v55  ;;  %v13460_v9 = vpop.permute.xlu0 %6383 }
 0xc75   : > { %v5948_v25 = vmul.f32 0.35355338, %v5850_v19  ;;  %v13439_v43 = vadd.f32 %v13326_v7, %v5947_v46  ;;  %v13454_v19 = vpop.permute.xlu1 %6445 }
 0xc76   : > { %v6037_v36 = vsel %vm1871_vm5, %v13436_v21, -inf }
 0xc77   : > { %v13444_v26 = vadd.f32 %v13336_v57, %v5948_v25  ;;  %6038 = vmax.xlane.f32.xlu0 %v6037_v36  ;;  %v6031_v11 = vsel %vm1871_vm5, %v13439_v43, -inf }
 0xc78   : > { %v13464_v46 = vpop.permute.xlu0 %6505 }
 0xc79   : > { %v6034_v23 = vsel %vm1871_vm5, %v13444_v26, -inf  ;;  %v13456_v7 = vpop.permute.xlu1 %6567 }
 0xc7a   : > { %6035 = vmax.xlane.f32.xlu1 %v6034_v23 }
 0xc7b   : > { %6032 = vmax.xlane.f32.xlu0 %v6031_v11 }
 0xc7d   : > { %v13458_v57 = vpop.permute.xlu1 %6507 }
 0xc81   : > { %v13462_v31 = vpop.permute.xlu1 %6569 }
 0xc8b   : > { %6631 = vrot.lane.b32.xlu1 %v11506_v35, %s10795_s26 }
 0xc91   : > { %6629 = vrot.lane.b32.xlu0 %v11494_v54, %s10795_s26 }
 0xccd   : > { %v5994_v22 = vpop.xlane.xlu1 %5993 }
 0xcce   : > { %v6054_v55 = vsub.f32 %v13321_v16, %v5994_v22  ;;  %v5988_v25 = vpop.xlane.xlu0 %5987 }
 0xccf   : > { %v6052_v35 = vsub.f32 %v13329_v15, %v5988_v25 }
 0xcd0   : > { %v6083_v36 = vmul.f32 1.442695, %v6054_v55 }
 0xcd1   : > { %v6079_v54 = vmul.f32 1.442695, %v6052_v35 }
 0xcd2   : > { %10498 = vpow2.f32 %v6083_v36  ;;  %v5991_v23 = vpop.xlane.xlu0 %5990 }
 0xcd3   : > { %v6053_v11 = vsub.f32 %v13339_v52, %v5991_v23  ;;  %10500 = vpow2.f32 %v6079_v54 }
 0xcd5   : > { %v6081_v5 = vmul.f32 1.442695, %v6053_v11 }
 0xcd6   : > { %v5985_v30 = vpop.xlane.xlu0 %5984 }
 0xcd7   : > { %10502 = vpow2.f32 %v6081_v5  ;;  %v6051_v4 = vsub.f32 %v13344_v50, %v5985_v30  ;;  %v5982_v1 = vpop.xlane.xlu1 %5981 }
 0xcd8   : > { %v6050_v18 = vsub.f32 %v13349_v61, %v5982_v1 }
 0xcd9   : > { %v6077_v56 = vmul.f32 1.442695, %v6051_v4 }
 0xcda   : > { %v6075_v16 = vmul.f32 1.442695, %v6050_v18  ;;  %v5979_v22 = vpop.xlane.xlu0 %5978 }
 0xcdb   : > { %10504 = vpow2.f32 %v6077_v56  ;;  %v6049_v15 = vsub.f32 %v13352_v47, %v5979_v22 }
 0xcdc   : > { %v13472_v55 = vpop.eup %10498  ;;  %10506 = vpow2.f32 %v6075_v16 }
 0xcdd   : > { %v6073_v25 = vmul.f32 1.442695, %v6049_v15  ;;  %v6012_v52 = vpop.xlane.xlu1 %6011  ;;  %v6136_v35 = vsel %vm1871_vm5, %v13472_v55, 0.0  ;;  %v13476_v5 = vpop.eup %10500 }
 0xcde   : > { %v6060_v30 = vsub.f32 %v13361_v33, %v6012_v52  ;;  %6137 = vadd.xlane.f32.xlu1 %v6136_v35  ;;  %v6130_v61 = vsel %vm1871_vm5, %v13476_v5, 0.0 }
 0xcdf   : > { %10508 = vpow2.f32 %v6073_v25 }
 0xce0   : > { %v6095_v1 = vmul.f32 1.442695, %v6060_v30  ;;  %v6009_v18 = vpop.xlane.xlu0 %6008 }
 0xce1   : > { %v13479_v4 = vpop.eup %10502  ;;  %v6059_v56 = vsub.f32 %v13369_v12, %v6009_v18  ;;  %v6006_v50 = vpop.xlane.xlu1 %6005 }
 0xce2   : > { %10510 = vpow2.f32 %v6095_v1  ;;  %v6058_v47 = vsub.f32 %v13364_v0, %v6006_v50  ;;  %6131 = vadd.xlane.f32.xlu1 %v6130_v61  ;;  %v6133_v36 = vsel %vm1871_vm5, %v13479_v4, 0.0 }
 0xce3   : > { %v6093_v33 = vmul.f32 1.442695, %v6059_v56  ;;  %6134 = vadd.xlane.f32.xlu0 %v6133_v36 }
 0xce4   : > { %v6091_v54 = vmul.f32 1.442695, %v6058_v47  ;;  %v6003_v23 = vpop.xlane.xlu0 %6002 }
 0xce5   : > { %v13487_v11 = vpop.eup %10504  ;;  %10512 = vpow2.f32 %v6093_v33  ;;  %v6057_v12 = vsub.f32 %v13376_v60, %v6003_v23 }
 0xce6   : > { %v13490_v16 = vpop.eup %10506  ;;  %10514 = vpow2.f32 %v6091_v54  ;;  %v6127_v22 = vsel %vm1871_vm5, %v13487_v11, 0.0 }
 0xce7   : > { %v6089_v0 = vmul.f32 1.442695, %v6057_v12  ;;  %v6000_v15 = vpop.xlane.xlu1 %5999  ;;  %6128 = vadd.xlane.f32.xlu0 %v6127_v22  ;;  %v6124_v25 = vsel %vm1871_vm5, %v13490_v16, 0.0 }
 0xce8   : > { %v6056_v52 = vsub.f32 %v13384_v39, %v6000_v15  ;;  %6125 = vadd.xlane.f32.xlu1 %v6124_v25  ;;  %v5997_v35 = vpop.xlane.xlu0 %5996 }
 0xce9   : > { %v13497_v30 = vpop.eup %10508  ;;  %10516 = vpow2.f32 %v6089_v0  ;;  %v6055_v60 = vsub.f32 %v13379_v8, %v5997_v35 }
 0xcea   : > { %v6087_v1 = vmul.f32 1.442695, %v6056_v52  ;;  %v6121_v18 = vsel %vm1871_vm5, %v13497_v30, 0.0 }
 0xceb   : > { %v6085_v56 = vmul.f32 1.442695, %v6055_v60  ;;  %6122 = vadd.xlane.f32.xlu0 %v6121_v18 }
 0xcec   : > { %v13502_v50 = vpop.eup %10510  ;;  %10518 = vpow2.f32 %v6087_v1 }
 0xced   : > { %10520 = vpow2.f32 %v6085_v56  ;;  %v6030_v61 = vpop.xlane.xlu1 %6029  ;;  %v6154_v39 = vsel %vm1871_vm5, %v13502_v50, 0.0 }
 0xcee   : > { %v6066_v47 = vsub.f32 %v13391_v17, %v6030_v61  ;;  %6155 = vadd.xlane.f32.xlu1 %v6154_v39 }
 0xcef   : > { %v13507_v36 = vpop.eup %10512 }
 0xcf0   : > { %v13509_v8 = vpop.eup %10514  ;;  %v6107_v33 = vmul.f32 1.442695, %v6066_v47  ;;  %v6027_v54 = vpop.xlane.xlu0 %6026  ;;  %v6151_v23 = vsel %vm1871_vm5, %v13507_v36, 0.0 }
 0xcf1   : > { %v6065_v12 = vsub.f32 %v13399_v14, %v6027_v54  ;;  %v6024_v22 = vpop.xlane.xlu1 %6023  ;;  %6152 = vadd.xlane.f32.xlu0 %v6151_v23  ;;  %v6148_v0 = vsel %vm1871_vm5, %v13509_v8, 0.0 }
 0xcf2   : > { %10522 = vpow2.f32 %v6107_v33  ;;  %v6064_v17 = vsub.f32 %v13394_v29, %v6024_v22  ;;  %6149 = vadd.xlane.f32.xlu1 %v6148_v0 }
 0xcf3   : > { %v13517_v15 = vpop.eup %10516  ;;  %v6105_v25 = vmul.f32 1.442695, %v6065_v12 }
 0xcf4   : > { %v6103_v52 = vmul.f32 1.442695, %v6064_v17  ;;  %v6021_v35 = vpop.xlane.xlu0 %6020  ;;  %v6145_v60 = vsel %vm1871_vm5, %v13517_v15, 0.0 }
 0xcf5   : > { %10524 = vpow2.f32 %v6105_v25  ;;  %v6063_v14 = vsub.f32 %v13406_v41, %v6021_v35  ;;  %6146 = vadd.xlane.f32.xlu0 %v6145_v60 }
 0xcf6   : > { %v13522_v1 = vpop.eup %10518  ;;  %10526 = vpow2.f32 %v6103_v52 }
 0xcf7   : > { %v13524_v18 = vpop.eup %10520  ;;  %v6101_v56 = vmul.f32 1.442695, %v6063_v14  ;;  %v6018_v29 = vpop.xlane.xlu1 %6017  ;;  %v6142_v61 = vsel %vm1871_vm5, %v13522_v1, 0.0 }
 0xcf8   : > { %v6062_v39 = vsub.f32 %v13414_v63, %v6018_v29  ;;  %6143 = vadd.xlane.f32.xlu1 %v6142_v61  ;;  %v6015_v47 = vpop.xlane.xlu0 %6014  ;;  %v6139_v33 = vsel %vm1871_vm5, %v13524_v18, 0.0 }
 0xcf9   : > { %10528 = vpow2.f32 %v6101_v56  ;;  %v6061_v41 = vsub.f32 %v13409_v37, %v6015_v47  ;;  %6140 = vadd.xlane.f32.xlu0 %v6139_v33 }
 0xcfa   : > { %v6099_v54 = vmul.f32 1.442695, %v6062_v39 }
 0xcfb   : > { %v6097_v23 = vmul.f32 1.442695, %v6061_v41 }
 0xcfc   : > { %v13532_v12 = vpop.eup %10522 }
 0xcfd   : > { %10530 = vpow2.f32 %v6097_v23  ;;  %v6048_v22 = vpop.xlane.xlu1 %6047  ;;  %v6172_v0 = vsel %vm1871_vm5, %v13532_v12, 0.0 }
 0xcfe   : > { %v6072_v63 = vsub.f32 %v13421_v28, %v6048_v22  ;;  %6173 = vadd.xlane.f32.xlu0 %v6172_v0  ;;  %10532 = vpow2.f32 %v6099_v54 }
 0xcff   : > { %v13537_v17 = vpop.eup %10524 }
 0xd00   : > { %v13539_v25 = vpop.eup %10526  ;;  %v6119_v52 = vmul.f32 1.442695, %v6072_v63  ;;  %v6045_v37 = vpop.xlane.xlu0 %6044  ;;  %v6169_v35 = vsel %vm1871_vm5, %v13537_v17, 0.0 }
 0xd01   : > { %v6071_v60 = vsub.f32 %v13429_v62, %v6045_v37  ;;  %v6042_v14 = vpop.xlane.xlu1 %6041  ;;  %6170 = vadd.xlane.f32.xlu1 %v6169_v35  ;;  %v6166_v56 = vsel %vm1871_vm5, %v13539_v25, 0.0 }
 0xd02   : > { %10534 = vpow2.f32 %v6119_v52  ;;  %v6070_v28 = vsub.f32 %v13424_v58, %v6042_v14  ;;  %6167 = vadd.xlane.f32.xlu0 %v6166_v56 }
 0xd03   : > { %v13547_v29 = vpop.eup %10528  ;;  %v6117_v61 = vmul.f32 1.442695, %v6071_v60 }
 0xd04   : > { %v6115_v39 = vmul.f32 1.442695, %v6070_v28  ;;  %v6039_v47 = vpop.xlane.xlu0 %6038  ;;  %v6163_v33 = vsel %vm1871_vm5, %v13547_v29, 0.0 }
 0xd05   : > { %10536 = vpow2.f32 %v6117_v61  ;;  %v6069_v62 = vsub.f32 %v13436_v21, %v6039_v47  ;;  %6164 = vadd.xlane.f32.xlu1 %v6163_v33 }
 0xd06   : > { %10538 = vpow2.f32 %v6115_v39 }
 0xd07   : > { %v13552_v41 = vpop.eup %10530  ;;  %v6113_v54 = vmul.f32 1.442695, %v6069_v62  ;;  %v6036_v23 = vpop.xlane.xlu1 %6035 }
 0xd08   : > { %v6068_v58 = vsub.f32 %v13444_v26, %v6036_v23  ;;  %v6033_v22 = vpop.xlane.xlu0 %6032  ;;  %v6157_v0 = vsel %vm1871_vm5, %v13552_v41, 0.0  ;;  %v13557_v63 = vpop.eup %10532  ;;  %v14745_v23 = vld [vmem:[#allocation38_spill] sm:$0xff] }
 0xd09   : > { %10540 = vpow2.f32 %v6113_v54  ;;  %v6067_v52 = vsub.f32 %v13439_v43, %v6033_v22  ;;  %6158 = vadd.xlane.f32.xlu1 %v6157_v0  ;;  %v6160_v60 = vsel %vm1871_vm5, %v13557_v63, 0.0  ;;  %v14747_v22 = vpack.i.bf16 %v13257_v20, %v13255_v2  ;;  %v10699_v0 = vld [vmem:[%s10879_s19] ss:$8 sps:$4 sm:$0xff]   ;;  %v14756_v20 = vld [vmem:[#allocation39_spill] sm:$0xff] }
 0xd0a   : > { %v6111_v37 = vmul.f32 1.442695, %v6068_v58  ;;  %v14746_v58 = vpack.i.bf16 %v12676_v45, %v14745_v23  ;;  %v14751_v45 = vld [vmem:[#allocation35_spill] sm:$0xff]  ;;  %v14755_v2 = vpack.i.bf16 %v13245_v53, %v13251_v27  ;;  %v14763_v53 = vpack.i.bf16 %v13243_v10, %v13247_v13  ;;  %v14764_v27 = vld [vmem:[#allocation40_spill] sm:$0xff] }
 0xd0b   : > { %v6109_v21 = vmul.f32 1.442695, %v6067_v52  ;;  %v14749_v52 = vld [vmem:[#allocation43_spill] sm:$0xff] }
 0xd0c   : > { %v13560_v35 = vpop.eup %10534  ;;  %10542 = vpow2.f32 %v6111_v37  ;;  %v13646_v10 = vpop.permute.xlu0 %6629 }
 0xd0d   : > { %10544 = vpow2.f32 %v6109_v21  ;;  %6161 = vadd.xlane.f32.xlu1 %v6160_v60  ;;  %v6190_v26 = vsel %vm1871_vm5, %v13560_v35, 0.0  ;;  %v14752_v21 = vld [vmem:[#allocation37_spill] sm:$0xff] }
 0xd0e   : > { %6191 = vadd.xlane.f32.xlu0 %v6190_v26  ;;  %v14753_v60 = vpack.i.bf16 %v14751_v45, %v14752_v21  ;;  %v14757_v26 = vld [vmem:[#allocation41_spill] sm:$0xff] }
 0xd0f   : > { %v13566_v14 = vpop.eup %10536 }
 0xd10   : > { %v13568_v56 = vpop.eup %10538  ;;  %v6187_v43 = vsel %vm1871_vm5, %v13566_v14, 0.0 }
 0xd11   : > { %v6184_v28 = vsel %vm1871_vm5, %v13568_v56, 0.0 }
 0xd12   : > { %6185 = vadd.xlane.f32.xlu1 %v6184_v28  ;;  %6188 = vadd.xlane.f32.xlu0 %v6187_v43  ;;  %v14758_v43 = vpack.i.bf16 %v14756_v20, %v14757_v26  ;;  %v10700_v28 = vld [vmem:[%s10879_s19 + $0x10] ss:$8 sps:$4 sm:$0xff]  }
 0xd13   : > { %v13574_v61 = vpop.eup %10540 }
 0xd14   : > { %v6181_v39 = vsel %vm1871_vm5, %v13574_v61, 0.0 }
 0xd16   : > { %v13578_v47 = vpop.eup %10542  ;;  %6182 = vadd.xlane.f32.xlu0 %v6181_v39  ;;  %v14759_v39 = vpack.i.bf16 %v13261_v32, %v13265_v42  ;;  %v14767_v32 = vpack.i.bf16 %v13263_v34, %v13269_v24  ;;  %v14768_v42 = vld [vmem:[#allocation50_spill] sm:$0xff] }
 0xd17   : > { %v13580_v33 = vpop.eup %10544  ;;  %v6178_v54 = vsel %vm1871_vm5, %v13578_v47, 0.0 }
 0xd18   : > { %v6175_v62 = vsel %vm1871_vm5, %v13580_v33, 0.0 }
 0xd19   : > { %6176 = vadd.xlane.f32.xlu1 %v6175_v62 }
 0xd1a   : > { %6179 = vadd.xlane.f32.xlu0 %v6178_v54  ;;  %v14765_v54 = vld [vmem:[#allocation42_spill] sm:$0xff] }
 0xd1b   : > { %v14766_v23 = vpack.i.bf16 %v14764_v27, %v14765_v54 }
 0xd2a   : > { %6693 = vrot.lane.b32.xlu1 %v11514_v3, %s10795_s26  ;;  %v14748_v3 = vld [vmem:[#allocation44_spill] sm:$0xff] }
 0xd2b   : > { %v14750_v37 = vpack.i.bf16 %v14748_v3, %v14749_v52 }
 0xd2e   : > { %9973 = vrot.lane.b32.xlu1 %v14746_v58, %s10796_s17  ;;  %v14769_v58 = vld [vmem:[#allocation49_spill] sm:$0xff] }
 0xd30   : > { %6691 = vrot.lane.b32.xlu0 %v11510_v6, %s10795_s26  ;;  %v14754_v6 = vpack.i.bf16 %v13275_v49, %v13273_v48  ;;  %v14760_v48 = vld [vmem:[#allocation34_spill] sm:$0xff]  ;;  %v14761_v49 = vld [vmem:[#allocation36_spill] sm:$0xff] }
 0xd31   : > { %v14762_v62 = vpack.i.bf16 %v14760_v48, %v14761_v49 }
 0xd32   : > { %9983 = vrot.lane.b32.xlu1 %v14747_v22, %s10797_s18  ;;  %v14770_v22 = vpack.i.bf16 %v14768_v42, %v14769_v58 }
 0xd34   : > { %7126 = vrot.lane.b32.xlu0 %v10699_v0, %s10798_s20  ;;  %v13644_v0 = vpop.permute.xlu1 %6631 }
 0xd36   : > { %9998 = vrot.lane.b32.xlu1 %v14750_v37, %s10796_s17 }
 0xd38   : > { %9978 = vrot.lane.b32.xlu0 %v14753_v60, %s10796_s17 }
 0xd3a   : > { %10008 = vrot.lane.b32.xlu1 %v14754_v6, %s10797_s18 }
 0xd3c   : > { %9988 = vrot.lane.b32.xlu0 %v14755_v2, %s10797_s18 }
 0xd3e   : > { %10018 = vrot.lane.b32.xlu1 %v14758_v43, %s10796_s17 }
 0xd40   : > { %7128 = vrot.lane.b32.xlu0 %v10700_v28, %s10798_s20 }
 0xd42   : > { %10028 = vrot.lane.b32.xlu1 %v14759_v39, %s10797_s18 }
 0xd44   : > { %9993 = vrot.lane.b32.xlu0 %v14762_v62, %s10796_s17 }
 0xd48   : > { %10003 = vrot.lane.b32.xlu0 %v14763_v53, %s10797_s18 }
 0xd4c   : > { %10013 = vrot.lane.b32.xlu0 %v14766_v23, %s10796_s17  ;;  %v6455_v23 = vsel %vm2163_vm4, %v13454_v19, 0 }
 0xd50   : > { %10023 = vrot.lane.b32.xlu0 %v14767_v32, %s10797_s18 }
 0xd54   : > { %10033 = vrot.lane.b32.xlu0 %v14770_v22, %s10796_s17 }
 0xd6b   : > { %v6138_v3 = vpop.xlane.xlu1 %6137 }
 0xd6c   : > { %10546 = vrcp.f32 %v6138_v3 }
 0xd6f   : > { %v6132_v13 = vpop.xlane.xlu1 %6131 }
 0xd70   : > { %10548 = vrcp.f32 %v6132_v13  ;;  %v6135_v52 = vpop.xlane.xlu0 %6134  ;;  %v6393_v13 = vsel %vm2163_vm4, %v13460_v9, 0 }
 0xd71   : > { %10550 = vrcp.f32 %v6135_v52 }
 0xd74   : > { %v6129_v37 = vpop.xlane.xlu0 %6128 }
 0xd75   : > { %v6126_v45 = vpop.xlane.xlu1 %6125  ;;  %10552 = vrcp.f32 %v6129_v37 }
 0xd76   : > { %10554 = vrcp.f32 %v6126_v45  ;;  %v10547_v34 = vpop.eup %10546 }
 0xd77   : > { %v6222_v20 = vmul.f32 %v10547_v34, %v13472_v55 }
 0xd78   : > { %v6123_v24 = vpop.xlane.xlu0 %6122 }
 0xd79   : > { %10556 = vrcp.f32 %v6123_v24  ;;  %v6244_v48 = vpack.c.bf16 %v6222_v20, %v6222_v20 }
 0xd7a   : > { %v10549_v21 = vpop.eup %10548 }
 0xd7b   : > { %v10551_v60 = vpop.eup %10550  ;;  %v6156_v6 = vpop.xlane.xlu1 %6155  ;;  %v6220_v2 = vmul.f32 %v10549_v21, %v13476_v5 }
 0xd7c   : > { %v6221_v26 = vmul.f32 %v10551_v60, %v13479_v4  ;;  %10558 = vrcp.f32 %v6156_v6  ;;  %v6579_v60 = vsel %vm2163_vm4, %v13462_v31, 0 }
 0xd7e   : > { %v6153_v43 = vpop.xlane.xlu0 %6152  ;;  %v6243_v28 = vpack.c.bf16 %v6221_v26, %v6220_v2 }
 0xd7f   : > { %10560 = vrcp.f32 %v6153_v43  ;;  %v6150_v39 = vpop.xlane.xlu1 %6149  ;;  %v10553_v49 = vpop.eup %10552  ;;  %v6517_v43 = vsel %vm2163_vm4, %v13458_v57, 0 }
 0xd80   : > { %10562 = vrcp.f32 %v6150_v39  ;;  %9671 = vmatprep.mubr.msk.bf16.mxu0 %vm1871_vm5, %v6243_v28  ;;  %v10555_v62 = vpop.eup %10554  ;;  %v6219_v55 = vmul.f32 %v10553_v49, %v13487_v11 }
 0xd81   : > { %9672 = vmatmul.mubr.msk.bf16.vlgmr.msra.gmra.mrb[136].mxu0 %vm1871_vm5, %v6244_v48  ;;  %v6218_v27 = vmul.f32 %v10555_v62, %v13490_v16 }
 0xd82   : > { %9684 = vmatpush3.bf16.msra.mxu0 %v13236_v51  ;;  %v6147_v5 = vpop.xlane.xlu0 %6146  ;;  %v6242_v58 = vpack.c.bf16 %v6219_v55, %v6219_v55 }
 0xd83   : > { %v10557_v53 = vpop.eup %10556  ;;  %9916 = vmatprep.subr.msk.bf16.mxu0 %vm2163_vm4, %v13454_v19  ;;  %10564 = vrcp.f32 %v6147_v5 }
 0xd84   : > { %v6217_v4 = vmul.f32 %v10557_v53, %v13497_v30 }
 0xd85   : > { %v6144_v54 = vpop.xlane.xlu1 %6143 }
 0xd86   : > { %10566 = vrcp.f32 %v6144_v54  ;;  %9686 = vmatpush3.bf16.msra.mxu0 %v6455_v23  ;;  %v6141_v32 = vpop.xlane.xlu0 %6140  ;;  %v6241_v51 = vpack.c.bf16 %v6218_v27, %v6217_v4  ;;  %v10559_v42 = vpop.eup %10558 }
 0xd87   : > { %9699 = vmatprep.subr.bf16.mxu0 %v13456_v7  ;;  %10568 = vrcp.f32 %v6141_v32  ;;  %v6228_v19 = vmul.f32 %v10559_v42, %v13502_v50 }
 0xd88   : > { %9663 = vmatprep.mubr.msk.bf16.mxu1 %vm1871_vm5, %v6241_v51 }
 0xd89   : > { %v10561_v11 = vpop.eup %10560  ;;  %9664 = vmatmul.mubr.msk.bf16.vlgmr.msra.gmra.mrb[112].mxu1 %vm1871_vm5, %v6242_v58  ;;  %v6248_v34 = vpack.c.bf16 %v6228_v19, %v6228_v19  ;;  %v6641_v19 = vsel %vm2163_vm4, %v13644_v0, 0 }
 0xd8a   : > { %v10563_v30 = vpop.eup %10562  ;;  %9676 = vmatpush3.bf16.msra.mxu1 %v13230_v40  ;;  %v6227_v16 = vmul.f32 %v10561_v11, %v13507_v36 }
 0xd8b   : > { %9915 = vmatprep.subr.msk.bf16.mxu1 %vm2163_vm4, %v13460_v9  ;;  %v6174_v22 = vpop.xlane.xlu0 %6173  ;;  %v6226_v3 = vmul.f32 %v10563_v30, %v13509_v8 }
 0xd8c   : > { %10570 = vrcp.f32 %v6174_v22 }
 0xd8d   : > { %v6247_v52 = vpack.c.bf16 %v6227_v16, %v6226_v3  ;;  %v10565_v37 = vpop.eup %10564 }
 0xd8e   : > { %9678 = vmatpush3.bf16.msra.mxu1 %v6393_v13  ;;  %v6171_v45 = vpop.xlane.xlu1 %6170  ;;  %v6225_v8 = vmul.f32 %v10565_v37, %v13517_v15 }
 0xd8f   : > { %10572 = vrcp.f32 %v6171_v45  ;;  %9691 = vmatprep.subr.bf16.mxu1 %v13464_v46  ;;  %9687 = vmatprep.mubr.msk.bf16.mxu0 %vm1871_vm5, %v6247_v52  ;;  %v6168_v40 = vpop.xlane.xlu0 %6167 }
 0xd90   : > { %v10567_v50 = vpop.eup %10566  ;;  %10574 = vrcp.f32 %v6168_v40  ;;  %9688 = vmatmul.mubr.msk.bf16.vlgmr.msra.gmra.mrb[140].mxu0 %vm1871_vm5, %v6248_v34  ;;  %v6246_v2 = vpack.c.bf16 %v6225_v8, %v6225_v8  ;;  %v14771_v40 = vld [vmem:[#allocation14_spill] sm:$0xff] }
 0xd91   : > { %v10569_v36 = vpop.eup %10568  ;;  %9700 = vmatpush3.bf16.msra.mxu0 %v13456_v7  ;;  %v6224_v9 = vmul.f32 %v10567_v50, %v13522_v1 }
 0xd92   : > { %9918 = vmatprep.subr.msk.bf16.mxu0 %vm2163_vm4, %v13462_v31  ;;  %v6165_v24 = vpop.xlane.xlu1 %6164  ;;  %v6223_v21 = vmul.f32 %v10569_v36, %v13524_v18  ;;  %v14772_v36 = vld [vmem:[#allocation10_spill] sm:$0xff] }
 0xd93   : > { %10576 = vrcp.f32 %v6165_v24 }
 0xd94   : > { %v6245_v6 = vpack.c.bf16 %v6224_v9, %v6223_v21 }
 0xd95   : > { %9702 = vmatpush3.bf16.msra.mxu0 %v6579_v60 }
 0xd96   : > { %v6159_v20 = vpop.xlane.xlu1 %6158  ;;  %9679 = vmatprep.mubr.msk.bf16.mxu1 %vm1871_vm5, %v6245_v6  ;;  %v10571_v7 = vpop.eup %10570 }
 0xd97   : > { %9680 = vmatmul.mubr.msk.bf16.vlgmr.msra.gmra.mrb[116].mxu1 %vm1871_vm5, %v6246_v2  ;;  %10578 = vrcp.f32 %v6159_v20  ;;  %v6234_v26 = vmul.f32 %v10571_v7, %v13532_v12 }
 0xd98   : > { %9692 = vmatpush3.bf16.msra.mxu1 %v13464_v46 }
 0xd99   : > { %v10573_v15 = vpop.eup %10572  ;;  %9917 = vmatprep.subr.msk.bf16.mxu1 %vm2163_vm4, %v13458_v57  ;;  %v6252_v48 = vpack.c.bf16 %v6234_v26, %v6234_v26  ;;  %v14773_v26 = vpack.i.bf16 %v13293_v44, %v13291_v59 }
 0xd9a   : > { %v10575_v1 = vpop.eup %10574  ;;  %v6162_v18 = vpop.xlane.xlu1 %6161  ;;  %v6233_v31 = vmul.f32 %v10573_v15, %v13537_v17 }
 0xd9b   : > { %10580 = vrcp.f32 %v6162_v18  ;;  %v6192_v28 = vpop.xlane.xlu0 %6191  ;;  %v6232_v39 = vmul.f32 %v10575_v1, %v13539_v25 }
 0xd9c   : > { %9694 = vmatpush3.bf16.msra.mxu1 %v6517_v43  ;;  %10582 = vrcp.f32 %v6192_v28 }
 0xd9d   : > { %9707 = vmatprep.subr.bf16.mxu1 %v13646_v10  ;;  %v6251_v46 = vpack.c.bf16 %v6233_v31, %v6232_v39  ;;  %v10577_v12 = vpop.eup %10576 }
 0xd9e   : > { %v6231_v25 = vmul.f32 %v10577_v12, %v13547_v29 }
 0xd9f   : > { %v6186_v49 = vpop.xlane.xlu1 %6185  ;;  %9703 = vmatprep.mubr.msk.bf16.mxu0 %vm1871_vm5, %v6251_v46  ;;  %v6189_v62 = vpop.xlane.xlu0 %6188 }
 0xda0   : > { %10584 = vrcp.f32 %v6186_v49  ;;  %9704 = vmatmul.mubr.msk.bf16.vlgmr.msra.gmra.mrb[144].mxu0 %vm1871_vm5, %v6252_v48  ;;  %v6250_v32 = vpack.c.bf16 %v6231_v25, %v6231_v25 }
 0xda1   : > { %10586 = vrcp.f32 %v6189_v62  ;;  %v10579_v17 = vpop.eup %10578 }
 0xda2   : > { %v6229_v55 = vmul.f32 %v10579_v17, %v13552_v41  ;;  %v14774_v17 = vld [vmem:[#allocation46_spill] sm:$0xff] }
 0xda3   : > { %v6183_v57 = vpop.xlane.xlu0 %6182 }
 0xda4   : > { %10588 = vrcp.f32 %v6183_v57  ;;  %v14775_v57 = vld [vmem:[#allocation48_spill] sm:$0xff] }
 0xda5   : > { %v10581_v5 = vpop.eup %10580 }
 0xda6   : > { %v6177_v53 = vpop.xlane.xlu1 %6176  ;;  %v6230_v4 = vmul.f32 %v10581_v5, %v13557_v63  ;;  %v10583_v23 = vpop.eup %10582  ;;  %v14776_v5 = vpack.i.bf16 %v14774_v17, %v14775_v57 }
 0xda7   : > { %10590 = vrcp.f32 %v6177_v53  ;;  %v6180_v27 = vpop.xlane.xlu0 %6179  ;;  %v6240_v11 = vmul.f32 %v10583_v23, %v13560_v35 }
 0xda8   : > { %10592 = vrcp.f32 %v6180_v27  ;;  %v6249_v54 = vpack.c.bf16 %v6230_v4, %v6229_v55  ;;  %v14777_v27 = vld [vmem:[#allocation45_spill] sm:$0xff] }
 0xda9   : > { %v6256_v35 = vpack.c.bf16 %v6240_v11, %v6240_v11 }
 0xdaa   : > { %v10585_v51 = vpop.eup %10584  ;;  %9695 = vmatprep.mubr.msk.bf16.mxu1 %vm1871_vm5, %v6249_v54  ;;  %v6694_v63 = vpop.permute.xlu1 %6693  ;;  %v14778_v54 = vld [vmem:[#allocation47_spill] sm:$0xff] }
 0xdab   : > { %v10587_v42 = vpop.eup %10586  ;;  %9696 = vmatmul.mubr.msk.bf16.vlgmr.msra.gmra.mrb[120].mxu1 %vm1871_vm5, %v6250_v32  ;;  %v6692_v58 = vpop.permute.xlu0 %6691  ;;  %v6238_v29 = vmul.f32 %v10585_v51, %v13568_v56  ;;  %v14779_v23 = vpack.i.bf16 %v14777_v27, %v14778_v54  ;;  %v14780_v51 = vld [vmem:[#allocation9_spill] sm:$0xff] }
 0xdac   : > { %9708 = vmatpush3.bf16.msra.mxu1 %v13646_v10  ;;  %9715 = vmatprep.subr.bf16.mxu0 %v6692_v58  ;;  %v6239_v41 = vmul.f32 %v10587_v42, %v13566_v14  ;;  %v6703_v10 = vsel %vm2163_vm4, %v6694_v63, 0  ;;  %v14781_v42 = vpack.i.bf16 %v13281_v38, %v14780_v51  ;;  %v14803_v54 = vld [vmem:[#allocation13_spill] sm:$0xff] }
 0xdad   : > { %9919 = vmatprep.subr.msk.bf16.mxu1 %vm2163_vm4, %v13644_v0  ;;  %9716 = vmatpush3.bf16.msra.mxu0 %v6692_v58 }
 0xdae   : > { %9920 = vmatprep.subr.msk.bf16.mxu0 %vm2163_vm4, %v6694_v63  ;;  %v6255_v30 = vpack.c.bf16 %v6239_v41, %v6238_v29  ;;  %v10589_v16 = vpop.eup %10588  ;;  %v14782_v29 = vld [vmem:[#allocation7_spill] sm:$0xff]  ;;  %v14783_v41 = vld [vmem:[#allocation8_spill] sm:$0xff] }
 0xdaf   : > { %v7127_v56 = vpop.permute.xlu0 %7126  ;;  %v6237_v3 = vmul.f32 %v10589_v16, %v13574_v61  ;;  %v14784_v63 = vpack.i.bf16 %v14782_v29, %v14783_v41 }
 0xdb0   : > { %9710 = vmatpush3.bf16.msra.mxu1 %v6641_v19  ;;  %9719 = vmatprep.mubr.msk.bf16.mxu0 %vm1871_vm5, %v6255_v30  ;;  %v14785_v19 = vld [vmem:[#allocation56_spill] sm:$0xff] }
 0xdb1   : > { %v10591_v14 = vpop.eup %10590  ;;  %9718 = vmatpush3.bf16.msra.mxu0 %v6703_v10  ;;  %9723 = vmatprep.subr.bf16.mxu1 %v7127_v56  ;;  %v6254_v8 = vpack.c.bf16 %v6237_v3, %v6237_v3 }
 0xdb2   : > { %v10593_v22 = vpop.eup %10592  ;;  %v6235_v13 = vmul.f32 %v10591_v14, %v13580_v33  ;;  %v14788_v14 = vld [vmem:[#allocation62_spill] sm:$0xff] }
 0xdb3   : > { %v9979_v52 = vpop.permute.xlu0 %9978  ;;  %v6236_v37 = vmul.f32 %v10593_v22, %v13578_v47  ;;  %v14789_v22 = vld [vmem:[#allocation61_spill] sm:$0xff] }
 0xdb4   : > { %v9981_v45 = vunpack.i.h.bf16 %v9979_v52  ;;  %v9980_v0 = vunpack.i.l.bf16 %v9979_v52  ;;  %9720 = vmatmul.mubr.msk.bf16.vlgmr.msra.gmra.mrb[148].mxu0 %vm1871_vm5, %v6256_v35  ;;  %v14790_v3 = vpack.i.bf16 %v14788_v14, %v14789_v22 }
 0xdb5   : > { %v6253_v34 = vpack.c.bf16 %v6236_v37, %v6235_v13 }
 0xdb6   : > { %v7044_v50 = vsel %vm1300_vm3, %v14771_v40, %v9981_v45  ;;  %v7043_v9 = vsel %vm1300_vm3, %v14772_v36, %v9980_v0  ;;  %v14791_v0 = vld [vmem:[#allocation51_spill] sm:$0xff] }
 0xdb7   : > { %9711 = vmatprep.mubr.msk.bf16.mxu1 %vm1871_vm5, %v6253_v34  ;;  %v9989_v61 = vpop.permute.xlu0 %9988  ;;  %v14792_v34 = vld [vmem:[#allocation53_spill] sm:$0xff] }
 0xdb8   : > { %v9991_v24 = vunpack.i.h.bf16 %v9989_v61  ;;  %v9990_v33 = vunpack.i.l.bf16 %v9989_v61  ;;  %9712 = vmatmul.mubr.msk.bf16.vlgmr.msra.gmra.mrb[124].mxu1 %vm1871_vm5, %v6254_v8  ;;  %v14793_v40 = vpack.i.bf16 %v14791_v0, %v14792_v34  ;;  %v14806_v34 = vld [vmem:[#allocation11_spill] sm:$0xff] }
 0xdb9   : > { %9724 = vmatpush3.bf16.msra.mxu1 %v7127_v56  ;;  %v14786_v56 = vld [vmem:[#allocation55_spill] sm:$0xff] }
 0xdba   : > { %v13723_v47 = vsel %vm7065_vm6, %v7043_v9, %v9990_v33  ;;  %v13726_v21 = vsel %vm7065_vm6, %v7044_v50, %v9991_v24  ;;  %v14787_v10 = vpack.i.bf16 %v14785_v19, %v14786_v56 }
 0xdbb   : > { %v7129_v60 = vpop.permute.xlu0 %7128 }
 0xdbc   : > { %9725 = vmatprep.subr.bf16.mxu1 %v7129_v60 }
 0xdbd   : > { %9726 = vmatpush3.bf16.msra.mxu1 %v7129_v60  ;;  %v14794_v60 = vld [vmem:[#allocation52_spill] sm:$0xff] }
 0xe54   : > { %v9673_v6 = vpop.f32.mrb[136].mxu0 }
 0xe55   : > { %v6367_v2 = vpop.f32.mrb[137].mxu0 }
 0xe56   : > { %v9674_v20 = vpop.f32.mrb[138].mxu0 }
 0xe57   : > { %v6370_v7 = vpop.f32.mrb[139].mxu0 }
 0xe58   : > { %v10037_v15 = vpack.i.bf16 %v9673_v6, %v6370_v7  ;;  %v14795_v6 = vld [vmem:[#allocation54_spill] sm:$0xff] }
 0xe5a   : > { %10038 = vrot.lane.b32.xlu0 %v10037_v15, %s10799_s21 }
 0xe5c   : > { %v9665_v1 = vpop.f32.mrb[112].mxu1 }
 0xe5d   : > { %v10042_v18 = vpack.i.bf16 %v6367_v2, %v9665_v1  ;;  %v6305_v31 = vpop.f32.mrb[113].mxu1  ;;  %v14796_v2 = vpack.i.bf16 %v14794_v60, %v14795_v6 }
 0xe5e   : > { %10058 = vrot.lane.b32.xlu0 %v14773_v26, %s10797_s18  ;;  %v9666_v43 = vpop.f32.mrb[114].mxu1 }
 0xe5f   : > { %10043 = vrot.lane.b32.xlu1 %v10042_v18, %s10799_s21  ;;  %v6308_v28 = vpop.f32.mrb[115].mxu1  ;;  %v14797_v18 = vld [vmem:[#allocation58_spill] sm:$0xff]  ;;  %v14800_v43 = vld [vmem:[#allocation57_spill] sm:$0xff] }
 0xe60   : > { %v10047_v39 = vpack.i.bf16 %v6308_v28, %v6305_v31  ;;  %v14798_v31 = vld [vmem:[#allocation60_spill] sm:$0xff]  ;;  %v14801_v28 = vld [vmem:[#allocation59_spill] sm:$0xff] }
 0xe61   : > { %v14799_v26 = vpack.i.bf16 %v14797_v18, %v14798_v31 }
 0xe63   : > { %10048 = vrot.lane.b32.xlu1 %v10047_v39, %s10799_s21  ;;  %v9689_v46 = vpop.f32.mrb[140].mxu0  ;;  %v14802_v39 = vpack.i.bf16 %v14800_v43, %v14801_v28 }
 0xe64   : > { %v6491_v48 = vpop.f32.mrb[141].mxu0 }
 0xe65   : > { %v9690_v49 = vpop.f32.mrb[142].mxu0 }
 0xe66   : > { %v6494_v62 = vpop.f32.mrb[143].mxu0 }
 0xe67   : > { %v10062_v12 = vpack.i.bf16 %v9689_v46, %v6494_v62  ;;  %10053 = vrot.lane.b32.xlu1 %v14776_v5, %s10796_s17  ;;  %v9974_v46 = vpop.permute.xlu1 %9973 }
 0xe68   : > { %v9976_v56 = vunpack.i.h.bf16 %v9974_v46 }
 0xe6a   : > { %v9681_v25 = vpop.f32.mrb[116].mxu1 }
 0xe6b   : > { %v10067_v59 = vpack.i.bf16 %v6491_v48, %v9681_v25  ;;  %10063 = vrot.lane.b32.xlu1 %v10062_v12, %s10799_s21  ;;  %v6429_v44 = vpop.f32.mrb[117].mxu1  ;;  %v9994_v48 = vpop.permute.xlu0 %9993 }
 0xe6c   : > { %v9682_v53 = vpop.f32.mrb[118].mxu1  ;;  %v9984_v49 = vpop.permute.xlu1 %9983 }
 0xe6d   : > { %10068 = vrot.lane.b32.xlu0 %v10067_v59, %s10799_s21  ;;  %v6432_v55 = vpop.f32.mrb[119].mxu1  ;;  %v9995_v53 = vunpack.i.l.bf16 %v9994_v48 }
 0xe6e   : > { %v10072_v4 = vpack.i.bf16 %v6432_v55, %v6429_v44  ;;  %v9996_v44 = vunpack.i.h.bf16 %v9994_v48 }
 0xe6f   : > { %v10004_v62 = vpop.permute.xlu0 %10003 }
 0xe70   : > { %10073 = vrot.lane.b32.xlu1 %v10072_v4, %s10799_s21  ;;  %v13784_v12 = vpop.permute.xlu1 %9998  ;;  %v10006_v55 = vunpack.i.h.bf16 %v10004_v62  ;;  %v10005_v4 = vunpack.i.l.bf16 %v10004_v62 }
 0xe71   : > { %10083 = vrot.lane.b32.xlu0 %v14779_v23, %s10796_s17  ;;  %v7046_v23 = vsel %vm1300_vm3, %v14803_v54, %v9996_v44  ;;  %v10000_v18 = vunpack.i.l.bf16 %v13784_v12 }
 0xe73   : > { %v9705_v32 = vpop.f32.mrb[144].mxu0  ;;  %v13786_v17 = vpop.permute.xlu0 %10013 }
 0xe74   : > { %10078 = vrot.lane.b32.xlu1 %v14781_v42, %s10797_s18  ;;  %v6615_v58 = vpop.f32.mrb[145].mxu0  ;;  %v13788_v57 = vpop.permute.xlu1 %10008 }
 0xe75   : > { %10093 = vrot.lane.b32.xlu0 %v14784_v63, %s10797_s18  ;;  %v9706_v11 = vpop.f32.mrb[146].mxu0  ;;  %v7071_v63 = vsel %vm7065_vm6, %v7046_v23, %v10006_v55  ;;  %v10011_v31 = vunpack.i.h.bf16 %v13788_v57  ;;  %v14810_v55 = vld [vmem:[#allocation19_spill] sm:$0xff] }
 0xe76   : > { %v6618_v30 = vpop.f32.mrb[147].mxu0 }
 0xe77   : > { %v10112_v16 = vpack.i.bf16 %v9705_v32, %v6618_v30  ;;  %v13790_v5 = vpop.permute.xlu0 %10023  ;;  %v14804_v32 = vld [vmem:[#allocation15_spill] sm:$0xff] }
 0xe78   : > { %10088 = vrot.lane.b32.xlu1 %v14787_v10, %s10796_s17  ;;  %v10019_v25 = vpop.permute.xlu1 %10018  ;;  %v7045_v51 = vsel %vm1300_vm3, %v14804_v32, %v9995_v53  ;;  %v9975_v10 = vunpack.i.l.bf16 %v9974_v46  ;;  %v10026_v43 = vunpack.i.h.bf16 %v13790_v5  ;;  %v10025_v28 = vunpack.i.l.bf16 %v13790_v5  ;;  %v14807_v46 = vld [vmem:[#allocation16_spill] sm:$0xff] }
 0xe79   : > { %v7070_v41 = vsel %vm7065_vm6, %v7045_v51, %v10005_v4  ;;  %v10020_v60 = vunpack.i.l.bf16 %v10019_v25 }
 0xe7b   : > { %v13792_v59 = vpop.permute.xlu0 %10033 }
 0xe7c   : > { %10098 = vrot.lane.b32.xlu1 %v14790_v3, %s10797_s18  ;;  %v10029_v42 = vpop.permute.xlu1 %10028  ;;  %v9986_v3 = vunpack.i.h.bf16 %v9984_v49 }
 0xe7d   : > { %v10031_v6 = vunpack.i.h.bf16 %v10029_v42 }
 0xe7e   : > { %v9697_v38 = vpop.f32.mrb[120].mxu1 }
 0xe7f   : > { %v10102_v35 = vpack.i.bf16 %v6615_v58, %v9697_v38  ;;  %v6553_v13 = vpop.f32.mrb[121].mxu1  ;;  %v9985_v38 = vunpack.i.l.bf16 %v9984_v49  ;;  %v14808_v49 = vld [vmem:[#allocation18_spill] sm:$0xff] }
 0xe80   : > { %v9698_v52 = vpop.f32.mrb[122].mxu1  ;;  %v7051_v62 = vsel %vm1300_vm3, %v14808_v49, %v10020_v60  ;;  %v14813_v60 = vld [vmem:[#allocation23_spill] sm:$0xff] }
 0xe81   : > { %v6556_v37 = vpop.f32.mrb[123].mxu1  ;;  %10103 = vrot.lane.b32.xlu1 %v10102_v35, %s10799_s21 }
 0xe82   : > { %v10107_v45 = vpack.i.bf16 %v6556_v37, %v6553_v13 }
 0xe84   : > { %10108 = vrot.lane.b32.xlu0 %v10107_v45, %s10799_s21  ;;  %v14805_v45 = vld [vmem:[#allocation12_spill] sm:$0xff] }
 0xe85   : > { %10123 = vrot.lane.b32.xlu1 %v14793_v40, %s10796_s17  ;;  %v7042_v0 = vsel %vm1300_vm3, %v14805_v45, %v9976_v56  ;;  %v7041_v40 = vsel %vm1300_vm3, %v14806_v34, %v9975_v10 }
 0xe87   : > { %v9721_v50 = vpop.f32.mrb[148].mxu0 }
 0xe88   : > { %10113 = vrot.lane.b32.xlu0 %v10112_v16, %s10799_s21  ;;  %v6739_v36 = vpop.f32.mrb[149].mxu0 }
 0xe89   : > { %v9722_v9 = vpop.f32.mrb[150].mxu0 }
 0xe8a   : > { %v6742_v8 = vpop.f32.mrb[151].mxu0  ;;  %v7066_v9 = vsel %vm7065_vm6, %v7041_v40, %v9985_v38 }
 0xe8b   : > { %v10147_v61 = vpack.i.bf16 %v9721_v50, %v6742_v8  ;;  %v9713_v24 = vpop.f32.mrb[124].mxu1  ;;  %v7067_v8 = vsel %vm7065_vm6, %v7042_v0, %v9986_v3 }
 0xe8c   : > { %v10142_v33 = vpack.i.bf16 %v6739_v36, %v9713_v24  ;;  %10118 = vrot.lane.b32.xlu0 %v14796_v2, %s10796_s17  ;;  %v6677_v20 = vpop.f32.mrb[125].mxu1  ;;  %v10030_v2 = vunpack.i.l.bf16 %v10029_v42 }
 0xe8d   : > { %v9714_v7 = vpop.f32.mrb[126].mxu1 }
 0xe8e   : > { %v6680_v15 = vpop.f32.mrb[127].mxu1  ;;  %v10015_v7 = vunpack.i.l.bf16 %v13786_v17 }
 0xe8f   : > { %v10132_v1 = vpack.i.bf16 %v6680_v15, %v6677_v20  ;;  %v10016_v20 = vunpack.i.h.bf16 %v13786_v17 }
 0xe90   : > { %10128 = vrot.lane.b32.xlu0 %v14799_v26, %s10797_s18  ;;  %v10010_v26 = vunpack.i.l.bf16 %v13788_v57  ;;  %v14809_v57 = vld [vmem:[#allocation17_spill] sm:$0xff]  ;;  %v7049_v5 = vsel %vm1300_vm3, %v14810_v55, %v10015_v7 }
 0xe91   : > { %10133 = vrot.lane.b32.xlu1 %v10132_v1, %s10799_s21  ;;  %v10001_v1 = vunpack.i.h.bf16 %v13784_v12  ;;  %v7050_v53 = vsel %vm1300_vm3, %v14809_v57, %v10016_v20  ;;  %v7074_v51 = vsel %vm7065_vm6, %v7049_v5, %v10025_v28 }
 0xe92   : > { %v7075_v42 = vsel %vm7065_vm6, %v7050_v53, %v10026_v43 }
 0xe94   : > { %10143 = vrot.lane.b32.xlu0 %v10142_v33, %s10799_s21  ;;  %v10021_v33 = vunpack.i.h.bf16 %v10019_v25  ;;  %v7076_v25 = vsel %vm7065_vm6, %v7051_v62, %v10030_v2  ;;  %v14814_v2 = vld [vmem:[#allocation25_spill] sm:$0xff] }
 0xe95   : > { %10138 = vrot.lane.b32.xlu1 %v14802_v39, %s10797_s18 }
 0xe96   : > { %v7052_v48 = vsel %vm1300_vm3, %v14807_v46, %v10021_v33 }
 0xe97   : > { %v7077_v44 = vsel %vm7065_vm6, %v7052_v48, %v10031_v6 }
 0xe99   : > { %10148 = vrot.lane.b32.xlu1 %v10147_v61, %s10799_s21 }
 0xecc   : > { %v10039_v27 = vpop.permute.xlu0 %10038 }
 0xecd   : > { %v10041_v58 = vunpack.i.h.bf16 %v10039_v27  ;;  %v10040_v29 = vunpack.i.l.bf16 %v10039_v27 }
 0xecf   : > { %v7094_v11 = vsel %vm1871_vm5, %v7070_v41, %v10040_v29  ;;  %v7095_v30 = vsel %vm1871_vm5, %v7071_v63, %v10041_v58  ;;  %v14811_v29 = vld [vmem:[#allocation21_spill] sm:$0xff] }
 0xed0   : > { %v7116_v16 = vpack.c.bf16 %v7095_v30, %v7094_v11  ;;  %v13818_v15 = vpop.permute.xlu0 %10058  ;;  %v7048_v41 = vsel %vm1300_vm3, %v14811_v29, %v10001_v1  ;;  %v14815_v1 = vld [vmem:[#allocation27_spill] sm:$0xff] }
 0xed1   : > { %v10044_v19 = vpop.permute.xlu1 %10043  ;;  %v7073_v3 = vsel %vm7065_vm6, %v7048_v41, %v10011_v31 }
 0xed2   : > { %v10046_v14 = vunpack.i.h.bf16 %v10044_v19  ;;  %v10045_v22 = vunpack.i.l.bf16 %v10044_v19 }
 0xed4   : > { %v7092_v35 = vsel %vm1871_vm5, %v13723_v47, %v10045_v22  ;;  %v7093_v13 = vsel %vm1871_vm5, %v13726_v21, %v10046_v14 }
 0xed5   : > { %v7115_v52 = vpack.c.bf16 %v7093_v13, %v7092_v35  ;;  %v10049_v37 = vpop.permute.xlu1 %10048 }
 0xed6   : > { %v10051_v50 = vunpack.i.h.bf16 %v10049_v37  ;;  %v10050_v36 = vunpack.i.l.bf16 %v10049_v37 }
 0xed8   : > { %v7091_v61 = vsel %vm1871_vm5, %v7067_v8, %v10051_v50  ;;  %v7090_v47 = vsel %vm1871_vm5, %v7066_v9, %v10050_v36  ;;  %v10036_v50 = vunpack.i.h.bf16 %v13792_v59  ;;  %v10035_v8 = vunpack.i.l.bf16 %v13792_v59 }
 0xed9   : > { %v7114_v24 = vpack.c.bf16 %v7091_v61, %v7090_v47  ;;  %v13814_v21 = vpop.permute.xlu1 %10053  ;;  %v10061_v47 = vunpack.i.h.bf16 %v13818_v15 }
 0xeda   : > { %v10056_v34 = vunpack.i.h.bf16 %v13814_v21  ;;  %v10055_v40 = vunpack.i.l.bf16 %v13814_v21 }
 0xedb   : > { %9727 = vmatprep.mubr.msk.bf16.mxu1 %vm712_vm2, %v7114_v24  ;;  %v10060_v24 = vunpack.i.l.bf16 %v13818_v15 }
 0xedc   : > { %9728 = vmatmul.mubr.msk.bf16.vlgmr.msra.gmra.mrb[128].mxu1 %vm712_vm2, %v7115_v52  ;;  %v7056_v6 = vsel %vm1300_vm3, %v14813_v60, %v10056_v34  ;;  %v7055_v21 = vsel %vm1300_vm3, %v14814_v2, %v10055_v40  ;;  %v14822_v60 = vld [vmem:[#allocation31_spill] sm:$0xff] }
 0xedd   : > { %v10064_v39 = vpop.permute.xlu1 %10063  ;;  %9731 = vmatprep.mubr.msk.bf16.mxu1 %vm712_vm2, %v7116_v16  ;;  %v14812_v16 = vld [vmem:[#allocation20_spill] sm:$0xff] }
 0xede   : > { %v10066_v12 = vunpack.i.h.bf16 %v10064_v39  ;;  %v10065_v17 = vunpack.i.l.bf16 %v10064_v39  ;;  %v7047_v19 = vsel %vm1300_vm3, %v14812_v16, %v10000_v18  ;;  %v7054_v18 = vsel %vm1300_vm3, %v14815_v1, %v10036_v50 }
 0xedf   : > { %v10069_v4 = vpop.permute.xlu0 %10068  ;;  %v7072_v22 = vsel %vm7065_vm6, %v7047_v19, %v10010_v26  ;;  %v14816_v26 = vld [vmem:[#allocation26_spill] sm:$0xff] }
 0xee0   : > { %v7101_v27 = vsel %vm1871_vm5, %v7077_v44, %v10066_v12  ;;  %v7100_v54 = vsel %vm1871_vm5, %v7076_v25, %v10065_v17  ;;  %v10071_v23 = vunpack.i.h.bf16 %v10069_v4  ;;  %v10070_v32 = vunpack.i.l.bf16 %v10069_v4 }
 0xee1   : > { %v7119_v58 = vpack.c.bf16 %v7101_v27, %v7100_v54  ;;  %v7053_v43 = vsel %vm1300_vm3, %v14816_v26, %v10035_v8  ;;  %v7079_v25 = vsel %vm7065_vm6, %v7054_v18, %v10061_v47  ;;  %v14817_v27 = vld [vmem:[#allocation22_spill] sm:$0xff] }
 0xee2   : > { %v7098_v63 = vsel %vm1871_vm5, %v7074_v51, %v10070_v32  ;;  %v7099_v11 = vsel %vm1871_vm5, %v7075_v42, %v10071_v23  ;;  %v10074_v30 = vpop.permute.xlu1 %10073  ;;  %v7078_v17 = vsel %vm7065_vm6, %v7053_v43, %v10060_v24  ;;  %v14818_v23 = vld [vmem:[#allocation24_spill] sm:$0xff] }
 0xee3   : > { %v7118_v56 = vpack.c.bf16 %v7099_v11, %v7098_v63  ;;  %v10076_v10 = vunpack.i.h.bf16 %v10074_v30  ;;  %v10075_v14 = vunpack.i.l.bf16 %v10074_v30  ;;  %v10084_v45 = vpop.permute.xlu0 %10083 }
 0xee4   : > { %v10086_v15 = vunpack.i.h.bf16 %v10084_v45  ;;  %v10085_v48 = vunpack.i.l.bf16 %v10084_v45 }
 0xee5   : > { %v7097_v38 = vsel %vm1871_vm5, %v7073_v3, %v10076_v10  ;;  %v7096_v35 = vsel %vm1871_vm5, %v7072_v22, %v10075_v14 }
 0xee6   : > { %v7117_v13 = vpack.c.bf16 %v7097_v38, %v7096_v35  ;;  %v10079_v52 = vpop.permute.xlu1 %10078  ;;  %v7058_v54 = vsel %vm1300_vm3, %v14817_v27, %v10086_v15  ;;  %v7057_v32 = vsel %vm1300_vm3, %v14818_v23, %v10085_v48  ;;  %v14819_v38 = vld [vmem:[#allocation33_spill] sm:$0xff]  ;;  %v14823_v48 = vld [vmem:[#allocation28_spill] sm:$0xff] }
 0xee7   : > { %v10081_v36 = vunpack.i.h.bf16 %v10079_v52  ;;  %v10080_v9 = vunpack.i.l.bf16 %v10079_v52  ;;  %v10094_v61 = vpop.permute.xlu0 %10093  ;;  %v13922_v23 = vld [vmem:[%s10889_s25] sm:$0xff] }
 0xee8   : > { %9732 = vmatmul.mubr.msk.bf16.gmra.mrb[132].mxu1 %vm712_vm2, %v7117_v13  ;;  %v10096_v44 = vunpack.i.h.bf16 %v10094_v61  ;;  %v10095_v57 = vunpack.i.l.bf16 %v10094_v61  ;;  %v14820_v13 = vld [vmem:[#allocation32_spill] sm:$0xff]  ;;  %v14821_v61 = vld [vmem:[#allocation29_spill] sm:$0xff] }
 0xee9   : > { %9735 = vmatprep.mubr.msk.bf16.mxu1 %vm712_vm2, %v7118_v56  ;;  %v7081_v31 = vsel %vm7065_vm6, %v7056_v6, %v10081_v36  ;;  %v7080_v59 = vsel %vm7065_vm6, %v7055_v21, %v10080_v9 }
 0xeea   : > { %v10089_v37 = vpop.permute.xlu1 %10088  ;;  %v7083_v29 = vsel %vm7065_vm6, %v7058_v54, %v10096_v44 }
 0xeeb   : > { %v10091_v16 = vunpack.i.h.bf16 %v10089_v37  ;;  %v10090_v19 = vunpack.i.l.bf16 %v10089_v37 }
 0xeed   : > { %v7060_v35 = vsel %vm1300_vm3, %v14819_v38, %v10091_v16  ;;  %v7059_v52 = vsel %vm1300_vm3, %v14820_v13, %v10090_v19  ;;  %v10704_v16 = vld [vmem:[#allocation2 + $0x8] sm:$0xff] }
 0xeee   : > { %v13855_v0 = vpop.permute.xlu1 %10098 }
 0xeef   : > { %v10101_v10 = vunpack.i.h.bf16 %v13855_v0  ;;  %v10100_v14 = vunpack.i.l.bf16 %v13855_v0 }
 0xef0   : > { %9736 = vmatmul.mubr.msk.bf16.gmra.mrb[136].mxu1 %vm712_vm2, %v7119_v58  ;;  %v7082_v58 = vsel %vm7065_vm6, %v7057_v32, %v10095_v57 }
 0xef1   : > { %v7084_v9 = vsel %vm7065_vm6, %v7059_v52, %v10100_v14  ;;  %v7085_v8 = vsel %vm7065_vm6, %v7060_v35, %v10101_v10  ;;  %v10705_v10 = vld [vmem:[#allocation2 + $0x18] sm:$0xff] }
 0xef3   : > { %v10104_v33 = vpop.permute.xlu1 %10103 }
 0xef4   : > { %v10106_v20 = vunpack.i.h.bf16 %v10104_v33  ;;  %v10105_v7 = vunpack.i.l.bf16 %v10104_v33 }
 0xef6   : > { %v7105_v28 = vsel %vm1871_vm5, %v7081_v31, %v10106_v20  ;;  %v7104_v39 = vsel %vm1871_vm5, %v7080_v59, %v10105_v7  ;;  %v10109_v46 = vpop.permute.xlu0 %10108 }
 0xef7   : > { %v7121_v49 = vpack.c.bf16 %v7105_v28, %v7104_v39  ;;  %v10111_v62 = vunpack.i.h.bf16 %v10109_v46  ;;  %v10110_v12 = vunpack.i.l.bf16 %v10109_v46  ;;  %v10124_v56 = vpop.permute.xlu1 %10123 }
 0xef8   : > { %v10126_v1 = vunpack.i.h.bf16 %v10124_v56  ;;  %v10125_v18 = vunpack.i.l.bf16 %v10124_v56 }
 0xef9   : > { %v7102_v53 = vsel %vm1871_vm5, %v7078_v17, %v10110_v12  ;;  %v7103_v55 = vsel %vm1871_vm5, %v7079_v25, %v10111_v62  ;;  %v14824_v62 = vld [vmem:[#allocation30_spill] sm:$0xff] }
 0xefa   : > { %v7120_v5 = vpack.c.bf16 %v7103_v55, %v7102_v53  ;;  %v10114_v4 = vpop.permute.xlu0 %10113  ;;  %v7063_v12 = vsel %vm1300_vm3, %v14824_v62, %v10125_v18  ;;  %v10710_v18 = vld [vmem:[#allocation2 + $0x50] sm:$0xff] }
 0xefb   : > { %v10116_v51 = vunpack.i.h.bf16 %v10114_v4  ;;  %v10115_v42 = vunpack.i.l.bf16 %v10114_v4  ;;  %v14825_v4 = vld [vmem:[#allocation6_spill] sm:$0xff] }
 0xefc   : > { %9739 = vmatprep.mubr.msk.bf16.mxu1 %vm712_vm2, %v7120_v5  ;;  %v14674_v27 = vsub.s32 1, %v14825_v4 }
 0xefd   : > { %v7106_v41 = vsel %vm1871_vm5, %v7082_v58, %v10115_v42  ;;  %v7107_v63 = vsel %vm1871_vm5, %v7083_v29, %v10116_v51  ;;  %9740 = vmatmul.mubr.msk.bf16.gmra.mrb[140].mxu1 %vm712_vm2, %v7121_v49  ;;  %v7064_v49 = vsel %vm1300_vm3, %v14823_v48, %v10126_v1  ;;  %v10702_v42 = vld [vmem:[#allocation2 + $0x10] sm:$0xff]  ;;  %v10703_v29 = vld [vmem:[#allocation2] sm:$0xff] }
 0xefe   : > { %v7122_v11 = vpack.c.bf16 %v7107_v63, %v7106_v41  ;;  %v10119_v30 = vpop.permute.xlu0 %10118  ;;  %v13927_v32 = vrot.slane %v13922_v23, %v14674_v27 }
 0xeff   : > { %v10121_v22 = vunpack.i.h.bf16 %v10119_v30  ;;  %v10120_v45 = vunpack.i.l.bf16 %v10119_v30 }
 0xf00   : > { %9743 = vmatprep.mubr.msk.bf16.mxu1 %vm712_vm2, %v7122_v11 }
 0xf01   : > { %v7062_v0 = vsel %vm1300_vm3, %v14821_v61, %v10121_v22  ;;  %v7061_v6 = vsel %vm1300_vm3, %v14822_v60, %v10120_v45 }
 0xf02   : > { %v10129_v3 = vpop.permute.xlu0 %10128 }
 0xf03   : > { %v10134_v34 = vpop.permute.xlu1 %10133  ;;  %v10131_v40 = vunpack.i.h.bf16 %v10129_v3  ;;  %v10130_v50 = vunpack.i.l.bf16 %v10129_v3 }
 0xf04   : > { %v10136_v37 = vunpack.i.h.bf16 %v10134_v34  ;;  %v10135_v36 = vunpack.i.l.bf16 %v10134_v34  ;;  %v10706_v34 = vld [vmem:[#allocation2 + $0x30] sm:$0xff] }
 0xf05   : > { %v7086_v31 = vsel %vm7065_vm6, %v7061_v6, %v10130_v50  ;;  %v7087_v59 = vsel %vm7065_vm6, %v7062_v0, %v10131_v40  ;;  %v10707_v50 = vld [vmem:[#allocation2 + $0x20] sm:$0xff]  ;;  %v10708_v0 = vld [vmem:[#allocation2 + $0x38] sm:$0xff] }
 0xf06   : > { %v7109_v47 = vsel %vm1871_vm5, %v7085_v8, %v10136_v37  ;;  %v7108_v24 = vsel %vm1871_vm5, %v7084_v9, %v10135_v36  ;;  %v10144_v33 = vpop.permute.xlu0 %10143 }
 0xf07   : > { %v7123_v2 = vpack.c.bf16 %v7109_v47, %v7108_v24  ;;  %v10146_v21 = vunpack.i.h.bf16 %v10144_v33  ;;  %v10145_v20 = vunpack.i.l.bf16 %v10144_v33  ;;  %v10139_v7 = vpop.permute.xlu1 %10138  ;;  %v10709_v24 = vld [vmem:[#allocation2 + $0x28] sm:$0xff] }
 0xf08   : > { %v10141_v15 = vunpack.i.h.bf16 %v10139_v7  ;;  %v10140_v28 = vunpack.i.l.bf16 %v10139_v7 }
 0xf09   : > { %v7110_v26 = vsel %vm1871_vm5, %v7086_v31, %v10145_v20  ;;  %v7111_v43 = vsel %vm1871_vm5, %v7087_v59, %v10146_v21  ;;  %9744 = vmatmul.mubr.msk.bf16.gmra.mrb[144].mxu1 %vm712_vm2, %v7123_v2  ;;  %v10711_v59 = vld [vmem:[#allocation2 + $0x40] sm:$0xff] }
 0xf0a   : > { %v7124_v39 = vpack.c.bf16 %v7111_v43, %v7110_v26  ;;  %v7089_v44 = vsel %vm7065_vm6, %v7064_v49, %v10141_v15  ;;  %v7088_v57 = vsel %vm7065_vm6, %v7063_v12, %v10140_v28  ;;  %v10713_v49 = vld [vmem:[#allocation2 + $0x48] sm:$0xff] }
 0xf0b   : > { %v10149_v46 = vpop.permute.xlu1 %10148 }
 0xf0c   : > { %v10151_v17 = vunpack.i.h.bf16 %v10149_v46  ;;  %v10150_v25 = vunpack.i.l.bf16 %v10149_v46  ;;  %9747 = vmatprep.mubr.msk.bf16.mxu1 %vm712_vm2, %v7124_v39  ;;  %v10712_v46 = vld [vmem:[#allocation2 + $0x58] sm:$0xff] }
 0xf0e   : > { %v7113_v53 = vsel %vm1871_vm5, %v7089_v44, %v10151_v17  ;;  %v7112_v55 = vsel %vm1871_vm5, %v7088_v57, %v10150_v25 }
 0xf0f   : > { %v7125_v5 = vpack.c.bf16 %v7113_v53, %v7112_v55 }
 0xf11   : > { %9748 = vmatmul.mubr.msk.bf16.gmra.mrb[148].mxu1 %vm712_vm2, %v7125_v5 }
 0xfaf   : > { %v9729_v54 = vpop.f32.mrb[128].mxu1 }
 0xfb0   : > { %v7202_v51 = vpop.f32.mrb[129].mxu1  ;;  %v7299_v58 = vadd.f32 %v10702_v42, %v9729_v54  ;;  %v10714_v42 = vld [vmem:[#allocation2 + $0x70] sm:$0xff] }
 0xfb1   : > { %v7297_v41 = vadd.f32 %v10703_v29, %v7202_v51  ;;  %v9730_v63 = vpop.f32.mrb[130].mxu1  ;;  %v10715_v29 = vld [vmem:[#allocation2 + $0x60] sm:$0xff] }
 0xfb2   : > { %v7205_v11 = vpop.f32.mrb[131].mxu1  ;;  %v13933_v56 = vadd.f32 %v13927_v32, %v7299_v58  ;;  %v7300_v14 = vadd.f32 %v10705_v10, %v9730_v63 }
 0xfb3   : > { %v13930_v30 = vadd.f32 %v13927_v32, %v7297_v41  ;;  %v7298_v19 = vadd.f32 %v10704_v16, %v7205_v11 }
 0xfb4   : > { %v13943_v35 = vadd.f32 %v13927_v32, %v7300_v14  ;;  %v7355_v13 = vsel %vm712_vm2, %v13933_v56, 0.0  ;;  %v10717_v14 = vld [vmem:[#allocation2 + $0x68] sm:$0xff] }
 0xfb5   : > { %v13936_v22 = vadd.f32 %v13927_v32, %v7298_v19  ;;  %v7349_v3 = vsel %vm712_vm2, %v13930_v30, 0.0  ;;  %v10716_v19 = vld [vmem:[#allocation2 + $0x78] sm:$0xff] }
 0xfb6   : > { %7350 = vadd.xlane.f32.xlu0 %v7349_v3  ;;  %v7358_v9 = vsel %vm712_vm2, %v13943_v35, 0.0 }
 0xfb7   : > { %v7352_v38 = vsel %vm712_vm2, %v13936_v22, 0.0 }
 0xfb8   : > { %7353 = vadd.xlane.f32.xlu1 %v7352_v38 }
 0xfba   : > { %7356 = vadd.xlane.f32.xlu0 %v7355_v13 }
 0xfbb   : > { %v9733_v52 = vpop.f32.mrb[132].mxu1 }
 0xfbc   : > { %v7218_v45 = vpop.f32.mrb[133].mxu1  ;;  %v7303_v40 = vadd.f32 %v10706_v34, %v9733_v52 }
 0xfbd   : > { %v7301_v37 = vadd.f32 %v10707_v50, %v7218_v45  ;;  %v9734_v36 = vpop.f32.mrb[134].mxu1 }
 0xfbe   : > { %7359 = vadd.xlane.f32.xlu0 %v7358_v9  ;;  %v7221_v8 = vpop.f32.mrb[135].mxu1  ;;  %v7304_v47 = vadd.f32 %v10708_v0, %v9734_v36  ;;  %v13953_v60 = vadd.f32 %v13927_v32, %v7303_v40  ;;  %v10718_v9 = vld [vmem:[#allocation2 + $0x90] sm:$0xff]  ;;  %v10719_v0 = vld [vmem:[#allocation2 + $0x80] sm:$0xff] }
 0xfbf   : > { %v13950_v61 = vadd.f32 %v13927_v32, %v7301_v37  ;;  %v7302_v33 = vadd.f32 %v10709_v24, %v7221_v8 }
 0xfc0   : > { %v13961_v21 = vadd.f32 %v13927_v32, %v7304_v47  ;;  %v7367_v15 = vsel %vm712_vm2, %v13953_v60, 0.0 }
 0xfc1   : > { %v13956_v6 = vadd.f32 %v13927_v32, %v7302_v33  ;;  %v7361_v2 = vsel %vm712_vm2, %v13950_v61, 0.0 }
 0xfc2   : > { %7362 = vadd.xlane.f32.xlu0 %v7361_v2  ;;  %v7370_v12 = vsel %vm712_vm2, %v13961_v21, 0.0 }
 0xfc3   : > { %v9737_v20 = vpop.f32.mrb[136].mxu1  ;;  %v7364_v7 = vsel %vm712_vm2, %v13956_v6, 0.0 }
 0xfc4   : > { %7365 = vadd.xlane.f32.xlu1 %v7364_v7  ;;  %v7234_v1 = vpop.f32.mrb[137].mxu1  ;;  %v7307_v31 = vadd.f32 %v10710_v18, %v9737_v20  ;;  %v10720_v20 = vld [vmem:[#allocation2 + $0x98] sm:$0xff] }
 0xfc5   : > { %v7305_v26 = vadd.f32 %v10711_v59, %v7234_v1  ;;  %v9738_v43 = vpop.f32.mrb[138].mxu1  ;;  %v10721_v1 = vld [vmem:[#allocation2 + $0x88] sm:$0xff] }
 0xfc6   : > { %7368 = vadd.xlane.f32.xlu0 %v7367_v15  ;;  %v7237_v28 = vpop.f32.mrb[139].mxu1  ;;  %v7308_v48 = vadd.f32 %v10712_v46, %v9738_v43  ;;  %v13973_v17 = vadd.f32 %v13927_v32, %v7307_v31 }
 0xfc7   : > { %v13968_v39 = vadd.f32 %v13927_v32, %v7305_v26  ;;  %v7306_v62 = vadd.f32 %v10713_v49, %v7237_v28 }
 0xfc8   : > { %7371 = vadd.xlane.f32.xlu1 %v7370_v12  ;;  %v13981_v57 = vadd.f32 %v13927_v32, %v7308_v48  ;;  %v7379_v55 = vsel %vm712_vm2, %v13973_v17, 0.0  ;;  %v10722_v48 = vld [vmem:[#allocation2 + $0xb0] sm:$0xff] }
 0xfc9   : > { %v13976_v25 = vadd.f32 %v13927_v32, %v7306_v62  ;;  %v7373_v44 = vsel %vm712_vm2, %v13968_v39, 0.0  ;;  %v10723_v62 = vld [vmem:[#allocation2 + $0xa0] sm:$0xff] }
 0xfca   : > { %7374 = vadd.xlane.f32.xlu0 %v7373_v44  ;;  %v7382_v5 = vsel %vm712_vm2, %v13981_v57, 0.0 }
 0xfcb   : > { %v7376_v53 = vsel %vm712_vm2, %v13976_v25, 0.0 }
 0xfcc   : > { %7377 = vadd.xlane.f32.xlu1 %v7376_v53 }
 0xfce   : > { %7380 = vadd.xlane.f32.xlu0 %v7379_v55 }
 0xfd0   : > { %7383 = vadd.xlane.f32.xlu1 %v7382_v5  ;;  %v9741_v54 = vpop.f32.mrb[140].mxu1 }
 0xfd1   : > { %v7250_v51 = vpop.f32.mrb[141].mxu1  ;;  %v7311_v58 = vadd.f32 %v10714_v42, %v9741_v54  ;;  %v10724_v54 = vld [vmem:[#allocation2 + $0xb8] sm:$0xff]  ;;  %v10725_v42 = vld [vmem:[#allocation2 + $0xa8] sm:$0xff] }
 0xfd2   : > { %v7309_v41 = vadd.f32 %v10715_v29, %v7250_v51  ;;  %v9742_v63 = vpop.f32.mrb[142].mxu1 }
 0xfd3   : > { %v7253_v11 = vpop.f32.mrb[143].mxu1  ;;  %v7312_v10 = vadd.f32 %v10716_v19, %v9742_v63  ;;  %v13993_v38 = vadd.f32 %v13927_v32, %v7311_v58 }
 0xfd4   : > { %v13990_v16 = vadd.f32 %v13927_v32, %v7309_v41  ;;  %v7310_v3 = vadd.f32 %v10717_v14, %v7253_v11 }
 0xfd5   : > { %v14001_v45 = vadd.f32 %v13927_v32, %v7312_v10  ;;  %v7391_v40 = vsel %vm712_vm2, %v13993_v38, 0.0 }
 0xfd6   : > { %v13996_v13 = vadd.f32 %v13927_v32, %v7310_v3  ;;  %v7385_v52 = vsel %vm712_vm2, %v13990_v16, 0.0 }
 0xfd7   : > { %7386 = vadd.xlane.f32.xlu0 %v7385_v52  ;;  %v7394_v37 = vsel %vm712_vm2, %v14001_v45, 0.0 }
 0xfd8   : > { %v7388_v34 = vsel %vm712_vm2, %v13996_v13, 0.0 }
 0xfd9   : > { %7389 = vadd.xlane.f32.xlu1 %v7388_v34 }
 0xfdb   : > { %7392 = vadd.xlane.f32.xlu0 %v7391_v40 }
 0xfdc   : > { %v9745_v50 = vpop.f32.mrb[144].mxu1 }
 0xfdd   : > { %7395 = vadd.xlane.f32.xlu1 %v7394_v37  ;;  %v7266_v36 = vpop.f32.mrb[145].mxu1  ;;  %v7315_v8 = vadd.f32 %v10718_v9, %v9745_v50 }
 0xfde   : > { %v7313_v47 = vadd.f32 %v10719_v0, %v7266_v36  ;;  %v9746_v24 = vpop.f32.mrb[146].mxu1 }
 0xfdf   : > { %v7269_v33 = vpop.f32.mrb[147].mxu1  ;;  %v7316_v7 = vadd.f32 %v10720_v20, %v9746_v24  ;;  %v14013_v31 = vadd.f32 %v13927_v32, %v7315_v8 }
 0xfe0   : > { %v14010_v2 = vadd.f32 %v13927_v32, %v7313_v47  ;;  %v7314_v18 = vadd.f32 %v10721_v1, %v7269_v33 }
 0xfe1   : > { %v14021_v43 = vadd.f32 %v13927_v32, %v7316_v7  ;;  %v7403_v53 = vsel %vm712_vm2, %v14013_v31, 0.0 }
 0xfe2   : > { %v14016_v59 = vadd.f32 %v13927_v32, %v7314_v18  ;;  %v7397_v26 = vsel %vm712_vm2, %v14010_v2, 0.0 }
 0xfe3   : > { %7398 = vadd.xlane.f32.xlu0 %v7397_v26  ;;  %v7406_v29 = vsel %vm712_vm2, %v14021_v43, 0.0 }
 0xfe4   : > { %14826 = vst [vmem:[#allocation38_spill] sm:$0xff] %v14016_v59  ;;  %v9749_v15 = vpop.f32.mrb[148].mxu1  ;;  %v7400_v28 = vsel %vm712_vm2, %v14016_v59, 0.0 }
 0xfe5   : > { %7401 = vadd.xlane.f32.xlu1 %v7400_v28  ;;  %v7282_v46 = vpop.f32.mrb[149].mxu1  ;;  %v7319_v49 = vadd.f32 %v10722_v48, %v9749_v15 }
 0xfe6   : > { %v7317_v12 = vadd.f32 %v10723_v62, %v7282_v46  ;;  %v9750_v44 = vpop.f32.mrb[150].mxu1 }
 0xfe7   : > { %7404 = vadd.xlane.f32.xlu0 %v7403_v53  ;;  %v7285_v55 = vpop.f32.mrb[151].mxu1  ;;  %v7320_v51 = vadd.f32 %v10724_v54, %v9750_v44  ;;  %v14033_v41 = vadd.f32 %v13927_v32, %v7319_v49 }
 0xfe8   : > { %v14028_v5 = vadd.f32 %v13927_v32, %v7317_v12  ;;  %v7318_v58 = vadd.f32 %v10725_v42, %v7285_v55 }
 0xfe9   : > { %7407 = vadd.xlane.f32.xlu1 %v7406_v29  ;;  %14828 = vst [vmem:[#allocation43_spill] sm:$0xff] %v14033_v41  ;;  %v14041_v19 = vadd.f32 %v13927_v32, %v7320_v51  ;;  %v7415_v14 = vsel %vm712_vm2, %v14033_v41, 0.0 }
 0xfea   : > { %14827 = vst [vmem:[#allocation44_spill] sm:$0xff] %v14028_v5  ;;  %v14036_v63 = vadd.f32 %v13927_v32, %v7318_v58  ;;  %v7409_v11 = vsel %vm712_vm2, %v14028_v5, 0.0 }
 0xfeb   : > { %7410 = vadd.xlane.f32.xlu0 %v7409_v11  ;;  %14830 = vst [vmem:[#allocation37_spill] sm:$0xff] %v14041_v19  ;;  %v7418_v3 = vsel %vm712_vm2, %v14041_v19, 0.0 }
 0xfec   : > { %14829 = vst [vmem:[#allocation35_spill] sm:$0xff] %v14036_v63  ;;  %v7412_v10 = vsel %vm712_vm2, %v14036_v63, 0.0 }
 0xfed   : > { %7413 = vadd.xlane.f32.xlu1 %v7412_v10 }
 0xfef   : > { %7416 = vadd.xlane.f32.xlu0 %v7415_v14 }
 0xff1   : > { %7419 = vadd.xlane.f32.xlu1 %v7418_v3 }
0x1043   : > { %v7351_v52 = vpop.xlane.xlu0 %7350 }
0x1044   : > { %v7421_v34 = vmul.f32 0.03125, %v7351_v52 }
0x1045   : > { %v7354_v40 = vpop.xlane.xlu1 %7353 }
0x1046   : > { %v14050_v50 = vsub.f32 %v13930_v30, %v7421_v34  ;;  %v7422_v32 = vmul.f32 0.03125, %v7354_v40 }
0x1047   : > { %v7357_v37 = vpop.xlane.xlu0 %7356 }
0x1048   : > { %v14053_v36 = vsub.f32 %v13936_v22, %v7422_v32  ;;  %v7423_v9 = vmul.f32 0.03125, %v7357_v37  ;;  %v7469_v8 = vmul.f32 %v14050_v50, %v14050_v50 }
0x104a   : > { %v14058_v0 = vsub.f32 %v13933_v56, %v7423_v9  ;;  %v7493_v47 = vsel %vm712_vm2, %v7469_v8, 0.0  ;;  %v7470_v24 = vmul.f32 %v14053_v36, %v14053_v36 }
0x104b   : > { %v7360_v33 = vpop.xlane.xlu0 %7359  ;;  %7494 = vadd.xlane.f32.xlu0 %v7493_v47 }
0x104c   : > { %v7424_v20 = vmul.f32 0.03125, %v7360_v33  ;;  %v7496_v7 = vsel %vm712_vm2, %v7470_v24, 0.0  ;;  %v7471_v1 = vmul.f32 %v14058_v0, %v14058_v0 }
0x104d   : > { %7497 = vadd.xlane.f32.xlu1 %v7496_v7 }
0x104e   : > { %v14067_v18 = vsub.f32 %v13943_v35, %v7424_v20  ;;  %v7499_v26 = vsel %vm712_vm2, %v7471_v1, 0.0 }
0x104f   : > { %v7363_v15 = vpop.xlane.xlu0 %7362  ;;  %7500 = vadd.xlane.f32.xlu0 %v7499_v26 }
0x1050   : > { %v7425_v28 = vmul.f32 0.03125, %v7363_v15  ;;  %v7472_v46 = vmul.f32 %v14067_v18, %v14067_v18 }
0x1051   : > { %v7366_v48 = vpop.xlane.xlu1 %7365 }
0x1052   : > { %v14073_v49 = vsub.f32 %v13950_v61, %v7425_v28  ;;  %v7426_v62 = vmul.f32 0.03125, %v7366_v48  ;;  %v7502_v12 = vsel %vm712_vm2, %v7472_v46, 0.0 }
0x1053   : > { %v7369_v44 = vpop.xlane.xlu0 %7368  ;;  %7503 = vadd.xlane.f32.xlu1 %v7502_v12 }
0x1054   : > { %v14077_v53 = vsub.f32 %v13956_v6, %v7426_v62  ;;  %v7427_v55 = vmul.f32 0.03125, %v7369_v44  ;;  %v7473_v54 = vmul.f32 %v14073_v49, %v14073_v49 }
0x1055   : > { %v7372_v51 = vpop.xlane.xlu1 %7371 }
0x1056   : > { %v14082_v42 = vsub.f32 %v13953_v60, %v7427_v55  ;;  %v7428_v58 = vmul.f32 0.03125, %v7372_v51  ;;  %v7505_v29 = vsel %vm712_vm2, %v7473_v54, 0.0  ;;  %v7474_v11 = vmul.f32 %v14077_v53, %v14077_v53 }
0x1057   : > { %v7375_v10 = vpop.xlane.xlu0 %7374  ;;  %7506 = vadd.xlane.f32.xlu0 %v7505_v29 }
0x1058   : > { %v14088_v14 = vsub.f32 %v13961_v21, %v7428_v58  ;;  %v7429_v3 = vmul.f32 0.03125, %v7375_v10  ;;  %v7508_v52 = vsel %vm712_vm2, %v7474_v11, 0.0  ;;  %v7475_v34 = vmul.f32 %v14082_v42, %v14082_v42 }
0x1059   : > { %v7378_v40 = vpop.xlane.xlu1 %7377  ;;  %7509 = vadd.xlane.f32.xlu1 %v7508_v52 }
0x105a   : > { %v14094_v32 = vsub.f32 %v13968_v39, %v7429_v3  ;;  %v7430_v37 = vmul.f32 0.03125, %v7378_v40  ;;  %v7511_v9 = vsel %vm712_vm2, %v7475_v34, 0.0  ;;  %v7476_v8 = vmul.f32 %v14088_v14, %v14088_v14 }
0x105b   : > { %v7381_v47 = vpop.xlane.xlu0 %7380  ;;  %7512 = vadd.xlane.f32.xlu0 %v7511_v9 }
0x105c   : > { %v14100_v24 = vsub.f32 %v13976_v25, %v7430_v37  ;;  %v7431_v33 = vmul.f32 0.03125, %v7381_v47  ;;  %v7514_v20 = vsel %vm712_vm2, %v7476_v8, 0.0  ;;  %v7477_v7 = vmul.f32 %v14094_v32, %v14094_v32 }
0x105d   : > { %v7384_v1 = vpop.xlane.xlu1 %7383  ;;  %7515 = vadd.xlane.f32.xlu1 %v7514_v20 }
0x105e   : > { %v14106_v26 = vsub.f32 %v13973_v17, %v7431_v33  ;;  %v7432_v15 = vmul.f32 0.03125, %v7384_v1  ;;  %v7517_v28 = vsel %vm712_vm2, %v7477_v7, 0.0  ;;  %v7478_v46 = vmul.f32 %v14100_v24, %v14100_v24 }
0x105f   : > { %7518 = vadd.xlane.f32.xlu0 %v7517_v28 }
0x1060   : > { %v14112_v48 = vsub.f32 %v13981_v57, %v7432_v15  ;;  %v7520_v62 = vsel %vm712_vm2, %v7478_v46, 0.0  ;;  %v7479_v12 = vmul.f32 %v14106_v26, %v14106_v26  ;;  %v10156_v46 = vld [vmem:[%s10879_s19 + $0x4] ss:$8 sps:$4 sm:$0xff]  }
0x1061   : > { %7521 = vadd.xlane.f32.xlu1 %v7520_v62  ;;  %9751 = vmatprep.subr.bf16.mxu0 %v10156_v46 }
0x1062   : > { %v7523_v44 = vsel %vm712_vm2, %v7479_v12, 0.0  ;;  %v7480_v55 = vmul.f32 %v14112_v48, %v14112_v48  ;;  %9752 = vmatpush3.bf16.msra.mxu0 %v10156_v46 }
0x1063   : > { %7524 = vadd.xlane.f32.xlu0 %v7523_v44 }
0x1064   : > { %v7387_v54 = vpop.xlane.xlu0 %7386  ;;  %v7526_v51 = vsel %vm712_vm2, %v7480_v55, 0.0 }
0x1065   : > { %v7433_v58 = vmul.f32 0.03125, %v7387_v54  ;;  %7527 = vadd.xlane.f32.xlu1 %v7526_v51 }
0x1066   : > { %v7390_v29 = vpop.xlane.xlu1 %7389 }
0x1067   : > { %v14122_v11 = vsub.f32 %v13990_v16, %v7433_v58  ;;  %v7434_v10 = vmul.f32 0.03125, %v7390_v29  ;;  %v10157_v58 = vld [vmem:[%s10879_s19 + $0x14] ss:$8 sps:$4 sm:$0xff]  }
0x1068   : > { %v7393_v3 = vpop.xlane.xlu0 %7392  ;;  %9753 = vmatprep.subr.bf16.mxu0 %v10157_v58 }
0x1069   : > { %v14125_v52 = vsub.f32 %v13996_v13, %v7434_v10  ;;  %v7435_v34 = vmul.f32 0.03125, %v7393_v3  ;;  %v7481_v40 = vmul.f32 %v14122_v11, %v14122_v11  ;;  %9754 = vmatpush3.bf16.msra.mxu0 %v10157_v58 }
0x106a   : > { %v7396_v37 = vpop.xlane.xlu1 %7395 }
0x106b   : > { %v14130_v9 = vsub.f32 %v13993_v38, %v7435_v34  ;;  %v7436_v8 = vmul.f32 0.03125, %v7396_v37  ;;  %v7529_v47 = vsel %vm712_vm2, %v7481_v40, 0.0  ;;  %v7482_v33 = vmul.f32 %v14125_v52, %v14125_v52 }
0x106c   : > { %7530 = vadd.xlane.f32.xlu0 %v7529_v47 }
0x106d   : > { %v14136_v20 = vsub.f32 %v14001_v45, %v7436_v8  ;;  %v7532_v7 = vsel %vm712_vm2, %v7482_v33, 0.0  ;;  %v7483_v1 = vmul.f32 %v14130_v9, %v14130_v9 }
0x106e   : > { %7533 = vadd.xlane.f32.xlu1 %v7532_v7 }
0x106f   : > { %v7535_v15 = vsel %vm712_vm2, %v7483_v1, 0.0  ;;  %v7484_v28 = vmul.f32 %v14136_v20, %v14136_v20 }
0x1070   : > { %v7399_v62 = vpop.xlane.xlu0 %7398  ;;  %7536 = vadd.xlane.f32.xlu0 %v7535_v15 }
0x1071   : > { %v7437_v12 = vmul.f32 0.03125, %v7399_v62  ;;  %v7538_v44 = vsel %vm712_vm2, %v7484_v28, 0.0 }
0x1072   : > { %v7402_v55 = vpop.xlane.xlu1 %7401  ;;  %7539 = vadd.xlane.f32.xlu1 %v7538_v44 }
0x1073   : > { %v14147_v54 = vsub.f32 %v14010_v2, %v7437_v12  ;;  %v7438_v51 = vmul.f32 0.03125, %v7402_v55 }
0x1074   : > { %v7405_v29 = vpop.xlane.xlu0 %7404 }
0x1075   : > { %v14151_v10 = vsub.f32 %v14016_v59, %v7438_v51  ;;  %v7439_v3 = vmul.f32 0.03125, %v7405_v29  ;;  %v7485_v34 = vmul.f32 %v14147_v54, %v14147_v54 }
0x1076   : > { %v7408_v40 = vpop.xlane.xlu1 %7407 }
0x1077   : > { %v14156_v37 = vsub.f32 %v14013_v31, %v7439_v3  ;;  %v7440_v8 = vmul.f32 0.03125, %v7408_v40  ;;  %v7541_v47 = vsel %vm712_vm2, %v7485_v34, 0.0  ;;  %v7486_v33 = vmul.f32 %v14151_v10, %v14151_v10 }
0x1078   : > { %7542 = vadd.xlane.f32.xlu0 %v7541_v47  ;;  %v7411_v7 = vpop.xlane.xlu0 %7410 }
0x1079   : > { %v14162_v1 = vsub.f32 %v14021_v43, %v7440_v8  ;;  %v7441_v15 = vmul.f32 0.03125, %v7411_v7  ;;  %v7544_v28 = vsel %vm712_vm2, %v7486_v33, 0.0  ;;  %v7487_v46 = vmul.f32 %v14156_v37, %v14156_v37 }
0x107a   : > { %7545 = vadd.xlane.f32.xlu1 %v7544_v28  ;;  %v7414_v62 = vpop.xlane.xlu1 %7413 }
0x107b   : > { %v14168_v12 = vsub.f32 %v14028_v5, %v7441_v15  ;;  %v7442_v44 = vmul.f32 0.03125, %v7414_v62  ;;  %v7547_v55 = vsel %vm712_vm2, %v7487_v46, 0.0  ;;  %v7488_v51 = vmul.f32 %v14162_v1, %v14162_v1 }
0x107c   : > { %7548 = vadd.xlane.f32.xlu0 %v7547_v55  ;;  %v7417_v58 = vpop.xlane.xlu0 %7416 }
0x107d   : > { %v14174_v29 = vsub.f32 %v14036_v63, %v7442_v44  ;;  %v7443_v3 = vmul.f32 0.03125, %v7417_v58  ;;  %v7550_v34 = vsel %vm712_vm2, %v7488_v51, 0.0  ;;  %v7489_v40 = vmul.f32 %v14168_v12, %v14168_v12 }
0x107e   : > { %7551 = vadd.xlane.f32.xlu1 %v7550_v34  ;;  %v7420_v8 = vpop.xlane.xlu1 %7419  ;;  %v7663_v63 = vsub.s32 4, %v14825_v4 }
0x107f   : > { %v14180_v47 = vsub.f32 %v14033_v41, %v7443_v3  ;;  %v7444_v33 = vmul.f32 0.03125, %v7420_v8  ;;  %v7553_v7 = vsel %vm712_vm2, %v7489_v40, 0.0  ;;  %v7490_v15 = vmul.f32 %v14174_v29, %v14174_v29 }
0x1080   : > { %7554 = vadd.xlane.f32.xlu0 %v7553_v7 }
0x1081   : > { %v14186_v28 = vsub.f32 %v14041_v19, %v7444_v33  ;;  %v7556_v46 = vsel %vm712_vm2, %v7490_v15, 0.0  ;;  %v7491_v62 = vmul.f32 %v14180_v47, %v14180_v47 }
0x1082   : > { %7557 = vadd.xlane.f32.xlu1 %v7556_v46 }
0x1083   : > { %v7559_v44 = vsel %vm712_vm2, %v7491_v62, 0.0  ;;  %v7492_v55 = vmul.f32 %v14186_v28, %v14186_v28 }
0x1084   : > { %7560 = vadd.xlane.f32.xlu0 %v7559_v44 }
0x1085   : > { %v7562_v51 = vsel %vm712_vm2, %v7492_v55, 0.0 }
0x1086   : > { %7563 = vadd.xlane.f32.xlu1 %v7562_v51  ;;  %v14197_v51 = vrot.slane %v13922_v23, %v7663_v63 }
0x10d8   : > { %v7495_v58 = vpop.xlane.xlu0 %7494 }
0x10d9   : > { %v7565_v3 = vmul.f32 0.03125, %v7495_v58 }
0x10da   : > { %v7498_v34 = vpop.xlane.xlu1 %7497 }
0x10db   : > { %v7589_v40 = vadd.f32 1e-06, %v7565_v3  ;;  %v7566_v8 = vmul.f32 0.03125, %v7498_v34  ;;  %v7691_v3 = vsub.s32 5, %v14825_v4 }
0x10dc   : > { %v7501_v33 = vpop.xlane.xlu0 %7500 }
0x10dd   : > { %10594 = vrsqrt.f32 %v7589_v40  ;;  %v7590_v7 = vadd.f32 1e-06, %v7566_v8  ;;  %v7567_v15 = vmul.f32 0.03125, %v7501_v33  ;;  %v14204_v63 = vrot.slane %v13922_v23, %v7691_v3 }
0x10df   : > { %10596 = vrsqrt.f32 %v7590_v7  ;;  %v7591_v46 = vadd.f32 1e-06, %v7567_v15 }
0x10e0   : > { %v7504_v27 = vpop.xlane.xlu1 %7503 }
0x10e1   : > { %10598 = vrsqrt.f32 %v7591_v46  ;;  %v7568_v62 = vmul.f32 0.03125, %v7504_v27 }
0x10e3   : > { %v7592_v44 = vadd.f32 1e-06, %v7568_v62 }
0x10e4   : > { %v7507_v19 = vpop.xlane.xlu0 %7506 }
0x10e5   : > { %10600 = vrsqrt.f32 %v7592_v44  ;;  %v7569_v55 = vmul.f32 0.03125, %v7507_v19 }
0x10e6   : > { %v7510_v58 = vpop.xlane.xlu1 %7509 }
0x10e7   : > { %v10595_v34 = vpop.eup %10594  ;;  %v7593_v40 = vadd.f32 1e-06, %v7569_v55  ;;  %v7570_v8 = vmul.f32 0.03125, %v7510_v58 }
0x10e8   : > { %v7637_v33 = vmul.f32 %v10595_v34, %v14050_v50  ;;  %v7513_v7 = vpop.xlane.xlu0 %7512 }
0x10e9   : > { %v10597_v15 = vpop.eup %10596  ;;  %10602 = vrsqrt.f32 %v7593_v40  ;;  %v7594_v27 = vadd.f32 1e-06, %v7570_v8  ;;  %v7571_v46 = vmul.f32 0.03125, %v7513_v7 }
0x10ea   : > { %v7638_v62 = vmul.f32 %v10597_v15, %v14053_v36  ;;  %v7516_v44 = vpop.xlane.xlu1 %7515  ;;  %v7665_v19 = vmul.f32 %v14197_v51, %v7637_v33 }
0x10eb   : > { %v10599_v5 = vpop.eup %10598  ;;  %10604 = vrsqrt.f32 %v7594_v27  ;;  %v7595_v41 = vadd.f32 1e-06, %v7571_v46  ;;  %v7572_v55 = vmul.f32 0.03125, %v7516_v44 }
0x10ec   : > { %v7639_v58 = vmul.f32 %v10599_v5, %v14058_v0  ;;  %v7519_v50 = vpop.xlane.xlu0 %7518  ;;  %v7666_v34 = vmul.f32 %v14197_v51, %v7638_v62  ;;  %v7693_v36 = vadd.f32 %v14204_v63, %v7665_v19 }
0x10ed   : > { %10606 = vrsqrt.f32 %v7595_v41  ;;  %v7596_v40 = vadd.f32 1e-06, %v7572_v55  ;;  %v7573_v8 = vmul.f32 0.03125, %v7519_v50 }
0x10ee   : > { %v7522_v7 = vpop.xlane.xlu1 %7521  ;;  %v7694_v33 = vadd.f32 %v14204_v63, %v7666_v34  ;;  %v7667_v27 = vmul.f32 %v14197_v51, %v7639_v58 }
0x10ef   : > { %v10601_v15 = vpop.eup %10600  ;;  %10608 = vrsqrt.f32 %v7596_v40  ;;  %v7597_v3 = vadd.f32 1e-06, %v7573_v8  ;;  %v7574_v59 = vmul.f32 0.03125, %v7522_v7 }
0x10f0   : > { %v7640_v46 = vmul.f32 %v10601_v15, %v14067_v18  ;;  %v7525_v5 = vpop.xlane.xlu0 %7524  ;;  %v7717_v0 = vpack.c.bf16 %v7694_v33, %v7693_v36  ;;  %v7695_v58 = vadd.f32 %v14204_v63, %v7667_v27 }
0x10f1   : > { %10610 = vrsqrt.f32 %v7597_v3  ;;  %v7598_v62 = vadd.f32 1e-06, %v7574_v59  ;;  %v7575_v41 = vmul.f32 0.03125, %v7525_v5 }
0x10f2   : > { %v7668_v44 = vmul.f32 %v14197_v51, %v7640_v46  ;;  %9755 = vmatprep.mubr.msk.bf16.mxu0 %vm712_vm2, %v7717_v0  ;;  %v7528_v19 = vpop.xlane.xlu1 %7527 }
0x10f3   : > { %v10603_v55 = vpop.eup %10602  ;;  %10612 = vrsqrt.f32 %v7598_v62  ;;  %v7599_v50 = vadd.f32 1e-06, %v7575_v41  ;;  %v7576_v34 = vmul.f32 0.03125, %v7528_v19 }
0x10f4   : > { %v7641_v40 = vmul.f32 %v10603_v55, %v14073_v49  ;;  %v7696_v18 = vadd.f32 %v14204_v63, %v7668_v44 }
0x10f5   : > { %v10605_v8 = vpop.eup %10604  ;;  %10614 = vrsqrt.f32 %v7599_v50  ;;  %v7600_v7 = vadd.f32 1e-06, %v7576_v34 }
0x10f6   : > { %v7642_v59 = vmul.f32 %v10605_v8, %v14077_v53  ;;  %v7718_v36 = vpack.c.bf16 %v7696_v18, %v7695_v58  ;;  %v7669_v33 = vmul.f32 %v14197_v51, %v7641_v40 }
0x10f7   : > { %v10607_v15 = vpop.eup %10606  ;;  %10616 = vrsqrt.f32 %v7600_v7 }
0x10f8   : > { %v7643_v3 = vmul.f32 %v10607_v15, %v14082_v42  ;;  %9756 = vmatmul.mubr.msk.bf16.vlgmr.msra.gmra.mrb[152].mxu0 %vm712_vm2, %v7718_v36  ;;  %v7670_v49 = vmul.f32 %v14197_v51, %v7642_v59  ;;  %v7697_v62 = vadd.f32 %v14204_v63, %v7669_v33 }
0x10f9   : > { %v10609_v46 = vpop.eup %10608  ;;  %v7531_v27 = vpop.xlane.xlu0 %7530 }
0x10fa   : > { %v7644_v5 = vmul.f32 %v10609_v46, %v14088_v14  ;;  %v7577_v0 = vmul.f32 0.03125, %v7531_v27  ;;  %v7698_v53 = vadd.f32 %v14204_v63, %v7670_v49  ;;  %v7671_v19 = vmul.f32 %v14197_v51, %v7643_v3 }
0x10fb   : > { %v10611_v41 = vpop.eup %10610  ;;  %v7534_v44 = vpop.xlane.xlu1 %7533 }
0x10fc   : > { %v7645_v55 = vmul.f32 %v10611_v41, %v14094_v32  ;;  %v7601_v42 = vadd.f32 1e-06, %v7577_v0  ;;  %v7578_v50 = vmul.f32 0.03125, %v7534_v44  ;;  %v7719_v34 = vpack.c.bf16 %v7698_v53, %v7697_v62 }
0x10fd   : > { %v10613_v40 = vpop.eup %10612  ;;  %v7537_v58 = vpop.xlane.xlu0 %7536  ;;  %v7672_v18 = vmul.f32 %v14197_v51, %v7644_v5  ;;  %v7699_v33 = vadd.f32 %v14204_v63, %v7671_v19 }
0x10fe   : > { %v7646_v14 = vmul.f32 %v10613_v40, %v14100_v24  ;;  %10618 = vrsqrt.f32 %v7601_v42  ;;  %v7602_v8 = vadd.f32 1e-06, %v7578_v50  ;;  %v7579_v7 = vmul.f32 0.03125, %v7537_v58  ;;  %9759 = vmatprep.mubr.msk.bf16.mxu0 %vm712_vm2, %v7719_v34 }
0x10ff   : > { %v10615_v59 = vpop.eup %10614  ;;  %v7540_v36 = vpop.xlane.xlu1 %7539  ;;  %v7700_v32 = vadd.f32 %v14204_v63, %v7672_v18  ;;  %v7673_v15 = vmul.f32 %v14197_v51, %v7645_v55 }
0x1100   : > { %v7647_v3 = vmul.f32 %v10615_v59, %v14106_v26  ;;  %10620 = vrsqrt.f32 %v7602_v8  ;;  %v7603_v49 = vadd.f32 1e-06, %v7579_v7  ;;  %v7580_v46 = vmul.f32 0.03125, %v7540_v36 }
0x1101   : > { %v10617_v27 = vpop.eup %10616  ;;  %v7720_v24 = vpack.c.bf16 %v7700_v32, %v7699_v33  ;;  %v7674_v5 = vmul.f32 %v14197_v51, %v7646_v14  ;;  %v7701_v41 = vadd.f32 %v14204_v63, %v7673_v15 }
0x1102   : > { %v7648_v0 = vmul.f32 %v10617_v27, %v14112_v48  ;;  %10622 = vrsqrt.f32 %v7603_v49  ;;  %v7604_v62 = vadd.f32 1e-06, %v7580_v46  ;;  %v7675_v53 = vmul.f32 %v14197_v51, %v7647_v3 }
0x1103   : > { %9760 = vmatmul.mubr.msk.bf16.gmra.mrb[156].mxu0 %vm712_vm2, %v7720_v24  ;;  %v7702_v44 = vadd.f32 %v14204_v63, %v7674_v5 }
0x1104   : > { %10624 = vrsqrt.f32 %v7604_v62  ;;  %v7676_v26 = vmul.f32 %v14197_v51, %v7648_v0  ;;  %v7703_v50 = vadd.f32 %v14204_v63, %v7675_v53 }
0x1105   : > { %v7543_v19 = vpop.xlane.xlu0 %7542  ;;  %v7721_v55 = vpack.c.bf16 %v7702_v44, %v7701_v41 }
0x1106   : > { %v7581_v42 = vmul.f32 0.03125, %v7543_v19  ;;  %v7704_v48 = vadd.f32 %v14204_v63, %v7676_v26 }
0x1107   : > { %9763 = vmatprep.mubr.msk.bf16.mxu0 %vm712_vm2, %v7721_v55  ;;  %v7546_v34 = vpop.xlane.xlu1 %7545 }
0x1108   : > { %v10619_v40 = vpop.eup %10618  ;;  %v7605_v58 = vadd.f32 1e-06, %v7581_v42  ;;  %v7582_v18 = vmul.f32 0.03125, %v7546_v34  ;;  %v7722_v14 = vpack.c.bf16 %v7704_v48, %v7703_v50 }
0x1109   : > { %v7649_v8 = vmul.f32 %v10619_v40, %v14122_v11  ;;  %v7549_v7 = vpop.xlane.xlu0 %7548 }
0x110a   : > { %v10621_v59 = vpop.eup %10620  ;;  %10626 = vrsqrt.f32 %v7605_v58  ;;  %v7606_v36 = vadd.f32 1e-06, %v7582_v18  ;;  %v7583_v33 = vmul.f32 0.03125, %v7549_v7 }
0x110b   : > { %v7650_v32 = vmul.f32 %v10621_v59, %v14125_v52  ;;  %9764 = vmatmul.mubr.msk.bf16.gmra.mrb[160].mxu0 %vm712_vm2, %v7722_v14  ;;  %v7552_v15 = vpop.xlane.xlu1 %7551  ;;  %v7677_v3 = vmul.f32 %v14197_v51, %v7649_v8 }
0x110c   : > { %v10623_v49 = vpop.eup %10622  ;;  %10628 = vrsqrt.f32 %v7606_v36  ;;  %v7607_v46 = vadd.f32 1e-06, %v7583_v33  ;;  %v7584_v27 = vmul.f32 0.03125, %v7552_v15 }
0x110d   : > { %v7651_v24 = vmul.f32 %v10623_v49, %v14130_v9  ;;  %v7555_v5 = vpop.xlane.xlu0 %7554  ;;  %v7678_v11 = vmul.f32 %v14197_v51, %v7650_v32  ;;  %v7705_v44 = vadd.f32 %v14204_v63, %v7677_v3 }
0x110e   : > { %v10625_v0 = vpop.eup %10624  ;;  %10630 = vrsqrt.f32 %v7607_v46  ;;  %v7608_v62 = vadd.f32 1e-06, %v7584_v27  ;;  %v7585_v53 = vmul.f32 0.03125, %v7555_v5 }
0x110f   : > { %v7652_v52 = vmul.f32 %v10625_v0, %v14136_v20  ;;  %v7558_v41 = vpop.xlane.xlu1 %7557  ;;  %v7706_v26 = vadd.f32 %v14204_v63, %v7678_v11  ;;  %v7679_v19 = vmul.f32 %v14197_v51, %v7651_v24 }
0x1110   : > { %10632 = vrsqrt.f32 %v7608_v62  ;;  %v7609_v55 = vadd.f32 1e-06, %v7585_v53  ;;  %v7586_v42 = vmul.f32 0.03125, %v7558_v41 }
0x1111   : > { %v7561_v9 = vpop.xlane.xlu0 %7560  ;;  %v7723_v50 = vpack.c.bf16 %v7706_v26, %v7705_v44  ;;  %v7680_v48 = vmul.f32 %v14197_v51, %v7652_v52  ;;  %v7707_v58 = vadd.f32 %v14204_v63, %v7679_v19 }
0x1112   : > { %10634 = vrsqrt.f32 %v7609_v55  ;;  %v7610_v34 = vadd.f32 1e-06, %v7586_v42  ;;  %v7587_v40 = vmul.f32 0.03125, %v7561_v9 }
0x1113   : > { %9767 = vmatprep.mubr.msk.bf16.mxu0 %vm712_vm2, %v7723_v50  ;;  %v7564_v20 = vpop.xlane.xlu1 %7563  ;;  %v7708_v18 = vadd.f32 %v14204_v63, %v7680_v48 }
0x1114   : > { %v10627_v14 = vpop.eup %10626  ;;  %10636 = vrsqrt.f32 %v7610_v34  ;;  %v7611_v8 = vadd.f32 1e-06, %v7587_v40  ;;  %v7588_v7 = vmul.f32 0.03125, %v7564_v20 }
0x1115   : > { %v7653_v59 = vmul.f32 %v10627_v14, %v14147_v54  ;;  %v7724_v36 = vpack.c.bf16 %v7708_v18, %v7707_v58  ;;  %v10158_v18 = vld [vmem:[%s10884_s22] sm:$0xff]   ;;  %v10159_v14 = vld [vmem:[%s10884_s22 + $0x8] sm:$0xff]  }
0x1116   : > { %v10629_v33 = vpop.eup %10628  ;;  %10638 = vrsqrt.f32 %v7611_v8  ;;  %v7612_v32 = vadd.f32 1e-06, %v7588_v7  ;;  %9779 = vmatprep.subr.bf16.mxu1 %v10158_v18  ;;  %v10160_v8 = vld [vmem:[%s10884_s22 + $0x10] sm:$0xff]   ;;  %v10161_v7 = vld [vmem:[%s10884_s22 + $0x18] sm:$0xff]  }
0x1117   : > { %v7654_v15 = vmul.f32 %v10629_v33, %v14151_v10  ;;  %9768 = vmatmul.mubr.msk.bf16.gmra.mrb[164].mxu0 %vm712_vm2, %v7724_v36  ;;  %v7681_v3 = vmul.f32 %v14197_v51, %v7653_v59  ;;  %9780 = vmatpush3.bf16.msra.mxu1 %v10158_v18 }
0x1118   : > { %v10631_v49 = vpop.eup %10630  ;;  %10640 = vrsqrt.f32 %v7612_v32  ;;  %9781 = vmatprep.subr.bf16.mxu1 %v10159_v14 }
0x1119   : > { %v7655_v46 = vmul.f32 %v10631_v49, %v14156_v37  ;;  %v7682_v27 = vmul.f32 %v14197_v51, %v7654_v15  ;;  %v7709_v54 = vadd.f32 %v14204_v63, %v7681_v3 }
0x111a   : > { %v10633_v24 = vpop.eup %10632 }
0x111b   : > { %v7656_v5 = vmul.f32 %v10633_v24, %v14162_v1  ;;  %v7710_v11 = vadd.f32 %v14204_v63, %v7682_v27  ;;  %v7683_v0 = vmul.f32 %v14197_v51, %v7655_v46  ;;  %9782 = vmatpush3.bf16.msra.mxu1 %v10159_v14 }
0x111c   : > { %v10635_v10 = vpop.eup %10634  ;;  %9783 = vmatprep.subr.bf16.mxu1 %v10160_v8 }
0x111d   : > { %v7657_v62 = vmul.f32 %v10635_v10, %v14168_v12  ;;  %v7725_v53 = vpack.c.bf16 %v7710_v11, %v7709_v54  ;;  %v7684_v52 = vmul.f32 %v14197_v51, %v7656_v5  ;;  %v7711_v44 = vadd.f32 %v14204_v63, %v7683_v0 }
0x111e   : > { %v10637_v41 = vpop.eup %10636 }
0x111f   : > { %v7658_v37 = vmul.f32 %v10637_v41, %v14174_v29  ;;  %9771 = vmatprep.mubr.msk.bf16.mxu0 %vm712_vm2, %v7725_v53  ;;  %v7712_v1 = vadd.f32 %v14204_v63, %v7684_v52  ;;  %v7685_v26 = vmul.f32 %v14197_v51, %v7657_v62  ;;  %9784 = vmatpush3.bf16.msra.mxu1 %v10160_v8 }
0x1120   : > { %v10639_v19 = vpop.eup %10638  ;;  %9785 = vmatprep.subr.bf16.mxu1 %v10161_v7 }
0x1121   : > { %v7659_v55 = vmul.f32 %v10639_v19, %v14180_v47  ;;  %v7726_v42 = vpack.c.bf16 %v7712_v1, %v7711_v44  ;;  %v7686_v12 = vmul.f32 %v14197_v51, %v7658_v37  ;;  %v7713_v29 = vadd.f32 %v14204_v63, %v7685_v26 }
0x1122   : > { %v10641_v9 = vpop.eup %10640 }
0x1123   : > { %v7660_v50 = vmul.f32 %v10641_v9, %v14186_v28  ;;  %9772 = vmatmul.mubr.msk.bf16.gmra.mrb[168].mxu0 %vm712_vm2, %v7726_v42  ;;  %v7714_v48 = vadd.f32 %v14204_v63, %v7686_v12  ;;  %v7687_v34 = vmul.f32 %v14197_v51, %v7659_v55  ;;  %9786 = vmatpush3.bf16.msra.mxu1 %v10161_v7 }
0x1125   : > { %v7727_v40 = vpack.c.bf16 %v7714_v48, %v7713_v29  ;;  %v7688_v47 = vmul.f32 %v14197_v51, %v7660_v50  ;;  %v7715_v20 = vadd.f32 %v14204_v63, %v7687_v34  ;;  %v7731_v51 = vsub.s32 6, %v14825_v4 }
0x1127   : > { %9775 = vmatprep.mubr.msk.bf16.mxu0 %vm712_vm2, %v7727_v40  ;;  %v7716_v58 = vadd.f32 %v14204_v63, %v7688_v47  ;;  %v14293_v59 = vrot.slane %v13922_v23, %v7731_v51 }
0x1129   : > { %v7728_v28 = vpack.c.bf16 %v7716_v58, %v7715_v20 }
0x112b   : > { %9776 = vmatmul.mubr.msk.bf16.gmra.mrb[172].mxu0 %vm712_vm2, %v7728_v28 }
0x11cb   : > { %v9757_v63 = vpop.f32.mrb[152].mxu0 }
0x11cc   : > { %v7820_v36 = vadd.f32 %v9757_v63, %v14293_v59  ;;  %v7811_v33 = vpop.f32.mrb[153].mxu0 }
0x11cd   : > { %v7812_v32 = vadd.f32 %v7811_v33, %v14293_v59  ;;  %v9758_v15 = vpop.f32.mrb[154].mxu0 }
0x11ce   : > { %v7932_v3 = vmul.f32 0.044715, %v7820_v36  ;;  %v7823_v49 = vadd.f32 %v9758_v15, %v14293_v59  ;;  %v7814_v46 = vpop.f32.mrb[155].mxu0  ;;  %v7908_v33 = vmul.f32 0.5, %v7820_v36 }
0x11cf   : > { %v7930_v27 = vmul.f32 0.044715, %v7812_v32  ;;  %v7815_v24 = vadd.f32 %v7814_v46, %v14293_v59 }
0x11d0   : > { %v7956_v5 = vmul.f32 %v7932_v3, %v7820_v36  ;;  %v7933_v54 = vmul.f32 0.044715, %v7823_v49 }
0x11d1   : > { %v7954_v11 = vmul.f32 %v7930_v27, %v7812_v32  ;;  %v7931_v0 = vmul.f32 0.044715, %v7815_v24  ;;  %v7906_v27 = vmul.f32 0.5, %v7812_v32 }
0x11d2   : > { %v7980_v23 = vmul.f32 %v7956_v5, %v7820_v36  ;;  %v7957_v10 = vmul.f32 %v7933_v54, %v7823_v49  ;;  %v7909_v5 = vmul.f32 0.5, %v7823_v49 }
0x11d3   : > { %v7978_v62 = vmul.f32 %v7954_v11, %v7812_v32  ;;  %v7955_v53 = vmul.f32 %v7931_v0, %v7815_v24 }
0x11d4   : > { %v8004_v52 = vadd.f32 %v7980_v23, %v7820_v36  ;;  %v7981_v41 = vmul.f32 %v7957_v10, %v7823_v49 }
0x11d5   : > { %v8002_v37 = vadd.f32 %v7978_v62, %v7812_v32  ;;  %v7979_v44 = vmul.f32 %v7955_v53, %v7815_v24 }
0x11d6   : > { %v8028_v1 = vmul.f32 0.7978846, %v8004_v52  ;;  %v8005_v26 = vadd.f32 %v7981_v41, %v7823_v49  ;;  %v9761_v19 = vpop.f32.mrb[156].mxu0  ;;  %v7907_v52 = vmul.f32 0.5, %v7815_v24 }
0x11d7   : > { %v8026_v55 = vmul.f32 0.7978846, %v8002_v37  ;;  %v8003_v42 = vadd.f32 %v7979_v44, %v7815_v24  ;;  %v14300_v12 = vadd.f32 %v9761_v19, %v14293_v59  ;;  %v7827_v9 = vpop.f32.mrb[157].mxu0 }
0x11d8   : > { %10642 = vtanh.f32 %v8028_v1  ;;  %v8029_v50 = vmul.f32 0.7978846, %v8005_v26  ;;  %v14303_v29 = vadd.f32 %v7827_v9, %v14293_v59  ;;  %v9762_v48 = vpop.f32.mrb[158].mxu0 }
0x11d9   : > { %10644 = vtanh.f32 %v8026_v55  ;;  %v8027_v34 = vmul.f32 0.7978846, %v8003_v42  ;;  %v7936_v40 = vmul.f32 0.044715, %v14300_v12  ;;  %v14307_v47 = vadd.f32 %v9762_v48, %v14293_v59  ;;  %v7830_v20 = vpop.f32.mrb[159].mxu0 }
0x11da   : > { %10646 = vtanh.f32 %v8029_v50  ;;  %v7934_v58 = vmul.f32 0.044715, %v14303_v29  ;;  %v14311_v28 = vadd.f32 %v7830_v20, %v14293_v59 }
0x11db   : > { %10648 = vtanh.f32 %v8027_v34  ;;  %v7960_v18 = vmul.f32 %v7936_v40, %v14300_v12  ;;  %v7937_v14 = vmul.f32 0.044715, %v14307_v47 }
0x11dc   : > { %v7958_v8 = vmul.f32 %v7934_v58, %v14303_v29  ;;  %v7935_v7 = vmul.f32 0.044715, %v14311_v28 }
0x11dd   : > { %v7984_v51 = vmul.f32 %v7960_v18, %v14300_v12  ;;  %v7961_v63 = vmul.f32 %v7937_v14, %v14307_v47 }
0x11de   : > { %v7982_v15 = vmul.f32 %v7958_v8, %v14303_v29  ;;  %v7959_v3 = vmul.f32 %v7935_v7, %v14311_v28  ;;  %v9765_v46 = vpop.f32.mrb[160].mxu0 }
0x11df   : > { %v8008_v54 = vadd.f32 %v7984_v51, %v14300_v12  ;;  %v7985_v11 = vmul.f32 %v7961_v63, %v14307_v47  ;;  %v14324_v0 = vadd.f32 %v9765_v46, %v14293_v59  ;;  %v7843_v23 = vpop.f32.mrb[161].mxu0 }
0x11e0   : > { %v8006_v10 = vadd.f32 %v7982_v15, %v14303_v29  ;;  %v7983_v62 = vmul.f32 %v7959_v3, %v14311_v28  ;;  %v14329_v36 = vadd.f32 %v7843_v23, %v14293_v59  ;;  %v9766_v53 = vpop.f32.mrb[162].mxu0 }
0x11e1   : > { %v8032_v41 = vmul.f32 0.7978846, %v8008_v54  ;;  %v8009_v32 = vadd.f32 %v7985_v11, %v14307_v47  ;;  %v7940_v49 = vmul.f32 0.044715, %v14324_v0  ;;  %v14334_v37 = vadd.f32 %v9766_v53, %v14293_v59  ;;  %v7846_v44 = vpop.f32.mrb[163].mxu0 }
0x11e2   : > { %v10643_v1 = vpop.eup %10642  ;;  %v8030_v26 = vmul.f32 0.7978846, %v8006_v10  ;;  %v8007_v19 = vadd.f32 %v7983_v62, %v14311_v28  ;;  %v7938_v55 = vmul.f32 0.044715, %v14329_v36  ;;  %v14339_v42 = vadd.f32 %v7846_v44, %v14293_v59 }
0x11e3   : > { %v10645_v9 = vpop.eup %10644  ;;  %v8076_v24 = vadd.f32 1.0, %v10643_v1  ;;  %10650 = vtanh.f32 %v8032_v41  ;;  %v8033_v50 = vmul.f32 0.7978846, %v8009_v32  ;;  %v7964_v48 = vmul.f32 %v7940_v49, %v14324_v0 }
0x11e4   : > { %v10647_v34 = vpop.eup %10646  ;;  %10652 = vtanh.f32 %v8030_v26  ;;  %v8031_v40 = vmul.f32 0.7978846, %v8007_v19  ;;  %v7962_v20 = vmul.f32 %v7938_v55, %v14329_v36  ;;  %v7941_v58 = vmul.f32 0.044715, %v14334_v37 }
0x11e5   : > { %v10649_v18 = vpop.eup %10648  ;;  %v8100_v14 = vmul.f32 %v8076_v24, %v7908_v33  ;;  %v8077_v8 = vadd.f32 1.0, %v10647_v34  ;;  %10654 = vtanh.f32 %v8033_v50  ;;  %v7988_v7 = vmul.f32 %v7964_v48, %v14324_v0 }
0x11e6   : > { %10656 = vtanh.f32 %v8031_v40  ;;  %v7986_v51 = vmul.f32 %v7962_v20, %v14329_v36  ;;  %v7965_v63 = vmul.f32 %v7941_v58, %v14334_v37  ;;  %v7939_v15 = vmul.f32 0.044715, %v14339_v42 }
0x11e7   : > { %v8101_v3 = vmul.f32 %v8077_v8, %v7909_v5  ;;  %v8012_v46 = vadd.f32 %v7988_v7, %v14324_v0  ;;  %v8074_v54 = vadd.f32 1.0, %v10645_v9  ;;  %v8075_v11 = vadd.f32 1.0, %v10649_v18 }
0x11e8   : > { %v8010_v23 = vadd.f32 %v7986_v51, %v14329_v36  ;;  %v7989_v33 = vmul.f32 %v7965_v63, %v14334_v37  ;;  %v7963_v10 = vmul.f32 %v7939_v15, %v14339_v42  ;;  %v7910_v9 = vmul.f32 0.5, %v14303_v29 }
0x11e9   : > { %v8123_v62 = vpack.c.bf16 %v8101_v3, %v8100_v14  ;;  %v8036_v53 = vmul.f32 0.7978846, %v8012_v46  ;;  %v8098_v41 = vmul.f32 %v8074_v54, %v7906_v27  ;;  %v8099_v32 = vmul.f32 %v8075_v11, %v7907_v52 }
0x11ea   : > { %v8034_v49 = vmul.f32 0.7978846, %v8010_v23  ;;  %v8013_v44 = vadd.f32 %v7989_v33, %v14334_v37  ;;  %v7987_v1 = vmul.f32 %v7963_v10, %v14339_v42  ;;  %v9769_v5 = vpop.f32.mrb[164].mxu0  ;;  %v7912_v58 = vmul.f32 0.5, %v14300_v12 }
0x11eb   : > { %10658 = vtanh.f32 %v8036_v53  ;;  %v14355_v26 = vadd.f32 %v9769_v5, %v14293_v59  ;;  %v7859_v19 = vpop.f32.mrb[165].mxu0  ;;  %v8122_v55 = vpack.c.bf16 %v8099_v32, %v8098_v41  ;;  %v7913_v29 = vmul.f32 0.5, %v14307_v47 }
0x11ec   : > { %10660 = vtanh.f32 %v8034_v49  ;;  %v8037_v24 = vmul.f32 0.7978846, %v8013_v44  ;;  %v8011_v27 = vadd.f32 %v7987_v1, %v14339_v42  ;;  %v7860_v52 = vadd.f32 %v7859_v19, %v14293_v59  ;;  %v9770_v50 = vpop.f32.mrb[166].mxu0 }
0x11ed   : > { %v10651_v48 = vpop.eup %10650  ;;  %v7944_v34 = vmul.f32 0.044715, %v14355_v26  ;;  %v14362_v40 = vadd.f32 %v9770_v50, %v14293_v59  ;;  %9787 = vmatprep.mubr.msk.bf16.mxu1 %vm8162_vm7, %v8122_v55  ;;  %v7862_v20 = vpop.f32.mrb[167].mxu0  ;;  %v7911_v10 = vmul.f32 0.5, %v14311_v28  ;;  %v7914_v50 = vmul.f32 0.5, %v14329_v36 }
0x11ee   : > { %v10653_v18 = vpop.eup %10652  ;;  %10662 = vtanh.f32 %v8037_v24  ;;  %v8035_v14 = vmul.f32 0.7978846, %v8011_v27  ;;  %v7942_v8 = vmul.f32 0.044715, %v7860_v52  ;;  %v14368_v7 = vadd.f32 %v7862_v20, %v14293_v59  ;;  %9788 = vmatmul.mubr.msk.bf16.vlgmr.msra.gmra.mrb[152].mxu1 %vm8162_vm7, %v8123_v62 }
0x11ef   : > { %v10655_v51 = vpop.eup %10654  ;;  %v7968_v63 = vmul.f32 %v7944_v34, %v14355_v26  ;;  %v7945_v15 = vmul.f32 0.044715, %v14362_v40  ;;  %v8078_v3 = vadd.f32 1.0, %v10653_v18  ;;  %v8080_v46 = vadd.f32 1.0, %v10651_v48 }
0x11f0   : > { %v10657_v54 = vpop.eup %10656  ;;  %10664 = vtanh.f32 %v8035_v14  ;;  %v7966_v12 = vmul.f32 %v7942_v8, %v7860_v52  ;;  %v7943_v47 = vmul.f32 0.044715, %v14368_v7  ;;  %v8081_v11 = vadd.f32 1.0, %v10655_v51 }
0x11f1   : > { %v7992_v23 = vmul.f32 %v7968_v63, %v14355_v26  ;;  %v7969_v33 = vmul.f32 %v7945_v15, %v14362_v40  ;;  %v8079_v62 = vadd.f32 1.0, %v10657_v54  ;;  %v8104_v32 = vmul.f32 %v8080_v46, %v7912_v58 }
0x11f2   : > { %v7990_v53 = vmul.f32 %v7966_v12, %v7860_v52  ;;  %v7967_v41 = vmul.f32 %v7943_v47, %v14368_v7  ;;  %v8105_v49 = vmul.f32 %v8081_v11, %v7913_v29  ;;  %v8102_v5 = vmul.f32 %v8078_v3, %v7910_v9 }
0x11f3   : > { %v8016_v44 = vadd.f32 %v7992_v23, %v14355_v26  ;;  %v7993_v1 = vmul.f32 %v7969_v33, %v14362_v40  ;;  %v8103_v19 = vmul.f32 %v8079_v62, %v7911_v10  ;;  %v7915_v58 = vmul.f32 0.5, %v14339_v42 }
0x11f4   : > { %v8014_v55 = vadd.f32 %v7990_v53, %v7860_v52  ;;  %v7991_v24 = vmul.f32 %v7967_v41, %v14368_v7  ;;  %v8125_v27 = vpack.c.bf16 %v8105_v49, %v8104_v32  ;;  %v7916_v9 = vmul.f32 0.5, %v14324_v0 }
0x11f5   : > { %v10659_v48 = vpop.eup %10658  ;;  %v8040_v28 = vmul.f32 0.7978846, %v8016_v44  ;;  %v8017_v34 = vadd.f32 %v7993_v1, %v14362_v40  ;;  %v8124_v20 = vpack.c.bf16 %v8103_v19, %v8102_v5  ;;  %v7917_v51 = vmul.f32 0.5, %v14334_v37 }
0x11f6   : > { %v10661_v29 = vpop.eup %10660  ;;  %v8038_v18 = vmul.f32 0.7978846, %v8014_v55  ;;  %v8015_v14 = vadd.f32 %v7991_v24, %v14368_v7  ;;  %v9773_v8 = vpop.f32.mrb[168].mxu0  ;;  %v14391_v3 = vmul.f32 0.5, %v7860_v52  ;;  %v14394_v42 = vmul.f32 0.5, %v14355_v26 }
0x11f7   : > { %v8041_v63 = vmul.f32 0.7978846, %v8017_v34  ;;  %v14388_v15 = vadd.f32 %v9773_v8, %v14293_v59  ;;  %9791 = vmatprep.mubr.msk.bf16.mxu1 %vm8162_vm7, %v8124_v20  ;;  %v7875_v36 = vpop.f32.mrb[169].mxu0  ;;  %v8084_v37 = vadd.f32 1.0, %v10659_v48  ;;  %v8082_v23 = vadd.f32 1.0, %v10661_v29 }
0x11f8   : > { %v10663_v46 = vpop.eup %10662  ;;  %10666 = vtanh.f32 %v8038_v18  ;;  %v8039_v54 = vmul.f32 0.7978846, %v8015_v14  ;;  %v14397_v12 = vadd.f32 %v7875_v36, %v14293_v59  ;;  %9792 = vmatmul.mubr.msk.bf16.gmra.mrb[156].mxu1 %vm8162_vm7, %v8125_v27  ;;  %v9774_v0 = vpop.f32.mrb[170].mxu0  ;;  %v7919_v29 = vmul.f32 0.5, %v14368_v7 }
0x11f9   : > { %10668 = vtanh.f32 %v8040_v28  ;;  %v7948_v47 = vmul.f32 0.044715, %v14388_v15  ;;  %v14402_v11 = vadd.f32 %v9774_v0, %v14293_v59  ;;  %v7878_v52 = vpop.f32.mrb[171].mxu0  ;;  %v8085_v62 = vadd.f32 1.0, %v10663_v46 }
0x11fa   : > { %v10665_v26 = vpop.eup %10664  ;;  %10670 = vtanh.f32 %v8039_v54  ;;  %v7946_v33 = vmul.f32 0.044715, %v14397_v12  ;;  %v14406_v10 = vadd.f32 %v7878_v52, %v14293_v59  ;;  %v8108_v1 = vmul.f32 %v8084_v37, %v7916_v9 }
0x11fb   : > { %10672 = vtanh.f32 %v8041_v63  ;;  %v7972_v53 = vmul.f32 %v7948_v47, %v14388_v15  ;;  %v7949_v41 = vmul.f32 0.044715, %v14402_v11  ;;  %v8083_v32 = vadd.f32 1.0, %v10665_v26 }
0x11fc   : > { %v7970_v49 = vmul.f32 %v7946_v33, %v14397_v12  ;;  %v7947_v44 = vmul.f32 0.044715, %v14406_v10  ;;  %v8109_v5 = vmul.f32 %v8085_v62, %v7917_v51  ;;  %v8106_v24 = vmul.f32 %v8082_v23, %v7914_v50 }
0x11fd   : > { %v7996_v19 = vmul.f32 %v7972_v53, %v14388_v15  ;;  %v7973_v55 = vmul.f32 %v7949_v41, %v14402_v11  ;;  %v8107_v27 = vmul.f32 %v8083_v32, %v7915_v58  ;;  %v7921_v46 = vmul.f32 0.5, %v14362_v40 }
0x11fe   : > { %v7994_v48 = vmul.f32 %v7970_v49, %v14397_v12  ;;  %v7971_v28 = vmul.f32 %v7947_v44, %v14406_v10  ;;  %v9777_v34 = vpop.f32.mrb[172].mxu0  ;;  %v8127_v20 = vpack.c.bf16 %v8109_v5, %v8108_v1 }
0x11ff   : > { %v8020_v18 = vadd.f32 %v7996_v19, %v14388_v15  ;;  %v7997_v14 = vmul.f32 %v7973_v55, %v14402_v11  ;;  %v14420_v8 = vadd.f32 %v9777_v34, %v14293_v59  ;;  %v8126_v9 = vpack.c.bf16 %v8107_v27, %v8106_v24  ;;  %v7891_v51 = vpop.f32.mrb[173].mxu0 }
0x1200   : > { %v8018_v50 = vadd.f32 %v7994_v48, %v14397_v12  ;;  %v7995_v58 = vmul.f32 %v7971_v28, %v14406_v10  ;;  %v14425_v63 = vadd.f32 %v7891_v51, %v14293_v59  ;;  %v9778_v36 = vpop.f32.mrb[174].mxu0 }
0x1201   : > { %v8044_v7 = vmul.f32 0.7978846, %v8020_v18  ;;  %v8021_v54 = vadd.f32 %v7997_v14, %v14402_v11  ;;  %v7952_v0 = vmul.f32 0.044715, %v14420_v8  ;;  %9795 = vmatprep.mubr.msk.bf16.mxu1 %vm8162_vm7, %v8126_v9  ;;  %v14432_v37 = vadd.f32 %v9778_v36, %v14293_v59  ;;  %v7894_v47 = vpop.f32.mrb[175].mxu0 }
0x1202   : > { %v10667_v52 = vpop.eup %10666  ;;  %v8042_v23 = vmul.f32 0.7978846, %v8018_v50  ;;  %v8019_v26 = vadd.f32 %v7995_v58, %v14406_v10  ;;  %v7950_v33 = vmul.f32 0.044715, %v14425_v63  ;;  %9796 = vmatmul.mubr.msk.bf16.gmra.mrb[160].mxu1 %vm8162_vm7, %v8127_v20  ;;  %v14438_v40 = vadd.f32 %v7894_v47, %v14293_v59 }
0x1203   : > { %v10669_v62 = vpop.eup %10668  ;;  %10674 = vtanh.f32 %v8044_v7  ;;  %v8045_v53 = vmul.f32 0.7978846, %v8021_v54  ;;  %v7976_v41 = vmul.f32 %v7952_v0, %v14420_v8  ;;  %v7953_v32 = vmul.f32 0.044715, %v14432_v37 }
0x1204   : > { %v10671_v49 = vpop.eup %10670  ;;  %10676 = vtanh.f32 %v8042_v23  ;;  %v8043_v44 = vmul.f32 0.7978846, %v8019_v26  ;;  %v7974_v1 = vmul.f32 %v7950_v33, %v14425_v63  ;;  %v7951_v5 = vmul.f32 0.044715, %v14438_v40 }
0x1205   : > { %v10673_v19 = vpop.eup %10672  ;;  %10678 = vtanh.f32 %v8045_v53  ;;  %v8000_v55 = vmul.f32 %v7976_v41, %v14420_v8  ;;  %v7977_v59 = vmul.f32 %v7953_v32, %v14432_v37  ;;  %v8086_v24 = vadd.f32 1.0, %v10667_v52 }
0x1206   : > { %10680 = vtanh.f32 %v8043_v44  ;;  %v7998_v27 = vmul.f32 %v7974_v1, %v14425_v63  ;;  %v7975_v48 = vmul.f32 %v7951_v5, %v14438_v40  ;;  %v8087_v28 = vadd.f32 1.0, %v10671_v49 }
0x1207   : > { %v8024_v34 = vadd.f32 %v8000_v55, %v14420_v8  ;;  %v8001_v20 = vmul.f32 %v7977_v59, %v14432_v37  ;;  %v8110_v18 = vmul.f32 %v8086_v24, %v14391_v3  ;;  %v8088_v14 = vadd.f32 1.0, %v10669_v62 }
0x1208   : > { %v8022_v9 = vadd.f32 %v7998_v27, %v14425_v63  ;;  %v7999_v51 = vmul.f32 %v7975_v48, %v14438_v40  ;;  %v8111_v50 = vmul.f32 %v8087_v28, %v7919_v29  ;;  %v8089_v58 = vadd.f32 1.0, %v10673_v19 }
0x1209   : > { %v8048_v36 = vmul.f32 0.7978846, %v8024_v34  ;;  %v8025_v7 = vadd.f32 %v8001_v20, %v14432_v37  ;;  %v8112_v54 = vmul.f32 %v8088_v14, %v14394_v42  ;;  %v7924_v49 = vmul.f32 0.5, %v14388_v15 }
0x120a   : > { %v8046_v0 = vmul.f32 0.7978846, %v8022_v9  ;;  %v8023_v47 = vadd.f32 %v7999_v51, %v14438_v40  ;;  %v8128_v52 = vpack.c.bf16 %v8111_v50, %v8110_v18  ;;  %v8113_v23 = vmul.f32 %v8089_v58, %v7921_v46 }
0x120b   : > { %10682 = vtanh.f32 %v8048_v36  ;;  %v8049_v26 = vmul.f32 0.7978846, %v8025_v7  ;;  %v7925_v46 = vmul.f32 0.5, %v14402_v11  ;;  %v7922_v1 = vmul.f32 0.5, %v14397_v12 }
0x120c   : > { %10684 = vtanh.f32 %v8046_v0  ;;  %v8047_v3 = vmul.f32 0.7978846, %v8023_v47  ;;  %9799 = vmatprep.mubr.msk.bf16.mxu1 %vm8162_vm7, %v8128_v52  ;;  %v8129_v33 = vpack.c.bf16 %v8113_v23, %v8112_v54  ;;  %v7923_v5 = vmul.f32 0.5, %v14406_v10  ;;  %v10726_v23 = vld [vmem:[%s10889_s25] sm:$0xff] }
0x120d   : > { %v10675_v62 = vpop.eup %10674  ;;  %10686 = vtanh.f32 %v8049_v26  ;;  %v7928_v12 = vmul.f32 0.5, %v14420_v8  ;;  %v7929_v10 = vmul.f32 0.5, %v14432_v37  ;;  %v7926_v51 = vmul.f32 0.5, %v14425_v63 }
0x120e   : > { %v10677_v29 = vpop.eup %10676  ;;  %10688 = vtanh.f32 %v8047_v3  ;;  %9800 = vmatmul.mubr.msk.bf16.gmra.mrb[164].mxu1 %vm8162_vm7, %v8129_v33  ;;  %v8092_v53 = vadd.f32 1.0, %v10675_v62  ;;  %v7927_v50 = vmul.f32 0.5, %v14438_v40  ;;  %v8136_v8 = vsub.s32 7, %v14825_v4 }
0x120f   : > { %v10679_v42 = vpop.eup %10678  ;;  %v8090_v41 = vadd.f32 1.0, %v10677_v29 }
0x1210   : > { %v10681_v32 = vpop.eup %10680  ;;  %v8093_v44 = vadd.f32 1.0, %v10679_v42  ;;  %v8116_v55 = vmul.f32 %v8092_v53, %v7924_v49  ;;  %v14472_v37 = vrot.slane %v10726_v23, %v8136_v8  ;;  %v14831_v23 = vld [vmem:[#allocation38_spill] sm:$0xff] }
0x1211   : > { %v8091_v19 = vadd.f32 1.0, %v10681_v32  ;;  %v8114_v24 = vmul.f32 %v8090_v41, %v7922_v1 }
0x1212   : > { %v8117_v59 = vmul.f32 %v8093_v44, %v7925_v46 }
0x1213   : > { %v8115_v27 = vmul.f32 %v8091_v19, %v7923_v5 }
0x1214   : > { %v8131_v48 = vpack.c.bf16 %v8117_v59, %v8116_v55 }
0x1215   : > { %v10683_v28 = vpop.eup %10682  ;;  %v8130_v34 = vpack.c.bf16 %v8115_v27, %v8114_v24 }
0x1216   : > { %v10685_v20 = vpop.eup %10684  ;;  %v8096_v18 = vadd.f32 1.0, %v10683_v28 }
0x1217   : > { %v10687_v14 = vpop.eup %10686  ;;  %9803 = vmatprep.mubr.msk.bf16.mxu1 %vm8162_vm7, %v8130_v34  ;;  %v8094_v15 = vadd.f32 1.0, %v10685_v20 }
0x1218   : > { %v10689_v11 = vpop.eup %10688  ;;  %9804 = vmatmul.mubr.msk.bf16.gmra.mrb[168].mxu1 %vm8162_vm7, %v8131_v48  ;;  %v8097_v9 = vadd.f32 1.0, %v10687_v14  ;;  %v8120_v36 = vmul.f32 %v8096_v18, %v7928_v12 }
0x1219   : > { %v8095_v58 = vadd.f32 1.0, %v10689_v11  ;;  %v8118_v54 = vmul.f32 %v8094_v15, %v7926_v51 }
0x121a   : > { %v8121_v7 = vmul.f32 %v8097_v9, %v7929_v10 }
0x121b   : > { %v8119_v0 = vmul.f32 %v8095_v58, %v7927_v50 }
0x121c   : > { %v8133_v47 = vpack.c.bf16 %v8121_v7, %v8120_v36 }
0x121d   : > { %v8132_v52 = vpack.c.bf16 %v8119_v0, %v8118_v54 }
0x121f   : > { %9807 = vmatprep.mubr.msk.bf16.mxu1 %vm8162_vm7, %v8132_v52 }
0x1220   : > { %9808 = vmatmul.mubr.msk.bf16.gmra.mrb[172].mxu1 %vm8162_vm7, %v8133_v47 }
0x12c1   : > { %v9789_v26 = vpop.f32.mrb[152].mxu1 }
0x12c2   : > { %v8242_v63 = vadd.f32 %v9789_v26, %v14472_v37  ;;  %v8233_v40 = vpop.f32.mrb[153].mxu1 }
0x12c3   : > { %v8234_v3 = vadd.f32 %v8233_v40, %v14472_v37  ;;  %v9790_v33 = vpop.f32.mrb[154].mxu1 }
0x12c4   : > { %v8330_v62 = vadd.f32 %v8242_v63, %v13933_v56  ;;  %v8245_v29 = vadd.f32 %v9790_v33, %v14472_v37  ;;  %v8236_v53 = vpop.f32.mrb[155].mxu1  ;;  %v14832_v33 = vld [vmem:[#allocation43_spill] sm:$0xff] }
0x12c5   : > { %v14479_v42 = vadd.f32 %v8234_v3, %v13930_v30  ;;  %v8237_v4 = vadd.f32 %v8236_v53, %v14472_v37  ;;  %v14833_v53 = vld [vmem:[#allocation44_spill] sm:$0xff] }
0x12c6   : > { %8354 = vst.msk [vmem:[#allocation2 + $0x10] sm:$0xff] %vm712_vm2, %v8330_v62  ;;  %v14484_v41 = vadd.f32 %v8245_v29, %v13943_v35 }
0x12c7   : > { %8352 = vst.msk [vmem:[#allocation2] sm:$0xff] %vm712_vm2, %v14479_v42  ;;  %v8329_v32 = vadd.f32 %v8237_v4, %v13936_v22 }
0x12c8   : > { %8355 = vst.msk [vmem:[#allocation2 + $0x18] sm:$0xff] %vm712_vm2, %v14484_v41 }
0x12c9   : > { %8353 = vst.msk [vmem:[#allocation2 + $0x8] sm:$0xff] %vm712_vm2, %v8329_v32 }
0x12cb   : > { %v9793_v56 = vpop.f32.mrb[156].mxu1 }
0x12cc   : > { %v8258_v30 = vadd.f32 %v9793_v56, %v14472_v37  ;;  %v8249_v49 = vpop.f32.mrb[157].mxu1  ;;  %v14834_v56 = vld [vmem:[#allocation37_spill] sm:$0xff] }
0x12cd   : > { %v8250_v46 = vadd.f32 %v8249_v49, %v14472_v37  ;;  %v9794_v44 = vpop.f32.mrb[158].mxu1  ;;  %v14835_v49 = vld [vmem:[#allocation35_spill] sm:$0xff] }
0x12ce   : > { %v14495_v35 = vadd.f32 %v8258_v30, %v13953_v60  ;;  %v8261_v1 = vadd.f32 %v9794_v44, %v14472_v37  ;;  %v8252_v5 = vpop.f32.mrb[159].mxu1  ;;  %v8381_v44 = vrot.slane (!%p8811_p6), %v14484_v41, 7 }
0x12cf   : > { %v8332_v22 = vadd.f32 %v8250_v46, %v13950_v61  ;;  %v8253_v19 = vadd.f32 %v8252_v5, %v14472_v37 }
0x12d0   : > { %8358 = vst.msk [vmem:[#allocation2 + $0x30] sm:$0xff] %vm712_vm2, %v14495_v35  ;;  %v8335_v55 = vadd.f32 %v8261_v1, %v13961_v21  ;;  %v8384_v1 = vrot.slane (!%p8811_p6), %v14495_v35, 6 }
0x12d1   : > { %8356 = vst.msk [vmem:[#allocation2 + $0x20] sm:$0xff] %vm712_vm2, %v8332_v22  ;;  %v8333_v59 = vadd.f32 %v8253_v19, %v13956_v6  ;;  %v8402_v19 = vsel (!%p8811_p6), %vm8401_vm8, %v14479_v42, %v8381_v44 }
0x12d2   : > { %8359 = vst.msk [vmem:[#allocation2 + $0x38] sm:$0xff] %vm712_vm2, %v8335_v55 }
0x12d3   : > { %8357 = vst.msk [vmem:[#allocation2 + $0x28] sm:$0xff] %vm712_vm2, %v8333_v59  ;;  %v8404_v59 = vsel (!%p8811_p6), %vm8403_vm9, %v8402_v19, %v8384_v1 }
0x12d5   : > { %v9797_v60 = vpop.f32.mrb[160].mxu1 }
0x12d6   : > { %v8274_v24 = vadd.f32 %v9797_v60, %v14472_v37  ;;  %v8265_v27 = vpop.f32.mrb[161].mxu1 }
0x12d7   : > { %v8266_v61 = vadd.f32 %v8265_v27, %v14472_v37  ;;  %v9798_v48 = vpop.f32.mrb[162].mxu1 }
0x12d8   : > { %v8338_v28 = vadd.f32 %v8274_v24, %v13973_v17  ;;  %v8277_v34 = vadd.f32 %v9798_v48, %v14472_v37  ;;  %v8268_v21 = vpop.f32.mrb[163].mxu1 }
0x12d9   : > { %v8336_v20 = vadd.f32 %v8266_v61, %v13968_v39  ;;  %v8269_v6 = vadd.f32 %v8268_v21, %v14472_v37 }
0x12da   : > { %8362 = vst.msk [vmem:[#allocation2 + $0x50] sm:$0xff] %vm712_vm2, %v8338_v28  ;;  %v8339_v18 = vadd.f32 %v8277_v34, %v13981_v57 }
0x12db   : > { %8360 = vst.msk [vmem:[#allocation2 + $0x40] sm:$0xff] %vm712_vm2, %v8336_v20  ;;  %v14517_v14 = vadd.f32 %v8269_v6, %v13976_v25  ;;  %v10727_v6 = vld [vmem:[%s14626_s7] sm:$0xff] (!%p8811_p6)  }
0x12dc   : > { %8363 = vst.msk [vmem:[#allocation2 + $0x58] sm:$0xff] %vm712_vm2, %v8339_v18  ;;  %v10800_v18 = vmov (!%p8811_p6), 0.0  }
0x12dd   : > { %8361 = vst.msk [vmem:[#allocation2 + $0x48] sm:$0xff] %vm712_vm2, %v14517_v14  ;;  %9811 = vmatprep.subr.bf16.mxu0 (!%p8811_p6), %v10800_v18  ;;  %9815 = vmatprep.mubr.msk.bf16.mxu0 (!%p8811_p6), %vm10801_vm14, %v10800_v18 }
0x12de   : > { %9812 = vmatpush3.bf16.msra.mxu0 (!%p8811_p6), %v10727_v6 }
0x12df   : > { %9813 = vmatprep.subr.bf16.mxu0 (!%p8811_p6), %v10800_v18 }
0x12e1   : > { %v9801_v17 = vpop.f32.mrb[164].mxu1 }
0x12e2   : > { %v8290_v15 = vadd.f32 %v9801_v17, %v14472_v37  ;;  %v8281_v39 = vpop.f32.mrb[165].mxu1 }
0x12e3   : > { %v8282_v11 = vadd.f32 %v8281_v39, %v14472_v37  ;;  %v9802_v12 = vpop.f32.mrb[166].mxu1 }
0x12e4   : > { %v8342_v10 = vadd.f32 %v8290_v15, %v13993_v38  ;;  %v8293_v57 = vadd.f32 %v9802_v12, %v14472_v37  ;;  %v8284_v9 = vpop.f32.mrb[167].mxu1  ;;  %v14836_v12 = vld [vmem:[#allocation6_spill] sm:$0xff] (!%p8811_p6) }
0x12e5   : > { %v8340_v25 = vadd.f32 %v8282_v11, %v13990_v16  ;;  %v8285_v51 = vadd.f32 %v8284_v9, %v14472_v37  ;;  %v8414_v11 = vld [vmem:[%s14627_s8] sm:$0xff] (!%p8811_p6) }
0x12e6   : > { %8366 = vst.msk [vmem:[#allocation2 + $0x70] sm:$0xff] %vm712_vm2, %v8342_v10  ;;  %v8343_v50 = vadd.f32 %v8293_v57, %v14001_v45  ;;  %v14837_v10 = vsub.s32 (!%p8811_p6), 0, %v14836_v12 }
0x12e7   : > { %8364 = vst.msk [vmem:[#allocation2 + $0x60] sm:$0xff] %vm712_vm2, %v8340_v25  ;;  %v8341_v58 = vadd.f32 %v8285_v51, %v13996_v13  ;;  %v8390_v5 = vrot.slane (!%p8811_p6), %v8340_v25, 4  ;;  %v14838_v51 = vsub.s32 (!%p8811_p6), 1, %v14836_v12 }
0x12e8   : > { %8367 = vst.msk [vmem:[#allocation2 + $0x78] sm:$0xff] %vm712_vm2, %v8343_v50  ;;  %v8393_v22 = vrot.slane (!%p8811_p6), %v8343_v50, 3  ;;  %v8431_v57 = vrot.slane (!%p8811_p6), %v8414_v11, %v14837_v10 }
0x12e9   : > { %8365 = vst.msk [vmem:[#allocation2 + $0x68] sm:$0xff] %vm712_vm2, %v8341_v58  ;;  %v8436_v50 = vrot.slane (!%p8811_p6), %v8414_v11, %v14838_v51 }
0x12eb   : > { %v9805_v38 = vpop.f32.mrb[168].mxu1 }
0x12ec   : > { %v8306_v36 = vadd.f32 %v9805_v38, %v14472_v37  ;;  %v8297_v7 = vpop.f32.mrb[169].mxu1 }
0x12ed   : > { %v8298_v16 = vadd.f32 %v8297_v7, %v14472_v37  ;;  %v9806_v54 = vpop.f32.mrb[170].mxu1  ;;  %v14839_v7 = vsub.s32 (!%p8811_p6), 2, %v14836_v12 }
0x12ee   : > { %v8346_v0 = vadd.f32 %v8306_v36, %v14013_v31  ;;  %v8309_v47 = vadd.f32 %v9806_v54, %v14472_v37  ;;  %v8300_v45 = vpop.f32.mrb[171].mxu1 }
0x12ef   : > { %v8344_v52 = vadd.f32 %v8298_v16, %v14010_v2  ;;  %v8301_v13 = vadd.f32 %v8300_v45, %v14472_v37  ;;  %v8446_v16 = vrot.slane (!%p8811_p6), %v8414_v11, %v14839_v7 }
0x12f0   : > { %8370 = vst.msk [vmem:[#allocation2 + $0x90] sm:$0xff] %vm712_vm2, %v8346_v0  ;;  %v8347_v8 = vadd.f32 %v8309_v47, %v14021_v43  ;;  %v8396_v55 = vrot.slane (!%p8811_p6), %v8346_v0, 2 }
0x12f1   : > { %8368 = vst.msk [vmem:[#allocation2 + $0x80] sm:$0xff] %vm712_vm2, %v8344_v52  ;;  %v8345_v26 = vadd.f32 %v8301_v13, %v14831_v23 }
0x12f2   : > { %8371 = vst.msk [vmem:[#allocation2 + $0x98] sm:$0xff] %vm712_vm2, %v8347_v8 }
0x12f3   : > { %8369 = vst.msk [vmem:[#allocation2 + $0x88] sm:$0xff] %vm712_vm2, %v8345_v26  ;;  %v9809_v31 = vpop.f32.mrb[172].mxu1 }
0x12f4   : > { %v8322_v63 = vadd.f32 %v9809_v31, %v14472_v37  ;;  %v8313_v40 = vpop.f32.mrb[173].mxu1 }
0x12f5   : > { %v8314_v2 = vadd.f32 %v8313_v40, %v14472_v37  ;;  %v9810_v3 = vpop.f32.mrb[174].mxu1  ;;  %8379 = sbr.rel (%p8811_p6) target bundleno = 5392 (0x1510), region = 64 }
0x12f6   : > { %v8350_v62 = vadd.f32 %v8322_v63, %v14832_v33  ;;  %v8325_v29 = vadd.f32 %v9810_v3, %v14472_v37  ;;  %v8316_v43 = vpop.f32.mrb[175].mxu1 }
0x12f7   : > { %v8348_v4 = vadd.f32 %v8314_v2, %v14833_v53  ;;  %v8317_v32 = vadd.f32 %v8316_v43, %v14472_v37  ;;  %v8387_v37 = vrot.slane (!%p8811_p6), %v14517_v14, 5  ;;  %v10728_v14 = vld [vmem:[%s14626_s7 + $0x8] sm:$0xff] (!%p8811_p6)  }
0x12f8   : > { %8374 = vst.msk [vmem:[#allocation2 + $0xb0] sm:$0xff] %vm712_vm2, %v8350_v62  ;;  %v8351_v30 = vadd.f32 %v8325_v29, %v14834_v56  ;;  %9814 = vmatpush3.bf16.msra.mxu0 (!%p8811_p6), %v10728_v14 }
0x12f9   : > { %8372 = vst.msk [vmem:[#allocation2 + $0xa0] sm:$0xff] %vm712_vm2, %v8348_v4  ;;  %v8349_v46 = vadd.f32 %v8317_v32, %v14835_v49  ;;  %v8406_v24 = vsel (!%p8811_p6), %vm8405_vm10, %v8404_v59, %v8387_v37 }
0x12fa   : > { %8375 = vst.msk [vmem:[#allocation2 + $0xb8] sm:$0xff] %vm712_vm2, %v8351_v30  ;;  %v8407_v27 = vsel (!%p8811_p6), %vm2163_vm4, %v8406_v24, %v8390_v5 }
0x12fb   : > { %8373 = vst.msk [vmem:[#allocation2 + $0xa8] sm:$0xff] %vm712_vm2, %v8349_v46  ;;  %v8399_v60 = vrot.slane (!%p8811_p6), %v8349_v46, 1  ;;  %v8409_v41 = vsel (!%p8811_p6), %vm8408_vm11, %v8407_v27, %v8393_v22 }
0x12fc   : > { %v8411_v35 = vsel %vm8410_vm12, %v8409_v41, %v8396_v55 }
0x12fd   : > { %v8413_v61 = vsel %vm8412_vm13, %v8411_v35, %v8399_v60 }
0x12fe   : > { %v8415_v48 = vsel %vm712_vm2, %v8413_v61, 0.0 }
0x12ff   : > { %8416 = vadd.xlane.f32.xlu0 %v8415_v48 }
0x138c   : > { %v8417_v28 = vpop.xlane.xlu0 %8416 }
0x138d   : > { %v8418_v34 = vmul.f32 0.03125, %v8417_v28 }
0x138f   : > { %v8419_v42 = vsub.f32 %v8413_v61, %v8418_v34 }
0x1391   : > { %v8420_v21 = vmul.f32 %v8419_v42, %v8419_v42 }
0x1393   : > { %v8421_v20 = vsel %vm712_vm2, %v8420_v21, 0.0 }
0x1394   : > { %8422 = vadd.xlane.f32.xlu0 %v8421_v20 }
0x1421   : > { %v8423_v17 = vpop.xlane.xlu0 %8422 }
0x1422   : > { %v8424_v15 = vmul.f32 0.03125, %v8423_v17 }
0x1424   : > { %v8425_v39 = vadd.f32 1e-06, %v8424_v15 }
0x1426   : > { %10729 = vrsqrt.f32 %v8425_v39 }
0x1430   : > { %v10730_v9 = vpop.eup %10729 }
0x1431   : > { %v8427_v25 = vmul.f32 %v10730_v9, %v8419_v42 }
0x1433   : > { %v8432_v58 = vmul.f32 %v8431_v57, %v8427_v25 }
0x1435   : > { %v8437_v38 = vadd.f32 %v8436_v50, %v8432_v58 }
0x1437   : > { %v8438_v36 = vpack.c.bf16 %v8437_v38, %v8437_v38 }
0x1439   : > { %9816 = vmatmul.mubr.msk.bf16.vlgmr.msra.gmra.mrb[0].mxu0 %vm712_vm2, %v8438_v36 }
0x150c   : > { %v8496_v54 = vpop.f32.mrb[0].mxu0 }
0x150d   : > { %v8497_v0 = vadd.f32 %v8496_v54, %v8446_v16  ;;  %v9817_v47 = vpop.f32.mrb[1].mxu0 }
0x150e   : > { %v8499_v45 = vpop.f32.mrb[2].mxu0 }
0x150f   : > { %8502 = vst [vmem:[#allocation3] sm:$0xff] %v8497_v0  ;;  %v9818_v52 = vpop.f32.mrb[3].mxu0 }
0x1510 PF: > { %p14584_p7 = scmp.eq.s32.totalorder %s8601_s12, 1  ;;  %s10802_s27 = smov [#allocation3]  }
0x1511   : > { %s8512_s28 = sshll.u32 %s10802_s27, 4  ;;  %s8513_s28 = int_to_ptr.vmem [resolvable:$true] %s8512_s28 }
0x1512   : > { %s10731_s29 = scalar_lea.vmem %s8513_s28, 128  ;;  %p10738_p11 = scmp.lt.s32.totalorder %s8513_s28, %s8513_s28 }
0x1513   : > { %p10732_p8 = scmp.ne.s32.totalorder %s8513_s28, %s10731_s29  ;;  %p10739_p12 = scmp.lt.s32.totalorder %s10731_s29, %s10731_s29 }
0x1515   : > { %p10733_p9 = pnand %p10732_p8, %p14584_p7  ;;  %p10740_p13 = por %p10739_p12, %p10738_p11 }
0x1517   : > { %p10734_p10 = pneg %p10733_p9 }
0x1519   : > { %p10741_p0 = pnand %p10740_p13, %p10734_p10 }
0x151b   : > { %10744 = shalt.err (!%p10741_p0)
}
0x151c   : > { %s10745_s12 = scalar_lea.hbm %s14628_s9, 128 }
0x151d   : > { %p10746_p1 = scmp.ne.s32.totalorder %s14628_s9, %s10745_s12  ;;  %p10751_p4 = scmp.lt.u32.totalorder %s10745_s12, %s14628_s9 }
0x151f   : > { %p10747_p2 = pnand %p10746_p1, %p14584_p7 }
0x1521   : > { %p10748_p3 = pneg %p10747_p2 }
0x1523   : > { %p10753_p5 = pnand %p10751_p4, %p10748_p3 }
0x1525   : > { %10756 = shalt.err (!%p10753_p5)
}
0x1526   : > { %9922 = dma.vmem_to_hbm [thread:$0]  (%p14584_p7), %s8513_s28, 128, %s14628_s9, [#allocation4]  }
0x1527   : > { %10770 = dma.done.wait (%p14584_p7), [#allocation4], 128  }
0x1528   : > { %10772 = vsyncadd (%p14584_p7), [#allocation4], 4294967168 }
0x1529 PF: > { %s20_s11 = sadd.s32 1, %s10783_s11   ;;  %s14841_s30 = smov %s10779_s10 }
0x152a   : > { %p17_p6 = scmp.ge.s32.totalorder %s20_s11, 4   ;;  %s14842_s10 = smov %s14844_s13 }
0x152c   :  { %19 = sbr.rel (!%p17_p6) target bundleno = 2 (0x2), region = 101 }
0x1533   :  { %8525 = vsyncpa [#allocation4], 1 }
0x1534   :  { %8527 = vsyncpa [#allocation4 + $0x1], 1 }

</bundles_post_ra>
